<compile_context>
chip_gen: v6e
topology: v6e:2x2x1
jax: 0.10.0
libtpu: 0.0.40
codegen_flags: <defaults>
</compile_context>

<pallas_src>
import functools

import jax
import jax.numpy as jnp
import numpy as np
from jax.experimental import pallas as pl
from jax.experimental.pallas import tpu as pltpu


_DILATIONS = (1, 2, 4, 8, 16)   # dilation_depth = 5, kernel_size = 3
_VMEM_LIMIT = 48 * 1024 * 1024  # > v5e 16MiB default, < v7x 64MiB physical


def _pick_tile_m(M, cap=1024):
    """Largest power-of-two row tile (<= cap) that divides M, else M."""
    for cand in (1024, 512, 256, 128, 64, 32, 16, 8):
        if cand <= cap and cand <= M and M % cand == 0:
            return cand
    return M


def _pick_batch_tile(B, T, target_rows=2048):
    """Batch tile for (T, tb, C) blocks.

    The second-to-last block dim must be a multiple of 8 or the full batch
    (TPU (8,128) block constraint).  Prefer >= 2 grid steps (v7x megacore)
    while keeping T*tb near target_rows.
    """
    cands = [tb for tb in range(8, B, 8) if B % tb == 0]
    if not cands:
        # TODO(synk): batches not divisible into multiples of 8 run as one
        # grid step; pad the batch on the wrapper side if this matters.
        return B
    ok = [tb for tb in cands if T * tb <= target_rows]
    return max(ok) if ok else min(cands)


# ----------------------------------------------------------------------------
# Kernel 1: fused AnDi_Wave (conv1d_0 + gated dilations + shared 1x1 + res)
# ----------------------------------------------------------------------------
def _andi_wave_kernel(x_ref, w0_ref, b0_ref, wg_ref, bg_ref, w1_ref, b1_ref,
                      o_ref, x0buf, xbuf):
    T, tb, E = x_ref.shape
    F = o_ref.shape[-1]
    M = T * tb
    D = wg_ref.shape[0]
    maxpad = (xbuf.shape[0] - T) // 2

    # ---- conv1d_0 (k=3, pad=1): zero halo rows only, 3 accumulating matmuls
    x0buf[0] = jnp.zeros((tb, E), jnp.float32)
    x0buf[T + 1] = jnp.zeros((tb, E), jnp.float32)
    x0buf[1:T + 1] = x_ref[...]
    x = b0_ref[...].astype(jnp.float32)                       # (1, F) -> bcast
    for k in range(3):
        tap = x0buf[k:k + T].reshape(M, E).astype(jnp.bfloat16)
        x = x + jnp.dot(tap, w0_ref[k], preferred_element_type=jnp.float32)

    # ---- dilation pad buffer: zero halos once, interior rewritten each step
    xbuf[0:maxpad] = jnp.zeros((maxpad, tb, F), jnp.float32)
    xbuf[maxpad + T:maxpad + T + maxpad] = jnp.zeros((maxpad, tb, F),
                                                     jnp.float32)

    w1 = w1_ref[...]
    b1 = b1_ref[...]

    def dstep(i, carry):
        xc, rc = carry                                        # (M, F) f32 each
        xbuf[maxpad:maxpad + T] = xc.reshape(T, tb, F)
        d = jax.lax.shift_left(jnp.int32(1), i)               # dilation = 2**i
        wgi = wg_ref[i]                                       # (3, F, 2F) bf16
        g = bg_ref[i].astype(jnp.float32)                     # (1, 2F)
        # 3 accumulating tap matmuls ([tanh | sigm] on the output axis).
        for k in range(3):
            start = maxpad - d + k * d
            tap = xbuf[pl.ds(start, T)].reshape(M, F).astype(jnp.bfloat16)
            g = g + jnp.dot(tap, wgi[k], preferred_element_type=jnp.float32)
        gated = jnp.tanh(g[:, :F]) * jax.nn.sigmoid(g[:, F:])
        xn = jnp.dot(gated.astype(jnp.bfloat16), w1,
                     preferred_element_type=jnp.float32) + b1
        return xn, rc + xn

    _, res = jax.lax.fori_loop(0, D, dstep, (x, x))

    # BatchNorm (eval) is folded into the LSTM input projection downstream.
    o_ref[...] = res.reshape(T, tb, F).astype(o_ref.dtype)


def andi_wave(p, xt):
    """AnDi_Wave (pre-pool output).  xt: (T, B, E) f32 -> (T, B, F) bf16."""
    T, B, E = xt.shape
    F = p["w1"].shape[0]
    D = len(_DILATIONS)
    maxpad = max(_DILATIONS)
    tb = _pick_batch_tile(B, T)
    return pl.pallas_call(
        _andi_wave_kernel,
        out_shape=jax.ShapeDtypeStruct((T, B, F), jnp.bfloat16),
        grid=(B // tb,),
        in_specs=[
            pl.BlockSpec((T, tb, E), lambda b: (0, b, 0)),
            pl.BlockSpec((3, E, F), lambda b: (0, 0, 0)),
            pl.BlockSpec((1, F), lambda b: (0, 0)),
            pl.BlockSpec((D, 3, F, 2 * F), lambda b: (0, 0, 0, 0)),
            pl.BlockSpec((D, 1, 2 * F), lambda b: (0, 0, 0)),
            pl.BlockSpec((F, F), lambda b: (0, 0)),
            pl.BlockSpec((1, F), lambda b: (0, 0)),
        ],
        out_specs=pl.BlockSpec((T, tb, F), lambda b: (0, b, 0)),
        scratch_shapes=[
            pltpu.VMEM((T + 2, tb, E), jnp.float32),            # conv1d_0 pad
            pltpu.VMEM((T + 2 * maxpad, tb, F), jnp.float32),   # dilation pad
        ],
        compiler_params=pltpu.CompilerParams(
            dimension_semantics=("parallel",),
            vmem_limit_bytes=_VMEM_LIMIT),
    )(xt, p["w0"], p["b0"].reshape(1, F), p["wg"], p["bg"],
      p["w1"], p["b1"].reshape(1, F))


# ----------------------------------------------------------------------------
# Kernel 2: fused bidirectional LSTM (both directions, one recurrence loop)
# ----------------------------------------------------------------------------
def _bilstm_kernel(xc_ref, wih_ref, b_ref, whhf_ref, whhr_ref, o_ref, gx_sc,
                   *, unroll):
    T, tb, Hin = xc_ref.shape
    H = whhf_ref.shape[0]
    G = 4 * H

    # Input projection for BOTH directions at once: (T*tb, Hin) @ (Hin, 8H).
    xf = xc_ref[...].reshape(T * tb, Hin)                     # already bf16
    gx = jnp.dot(xf, wih_ref[...], preferred_element_type=jnp.float32)
    gx = gx + b_ref[...]
    gx_sc[...] = gx.reshape(T, tb, 2 * G).astype(gx_sc.dtype)  # bf16 scratch

    whh_f = whhf_ref[...]                                     # (H, 4H) bf16
    whh_r = whhr_ref[...]

    def step(t, carry):
        h_f, c_f, h_r, c_r = carry
        rec_f = jnp.dot(h_f.astype(jnp.bfloat16), whh_f,
                        preferred_element_type=jnp.float32)
        rec_r = jnp.dot(h_r.astype(jnp.bfloat16), whh_r,
                        preferred_element_type=jnp.float32)
        gf = gx_sc[t][:, :G].astype(jnp.float32) + rec_f        # fwd, time t
        gr = gx_sc[T - 1 - t][:, G:].astype(jnp.float32) + rec_r  # rev, T-1-t

        # PyTorch gate order: i, f, g, o.
        i_f = jax.nn.sigmoid(gf[:, 0:H])
        f_f = jax.nn.sigmoid(gf[:, H:2 * H])
        g_f = jnp.tanh(gf[:, 2 * H:3 * H])
        o_f = jax.nn.sigmoid(gf[:, 3 * H:4 * H])
        c_f = f_f * c_f + i_f * g_f
        h_f = o_f * jnp.tanh(c_f)

        i_r = jax.nn.sigmoid(gr[:, 0:H])
        f_r = jax.nn.sigmoid(gr[:, H:2 * H])
        g_r = jnp.tanh(gr[:, 2 * H:3 * H])
        o_r = jax.nn.sigmoid(gr[:, 3 * H:4 * H])
        c_r = f_r * c_r + i_r * g_r
        h_r = o_r * jnp.tanh(c_r)

        # Output packed [fwd | rev] along the lane axis (PyTorch concat order).
        o_ref[t, :, :H] = h_f.astype(o_ref.dtype)
        o_ref[T - 1 - t, :, H:] = h_r.astype(o_ref.dtype)
        return (h_f, c_f, h_r, c_r)

    z = jnp.zeros((tb, H), jnp.float32)
    jax.lax.fori_loop(0, T, step, (z, z, z, z), unroll=unroll)


def bilstm(p, xc):
    """1-layer bidirectional LSTM.  xc: (T,B,Hin) bf16 -> (T,B,2H) bf16."""
    T, B, Hin = xc.shape
    H = p["whh_f"].shape[0]
    tb = _pick_batch_tile(B, T)
    # TODO(synk): for very long production T, chunk the gx scratch over time.
    unroll = True if T <= 32 else max(u for u in (8, 4, 2, 1) if T % u == 0)
    return pl.pallas_call(
        functools.partial(_bilstm_kernel, unroll=unroll),
        out_shape=jax.ShapeDtypeStruct((T, B, 2 * H), jnp.bfloat16),
        grid=(B // tb,),
        in_specs=[
            pl.BlockSpec((T, tb, Hin), lambda b: (0, b, 0)),
            pl.BlockSpec((Hin, 8 * H), lambda b: (0, 0)),
            pl.BlockSpec((1, 8 * H), lambda b: (0, 0)),
            pl.BlockSpec((H, 4 * H), lambda b: (0, 0)),
            pl.BlockSpec((H, 4 * H), lambda b: (0, 0)),
        ],
        out_specs=pl.BlockSpec((T, tb, 2 * H), lambda b: (0, b, 0)),
        scratch_shapes=[pltpu.VMEM((T, tb, 8 * H), jnp.bfloat16)],
        compiler_params=pltpu.CompilerParams(
            dimension_semantics=("parallel",),
            vmem_limit_bytes=_VMEM_LIMIT),
    )(xc, p["wih"], p["b"].reshape(1, 8 * H), p["whh_f"], p["whh_r"])


# ----------------------------------------------------------------------------
# Kernel 3: fused head  out = x @ W_fc0 + out_lstm @ W_mlp2 + (b_fc0 + b_mlp2)
# ----------------------------------------------------------------------------
def _head_kernel(xt_ref, lstm_ref, w0_ref, w2_ref, b_ref, o_ref):
    acc = jnp.dot(xt_ref[...].astype(w0_ref.dtype), w0_ref[...],
                  preferred_element_type=jnp.float32)
    acc = acc + jnp.dot(lstm_ref[...], w2_ref[...],
                        preferred_element_type=jnp.float32)
    o_ref[...] = (acc + b_ref[...]).astype(o_ref.dtype)


def head(xt, out_lstm, w0, w2, b):
    """fc0(x) + mlp2(out_lstm), M-tiled.  xt: (T,B,E) f32, out_lstm bf16."""
    T, B, E = xt.shape
    H = w0.shape[1]
    H2 = w2.shape[0]
    M = T * B
    tm = _pick_tile_m(M, cap=1024)
    out = pl.pallas_call(
        _head_kernel,
        out_shape=jax.ShapeDtypeStruct((M, H), jnp.float32),
        grid=(M // tm,),
        in_specs=[
            pl.BlockSpec((tm, E), lambda i: (i, 0)),
            pl.BlockSpec((tm, H2), lambda i: (i, 0)),
            pl.BlockSpec((E, H), lambda i: (0, 0)),
            pl.BlockSpec((H2, H), lambda i: (0, 0)),
            pl.BlockSpec((1, H), lambda i: (0, 0)),
        ],
        out_specs=pl.BlockSpec((tm, H), lambda i: (i, 0)),
        compiler_params=pltpu.CompilerParams(
            dimension_semantics=("parallel",)),
    )(xt.reshape(M, E), out_lstm.reshape(M, H2), w0, w2, b.reshape(1, H))
    return out.reshape(T, B, H)


# ----------------------------------------------------------------------------
# Model composition
# ----------------------------------------------------------------------------
def traj_module_forward(params, x):
    """TrajModule_ConvLSTM_seq forward.  x: (B, T, embed) -> (B, T, hidden)."""
    xt = jnp.transpose(x, (1, 0, 2))                 # time-major (T, B, E)
    x_conv = andi_wave(params["res"], xt)            # (T, B, F) bf16
    out_lstm = bilstm(params["lstm"], x_conv)        # (T, B, 2H) bf16
    out = head(xt, out_lstm, params["fc0_w"], params["mlp2_w"],
               params["fc0_b"] + params["mlp2_b"])   # (T, B, H) f32
    return jnp.transpose(out, (1, 0, 2))             # back to (B, T, H)


# ----------------------------------------------------------------------------
# Deterministic synthetic parameters (not a checkpoint), kernel-ready layouts
# ----------------------------------------------------------------------------
def init_params(key, embed_dim, hidden_dim):
    E, H = embed_dim, hidden_dim
    F = H                                   # AnDi_Wave filters == hidden_dim
    D = len(_DILATIONS)
    ks = jax.random.split(key, 12)

    def w(kk, shape, fan_in, dtype=jnp.bfloat16):
        return (jax.random.normal(kk, shape, jnp.float32)
                / np.sqrt(fan_in)).astype(dtype)

    params = {
        "fc0_w": w(ks[0], (E, H), E),
        "fc0_b": jnp.zeros((H,), jnp.float32),
        "mlp2_w": w(ks[1], (2 * H, H), 2 * H),        # rows: [fwd | rev]
        "mlp2_b": jnp.zeros((H,), jnp.float32),
    }

    # AnDi_Wave — conv weights stored channels-last, per-tap slabs.
    res = {
        "w0": w(ks[2], (3, E, F), 3 * E),             # conv1d_0, tap k slabs
        "b0": jnp.zeros((F,), jnp.float32),
        # per-dilation gated conv: [tanh | sigm] concatenated on the out axis
        "wg": w(ks[3], (D, 3, F, 2 * F), 3 * F),
        "bg": jnp.zeros((D, 1, 2 * F), jnp.float32),
        "w1": w(ks[4], (F, F), F),                    # shared 1x1 conv1d_1
        "b1": jnp.zeros((F,), jnp.float32),
    }
    params["res"] = res

    # BatchNorm1d (eval) with default running stats, folded to scale/shift,
    # then folded exactly into the LSTM input projection (x_conv only feeds
    # the LSTM).
    gamma = jnp.ones((F,), jnp.float32)
    beta = jnp.zeros((F,), jnp.float32)
    r_mean = jnp.zeros((F,), jnp.float32)
    r_var = jnp.ones((F,), jnp.float32)
    bn_scale = gamma * jax.lax.rsqrt(r_var + 1e-5)
    bn_shift = beta - r_mean * bn_scale

    # 1-layer bidirectional LSTM (gate order i, f, g, o; b_ih + b_hh folded).
    wih_f = jax.random.normal(ks[5], (F, 4 * H), jnp.float32) / np.sqrt(H)
    wih_r = jax.random.normal(ks[6], (F, 4 * H), jnp.float32) / np.sqrt(H)
    b_cat = jnp.zeros((8 * H,), jnp.float32)
    wih_cat = jnp.concatenate([wih_f, wih_r], axis=1)          # (F, 8H) f32
    wih_eff = wih_cat * bn_scale[:, None]                      # BN fold
    b_eff = b_cat + bn_shift @ wih_cat
    params["lstm"] = {
        "wih": wih_eff.astype(jnp.bfloat16),                   # (F, 8H)
        "b": b_eff,                                            # (8H,) f32
        "whh_f": w(ks[7], (H, 4 * H), H),                      # bf16
        "whh_r": w(ks[8], (H, 4 * H), H),                      # bf16
    }
    return params


# ----------------------------------------------------------------------------
if __name__ == "__main__":
    key = jax.random.PRNGKey(0)
    kp, kx = jax.random.split(key)

    B, T = 16, 16
    EMBED_DIM, HIDDEN_DIM = 16, 32   # small but shape-consistent with module

    params = init_params(kp, EMBED_DIM, HIDDEN_DIM)
    x = jax.random.normal(kx, (B, T, EMBED_DIM), jnp.float32)

    out = jax.jit(traj_module_forward)(params, x)
    out = jax.block_until_ready(out)

    assert out.shape == (B, T, HIDDEN_DIM), out.shape
    assert bool(jnp.all(jnp.isfinite(out)))
    print("KERNEL_OK")
</pallas_src>

<mosaic_0001>
module attributes {stable_mosaic.version = 11 : i64} {
  func.func @_andi_wave_kernel(%arg0: i32, %arg1: memref<16x8x16xf32, #tpu.memory_space<vmem>>, %arg2: memref<3x16x32xbf16, #tpu.memory_space<vmem>>, %arg3: memref<1x32xf32, #tpu.memory_space<vmem>>, %arg4: memref<5x3x32x64xbf16, #tpu.memory_space<vmem>>, %arg5: memref<5x1x64xf32, #tpu.memory_space<vmem>>, %arg6: memref<32x32xbf16, #tpu.memory_space<vmem>>, %arg7: memref<1x32xf32, #tpu.memory_space<vmem>>, %arg8: memref<16x8x32xbf16, #tpu.memory_space<vmem>>, %arg9: memref<18x8x16xf32, #tpu.memory_space<vmem>>, %arg10: memref<48x8x32xf32, #tpu.memory_space<vmem>>) attributes {dimension_semantics = [#tpu.dimension_semantics<parallel>], iteration_bounds = array<i64: 2>, scalar_prefetch = 0 : i64, scratch_operands = 2 : i64, tpu.core_type = #tpu.core_type<tc>, window_params = [{transform_indices = @transform_0, window_bounds = array<i64: 16, 8, 16>}, {pipeline_mode = #tpu.pipeline_mode<synchronous>, transform_indices = @transform_1, window_bounds = array<i64: 3, 16, 32>}, {pipeline_mode = #tpu.pipeline_mode<synchronous>, transform_indices = @transform_2, window_bounds = array<i64: 1, 32>}, {pipeline_mode = #tpu.pipeline_mode<synchronous>, transform_indices = @transform_3, window_bounds = array<i64: 5, 3, 32, 64>}, {pipeline_mode = #tpu.pipeline_mode<synchronous>, transform_indices = @transform_4, window_bounds = array<i64: 5, 1, 64>}, {pipeline_mode = #tpu.pipeline_mode<synchronous>, transform_indices = @transform_5, window_bounds = array<i64: 32, 32>}, {pipeline_mode = #tpu.pipeline_mode<synchronous>, transform_indices = @transform_6, window_bounds = array<i64: 1, 32>}, {transform_indices = @transform_7, window_bounds = array<i64: 16, 8, 32>}]} {
    %cst = arith.constant 0.000000e+00 : f32
    %0 = vector.broadcast %cst : f32 to vector<8x16xf32>
    %c0 = arith.constant 0 : index
    %c0_0 = arith.constant 0 : index
    %c0_1 = arith.constant 0 : index
    %1 = vector.load %arg9[%c0, %c0_0, %c0_1] : memref<18x8x16xf32, #tpu.memory_space<vmem>>, vector<1x8x16xf32>
    %2 = vector.shape_cast %1 : vector<1x8x16xf32> to vector<8x16xf32>
    %3 = vector.shape_cast %0 : vector<8x16xf32> to vector<1x8x16xf32>
    tpu.vector_store %arg9[%c0, %c0_0, %c0_1], %3 {strides = array<i32>} : memref<18x8x16xf32, #tpu.memory_space<vmem>>, vector<1x8x16xf32>,
    %cst_2 = arith.constant 0.000000e+00 : f32
    %4 = vector.broadcast %cst_2 : f32 to vector<8x16xf32>
    %c17 = arith.constant 17 : index
    %c0_3 = arith.constant 0 : index
    %c0_4 = arith.constant 0 : index
    %5 = vector.load %arg9[%c17, %c0_3, %c0_4] : memref<18x8x16xf32, #tpu.memory_space<vmem>>, vector<1x8x16xf32>
    %6 = vector.shape_cast %5 : vector<1x8x16xf32> to vector<8x16xf32>
    %7 = vector.shape_cast %4 : vector<8x16xf32> to vector<1x8x16xf32>
    tpu.vector_store %arg9[%c17, %c0_3, %c0_4], %7 {strides = array<i32>} : memref<18x8x16xf32, #tpu.memory_space<vmem>>, vector<1x8x16xf32>,
    %c0_5 = arith.constant 0 : index
    %c0_6 = arith.constant 0 : index
    %c0_7 = arith.constant 0 : index
    %8 = vector.load %arg1[%c0_5, %c0_6, %c0_7] : memref<16x8x16xf32, #tpu.memory_space<vmem>>, vector<16x8x16xf32>
    %c1 = arith.constant 1 : index
    %c0_8 = arith.constant 0 : index
    %c0_9 = arith.constant 0 : index
    %9 = vector.load %arg9[%c1, %c0_8, %c0_9] : memref<18x8x16xf32, #tpu.memory_space<vmem>>, vector<16x8x16xf32>
    tpu.vector_store %arg9[%c1, %c0_8, %c0_9], %8 {strides = array<i32>} : memref<18x8x16xf32, #tpu.memory_space<vmem>>, vector<16x8x16xf32>,
    %c0_10 = arith.constant 0 : index
    %c0_11 = arith.constant 0 : index
    %10 = vector.load %arg3[%c0_10, %c0_11] : memref<1x32xf32, #tpu.memory_space<vmem>>, vector<1x32xf32>
    %c0_12 = arith.constant 0 : index
    %c0_13 = arith.constant 0 : index
    %c0_14 = arith.constant 0 : index
    %11 = vector.load %arg9[%c0_12, %c0_13, %c0_14] : memref<18x8x16xf32, #tpu.memory_space<vmem>>, vector<16x8x16xf32>
    %12 = vector.shape_cast %11 : vector<16x8x16xf32> to vector<128x16xf32>
    %13 = arith.truncf %12 : vector<128x16xf32> to vector<128x16xbf16>
    %c0_15 = arith.constant 0 : index
    %c0_16 = arith.constant 0 : index
    %c0_17 = arith.constant 0 : index
    %14 = vector.load %arg2[%c0_15, %c0_16, %c0_17] : memref<3x16x32xbf16, #tpu.memory_space<vmem>>, vector<1x16x32xbf16>
    %15 = vector.shape_cast %14 : vector<1x16x32xbf16> to vector<16x32xbf16>
    %cst_18 = arith.constant dense<0.000000e+00> : vector<128x32xf32>
    %16 = tpu.matmul %13, %15, %cst_18 {dimension_numbers = #tpu.dot_dimension_numbers<[1], [0], [0], [1], [0, 0, 1, 1], [], []>} : vector<128x16xbf16>, vector<16x32xbf16>, vector<128x32xf32> -> vector<128x32xf32>
    %17 = vector.broadcast %10 : vector<1x32xf32> to vector<128x32xf32>
    %18 = arith.addf %17, %16 : vector<128x32xf32>
    %c1_19 = arith.constant 1 : index
    %c0_20 = arith.constant 0 : index
    %c0_21 = arith.constant 0 : index
    %19 = vector.load %arg9[%c1_19, %c0_20, %c0_21] : memref<18x8x16xf32, #tpu.memory_space<vmem>>, vector<16x8x16xf32>
    %20 = vector.shape_cast %19 : vector<16x8x16xf32> to vector<128x16xf32>
    %21 = arith.truncf %20 : vector<128x16xf32> to vector<128x16xbf16>
    %c1_22 = arith.constant 1 : index
    %c0_23 = arith.constant 0 : index
    %c0_24 = arith.constant 0 : index
    %22 = vector.load %arg2[%c1_22, %c0_23, %c0_24] : memref<3x16x32xbf16, #tpu.memory_space<vmem>>, vector<1x16x32xbf16>
    %23 = vector.shape_cast %22 : vector<1x16x32xbf16> to vector<16x32xbf16>
    %cst_25 = arith.constant dense<0.000000e+00> : vector<128x32xf32>
    %24 = tpu.matmul %21, %23, %cst_25 {dimension_numbers = #tpu.dot_dimension_numbers<[1], [0], [0], [1], [0, 0, 1, 1], [], []>} : vector<128x16xbf16>, vector<16x32xbf16>, vector<128x32xf32> -> vector<128x32xf32>
    %25 = arith.addf %18, %24 : vector<128x32xf32>
    %c2 = arith.constant 2 : index
    %c0_26 = arith.constant 0 : index
    %c0_27 = arith.constant 0 : index
    %26 = vector.load %arg9[%c2, %c0_26, %c0_27] : memref<18x8x16xf32, #tpu.memory_space<vmem>>, vector<16x8x16xf32>
    %27 = vector.shape_cast %26 : vector<16x8x16xf32> to vector<128x16xf32>
    %28 = arith.truncf %27 : vector<128x16xf32> to vector<128x16xbf16>
    %c2_28 = arith.constant 2 : index
    %c0_29 = arith.constant 0 : index
    %c0_30 = arith.constant 0 : index
    %29 = vector.load %arg2[%c2_28, %c0_29, %c0_30] : memref<3x16x32xbf16, #tpu.memory_space<vmem>>, vector<1x16x32xbf16>
    %30 = vector.shape_cast %29 : vector<1x16x32xbf16> to vector<16x32xbf16>
    %cst_31 = arith.constant dense<0.000000e+00> : vector<128x32xf32>
    %31 = tpu.matmul %28, %30, %cst_31 {dimension_numbers = #tpu.dot_dimension_numbers<[1], [0], [0], [1], [0, 0, 1, 1], [], []>} : vector<128x16xbf16>, vector<16x32xbf16>, vector<128x32xf32> -> vector<128x32xf32>
    %32 = arith.addf %25, %31 : vector<128x32xf32>
    %cst_32 = arith.constant 0.000000e+00 : f32
    %33 = vector.broadcast %cst_32 : f32 to vector<16x8x32xf32>
    %c0_33 = arith.constant 0 : index
    %c0_34 = arith.constant 0 : index
    %c0_35 = arith.constant 0 : index
    %34 = vector.load %arg10[%c0_33, %c0_34, %c0_35] : memref<48x8x32xf32, #tpu.memory_space<vmem>>, vector<16x8x32xf32>
    tpu.vector_store %arg10[%c0_33, %c0_34, %c0_35], %33 {strides = array<i32>} : memref<48x8x32xf32, #tpu.memory_space<vmem>>, vector<16x8x32xf32>,
    %cst_36 = arith.constant 0.000000e+00 : f32
    %35 = vector.broadcast %cst_36 : f32 to vector<16x8x32xf32>
    %c32 = arith.constant 32 : index
    %c0_37 = arith.constant 0 : index
    %c0_38 = arith.constant 0 : index
    %36 = vector.load %arg10[%c32, %c0_37, %c0_38] : memref<48x8x32xf32, #tpu.memory_space<vmem>>, vector<16x8x32xf32>
    tpu.vector_store %arg10[%c32, %c0_37, %c0_38], %35 {strides = array<i32>} : memref<48x8x32xf32, #tpu.memory_space<vmem>>, vector<16x8x32xf32>,
    %c0_39 = arith.constant 0 : index
    %c0_40 = arith.constant 0 : index
    %37 = vector.load %arg6[%c0_39, %c0_40] : memref<32x32xbf16, #tpu.memory_space<vmem>>, vector<32x32xbf16>
    %c0_41 = arith.constant 0 : index
    %c0_42 = arith.constant 0 : index
    %38 = vector.load %arg7[%c0_41, %c0_42] : memref<1x32xf32, #tpu.memory_space<vmem>>, vector<1x32xf32>
    %c0_i32 = arith.constant 0 : i32
    %c5_i32 = arith.constant 5 : i32
    %39 = arith.addi %c0_i32, %c5_i32 : i32
    %c1_i32 = arith.constant 1 : i32
    %40:2 = scf.for %arg11 = %c0_i32 to %39 step %c1_i32 iter_args(%arg12 = %32, %arg13 = %32) -> (vector<128x32xf32>, vector<128x32xf32>)  : i32 {
      %44 = vector.shape_cast %arg12 : vector<128x32xf32> to vector<16x8x32xf32>
      %c16 = arith.constant 16 : index
      %c0_47 = arith.constant 0 : index
      %c0_48 = arith.constant 0 : index
      %45 = vector.load %arg10[%c16, %c0_47, %c0_48] : memref<48x8x32xf32, #tpu.memory_space<vmem>>, vector<16x8x32xf32>
      tpu.vector_store %arg10[%c16, %c0_47, %c0_48], %44 {strides = array<i32>} : memref<48x8x32xf32, #tpu.memory_space<vmem>>, vector<16x8x32xf32>,
      %c1_i32_49 = arith.constant 1 : i32
      %46 = arith.shli %c1_i32_49, %arg11 : i32
      %47 = arith.index_cast %arg11 : i32 to index
      %c0_50 = arith.constant 0 : index
      %c0_51 = arith.constant 0 : index
      %c0_52 = arith.constant 0 : index
      %48 = vector.load %arg4[%47, %c0_50, %c0_51, %c0_52] : memref<5x3x32x64xbf16, #tpu.memory_space<vmem>>, vector<1x3x32x64xbf16>
      %49 = vector.shape_cast %48 : vector<1x3x32x64xbf16> to vector<3x32x64xbf16>
      %50 = arith.index_cast %arg11 : i32 to index
      %c0_53 = arith.constant 0 : index
      %c0_54 = arith.constant 0 : index
      %51 = vector.load %arg5[%50, %c0_53, %c0_54] : memref<5x1x64xf32, #tpu.memory_space<vmem>>, vector<1x1x64xf32>
      %52 = vector.shape_cast %51 : vector<1x1x64xf32> to vector<1x64xf32>
      %c16_i32 = arith.constant 16 : i32
      %53 = arith.subi %c16_i32, %46 : i32
      %c0_i32_55 = arith.constant 0 : i32
      %54 = arith.muli %c0_i32_55, %46 : i32
      %55 = arith.addi %53, %54 : i32
      %56 = arith.index_cast %55 : i32 to index
      %c0_56 = arith.constant 0 : index
      %c0_57 = arith.constant 0 : index
      %57 = vector.load %arg10[%56, %c0_56, %c0_57] : memref<48x8x32xf32, #tpu.memory_space<vmem>>, vector<16x8x32xf32>
      %58 = vector.shape_cast %57 : vector<16x8x32xf32> to vector<128x32xf32>
      %59 = arith.truncf %58 : vector<128x32xf32> to vector<128x32xbf16>
      %60 = vector.extract_strided_slice %49 {offsets = [0, 0, 0], sizes = [1, 32, 64], strides = [1, 1, 1]} : vector<3x32x64xbf16> to vector<1x32x64xbf16>
      %61 = vector.shape_cast %60 : vector<1x32x64xbf16> to vector<32x64xbf16>
      %cst_58 = arith.constant dense<0.000000e+00> : vector<128x64xf32>
      %62 = tpu.matmul %59, %61, %cst_58 {dimension_numbers = #tpu.dot_dimension_numbers<[1], [0], [0], [1], [0, 0, 1, 1], [], []>} : vector<128x32xbf16>, vector<32x64xbf16>, vector<128x64xf32> -> vector<128x64xf32>
      %63 = vector.broadcast %52 : vector<1x64xf32> to vector<128x64xf32>
      %64 = arith.addf %63, %62 : vector<128x64xf32>
      %c16_i32_59 = arith.constant 16 : i32
      %65 = arith.subi %c16_i32_59, %46 : i32
      %c1_i32_60 = arith.constant 1 : i32
      %66 = arith.muli %c1_i32_60, %46 : i32
      %67 = arith.addi %65, %66 : i32
      %68 = arith.index_cast %67 : i32 to index
      %c0_61 = arith.constant 0 : index
      %c0_62 = arith.constant 0 : index
      %69 = vector.load %arg10[%68, %c0_61, %c0_62] : memref<48x8x32xf32, #tpu.memory_space<vmem>>, vector<16x8x32xf32>
      %70 = vector.shape_cast %69 : vector<16x8x32xf32> to vector<128x32xf32>
      %71 = arith.truncf %70 : vector<128x32xf32> to vector<128x32xbf16>
      %72 = vector.extract_strided_slice %49 {offsets = [1, 0, 0], sizes = [1, 32, 64], strides = [1, 1, 1]} : vector<3x32x64xbf16> to vector<1x32x64xbf16>
      %73 = vector.shape_cast %72 : vector<1x32x64xbf16> to vector<32x64xbf16>
      %cst_63 = arith.constant dense<0.000000e+00> : vector<128x64xf32>
      %74 = tpu.matmul %71, %73, %cst_63 {dimension_numbers = #tpu.dot_dimension_numbers<[1], [0], [0], [1], [0, 0, 1, 1], [], []>} : vector<128x32xbf16>, vector<32x64xbf16>, vector<128x64xf32> -> vector<128x64xf32>
      %75 = arith.addf %64, %74 : vector<128x64xf32>
      %c16_i32_64 = arith.constant 16 : i32
      %76 = arith.subi %c16_i32_64, %46 : i32
      %c2_i32 = arith.constant 2 : i32
      %77 = arith.muli %c2_i32, %46 : i32
      %78 = arith.addi %76, %77 : i32
      %79 = arith.index_cast %78 : i32 to index
      %c0_65 = arith.constant 0 : index
      %c0_66 = arith.constant 0 : index
      %80 = vector.load %arg10[%79, %c0_65, %c0_66] : memref<48x8x32xf32, #tpu.memory_space<vmem>>, vector<16x8x32xf32>
      %81 = vector.shape_cast %80 : vector<16x8x32xf32> to vector<128x32xf32>
      %82 = arith.truncf %81 : vector<128x32xf32> to vector<128x32xbf16>
      %83 = vector.extract_strided_slice %49 {offsets = [2, 0, 0], sizes = [1, 32, 64], strides = [1, 1, 1]} : vector<3x32x64xbf16> to vector<1x32x64xbf16>
      %84 = vector.shape_cast %83 : vector<1x32x64xbf16> to vector<32x64xbf16>
      %cst_67 = arith.constant dense<0.000000e+00> : vector<128x64xf32>
      %85 = tpu.matmul %82, %84, %cst_67 {dimension_numbers = #tpu.dot_dimension_numbers<[1], [0], [0], [1], [0, 0, 1, 1], [], []>} : vector<128x32xbf16>, vector<32x64xbf16>, vector<128x64xf32> -> vector<128x64xf32>
      %86 = arith.addf %75, %85 : vector<128x64xf32>
      %87 = vector.extract_strided_slice %86 {offsets = [0, 0], sizes = [128, 32], strides = [1, 1]} : vector<128x64xf32> to vector<128x32xf32>
      %88 = math.tanh %87 : vector<128x32xf32>
      %89 = vector.extract_strided_slice %86 {offsets = [0, 32], sizes = [128, 32], strides = [1, 1]} : vector<128x64xf32> to vector<128x32xf32>
      %90 = arith.negf %89 : vector<128x32xf32>
      %91 = math.exp %90 : vector<128x32xf32>
      %cst_68 = arith.constant 1.000000e+00 : f32
      %92 = vector.broadcast %cst_68 : f32 to vector<128x32xf32>
      %93 = arith.addf %92, %91 : vector<128x32xf32>
      %94 = arith.divf %92, %93 : vector<128x32xf32>
      %95 = arith.mulf %88, %94 : vector<128x32xf32>
      %96 = arith.truncf %95 : vector<128x32xf32> to vector<128x32xbf16>
      %cst_69 = arith.constant dense<0.000000e+00> : vector<128x32xf32>
      %97 = tpu.matmul %96, %37, %cst_69 {dimension_numbers = #tpu.dot_dimension_numbers<[1], [0], [0], [1], [0, 0, 1, 1], [], []>} : vector<128x32xbf16>, vector<32x32xbf16>, vector<128x32xf32> -> vector<128x32xf32>
      %98 = vector.broadcast %38 : vector<1x32xf32> to vector<128x32xf32>
      %99 = arith.addf %97, %98 : vector<128x32xf32>
      %100 = arith.addf %arg13, %99 : vector<128x32xf32>
      scf.yield %99, %100 : vector<128x32xf32>, vector<128x32xf32>
    }
    %c5_i32_43 = arith.constant 5 : i32
    %41 = vector.shape_cast %40#1 : vector<128x32xf32> to vector<16x8x32xf32>
    %42 = arith.truncf %41 : vector<16x8x32xf32> to vector<16x8x32xbf16>
    %c0_44 = arith.constant 0 : index
    %c0_45 = arith.constant 0 : index
    %c0_46 = arith.constant 0 : index
    %43 = vector.load %arg8[%c0_44, %c0_45, %c0_46] : memref<16x8x32xbf16, #tpu.memory_space<vmem>>, vector<16x8x32xbf16>
    tpu.vector_store %arg8[%c0_44, %c0_45, %c0_46], %42 {strides = array<i32>} : memref<16x8x32xbf16, #tpu.memory_space<vmem>>, vector<16x8x32xbf16>,
    return
  }
  func.func @transform_0(%arg0: i32) -> (i32, i32, i32) {
    %c0_i32 = arith.constant 0 : i32
    %c0_i32_0 = arith.constant 0 : i32
    %c0_i32_1 = arith.constant 0 : i32
    return %c0_i32, %arg0, %c0_i32_0 : i32, i32, i32
  }
  func.func @transform_1(%arg0: i32) -> (i32, i32, i32) {
    %c0_i32 = arith.constant 0 : i32
    %c0_i32_0 = arith.constant 0 : i32
    %c0_i32_1 = arith.constant 0 : i32
    %c0_i32_2 = arith.constant 0 : i32
    return %c0_i32, %c0_i32_0, %c0_i32_1 : i32, i32, i32
  }
  func.func @transform_2(%arg0: i32) -> (i32, i32) {
    %c0_i32 = arith.constant 0 : i32
    %c0_i32_0 = arith.constant 0 : i32
    %c0_i32_1 = arith.constant 0 : i32
    return %c0_i32, %c0_i32_0 : i32, i32
  }
  func.func @transform_3(%arg0: i32) -> (i32, i32, i32, i32) {
    %c0_i32 = arith.constant 0 : i32
    %c0_i32_0 = arith.constant 0 : i32
    %c0_i32_1 = arith.constant 0 : i32
    %c0_i32_2 = arith.constant 0 : i32
    %c0_i32_3 = arith.constant 0 : i32
    return %c0_i32, %c0_i32_0, %c0_i32_1, %c0_i32_2 : i32, i32, i32, i32
  }
  func.func @transform_4(%arg0: i32) -> (i32, i32, i32) {
    %c0_i32 = arith.constant 0 : i32
    %c0_i32_0 = arith.constant 0 : i32
    %c0_i32_1 = arith.constant 0 : i32
    %c0_i32_2 = arith.constant 0 : i32
    return %c0_i32, %c0_i32_0, %c0_i32_1 : i32, i32, i32
  }
  func.func @transform_5(%arg0: i32) -> (i32, i32) {
    %c0_i32 = arith.constant 0 : i32
    %c0_i32_0 = arith.constant 0 : i32
    %c0_i32_1 = arith.constant 0 : i32
    return %c0_i32, %c0_i32_0 : i32, i32
  }
  func.func @transform_6(%arg0: i32) -> (i32, i32) {
    %c0_i32 = arith.constant 0 : i32
    %c0_i32_0 = arith.constant 0 : i32
    %c0_i32_1 = arith.constant 0 : i32
    return %c0_i32, %c0_i32_0 : i32, i32
  }
  func.func @transform_7(%arg0: i32) -> (i32, i32, i32) {
    %c0_i32 = arith.constant 0 : i32
    %c0_i32_0 = arith.constant 0 : i32
    %c0_i32_1 = arith.constant 0 : i32
    return %c0_i32, %arg0, %c0_i32_0 : i32, i32, i32
  }
}

module attributes {stable_mosaic.version = 11 : i64} {
  func.func @_head_kernel(%arg0: i32, %arg1: memref<256x16xf32, #tpu.memory_space<vmem>>, %arg2: memref<256x64xbf16, #tpu.memory_space<vmem>>, %arg3: memref<16x32xbf16, #tpu.memory_space<vmem>>, %arg4: memref<64x32xbf16, #tpu.memory_space<vmem>>, %arg5: memref<1x32xf32, #tpu.memory_space<vmem>>, %arg6: memref<256x32xf32, #tpu.memory_space<vmem>>) attributes {dimension_semantics = [#tpu.dimension_semantics<parallel>], iteration_bounds = array<i64: 1>, scalar_prefetch = 0 : i64, scratch_operands = 0 : i64, tpu.core_type = #tpu.core_type<tc>, window_params = [{transform_indices = @transform_0, window_bounds = array<i64: 256, 16>}, {transform_indices = @transform_1, window_bounds = array<i64: 256, 64>}, {pipeline_mode = #tpu.pipeline_mode<synchronous>, transform_indices = @transform_2, window_bounds = array<i64: 16, 32>}, {pipeline_mode = #tpu.pipeline_mode<synchronous>, transform_indices = @transform_3, window_bounds = array<i64: 64, 32>}, {pipeline_mode = #tpu.pipeline_mode<synchronous>, transform_indices = @transform_4, window_bounds = array<i64: 1, 32>}, {transform_indices = @transform_5, window_bounds = array<i64: 256, 32>}]} {
    %c0 = arith.constant 0 : index
    %c0_0 = arith.constant 0 : index
    %0 = vector.load %arg1[%c0, %c0_0] : memref<256x16xf32, #tpu.memory_space<vmem>>, vector<256x16xf32>
    %1 = arith.truncf %0 : vector<256x16xf32> to vector<256x16xbf16>
    %c0_1 = arith.constant 0 : index
    %c0_2 = arith.constant 0 : index
    %2 = vector.load %arg3[%c0_1, %c0_2] : memref<16x32xbf16, #tpu.memory_space<vmem>>, vector<16x32xbf16>
    %cst = arith.constant dense<0.000000e+00> : vector<256x32xf32>
    %3 = tpu.matmul %1, %2, %cst {dimension_numbers = #tpu.dot_dimension_numbers<[1], [0], [0], [1], [0, 0, 1, 1], [], []>} : vector<256x16xbf16>, vector<16x32xbf16>, vector<256x32xf32> -> vector<256x32xf32>
    %c0_3 = arith.constant 0 : index
    %c0_4 = arith.constant 0 : index
    %4 = vector.load %arg2[%c0_3, %c0_4] : memref<256x64xbf16, #tpu.memory_space<vmem>>, vector<256x64xbf16>
    %c0_5 = arith.constant 0 : index
    %c0_6 = arith.constant 0 : index
    %5 = vector.load %arg4[%c0_5, %c0_6] : memref<64x32xbf16, #tpu.memory_space<vmem>>, vector<64x32xbf16>
    %cst_7 = arith.constant dense<0.000000e+00> : vector<256x32xf32>
    %6 = tpu.matmul %4, %5, %cst_7 {dimension_numbers = #tpu.dot_dimension_numbers<[1], [0], [0], [1], [0, 0, 1, 1], [], []>} : vector<256x64xbf16>, vector<64x32xbf16>, vector<256x32xf32> -> vector<256x32xf32>
    %7 = arith.addf %3, %6 : vector<256x32xf32>
    %c0_8 = arith.constant 0 : index
    %c0_9 = arith.constant 0 : index
    %8 = vector.load %arg5[%c0_8, %c0_9] : memref<1x32xf32, #tpu.memory_space<vmem>>, vector<1x32xf32>
    %9 = vector.broadcast %8 : vector<1x32xf32> to vector<256x32xf32>
    %10 = arith.addf %7, %9 : vector<256x32xf32>
    %c0_10 = arith.constant 0 : index
    %c0_11 = arith.constant 0 : index
    %11 = vector.load %arg6[%c0_10, %c0_11] : memref<256x32xf32, #tpu.memory_space<vmem>>, vector<256x32xf32>
    tpu.vector_store %arg6[%c0_10, %c0_11], %10 {strides = array<i32>} : memref<256x32xf32, #tpu.memory_space<vmem>>, vector<256x32xf32>,
    return
  }
  func.func @transform_0(%arg0: i32) -> (i32, i32) {
    %c0_i32 = arith.constant 0 : i32
    %c0_i32_0 = arith.constant 0 : i32
    return %arg0, %c0_i32 : i32, i32
  }
  func.func @transform_1(%arg0: i32) -> (i32, i32) {
    %c0_i32 = arith.constant 0 : i32
    %c0_i32_0 = arith.constant 0 : i32
    return %arg0, %c0_i32 : i32, i32
  }
  func.func @transform_2(%arg0: i32) -> (i32, i32) {
    %c0_i32 = arith.constant 0 : i32
    %c0_i32_0 = arith.constant 0 : i32
    %c0_i32_1 = arith.constant 0 : i32
    return %c0_i32, %c0_i32_0 : i32, i32
  }
  func.func @transform_3(%arg0: i32) -> (i32, i32) {
    %c0_i32 = arith.constant 0 : i32
    %c0_i32_0 = arith.constant 0 : i32
    %c0_i32_1 = arith.constant 0 : i32
    return %c0_i32, %c0_i32_0 : i32, i32
  }
  func.func @transform_4(%arg0: i32) -> (i32, i32) {
    %c0_i32 = arith.constant 0 : i32
    %c0_i32_0 = arith.constant 0 : i32
    %c0_i32_1 = arith.constant 0 : i32
    return %c0_i32, %c0_i32_0 : i32, i32
  }
  func.func @transform_5(%arg0: i32) -> (i32, i32) {
    %c0_i32 = arith.constant 0 : i32
    %c0_i32_0 = arith.constant 0 : i32
    return %arg0, %c0_i32 : i32, i32
  }
}

module attributes {stable_mosaic.version = 11 : i64} {
  func.func @_bilstm_kernel(%arg0: i32, %arg1: memref<16x8x32xbf16, #tpu.memory_space<vmem>>, %arg2: memref<32x256xbf16, #tpu.memory_space<vmem>>, %arg3: memref<1x256xf32, #tpu.memory_space<vmem>>, %arg4: memref<32x128xbf16, #tpu.memory_space<vmem>>, %arg5: memref<32x128xbf16, #tpu.memory_space<vmem>>, %arg6: memref<16x8x64xbf16, #tpu.memory_space<vmem>>, %arg7: memref<16x8x256xbf16, #tpu.memory_space<vmem>>) attributes {dimension_semantics = [#tpu.dimension_semantics<parallel>], iteration_bounds = array<i64: 2>, scalar_prefetch = 0 : i64, scratch_operands = 1 : i64, tpu.core_type = #tpu.core_type<tc>, window_params = [{transform_indices = @transform_0, window_bounds = array<i64: 16, 8, 32>}, {pipeline_mode = #tpu.pipeline_mode<synchronous>, transform_indices = @transform_1, window_bounds = array<i64: 32, 256>}, {pipeline_mode = #tpu.pipeline_mode<synchronous>, transform_indices = @transform_2, window_bounds = array<i64: 1, 256>}, {pipeline_mode = #tpu.pipeline_mode<synchronous>, transform_indices = @transform_3, window_bounds = array<i64: 32, 128>}, {pipeline_mode = #tpu.pipeline_mode<synchronous>, transform_indices = @transform_4, window_bounds = array<i64: 32, 128>}, {transform_indices = @transform_5, window_bounds = array<i64: 16, 8, 64>}]} {
    %c0 = arith.constant 0 : index
    %c0_0 = arith.constant 0 : index
    %c0_1 = arith.constant 0 : index
    %0 = vector.load %arg1[%c0, %c0_0, %c0_1] : memref<16x8x32xbf16, #tpu.memory_space<vmem>>, vector<16x8x32xbf16>
    %1 = vector.shape_cast %0 : vector<16x8x32xbf16> to vector<128x32xbf16>
    %c0_2 = arith.constant 0 : index
    %c0_3 = arith.constant 0 : index
    %2 = vector.load %arg2[%c0_2, %c0_3] : memref<32x256xbf16, #tpu.memory_space<vmem>>, vector<32x256xbf16>
    %cst = arith.constant dense<0.000000e+00> : vector<128x256xf32>
    %3 = tpu.matmul %1, %2, %cst {dimension_numbers = #tpu.dot_dimension_numbers<[1], [0], [0], [1], [0, 0, 1, 1], [], []>} : vector<128x32xbf16>, vector<32x256xbf16>, vector<128x256xf32> -> vector<128x256xf32>
    %c0_4 = arith.constant 0 : index
    %c0_5 = arith.constant 0 : index
    %4 = vector.load %arg3[%c0_4, %c0_5] : memref<1x256xf32, #tpu.memory_space<vmem>>, vector<1x256xf32>
    %5 = vector.broadcast %4 : vector<1x256xf32> to vector<128x256xf32>
    %6 = arith.addf %3, %5 : vector<128x256xf32>
    %7 = vector.shape_cast %6 : vector<128x256xf32> to vector<16x8x256xf32>
    %8 = arith.truncf %7 : vector<16x8x256xf32> to vector<16x8x256xbf16>
    %c0_6 = arith.constant 0 : index
    %c0_7 = arith.constant 0 : index
    %c0_8 = arith.constant 0 : index
    %9 = vector.load %arg7[%c0_6, %c0_7, %c0_8] : memref<16x8x256xbf16, #tpu.memory_space<vmem>>, vector<16x8x256xbf16>
    tpu.vector_store %arg7[%c0_6, %c0_7, %c0_8], %8 {strides = array<i32>} : memref<16x8x256xbf16, #tpu.memory_space<vmem>>, vector<16x8x256xbf16>,
    %c0_9 = arith.constant 0 : index
    %c0_10 = arith.constant 0 : index
    %10 = vector.load %arg4[%c0_9, %c0_10] : memref<32x128xbf16, #tpu.memory_space<vmem>>, vector<32x128xbf16>
    %c0_11 = arith.constant 0 : index
    %c0_12 = arith.constant 0 : index
    %11 = vector.load %arg5[%c0_11, %c0_12] : memref<32x128xbf16, #tpu.memory_space<vmem>>, vector<32x128xbf16>
    %cst_13 = arith.constant 0.000000e+00 : f32
    %12 = vector.broadcast %cst_13 : f32 to vector<8x32xf32>
    %c0_i32 = arith.constant 0 : i32
    %13 = arith.truncf %12 : vector<8x32xf32> to vector<8x32xbf16>
    %cst_14 = arith.constant dense<0.000000e+00> : vector<8x128xf32>
    %14 = tpu.matmul %13, %10, %cst_14 {dimension_numbers = #tpu.dot_dimension_numbers<[1], [0], [0], [1], [0, 0, 1, 1], [], []>} : vector<8x32xbf16>, vector<32x128xbf16>, vector<8x128xf32> -> vector<8x128xf32>
    %15 = arith.truncf %12 : vector<8x32xf32> to vector<8x32xbf16>
    %cst_15 = arith.constant dense<0.000000e+00> : vector<8x128xf32>
    %16 = tpu.matmul %15, %11, %cst_15 {dimension_numbers = #tpu.dot_dimension_numbers<[1], [0], [0], [1], [0, 0, 1, 1], [], []>} : vector<8x32xbf16>, vector<32x128xbf16>, vector<8x128xf32> -> vector<8x128xf32>
    %17 = arith.index_cast %c0_i32 : i32 to index
    %c0_16 = arith.constant 0 : index
    %c0_17 = arith.constant 0 : index
    %18 = vector.load %arg7[%17, %c0_16, %c0_17] : memref<16x8x256xbf16, #tpu.memory_space<vmem>>, vector<1x8x256xbf16>
    %19 = vector.shape_cast %18 : vector<1x8x256xbf16> to vector<8x256xbf16>
    %20 = vector.extract_strided_slice %19 {offsets = [0, 0], sizes = [8, 128], strides = [1, 1]} : vector<8x256xbf16> to vector<8x128xbf16>
    %21 = arith.extf %20 : vector<8x128xbf16> to vector<8x128xf32>
    %22 = arith.addf %21, %14 : vector<8x128xf32>
    %c15_i32 = arith.constant 15 : i32
    %23 = arith.subi %c15_i32, %c0_i32 : i32
    %24 = arith.index_cast %23 : i32 to index
    %c0_18 = arith.constant 0 : index
    %c0_19 = arith.constant 0 : index
    %25 = vector.load %arg7[%24, %c0_18, %c0_19] : memref<16x8x256xbf16, #tpu.memory_space<vmem>>, vector<1x8x256xbf16>
    %26 = vector.shape_cast %25 : vector<1x8x256xbf16> to vector<8x256xbf16>
    %27 = vector.extract_strided_slice %26 {offsets = [0, 128], sizes = [8, 128], strides = [1, 1]} : vector<8x256xbf16> to vector<8x128xbf16>
    %28 = arith.extf %27 : vector<8x128xbf16> to vector<8x128xf32>
    %29 = arith.addf %28, %16 : vector<8x128xf32>
    %30 = vector.extract_strided_slice %22 {offsets = [0, 0], sizes = [8, 32], strides = [1, 1]} : vector<8x128xf32> to vector<8x32xf32>
    %31 = arith.negf %30 : vector<8x32xf32>
    %32 = math.exp %31 : vector<8x32xf32>
    %cst_20 = arith.constant 1.000000e+00 : f32
    %33 = vector.broadcast %cst_20 : f32 to vector<8x32xf32>
    %34 = arith.addf %33, %32 : vector<8x32xf32>
    %35 = arith.divf %33, %34 : vector<8x32xf32>
    %36 = vector.extract_strided_slice %22 {offsets = [0, 32], sizes = [8, 32], strides = [1, 1]} : vector<8x128xf32> to vector<8x32xf32>
    %37 = arith.negf %36 : vector<8x32xf32>
    %38 = math.exp %37 : vector<8x32xf32>
    %cst_21 = arith.constant 1.000000e+00 : f32
    %39 = vector.broadcast %cst_21 : f32 to vector<8x32xf32>
    %40 = arith.addf %39, %38 : vector<8x32xf32>
    %41 = arith.divf %39, %40 : vector<8x32xf32>
    %42 = vector.extract_strided_slice %22 {offsets = [0, 64], sizes = [8, 32], strides = [1, 1]} : vector<8x128xf32> to vector<8x32xf32>
    %43 = math.tanh %42 : vector<8x32xf32>
    %44 = vector.extract_strided_slice %22 {offsets = [0, 96], sizes = [8, 32], strides = [1, 1]} : vector<8x128xf32> to vector<8x32xf32>
    %45 = arith.negf %44 : vector<8x32xf32>
    %46 = math.exp %45 : vector<8x32xf32>
    %cst_22 = arith.constant 1.000000e+00 : f32
    %47 = vector.broadcast %cst_22 : f32 to vector<8x32xf32>
    %48 = arith.addf %47, %46 : vector<8x32xf32>
    %49 = arith.divf %47, %48 : vector<8x32xf32>
    %50 = arith.mulf %41, %12 : vector<8x32xf32>
    %51 = arith.mulf %35, %43 : vector<8x32xf32>
    %52 = arith.addf %50, %51 : vector<8x32xf32>
    %53 = math.tanh %52 : vector<8x32xf32>
    %54 = arith.mulf %49, %53 : vector<8x32xf32>
    %55 = vector.extract_strided_slice %29 {offsets = [0, 0], sizes = [8, 32], strides = [1, 1]} : vector<8x128xf32> to vector<8x32xf32>
    %56 = arith.negf %55 : vector<8x32xf32>
    %57 = math.exp %56 : vector<8x32xf32>
    %cst_23 = arith.constant 1.000000e+00 : f32
    %58 = vector.broadcast %cst_23 : f32 to vector<8x32xf32>
    %59 = arith.addf %58, %57 : vector<8x32xf32>
    %60 = arith.divf %58, %59 : vector<8x32xf32>
    %61 = vector.extract_strided_slice %29 {offsets = [0, 32], sizes = [8, 32], strides = [1, 1]} : vector<8x128xf32> to vector<8x32xf32>
    %62 = arith.negf %61 : vector<8x32xf32>
    %63 = math.exp %62 : vector<8x32xf32>
    %cst_24 = arith.constant 1.000000e+00 : f32
    %64 = vector.broadcast %cst_24 : f32 to vector<8x32xf32>
    %65 = arith.addf %64, %63 : vector<8x32xf32>
    %66 = arith.divf %64, %65 : vector<8x32xf32>
    %67 = vector.extract_strided_slice %29 {offsets = [0, 64], sizes = [8, 32], strides = [1, 1]} : vector<8x128xf32> to vector<8x32xf32>
    %68 = math.tanh %67 : vector<8x32xf32>
    %69 = vector.extract_strided_slice %29 {offsets = [0, 96], sizes = [8, 32], strides = [1, 1]} : vector<8x128xf32> to vector<8x32xf32>
    %70 = arith.negf %69 : vector<8x32xf32>
    %71 = math.exp %70 : vector<8x32xf32>
    %cst_25 = arith.constant 1.000000e+00 : f32
    %72 = vector.broadcast %cst_25 : f32 to vector<8x32xf32>
    %73 = arith.addf %72, %71 : vector<8x32xf32>
    %74 = arith.divf %72, %73 : vector<8x32xf32>
    %75 = arith.mulf %66, %12 : vector<8x32xf32>
    %76 = arith.mulf %60, %68 : vector<8x32xf32>
    %77 = arith.addf %75, %76 : vector<8x32xf32>
    %78 = math.tanh %77 : vector<8x32xf32>
    %79 = arith.mulf %74, %78 : vector<8x32xf32>
    %80 = arith.truncf %54 : vector<8x32xf32> to vector<8x32xbf16>
    %81 = arith.index_cast %c0_i32 : i32 to index
    %c0_26 = arith.constant 0 : index
    %c0_27 = arith.constant 0 : index
    %82 = vector.load %arg6[%81, %c0_26, %c0_27] : memref<16x8x64xbf16, #tpu.memory_space<vmem>>, vector<1x8x32xbf16>
    %83 = vector.shape_cast %82 : vector<1x8x32xbf16> to vector<8x32xbf16>
    %84 = vector.shape_cast %80 : vector<8x32xbf16> to vector<1x8x32xbf16>
    tpu.vector_store %arg6[%81, %c0_26, %c0_27], %84 {strides = array<i32>} : memref<16x8x64xbf16, #tpu.memory_space<vmem>>, vector<1x8x32xbf16>,
    %85 = arith.truncf %79 : vector<8x32xf32> to vector<8x32xbf16>
    %c15_i32_28 = arith.constant 15 : i32
    %86 = arith.subi %c15_i32_28, %c0_i32 : i32
    %87 = arith.index_cast %86 : i32 to index
    %c0_29 = arith.constant 0 : index
    %c32 = arith.constant 32 : index
    %88 = vector.load %arg6[%87, %c0_29, %c32] : memref<16x8x64xbf16, #tpu.memory_space<vmem>>, vector<1x8x32xbf16>
    %89 = vector.shape_cast %88 : vector<1x8x32xbf16> to vector<8x32xbf16>
    %90 = vector.shape_cast %85 : vector<8x32xbf16> to vector<1x8x32xbf16>
    tpu.vector_store %arg6[%87, %c0_29, %c32], %90 {strides = array<i32>} : memref<16x8x64xbf16, #tpu.memory_space<vmem>>, vector<1x8x32xbf16>,
    %c1_i32 = arith.constant 1 : i32
    %91 = arith.truncf %54 : vector<8x32xf32> to vector<8x32xbf16>
    %cst_30 = arith.constant dense<0.000000e+00> : vector<8x128xf32>
    %92 = tpu.matmul %91, %10, %cst_30 {dimension_numbers = #tpu.dot_dimension_numbers<[1], [0], [0], [1], [0, 0, 1, 1], [], []>} : vector<8x32xbf16>, vector<32x128xbf16>, vector<8x128xf32> -> vector<8x128xf32>
    %93 = arith.truncf %79 : vector<8x32xf32> to vector<8x32xbf16>
    %cst_31 = arith.constant dense<0.000000e+00> : vector<8x128xf32>
    %94 = tpu.matmul %93, %11, %cst_31 {dimension_numbers = #tpu.dot_dimension_numbers<[1], [0], [0], [1], [0, 0, 1, 1], [], []>} : vector<8x32xbf16>, vector<32x128xbf16>, vector<8x128xf32> -> vector<8x128xf32>
    %95 = arith.index_cast %c1_i32 : i32 to index
    %c0_32 = arith.constant 0 : index
    %c0_33 = arith.constant 0 : index
    %96 = vector.load %arg7[%95, %c0_32, %c0_33] : memref<16x8x256xbf16, #tpu.memory_space<vmem>>, vector<1x8x256xbf16>
    %97 = vector.shape_cast %96 : vector<1x8x256xbf16> to vector<8x256xbf16>
    %98 = vector.extract_strided_slice %97 {offsets = [0, 0], sizes = [8, 128], strides = [1, 1]} : vector<8x256xbf16> to vector<8x128xbf16>
    %99 = arith.extf %98 : vector<8x128xbf16> to vector<8x128xf32>
    %100 = arith.addf %99, %92 : vector<8x128xf32>
    %c15_i32_34 = arith.constant 15 : i32
    %101 = arith.subi %c15_i32_34, %c1_i32 : i32
    %102 = arith.index_cast %101 : i32 to index
    %c0_35 = arith.constant 0 : index
    %c0_36 = arith.constant 0 : index
    %103 = vector.load %arg7[%102, %c0_35, %c0_36] : memref<16x8x256xbf16, #tpu.memory_space<vmem>>, vector<1x8x256xbf16>
    %104 = vector.shape_cast %103 : vector<1x8x256xbf16> to vector<8x256xbf16>
    %105 = vector.extract_strided_slice %104 {offsets = [0, 128], sizes = [8, 128], strides = [1, 1]} : vector<8x256xbf16> to vector<8x128xbf16>
    %106 = arith.extf %105 : vector<8x128xbf16> to vector<8x128xf32>
    %107 = arith.addf %106, %94 : vector<8x128xf32>
    %108 = vector.extract_strided_slice %100 {offsets = [0, 0], sizes = [8, 32], strides = [1, 1]} : vector<8x128xf32> to vector<8x32xf32>
    %109 = arith.negf %108 : vector<8x32xf32>
    %110 = math.exp %109 : vector<8x32xf32>
    %cst_37 = arith.constant 1.000000e+00 : f32
    %111 = vector.broadcast %cst_37 : f32 to vector<8x32xf32>
    %112 = arith.addf %111, %110 : vector<8x32xf32>
    %113 = arith.divf %111, %112 : vector<8x32xf32>
    %114 = vector.extract_strided_slice %100 {offsets = [0, 32], sizes = [8, 32], strides = [1, 1]} : vector<8x128xf32> to vector<8x32xf32>
    %115 = arith.negf %114 : vector<8x32xf32>
    %116 = math.exp %115 : vector<8x32xf32>
    %cst_38 = arith.constant 1.000000e+00 : f32
    %117 = vector.broadcast %cst_38 : f32 to vector<8x32xf32>
    %118 = arith.addf %117, %116 : vector<8x32xf32>
    %119 = arith.divf %117, %118 : vector<8x32xf32>
    %120 = vector.extract_strided_slice %100 {offsets = [0, 64], sizes = [8, 32], strides = [1, 1]} : vector<8x128xf32> to vector<8x32xf32>
    %121 = math.tanh %120 : vector<8x32xf32>
    %122 = vector.extract_strided_slice %100 {offsets = [0, 96], sizes = [8, 32], strides = [1, 1]} : vector<8x128xf32> to vector<8x32xf32>
    %123 = arith.negf %122 : vector<8x32xf32>
    %124 = math.exp %123 : vector<8x32xf32>
    %cst_39 = arith.constant 1.000000e+00 : f32
    %125 = vector.broadcast %cst_39 : f32 to vector<8x32xf32>
    %126 = arith.addf %125, %124 : vector<8x32xf32>
    %127 = arith.divf %125, %126 : vector<8x32xf32>
    %128 = arith.mulf %119, %52 : vector<8x32xf32>
    %129 = arith.mulf %113, %121 : vector<8x32xf32>
    %130 = arith.addf %128, %129 : vector<8x32xf32>
    %131 = math.tanh %130 : vector<8x32xf32>
    %132 = arith.mulf %127, %131 : vector<8x32xf32>
    %133 = vector.extract_strided_slice %107 {offsets = [0, 0], sizes = [8, 32], strides = [1, 1]} : vector<8x128xf32> to vector<8x32xf32>
    %134 = arith.negf %133 : vector<8x32xf32>
    %135 = math.exp %134 : vector<8x32xf32>
    %cst_40 = arith.constant 1.000000e+00 : f32
    %136 = vector.broadcast %cst_40 : f32 to vector<8x32xf32>
    %137 = arith.addf %136, %135 : vector<8x32xf32>
    %138 = arith.divf %136, %137 : vector<8x32xf32>
    %139 = vector.extract_strided_slice %107 {offsets = [0, 32], sizes = [8, 32], strides = [1, 1]} : vector<8x128xf32> to vector<8x32xf32>
    %140 = arith.negf %139 : vector<8x32xf32>
    %141 = math.exp %140 : vector<8x32xf32>
    %cst_41 = arith.constant 1.000000e+00 : f32
    %142 = vector.broadcast %cst_41 : f32 to vector<8x32xf32>
    %143 = arith.addf %142, %141 : vector<8x32xf32>
    %144 = arith.divf %142, %143 : vector<8x32xf32>
    %145 = vector.extract_strided_slice %107 {offsets = [0, 64], sizes = [8, 32], strides = [1, 1]} : vector<8x128xf32> to vector<8x32xf32>
    %146 = math.tanh %145 : vector<8x32xf32>
    %147 = vector.extract_strided_slice %107 {offsets = [0, 96], sizes = [8, 32], strides = [1, 1]} : vector<8x128xf32> to vector<8x32xf32>
    %148 = arith.negf %147 : vector<8x32xf32>
    %149 = math.exp %148 : vector<8x32xf32>
    %cst_42 = arith.constant 1.000000e+00 : f32
    %150 = vector.broadcast %cst_42 : f32 to vector<8x32xf32>
    %151 = arith.addf %150, %149 : vector<8x32xf32>
    %152 = arith.divf %150, %151 : vector<8x32xf32>
    %153 = arith.mulf %144, %77 : vector<8x32xf32>
    %154 = arith.mulf %138, %146 : vector<8x32xf32>
    %155 = arith.addf %153, %154 : vector<8x32xf32>
    %156 = math.tanh %155 : vector<8x32xf32>
    %157 = arith.mulf %152, %156 : vector<8x32xf32>
    %158 = arith.truncf %132 : vector<8x32xf32> to vector<8x32xbf16>
    %159 = arith.index_cast %c1_i32 : i32 to index
    %c0_43 = arith.constant 0 : index
    %c0_44 = arith.constant 0 : index
    %160 = vector.load %arg6[%159, %c0_43, %c0_44] : memref<16x8x64xbf16, #tpu.memory_space<vmem>>, vector<1x8x32xbf16>
    %161 = vector.shape_cast %160 : vector<1x8x32xbf16> to vector<8x32xbf16>
    %162 = vector.shape_cast %158 : vector<8x32xbf16> to vector<1x8x32xbf16>
    tpu.vector_store %arg6[%159, %c0_43, %c0_44], %162 {strides = array<i32>} : memref<16x8x64xbf16, #tpu.memory_space<vmem>>, vector<1x8x32xbf16>,
    %163 = arith.truncf %157 : vector<8x32xf32> to vector<8x32xbf16>
    %c15_i32_45 = arith.constant 15 : i32
    %164 = arith.subi %c15_i32_45, %c1_i32 : i32
    %165 = arith.index_cast %164 : i32 to index
    %c0_46 = arith.constant 0 : index
    %c32_47 = arith.constant 32 : index
    %166 = vector.load %arg6[%165, %c0_46, %c32_47] : memref<16x8x64xbf16, #tpu.memory_space<vmem>>, vector<1x8x32xbf16>
    %167 = vector.shape_cast %166 : vector<1x8x32xbf16> to vector<8x32xbf16>
    %168 = vector.shape_cast %163 : vector<8x32xbf16> to vector<1x8x32xbf16>
    tpu.vector_store %arg6[%165, %c0_46, %c32_47], %168 {strides = array<i32>} : memref<16x8x64xbf16, #tpu.memory_space<vmem>>, vector<1x8x32xbf16>,
    %c2_i32 = arith.constant 2 : i32
    %169 = arith.truncf %132 : vector<8x32xf32> to vector<8x32xbf16>
    %cst_48 = arith.constant dense<0.000000e+00> : vector<8x128xf32>
    %170 = tpu.matmul %169, %10, %cst_48 {dimension_numbers = #tpu.dot_dimension_numbers<[1], [0], [0], [1], [0, 0, 1, 1], [], []>} : vector<8x32xbf16>, vector<32x128xbf16>, vector<8x128xf32> -> vector<8x128xf32>
    %171 = arith.truncf %157 : vector<8x32xf32> to vector<8x32xbf16>
    %cst_49 = arith.constant dense<0.000000e+00> : vector<8x128xf32>
    %172 = tpu.matmul %171, %11, %cst_49 {dimension_numbers = #tpu.dot_dimension_numbers<[1], [0], [0], [1], [0, 0, 1, 1], [], []>} : vector<8x32xbf16>, vector<32x128xbf16>, vector<8x128xf32> -> vector<8x128xf32>
    %173 = arith.index_cast %c2_i32 : i32 to index
    %c0_50 = arith.constant 0 : index
    %c0_51 = arith.constant 0 : index
    %174 = vector.load %arg7[%173, %c0_50, %c0_51] : memref<16x8x256xbf16, #tpu.memory_space<vmem>>, vector<1x8x256xbf16>
    %175 = vector.shape_cast %174 : vector<1x8x256xbf16> to vector<8x256xbf16>
    %176 = vector.extract_strided_slice %175 {offsets = [0, 0], sizes = [8, 128], strides = [1, 1]} : vector<8x256xbf16> to vector<8x128xbf16>
    %177 = arith.extf %176 : vector<8x128xbf16> to vector<8x128xf32>
    %178 = arith.addf %177, %170 : vector<8x128xf32>
    %c15_i32_52 = arith.constant 15 : i32
    %179 = arith.subi %c15_i32_52, %c2_i32 : i32
    %180 = arith.index_cast %179 : i32 to index
    %c0_53 = arith.constant 0 : index
    %c0_54 = arith.constant 0 : index
    %181 = vector.load %arg7[%180, %c0_53, %c0_54] : memref<16x8x256xbf16, #tpu.memory_space<vmem>>, vector<1x8x256xbf16>
    %182 = vector.shape_cast %181 : vector<1x8x256xbf16> to vector<8x256xbf16>
    %183 = vector.extract_strided_slice %182 {offsets = [0, 128], sizes = [8, 128], strides = [1, 1]} : vector<8x256xbf16> to vector<8x128xbf16>
    %184 = arith.extf %183 : vector<8x128xbf16> to vector<8x128xf32>
    %185 = arith.addf %184, %172 : vector<8x128xf32>
    %186 = vector.extract_strided_slice %178 {offsets = [0, 0], sizes = [8, 32], strides = [1, 1]} : vector<8x128xf32> to vector<8x32xf32>
    %187 = arith.negf %186 : vector<8x32xf32>
    %188 = math.exp %187 : vector<8x32xf32>
    %cst_55 = arith.constant 1.000000e+00 : f32
    %189 = vector.broadcast %cst_55 : f32 to vector<8x32xf32>
    %190 = arith.addf %189, %188 : vector<8x32xf32>
    %191 = arith.divf %189, %190 : vector<8x32xf32>
    %192 = vector.extract_strided_slice %178 {offsets = [0, 32], sizes = [8, 32], strides = [1, 1]} : vector<8x128xf32> to vector<8x32xf32>
    %193 = arith.negf %192 : vector<8x32xf32>
    %194 = math.exp %193 : vector<8x32xf32>
    %cst_56 = arith.constant 1.000000e+00 : f32
    %195 = vector.broadcast %cst_56 : f32 to vector<8x32xf32>
    %196 = arith.addf %195, %194 : vector<8x32xf32>
    %197 = arith.divf %195, %196 : vector<8x32xf32>
    %198 = vector.extract_strided_slice %178 {offsets = [0, 64], sizes = [8, 32], strides = [1, 1]} : vector<8x128xf32> to vector<8x32xf32>
    %199 = math.tanh %198 : vector<8x32xf32>
    %200 = vector.extract_strided_slice %178 {offsets = [0, 96], sizes = [8, 32], strides = [1, 1]} : vector<8x128xf32> to vector<8x32xf32>
    %201 = arith.negf %200 : vector<8x32xf32>
    %202 = math.exp %201 : vector<8x32xf32>
    %cst_57 = arith.constant 1.000000e+00 : f32
    %203 = vector.broadcast %cst_57 : f32 to vector<8x32xf32>
    %204 = arith.addf %203, %202 : vector<8x32xf32>
    %205 = arith.divf %203, %204 : vector<8x32xf32>
    %206 = arith.mulf %197, %130 : vector<8x32xf32>
    %207 = arith.mulf %191, %199 : vector<8x32xf32>
    %208 = arith.addf %206, %207 : vector<8x32xf32>
    %209 = math.tanh %208 : vector<8x32xf32>
    %210 = arith.mulf %205, %209 : vector<8x32xf32>
    %211 = vector.extract_strided_slice %185 {offsets = [0, 0], sizes = [8, 32], strides = [1, 1]} : vector<8x128xf32> to vector<8x32xf32>
    %212 = arith.negf %211 : vector<8x32xf32>
    %213 = math.exp %212 : vector<8x32xf32>
    %cst_58 = arith.constant 1.000000e+00 : f32
    %214 = vector.broadcast %cst_58 : f32 to vector<8x32xf32>
    %215 = arith.addf %214, %213 : vector<8x32xf32>
    %216 = arith.divf %214, %215 : vector<8x32xf32>
    %217 = vector.extract_strided_slice %185 {offsets = [0, 32], sizes = [8, 32], strides = [1, 1]} : vector<8x128xf32> to vector<8x32xf32>
    %218 = arith.negf %217 : vector<8x32xf32>
    %219 = math.exp %218 : vector<8x32xf32>
    %cst_59 = arith.constant 1.000000e+00 : f32
    %220 = vector.broadcast %cst_59 : f32 to vector<8x32xf32>
    %221 = arith.addf %220, %219 : vector<8x32xf32>
    %222 = arith.divf %220, %221 : vector<8x32xf32>
    %223 = vector.extract_strided_slice %185 {offsets = [0, 64], sizes = [8, 32], strides = [1, 1]} : vector<8x128xf32> to vector<8x32xf32>
    %224 = math.tanh %223 : vector<8x32xf32>
    %225 = vector.extract_strided_slice %185 {offsets = [0, 96], sizes = [8, 32], strides = [1, 1]} : vector<8x128xf32> to vector<8x32xf32>
    %226 = arith.negf %225 : vector<8x32xf32>
    %227 = math.exp %226 : vector<8x32xf32>
    %cst_60 = arith.constant 1.000000e+00 : f32
    %228 = vector.broadcast %cst_60 : f32 to vector<8x32xf32>
    %229 = arith.addf %228, %227 : vector<8x32xf32>
    %230 = arith.divf %228, %229 : vector<8x32xf32>
    %231 = arith.mulf %222, %155 : vector<8x32xf32>
    %232 = arith.mulf %216, %224 : vector<8x32xf32>
    %233 = arith.addf %231, %232 : vector<8x32xf32>
    %234 = math.tanh %233 : vector<8x32xf32>
    %235 = arith.mulf %230, %234 : vector<8x32xf32>
    %236 = arith.truncf %210 : vector<8x32xf32> to vector<8x32xbf16>
    %237 = arith.index_cast %c2_i32 : i32 to index
    %c0_61 = arith.constant 0 : index
    %c0_62 = arith.constant 0 : index
    %238 = vector.load %arg6[%237, %c0_61, %c0_62] : memref<16x8x64xbf16, #tpu.memory_space<vmem>>, vector<1x8x32xbf16>
    %239 = vector.shape_cast %238 : vector<1x8x32xbf16> to vector<8x32xbf16>
    %240 = vector.shape_cast %236 : vector<8x32xbf16> to vector<1x8x32xbf16>
    tpu.vector_store %arg6[%237, %c0_61, %c0_62], %240 {strides = array<i32>} : memref<16x8x64xbf16, #tpu.memory_space<vmem>>, vector<1x8x32xbf16>,
    %241 = arith.truncf %235 : vector<8x32xf32> to vector<8x32xbf16>
    %c15_i32_63 = arith.constant 15 : i32
    %242 = arith.subi %c15_i32_63, %c2_i32 : i32
    %243 = arith.index_cast %242 : i32 to index
    %c0_64 = arith.constant 0 : index
    %c32_65 = arith.constant 32 : index
    %244 = vector.load %arg6[%243, %c0_64, %c32_65] : memref<16x8x64xbf16, #tpu.memory_space<vmem>>, vector<1x8x32xbf16>
    %245 = vector.shape_cast %244 : vector<1x8x32xbf16> to vector<8x32xbf16>
    %246 = vector.shape_cast %241 : vector<8x32xbf16> to vector<1x8x32xbf16>
    tpu.vector_store %arg6[%243, %c0_64, %c32_65], %246 {strides = array<i32>} : memref<16x8x64xbf16, #tpu.memory_space<vmem>>, vector<1x8x32xbf16>,
    %c3_i32 = arith.constant 3 : i32
    %247 = arith.truncf %210 : vector<8x32xf32> to vector<8x32xbf16>
    %cst_66 = arith.constant dense<0.000000e+00> : vector<8x128xf32>
    %248 = tpu.matmul %247, %10, %cst_66 {dimension_numbers = #tpu.dot_dimension_numbers<[1], [0], [0], [1], [0, 0, 1, 1], [], []>} : vector<8x32xbf16>, vector<32x128xbf16>, vector<8x128xf32> -> vector<8x128xf32>
    %249 = arith.truncf %235 : vector<8x32xf32> to vector<8x32xbf16>
    %cst_67 = arith.constant dense<0.000000e+00> : vector<8x128xf32>
    %250 = tpu.matmul %249, %11, %cst_67 {dimension_numbers = #tpu.dot_dimension_numbers<[1], [0], [0], [1], [0, 0, 1, 1], [], []>} : vector<8x32xbf16>, vector<32x128xbf16>, vector<8x128xf32> -> vector<8x128xf32>
    %251 = arith.index_cast %c3_i32 : i32 to index
    %c0_68 = arith.constant 0 : index
    %c0_69 = arith.constant 0 : index
    %252 = vector.load %arg7[%251, %c0_68, %c0_69] : memref<16x8x256xbf16, #tpu.memory_space<vmem>>, vector<1x8x256xbf16>
    %253 = vector.shape_cast %252 : vector<1x8x256xbf16> to vector<8x256xbf16>
    %254 = vector.extract_strided_slice %253 {offsets = [0, 0], sizes = [8, 128], strides = [1, 1]} : vector<8x256xbf16> to vector<8x128xbf16>
    %255 = arith.extf %254 : vector<8x128xbf16> to vector<8x128xf32>
    %256 = arith.addf %255, %248 : vector<8x128xf32>
    %c15_i32_70 = arith.constant 15 : i32
    %257 = arith.subi %c15_i32_70, %c3_i32 : i32
    %258 = arith.index_cast %257 : i32 to index
    %c0_71 = arith.constant 0 : index
    %c0_72 = arith.constant 0 : index
    %259 = vector.load %arg7[%258, %c0_71, %c0_72] : memref<16x8x256xbf16, #tpu.memory_space<vmem>>, vector<1x8x256xbf16>
    %260 = vector.shape_cast %259 : vector<1x8x256xbf16> to vector<8x256xbf16>
    %261 = vector.extract_strided_slice %260 {offsets = [0, 128], sizes = [8, 128], strides = [1, 1]} : vector<8x256xbf16> to vector<8x128xbf16>
    %262 = arith.extf %261 : vector<8x128xbf16> to vector<8x128xf32>
    %263 = arith.addf %262, %250 : vector<8x128xf32>
    %264 = vector.extract_strided_slice %256 {offsets = [0, 0], sizes = [8, 32], strides = [1, 1]} : vector<8x128xf32> to vector<8x32xf32>
    %265 = arith.negf %264 : vector<8x32xf32>
    %266 = math.exp %265 : vector<8x32xf32>
    %cst_73 = arith.constant 1.000000e+00 : f32
    %267 = vector.broadcast %cst_73 : f32 to vector<8x32xf32>
    %268 = arith.addf %267, %266 : vector<8x32xf32>
    %269 = arith.divf %267, %268 : vector<8x32xf32>
    %270 = vector.extract_strided_slice %256 {offsets = [0, 32], sizes = [8, 32], strides = [1, 1]} : vector<8x128xf32> to vector<8x32xf32>
    %271 = arith.negf %270 : vector<8x32xf32>
    %272 = math.exp %271 : vector<8x32xf32>
    %cst_74 = arith.constant 1.000000e+00 : f32
    %273 = vector.broadcast %cst_74 : f32 to vector<8x32xf32>
    %274 = arith.addf %273, %272 : vector<8x32xf32>
    %275 = arith.divf %273, %274 : vector<8x32xf32>
    %276 = vector.extract_strided_slice %256 {offsets = [0, 64], sizes = [8, 32], strides = [1, 1]} : vector<8x128xf32> to vector<8x32xf32>
    %277 = math.tanh %276 : vector<8x32xf32>
    %278 = vector.extract_strided_slice %256 {offsets = [0, 96], sizes = [8, 32], strides = [1, 1]} : vector<8x128xf32> to vector<8x32xf32>
    %279 = arith.negf %278 : vector<8x32xf32>
    %280 = math.exp %279 : vector<8x32xf32>
    %cst_75 = arith.constant 1.000000e+00 : f32
    %281 = vector.broadcast %cst_75 : f32 to vector<8x32xf32>
    %282 = arith.addf %281, %280 : vector<8x32xf32>
    %283 = arith.divf %281, %282 : vector<8x32xf32>
    %284 = arith.mulf %275, %208 : vector<8x32xf32>
    %285 = arith.mulf %269, %277 : vector<8x32xf32>
    %286 = arith.addf %284, %285 : vector<8x32xf32>
    %287 = math.tanh %286 : vector<8x32xf32>
    %288 = arith.mulf %283, %287 : vector<8x32xf32>
    %289 = vector.extract_strided_slice %263 {offsets = [0, 0], sizes = [8, 32], strides = [1, 1]} : vector<8x128xf32> to vector<8x32xf32>
    %290 = arith.negf %289 : vector<8x32xf32>
    %291 = math.exp %290 : vector<8x32xf32>
    %cst_76 = arith.constant 1.000000e+00 : f32
    %292 = vector.broadcast %cst_76 : f32 to vector<8x32xf32>
    %293 = arith.addf %292, %291 : vector<8x32xf32>
    %294 = arith.divf %292, %293 : vector<8x32xf32>
    %295 = vector.extract_strided_slice %263 {offsets = [0, 32], sizes = [8, 32], strides = [1, 1]} : vector<8x128xf32> to vector<8x32xf32>
    %296 = arith.negf %295 : vector<8x32xf32>
    %297 = math.exp %296 : vector<8x32xf32>
    %cst_77 = arith.constant 1.000000e+00 : f32
    %298 = vector.broadcast %cst_77 : f32 to vector<8x32xf32>
    %299 = arith.addf %298, %297 : vector<8x32xf32>
    %300 = arith.divf %298, %299 : vector<8x32xf32>
    %301 = vector.extract_strided_slice %263 {offsets = [0, 64], sizes = [8, 32], strides = [1, 1]} : vector<8x128xf32> to vector<8x32xf32>
    %302 = math.tanh %301 : vector<8x32xf32>
    %303 = vector.extract_strided_slice %263 {offsets = [0, 96], sizes = [8, 32], strides = [1, 1]} : vector<8x128xf32> to vector<8x32xf32>
    %304 = arith.negf %303 : vector<8x32xf32>
    %305 = math.exp %304 : vector<8x32xf32>
    %cst_78 = arith.constant 1.000000e+00 : f32
    %306 = vector.broadcast %cst_78 : f32 to vector<8x32xf32>
    %307 = arith.addf %306, %305 : vector<8x32xf32>
    %308 = arith.divf %306, %307 : vector<8x32xf32>
    %309 = arith.mulf %300, %233 : vector<8x32xf32>
    %310 = arith.mulf %294, %302 : vector<8x32xf32>
    %311 = arith.addf %309, %310 : vector<8x32xf32>
    %312 = math.tanh %311 : vector<8x32xf32>
    %313 = arith.mulf %308, %312 : vector<8x32xf32>
    %314 = arith.truncf %288 : vector<8x32xf32> to vector<8x32xbf16>
    %315 = arith.index_cast %c3_i32 : i32 to index
    %c0_79 = arith.constant 0 : index
    %c0_80 = arith.constant 0 : index
    %316 = vector.load %arg6[%315, %c0_79, %c0_80] : memref<16x8x64xbf16, #tpu.memory_space<vmem>>, vector<1x8x32xbf16>
    %317 = vector.shape_cast %316 : vector<1x8x32xbf16> to vector<8x32xbf16>
    %318 = vector.shape_cast %314 : vector<8x32xbf16> to vector<1x8x32xbf16>
    tpu.vector_store %arg6[%315, %c0_79, %c0_80], %318 {strides = array<i32>} : memref<16x8x64xbf16, #tpu.memory_space<vmem>>, vector<1x8x32xbf16>,
    %319 = arith.truncf %313 : vector<8x32xf32> to vector<8x32xbf16>
    %c15_i32_81 = arith.constant 15 : i32
    %320 = arith.subi %c15_i32_81, %c3_i32 : i32
    %321 = arith.index_cast %320 : i32 to index
    %c0_82 = arith.constant 0 : index
    %c32_83 = arith.constant 32 : index
    %322 = vector.load %arg6[%321, %c0_82, %c32_83] : memref<16x8x64xbf16, #tpu.memory_space<vmem>>, vector<1x8x32xbf16>
    %323 = vector.shape_cast %322 : vector<1x8x32xbf16> to vector<8x32xbf16>
    %324 = vector.shape_cast %319 : vector<8x32xbf16> to vector<1x8x32xbf16>
    tpu.vector_store %arg6[%321, %c0_82, %c32_83], %324 {strides = array<i32>} : memref<16x8x64xbf16, #tpu.memory_space<vmem>>, vector<1x8x32xbf16>,
    %c4_i32 = arith.constant 4 : i32
    %325 = arith.truncf %288 : vector<8x32xf32> to vector<8x32xbf16>
    %cst_84 = arith.constant dense<0.000000e+00> : vector<8x128xf32>
    %326 = tpu.matmul %325, %10, %cst_84 {dimension_numbers = #tpu.dot_dimension_numbers<[1], [0], [0], [1], [0, 0, 1, 1], [], []>} : vector<8x32xbf16>, vector<32x128xbf16>, vector<8x128xf32> -> vector<8x128xf32>
    %327 = arith.truncf %313 : vector<8x32xf32> to vector<8x32xbf16>
    %cst_85 = arith.constant dense<0.000000e+00> : vector<8x128xf32>
    %328 = tpu.matmul %327, %11, %cst_85 {dimension_numbers = #tpu.dot_dimension_numbers<[1], [0], [0], [1], [0, 0, 1, 1], [], []>} : vector<8x32xbf16>, vector<32x128xbf16>, vector<8x128xf32> -> vector<8x128xf32>
    %329 = arith.index_cast %c4_i32 : i32 to index
    %c0_86 = arith.constant 0 : index
    %c0_87 = arith.constant 0 : index
    %330 = vector.load %arg7[%329, %c0_86, %c0_87] : memref<16x8x256xbf16, #tpu.memory_space<vmem>>, vector<1x8x256xbf16>
    %331 = vector.shape_cast %330 : vector<1x8x256xbf16> to vector<8x256xbf16>
    %332 = vector.extract_strided_slice %331 {offsets = [0, 0], sizes = [8, 128], strides = [1, 1]} : vector<8x256xbf16> to vector<8x128xbf16>
    %333 = arith.extf %332 : vector<8x128xbf16> to vector<8x128xf32>
    %334 = arith.addf %333, %326 : vector<8x128xf32>
    %c15_i32_88 = arith.constant 15 : i32
    %335 = arith.subi %c15_i32_88, %c4_i32 : i32
    %336 = arith.index_cast %335 : i32 to index
    %c0_89 = arith.constant 0 : index
    %c0_90 = arith.constant 0 : index
    %337 = vector.load %arg7[%336, %c0_89, %c0_90] : memref<16x8x256xbf16, #tpu.memory_space<vmem>>, vector<1x8x256xbf16>
    %338 = vector.shape_cast %337 : vector<1x8x256xbf16> to vector<8x256xbf16>
    %339 = vector.extract_strided_slice %338 {offsets = [0, 128], sizes = [8, 128], strides = [1, 1]} : vector<8x256xbf16> to vector<8x128xbf16>
    %340 = arith.extf %339 : vector<8x128xbf16> to vector<8x128xf32>
    %341 = arith.addf %340, %328 : vector<8x128xf32>
    %342 = vector.extract_strided_slice %334 {offsets = [0, 0], sizes = [8, 32], strides = [1, 1]} : vector<8x128xf32> to vector<8x32xf32>
    %343 = arith.negf %342 : vector<8x32xf32>
    %344 = math.exp %343 : vector<8x32xf32>
    %cst_91 = arith.constant 1.000000e+00 : f32
    %345 = vector.broadcast %cst_91 : f32 to vector<8x32xf32>
    %346 = arith.addf %345, %344 : vector<8x32xf32>
    %347 = arith.divf %345, %346 : vector<8x32xf32>
    %348 = vector.extract_strided_slice %334 {offsets = [0, 32], sizes = [8, 32], strides = [1, 1]} : vector<8x128xf32> to vector<8x32xf32>
    %349 = arith.negf %348 : vector<8x32xf32>
    %350 = math.exp %349 : vector<8x32xf32>
    %cst_92 = arith.constant 1.000000e+00 : f32
    %351 = vector.broadcast %cst_92 : f32 to vector<8x32xf32>
    %352 = arith.addf %351, %350 : vector<8x32xf32>
    %353 = arith.divf %351, %352 : vector<8x32xf32>
    %354 = vector.extract_strided_slice %334 {offsets = [0, 64], sizes = [8, 32], strides = [1, 1]} : vector<8x128xf32> to vector<8x32xf32>
    %355 = math.tanh %354 : vector<8x32xf32>
    %356 = vector.extract_strided_slice %334 {offsets = [0, 96], sizes = [8, 32], strides = [1, 1]} : vector<8x128xf32> to vector<8x32xf32>
    %357 = arith.negf %356 : vector<8x32xf32>
    %358 = math.exp %357 : vector<8x32xf32>
    %cst_93 = arith.constant 1.000000e+00 : f32
    %359 = vector.broadcast %cst_93 : f32 to vector<8x32xf32>
    %360 = arith.addf %359, %358 : vector<8x32xf32>
    %361 = arith.divf %359, %360 : vector<8x32xf32>
    %362 = arith.mulf %353, %286 : vector<8x32xf32>
    %363 = arith.mulf %347, %355 : vector<8x32xf32>
    %364 = arith.addf %362, %363 : vector<8x32xf32>
    %365 = math.tanh %364 : vector<8x32xf32>
    %366 = arith.mulf %361, %365 : vector<8x32xf32>
    %367 = vector.extract_strided_slice %341 {offsets = [0, 0], sizes = [8, 32], strides = [1, 1]} : vector<8x128xf32> to vector<8x32xf32>
    %368 = arith.negf %367 : vector<8x32xf32>
    %369 = math.exp %368 : vector<8x32xf32>
    %cst_94 = arith.constant 1.000000e+00 : f32
    %370 = vector.broadcast %cst_94 : f32 to vector<8x32xf32>
    %371 = arith.addf %370, %369 : vector<8x32xf32>
    %372 = arith.divf %370, %371 : vector<8x32xf32>
    %373 = vector.extract_strided_slice %341 {offsets = [0, 32], sizes = [8, 32], strides = [1, 1]} : vector<8x128xf32> to vector<8x32xf32>
    %374 = arith.negf %373 : vector<8x32xf32>
    %375 = math.exp %374 : vector<8x32xf32>
    %cst_95 = arith.constant 1.000000e+00 : f32
    %376 = vector.broadcast %cst_95 : f32 to vector<8x32xf32>
    %377 = arith.addf %376, %375 : vector<8x32xf32>
    %378 = arith.divf %376, %377 : vector<8x32xf32>
    %379 = vector.extract_strided_slice %341 {offsets = [0, 64], sizes = [8, 32], strides = [1, 1]} : vector<8x128xf32> to vector<8x32xf32>
    %380 = math.tanh %379 : vector<8x32xf32>
    %381 = vector.extract_strided_slice %341 {offsets = [0, 96], sizes = [8, 32], strides = [1, 1]} : vector<8x128xf32> to vector<8x32xf32>
    %382 = arith.negf %381 : vector<8x32xf32>
    %383 = math.exp %382 : vector<8x32xf32>
    %cst_96 = arith.constant 1.000000e+00 : f32
    %384 = vector.broadcast %cst_96 : f32 to vector<8x32xf32>
    %385 = arith.addf %384, %383 : vector<8x32xf32>
    %386 = arith.divf %384, %385 : vector<8x32xf32>
    %387 = arith.mulf %378, %311 : vector<8x32xf32>
    %388 = arith.mulf %372, %380 : vector<8x32xf32>
    %389 = arith.addf %387, %388 : vector<8x32xf32>
    %390 = math.tanh %389 : vector<8x32xf32>
    %391 = arith.mulf %386, %390 : vector<8x32xf32>
    %392 = arith.truncf %366 : vector<8x32xf32> to vector<8x32xbf16>
    %393 = arith.index_cast %c4_i32 : i32 to index
    %c0_97 = arith.constant 0 : index
    %c0_98 = arith.constant 0 : index
    %394 = vector.load %arg6[%393, %c0_97, %c0_98] : memref<16x8x64xbf16, #tpu.memory_space<vmem>>, vector<1x8x32xbf16>
    %395 = vector.shape_cast %394 : vector<1x8x32xbf16> to vector<8x32xbf16>
    %396 = vector.shape_cast %392 : vector<8x32xbf16> to vector<1x8x32xbf16>
    tpu.vector_store %arg6[%393, %c0_97, %c0_98], %396 {strides = array<i32>} : memref<16x8x64xbf16, #tpu.memory_space<vmem>>, vector<1x8x32xbf16>,
    %397 = arith.truncf %391 : vector<8x32xf32> to vector<8x32xbf16>
    %c15_i32_99 = arith.constant 15 : i32
    %398 = arith.subi %c15_i32_99, %c4_i32 : i32
    %399 = arith.index_cast %398 : i32 to index
    %c0_100 = arith.constant 0 : index
    %c32_101 = arith.constant 32 : index
    %400 = vector.load %arg6[%399, %c0_100, %c32_101] : memref<16x8x64xbf16, #tpu.memory_space<vmem>>, vector<1x8x32xbf16>
    %401 = vector.shape_cast %400 : vector<1x8x32xbf16> to vector<8x32xbf16>
    %402 = vector.shape_cast %397 : vector<8x32xbf16> to vector<1x8x32xbf16>
    tpu.vector_store %arg6[%399, %c0_100, %c32_101], %402 {strides = array<i32>} : memref<16x8x64xbf16, #tpu.memory_space<vmem>>, vector<1x8x32xbf16>,
    %c5_i32 = arith.constant 5 : i32
    %403 = arith.truncf %366 : vector<8x32xf32> to vector<8x32xbf16>
    %cst_102 = arith.constant dense<0.000000e+00> : vector<8x128xf32>
    %404 = tpu.matmul %403, %10, %cst_102 {dimension_numbers = #tpu.dot_dimension_numbers<[1], [0], [0], [1], [0, 0, 1, 1], [], []>} : vector<8x32xbf16>, vector<32x128xbf16>, vector<8x128xf32> -> vector<8x128xf32>
    %405 = arith.truncf %391 : vector<8x32xf32> to vector<8x32xbf16>
    %cst_103 = arith.constant dense<0.000000e+00> : vector<8x128xf32>
    %406 = tpu.matmul %405, %11, %cst_103 {dimension_numbers = #tpu.dot_dimension_numbers<[1], [0], [0], [1], [0, 0, 1, 1], [], []>} : vector<8x32xbf16>, vector<32x128xbf16>, vector<8x128xf32> -> vector<8x128xf32>
    %407 = arith.index_cast %c5_i32 : i32 to index
    %c0_104 = arith.constant 0 : index
    %c0_105 = arith.constant 0 : index
    %408 = vector.load %arg7[%407, %c0_104, %c0_105] : memref<16x8x256xbf16, #tpu.memory_space<vmem>>, vector<1x8x256xbf16>
    %409 = vector.shape_cast %408 : vector<1x8x256xbf16> to vector<8x256xbf16>
    %410 = vector.extract_strided_slice %409 {offsets = [0, 0], sizes = [8, 128], strides = [1, 1]} : vector<8x256xbf16> to vector<8x128xbf16>
    %411 = arith.extf %410 : vector<8x128xbf16> to vector<8x128xf32>
    %412 = arith.addf %411, %404 : vector<8x128xf32>
    %c15_i32_106 = arith.constant 15 : i32
    %413 = arith.subi %c15_i32_106, %c5_i32 : i32
    %414 = arith.index_cast %413 : i32 to index
    %c0_107 = arith.constant 0 : index
    %c0_108 = arith.constant 0 : index
    %415 = vector.load %arg7[%414, %c0_107, %c0_108] : memref<16x8x256xbf16, #tpu.memory_space<vmem>>, vector<1x8x256xbf16>
    %416 = vector.shape_cast %415 : vector<1x8x256xbf16> to vector<8x256xbf16>
    %417 = vector.extract_strided_slice %416 {offsets = [0, 128], sizes = [8, 128], strides = [1, 1]} : vector<8x256xbf16> to vector<8x128xbf16>
    %418 = arith.extf %417 : vector<8x128xbf16> to vector<8x128xf32>
    %419 = arith.addf %418, %406 : vector<8x128xf32>
    %420 = vector.extract_strided_slice %412 {offsets = [0, 0], sizes = [8, 32], strides = [1, 1]} : vector<8x128xf32> to vector<8x32xf32>
    %421 = arith.negf %420 : vector<8x32xf32>
    %422 = math.exp %421 : vector<8x32xf32>
    %cst_109 = arith.constant 1.000000e+00 : f32
    %423 = vector.broadcast %cst_109 : f32 to vector<8x32xf32>
    %424 = arith.addf %423, %422 : vector<8x32xf32>
    %425 = arith.divf %423, %424 : vector<8x32xf32>
    %426 = vector.extract_strided_slice %412 {offsets = [0, 32], sizes = [8, 32], strides = [1, 1]} : vector<8x128xf32> to vector<8x32xf32>
    %427 = arith.negf %426 : vector<8x32xf32>
    %428 = math.exp %427 : vector<8x32xf32>
    %cst_110 = arith.constant 1.000000e+00 : f32
    %429 = vector.broadcast %cst_110 : f32 to vector<8x32xf32>
    %430 = arith.addf %429, %428 : vector<8x32xf32>
    %431 = arith.divf %429, %430 : vector<8x32xf32>
    %432 = vector.extract_strided_slice %412 {offsets = [0, 64], sizes = [8, 32], strides = [1, 1]} : vector<8x128xf32> to vector<8x32xf32>
    %433 = math.tanh %432 : vector<8x32xf32>
    %434 = vector.extract_strided_slice %412 {offsets = [0, 96], sizes = [8, 32], strides = [1, 1]} : vector<8x128xf32> to vector<8x32xf32>
    %435 = arith.negf %434 : vector<8x32xf32>
    %436 = math.exp %435 : vector<8x32xf32>
    %cst_111 = arith.constant 1.000000e+00 : f32
    %437 = vector.broadcast %cst_111 : f32 to vector<8x32xf32>
    %438 = arith.addf %437, %436 : vector<8x32xf32>
    %439 = arith.divf %437, %438 : vector<8x32xf32>
    %440 = arith.mulf %431, %364 : vector<8x32xf32>
    %441 = arith.mulf %425, %433 : vector<8x32xf32>
    %442 = arith.addf %440, %441 : vector<8x32xf32>
    %443 = math.tanh %442 : vector<8x32xf32>
    %444 = arith.mulf %439, %443 : vector<8x32xf32>
    %445 = vector.extract_strided_slice %419 {offsets = [0, 0], sizes = [8, 32], strides = [1, 1]} : vector<8x128xf32> to vector<8x32xf32>
    %446 = arith.negf %445 : vector<8x32xf32>
    %447 = math.exp %446 : vector<8x32xf32>
    %cst_112 = arith.constant 1.000000e+00 : f32
    %448 = vector.broadcast %cst_112 : f32 to vector<8x32xf32>
    %449 = arith.addf %448, %447 : vector<8x32xf32>
    %450 = arith.divf %448, %449 : vector<8x32xf32>
    %451 = vector.extract_strided_slice %419 {offsets = [0, 32], sizes = [8, 32], strides = [1, 1]} : vector<8x128xf32> to vector<8x32xf32>
    %452 = arith.negf %451 : vector<8x32xf32>
    %453 = math.exp %452 : vector<8x32xf32>
    %cst_113 = arith.constant 1.000000e+00 : f32
    %454 = vector.broadcast %cst_113 : f32 to vector<8x32xf32>
    %455 = arith.addf %454, %453 : vector<8x32xf32>
    %456 = arith.divf %454, %455 : vector<8x32xf32>
    %457 = vector.extract_strided_slice %419 {offsets = [0, 64], sizes = [8, 32], strides = [1, 1]} : vector<8x128xf32> to vector<8x32xf32>
    %458 = math.tanh %457 : vector<8x32xf32>
    %459 = vector.extract_strided_slice %419 {offsets = [0, 96], sizes = [8, 32], strides = [1, 1]} : vector<8x128xf32> to vector<8x32xf32>
    %460 = arith.negf %459 : vector<8x32xf32>
    %461 = math.exp %460 : vector<8x32xf32>
    %cst_114 = arith.constant 1.000000e+00 : f32
    %462 = vector.broadcast %cst_114 : f32 to vector<8x32xf32>
    %463 = arith.addf %462, %461 : vector<8x32xf32>
    %464 = arith.divf %462, %463 : vector<8x32xf32>
    %465 = arith.mulf %456, %389 : vector<8x32xf32>
    %466 = arith.mulf %450, %458 : vector<8x32xf32>
    %467 = arith.addf %465, %466 : vector<8x32xf32>
    %468 = math.tanh %467 : vector<8x32xf32>
    %469 = arith.mulf %464, %468 : vector<8x32xf32>
    %470 = arith.truncf %444 : vector<8x32xf32> to vector<8x32xbf16>
    %471 = arith.index_cast %c5_i32 : i32 to index
    %c0_115 = arith.constant 0 : index
    %c0_116 = arith.constant 0 : index
    %472 = vector.load %arg6[%471, %c0_115, %c0_116] : memref<16x8x64xbf16, #tpu.memory_space<vmem>>, vector<1x8x32xbf16>
    %473 = vector.shape_cast %472 : vector<1x8x32xbf16> to vector<8x32xbf16>
    %474 = vector.shape_cast %470 : vector<8x32xbf16> to vector<1x8x32xbf16>
    tpu.vector_store %arg6[%471, %c0_115, %c0_116], %474 {strides = array<i32>} : memref<16x8x64xbf16, #tpu.memory_space<vmem>>, vector<1x8x32xbf16>,
    %475 = arith.truncf %469 : vector<8x32xf32> to vector<8x32xbf16>
    %c15_i32_117 = arith.constant 15 : i32
    %476 = arith.subi %c15_i32_117, %c5_i32 : i32
    %477 = arith.index_cast %476 : i32 to index
    %c0_118 = arith.constant 0 : index
    %c32_119 = arith.constant 32 : index
    %478 = vector.load %arg6[%477, %c0_118, %c32_119] : memref<16x8x64xbf16, #tpu.memory_space<vmem>>, vector<1x8x32xbf16>
    %479 = vector.shape_cast %478 : vector<1x8x32xbf16> to vector<8x32xbf16>
    %480 = vector.shape_cast %475 : vector<8x32xbf16> to vector<1x8x32xbf16>
    tpu.vector_store %arg6[%477, %c0_118, %c32_119], %480 {strides = array<i32>} : memref<16x8x64xbf16, #tpu.memory_space<vmem>>, vector<1x8x32xbf16>,
    %c6_i32 = arith.constant 6 : i32
    %481 = arith.truncf %444 : vector<8x32xf32> to vector<8x32xbf16>
    %cst_120 = arith.constant dense<0.000000e+00> : vector<8x128xf32>
    %482 = tpu.matmul %481, %10, %cst_120 {dimension_numbers = #tpu.dot_dimension_numbers<[1], [0], [0], [1], [0, 0, 1, 1], [], []>} : vector<8x32xbf16>, vector<32x128xbf16>, vector<8x128xf32> -> vector<8x128xf32>
    %483 = arith.truncf %469 : vector<8x32xf32> to vector<8x32xbf16>
    %cst_121 = arith.constant dense<0.000000e+00> : vector<8x128xf32>
    %484 = tpu.matmul %483, %11, %cst_121 {dimension_numbers = #tpu.dot_dimension_numbers<[1], [0], [0], [1], [0, 0, 1, 1], [], []>} : vector<8x32xbf16>, vector<32x128xbf16>, vector<8x128xf32> -> vector<8x128xf32>
    %485 = arith.index_cast %c6_i32 : i32 to index
    %c0_122 = arith.constant 0 : index
    %c0_123 = arith.constant 0 : index
    %486 = vector.load %arg7[%485, %c0_122, %c0_123] : memref<16x8x256xbf16, #tpu.memory_space<vmem>>, vector<1x8x256xbf16>
    %487 = vector.shape_cast %486 : vector<1x8x256xbf16> to vector<8x256xbf16>
    %488 = vector.extract_strided_slice %487 {offsets = [0, 0], sizes = [8, 128], strides = [1, 1]} : vector<8x256xbf16> to vector<8x128xbf16>
    %489 = arith.extf %488 : vector<8x128xbf16> to vector<8x128xf32>
    %490 = arith.addf %489, %482 : vector<8x128xf32>
    %c15_i32_124 = arith.constant 15 : i32
    %491 = arith.subi %c15_i32_124, %c6_i32 : i32
    %492 = arith.index_cast %491 : i32 to index
    %c0_125 = arith.constant 0 : index
    %c0_126 = arith.constant 0 : index
    %493 = vector.load %arg7[%492, %c0_125, %c0_126] : memref<16x8x256xbf16, #tpu.memory_space<vmem>>, vector<1x8x256xbf16>
    %494 = vector.shape_cast %493 : vector<1x8x256xbf16> to vector<8x256xbf16>
    %495 = vector.extract_strided_slice %494 {offsets = [0, 128], sizes = [8, 128], strides = [1, 1]} : vector<8x256xbf16> to vector<8x128xbf16>
    %496 = arith.extf %495 : vector<8x128xbf16> to vector<8x128xf32>
    %497 = arith.addf %496, %484 : vector<8x128xf32>
    %498 = vector.extract_strided_slice %490 {offsets = [0, 0], sizes = [8, 32], strides = [1, 1]} : vector<8x128xf32> to vector<8x32xf32>
    %499 = arith.negf %498 : vector<8x32xf32>
    %500 = math.exp %499 : vector<8x32xf32>
    %cst_127 = arith.constant 1.000000e+00 : f32
    %501 = vector.broadcast %cst_127 : f32 to vector<8x32xf32>
    %502 = arith.addf %501, %500 : vector<8x32xf32>
    %503 = arith.divf %501, %502 : vector<8x32xf32>
    %504 = vector.extract_strided_slice %490 {offsets = [0, 32], sizes = [8, 32], strides = [1, 1]} : vector<8x128xf32> to vector<8x32xf32>
    %505 = arith.negf %504 : vector<8x32xf32>
    %506 = math.exp %505 : vector<8x32xf32>
    %cst_128 = arith.constant 1.000000e+00 : f32
    %507 = vector.broadcast %cst_128 : f32 to vector<8x32xf32>
    %508 = arith.addf %507, %506 : vector<8x32xf32>
    %509 = arith.divf %507, %508 : vector<8x32xf32>
    %510 = vector.extract_strided_slice %490 {offsets = [0, 64], sizes = [8, 32], strides = [1, 1]} : vector<8x128xf32> to vector<8x32xf32>
    %511 = math.tanh %510 : vector<8x32xf32>
    %512 = vector.extract_strided_slice %490 {offsets = [0, 96], sizes = [8, 32], strides = [1, 1]} : vector<8x128xf32> to vector<8x32xf32>
    %513 = arith.negf %512 : vector<8x32xf32>
    %514 = math.exp %513 : vector<8x32xf32>
    %cst_129 = arith.constant 1.000000e+00 : f32
    %515 = vector.broadcast %cst_129 : f32 to vector<8x32xf32>
    %516 = arith.addf %515, %514 : vector<8x32xf32>
    %517 = arith.divf %515, %516 : vector<8x32xf32>
    %518 = arith.mulf %509, %442 : vector<8x32xf32>
    %519 = arith.mulf %503, %511 : vector<8x32xf32>
    %520 = arith.addf %518, %519 : vector<8x32xf32>
    %521 = math.tanh %520 : vector<8x32xf32>
    %522 = arith.mulf %517, %521 : vector<8x32xf32>
    %523 = vector.extract_strided_slice %497 {offsets = [0, 0], sizes = [8, 32], strides = [1, 1]} : vector<8x128xf32> to vector<8x32xf32>
    %524 = arith.negf %523 : vector<8x32xf32>
    %525 = math.exp %524 : vector<8x32xf32>
    %cst_130 = arith.constant 1.000000e+00 : f32
    %526 = vector.broadcast %cst_130 : f32 to vector<8x32xf32>
    %527 = arith.addf %526, %525 : vector<8x32xf32>
    %528 = arith.divf %526, %527 : vector<8x32xf32>
    %529 = vector.extract_strided_slice %497 {offsets = [0, 32], sizes = [8, 32], strides = [1, 1]} : vector<8x128xf32> to vector<8x32xf32>
    %530 = arith.negf %529 : vector<8x32xf32>
    %531 = math.exp %530 : vector<8x32xf32>
    %cst_131 = arith.constant 1.000000e+00 : f32
    %532 = vector.broadcast %cst_131 : f32 to vector<8x32xf32>
    %533 = arith.addf %532, %531 : vector<8x32xf32>
    %534 = arith.divf %532, %533 : vector<8x32xf32>
    %535 = vector.extract_strided_slice %497 {offsets = [0, 64], sizes = [8, 32], strides = [1, 1]} : vector<8x128xf32> to vector<8x32xf32>
    %536 = math.tanh %535 : vector<8x32xf32>
    %537 = vector.extract_strided_slice %497 {offsets = [0, 96], sizes = [8, 32], strides = [1, 1]} : vector<8x128xf32> to vector<8x32xf32>
    %538 = arith.negf %537 : vector<8x32xf32>
    %539 = math.exp %538 : vector<8x32xf32>
    %cst_132 = arith.constant 1.000000e+00 : f32
    %540 = vector.broadcast %cst_132 : f32 to vector<8x32xf32>
    %541 = arith.addf %540, %539 : vector<8x32xf32>
    %542 = arith.divf %540, %541 : vector<8x32xf32>
    %543 = arith.mulf %534, %467 : vector<8x32xf32>
    %544 = arith.mulf %528, %536 : vector<8x32xf32>
    %545 = arith.addf %543, %544 : vector<8x32xf32>
    %546 = math.tanh %545 : vector<8x32xf32>
    %547 = arith.mulf %542, %546 : vector<8x32xf32>
    %548 = arith.truncf %522 : vector<8x32xf32> to vector<8x32xbf16>
    %549 = arith.index_cast %c6_i32 : i32 to index
    %c0_133 = arith.constant 0 : index
    %c0_134 = arith.constant 0 : index
    %550 = vector.load %arg6[%549, %c0_133, %c0_134] : memref<16x8x64xbf16, #tpu.memory_space<vmem>>, vector<1x8x32xbf16>
    %551 = vector.shape_cast %550 : vector<1x8x32xbf16> to vector<8x32xbf16>
    %552 = vector.shape_cast %548 : vector<8x32xbf16> to vector<1x8x32xbf16>
    tpu.vector_store %arg6[%549, %c0_133, %c0_134], %552 {strides = array<i32>} : memref<16x8x64xbf16, #tpu.memory_space<vmem>>, vector<1x8x32xbf16>,
    %553 = arith.truncf %547 : vector<8x32xf32> to vector<8x32xbf16>
    %c15_i32_135 = arith.constant 15 : i32
    %554 = arith.subi %c15_i32_135, %c6_i32 : i32
    %555 = arith.index_cast %554 : i32 to index
    %c0_136 = arith.constant 0 : index
    %c32_137 = arith.constant 32 : index
    %556 = vector.load %arg6[%555, %c0_136, %c32_137] : memref<16x8x64xbf16, #tpu.memory_space<vmem>>, vector<1x8x32xbf16>
    %557 = vector.shape_cast %556 : vector<1x8x32xbf16> to vector<8x32xbf16>
    %558 = vector.shape_cast %553 : vector<8x32xbf16> to vector<1x8x32xbf16>
    tpu.vector_store %arg6[%555, %c0_136, %c32_137], %558 {strides = array<i32>} : memref<16x8x64xbf16, #tpu.memory_space<vmem>>, vector<1x8x32xbf16>,
    %c7_i32 = arith.constant 7 : i32
    %559 = arith.truncf %522 : vector<8x32xf32> to vector<8x32xbf16>
    %cst_138 = arith.constant dense<0.000000e+00> : vector<8x128xf32>
    %560 = tpu.matmul %559, %10, %cst_138 {dimension_numbers = #tpu.dot_dimension_numbers<[1], [0], [0], [1], [0, 0, 1, 1], [], []>} : vector<8x32xbf16>, vector<32x128xbf16>, vector<8x128xf32> -> vector<8x128xf32>
    %561 = arith.truncf %547 : vector<8x32xf32> to vector<8x32xbf16>
    %cst_139 = arith.constant dense<0.000000e+00> : vector<8x128xf32>
    %562 = tpu.matmul %561, %11, %cst_139 {dimension_numbers = #tpu.dot_dimension_numbers<[1], [0], [0], [1], [0, 0, 1, 1], [], []>} : vector<8x32xbf16>, vector<32x128xbf16>, vector<8x128xf32> -> vector<8x128xf32>
    %563 = arith.index_cast %c7_i32 : i32 to index
    %c0_140 = arith.constant 0 : index
    %c0_141 = arith.constant 0 : index
    %564 = vector.load %arg7[%563, %c0_140, %c0_141] : memref<16x8x256xbf16, #tpu.memory_space<vmem>>, vector<1x8x256xbf16>
    %565 = vector.shape_cast %564 : vector<1x8x256xbf16> to vector<8x256xbf16>
    %566 = vector.extract_strided_slice %565 {offsets = [0, 0], sizes = [8, 128], strides = [1, 1]} : vector<8x256xbf16> to vector<8x128xbf16>
    %567 = arith.extf %566 : vector<8x128xbf16> to vector<8x128xf32>
    %568 = arith.addf %567, %560 : vector<8x128xf32>
    %c15_i32_142 = arith.constant 15 : i32
    %569 = arith.subi %c15_i32_142, %c7_i32 : i32
    %570 = arith.index_cast %569 : i32 to index
    %c0_143 = arith.constant 0 : index
    %c0_144 = arith.constant 0 : index
    %571 = vector.load %arg7[%570, %c0_143, %c0_144] : memref<16x8x256xbf16, #tpu.memory_space<vmem>>, vector<1x8x256xbf16>
    %572 = vector.shape_cast %571 : vector<1x8x256xbf16> to vector<8x256xbf16>
    %573 = vector.extract_strided_slice %572 {offsets = [0, 128], sizes = [8, 128], strides = [1, 1]} : vector<8x256xbf16> to vector<8x128xbf16>
    %574 = arith.extf %573 : vector<8x128xbf16> to vector<8x128xf32>
    %575 = arith.addf %574, %562 : vector<8x128xf32>
    %576 = vector.extract_strided_slice %568 {offsets = [0, 0], sizes = [8, 32], strides = [1, 1]} : vector<8x128xf32> to vector<8x32xf32>
    %577 = arith.negf %576 : vector<8x32xf32>
    %578 = math.exp %577 : vector<8x32xf32>
    %cst_145 = arith.constant 1.000000e+00 : f32
    %579 = vector.broadcast %cst_145 : f32 to vector<8x32xf32>
    %580 = arith.addf %579, %578 : vector<8x32xf32>
    %581 = arith.divf %579, %580 : vector<8x32xf32>
    %582 = vector.extract_strided_slice %568 {offsets = [0, 32], sizes = [8, 32], strides = [1, 1]} : vector<8x128xf32> to vector<8x32xf32>
    %583 = arith.negf %582 : vector<8x32xf32>
    %584 = math.exp %583 : vector<8x32xf32>
    %cst_146 = arith.constant 1.000000e+00 : f32
    %585 = vector.broadcast %cst_146 : f32 to vector<8x32xf32>
    %586 = arith.addf %585, %584 : vector<8x32xf32>
    %587 = arith.divf %585, %586 : vector<8x32xf32>
    %588 = vector.extract_strided_slice %568 {offsets = [0, 64], sizes = [8, 32], strides = [1, 1]} : vector<8x128xf32> to vector<8x32xf32>
    %589 = math.tanh %588 : vector<8x32xf32>
    %590 = vector.extract_strided_slice %568 {offsets = [0, 96], sizes = [8, 32], strides = [1, 1]} : vector<8x128xf32> to vector<8x32xf32>
    %591 = arith.negf %590 : vector<8x32xf32>
    %592 = math.exp %591 : vector<8x32xf32>
    %cst_147 = arith.constant 1.000000e+00 : f32
    %593 = vector.broadcast %cst_147 : f32 to vector<8x32xf32>
    %594 = arith.addf %593, %592 : vector<8x32xf32>
    %595 = arith.divf %593, %594 : vector<8x32xf32>
    %596 = arith.mulf %587, %520 : vector<8x32xf32>
    %597 = arith.mulf %581, %589 : vector<8x32xf32>
    %598 = arith.addf %596, %597 : vector<8x32xf32>
    %599 = math.tanh %598 : vector<8x32xf32>
    %600 = arith.mulf %595, %599 : vector<8x32xf32>
    %601 = vector.extract_strided_slice %575 {offsets = [0, 0], sizes = [8, 32], strides = [1, 1]} : vector<8x128xf32> to vector<8x32xf32>
    %602 = arith.negf %601 : vector<8x32xf32>
    %603 = math.exp %602 : vector<8x32xf32>
    %cst_148 = arith.constant 1.000000e+00 : f32
    %604 = vector.broadcast %cst_148 : f32 to vector<8x32xf32>
    %605 = arith.addf %604, %603 : vector<8x32xf32>
    %606 = arith.divf %604, %605 : vector<8x32xf32>
    %607 = vector.extract_strided_slice %575 {offsets = [0, 32], sizes = [8, 32], strides = [1, 1]} : vector<8x128xf32> to vector<8x32xf32>
    %608 = arith.negf %607 : vector<8x32xf32>
    %609 = math.exp %608 : vector<8x32xf32>
    %cst_149 = arith.constant 1.000000e+00 : f32
    %610 = vector.broadcast %cst_149 : f32 to vector<8x32xf32>
    %611 = arith.addf %610, %609 : vector<8x32xf32>
    %612 = arith.divf %610, %611 : vector<8x32xf32>
    %613 = vector.extract_strided_slice %575 {offsets = [0, 64], sizes = [8, 32], strides = [1, 1]} : vector<8x128xf32> to vector<8x32xf32>
    %614 = math.tanh %613 : vector<8x32xf32>
    %615 = vector.extract_strided_slice %575 {offsets = [0, 96], sizes = [8, 32], strides = [1, 1]} : vector<8x128xf32> to vector<8x32xf32>
    %616 = arith.negf %615 : vector<8x32xf32>
    %617 = math.exp %616 : vector<8x32xf32>
    %cst_150 = arith.constant 1.000000e+00 : f32
    %618 = vector.broadcast %cst_150 : f32 to vector<8x32xf32>
    %619 = arith.addf %618, %617 : vector<8x32xf32>
    %620 = arith.divf %618, %619 : vector<8x32xf32>
    %621 = arith.mulf %612, %545 : vector<8x32xf32>
    %622 = arith.mulf %606, %614 : vector<8x32xf32>
    %623 = arith.addf %621, %622 : vector<8x32xf32>
    %624 = math.tanh %623 : vector<8x32xf32>
    %625 = arith.mulf %620, %624 : vector<8x32xf32>
    %626 = arith.truncf %600 : vector<8x32xf32> to vector<8x32xbf16>
    %627 = arith.index_cast %c7_i32 : i32 to index
    %c0_151 = arith.constant 0 : index
    %c0_152 = arith.constant 0 : index
    %628 = vector.load %arg6[%627, %c0_151, %c0_152] : memref<16x8x64xbf16, #tpu.memory_space<vmem>>, vector<1x8x32xbf16>
    %629 = vector.shape_cast %628 : vector<1x8x32xbf16> to vector<8x32xbf16>
    %630 = vector.shape_cast %626 : vector<8x32xbf16> to vector<1x8x32xbf16>
    tpu.vector_store %arg6[%627, %c0_151, %c0_152], %630 {strides = array<i32>} : memref<16x8x64xbf16, #tpu.memory_space<vmem>>, vector<1x8x32xbf16>,
    %631 = arith.truncf %625 : vector<8x32xf32> to vector<8x32xbf16>
    %c15_i32_153 = arith.constant 15 : i32
    %632 = arith.subi %c15_i32_153, %c7_i32 : i32
    %633 = arith.index_cast %632 : i32 to index
    %c0_154 = arith.constant 0 : index
    %c32_155 = arith.constant 32 : index
    %634 = vector.load %arg6[%633, %c0_154, %c32_155] : memref<16x8x64xbf16, #tpu.memory_space<vmem>>, vector<1x8x32xbf16>
    %635 = vector.shape_cast %634 : vector<1x8x32xbf16> to vector<8x32xbf16>
    %636 = vector.shape_cast %631 : vector<8x32xbf16> to vector<1x8x32xbf16>
    tpu.vector_store %arg6[%633, %c0_154, %c32_155], %636 {strides = array<i32>} : memref<16x8x64xbf16, #tpu.memory_space<vmem>>, vector<1x8x32xbf16>,
    %c8_i32 = arith.constant 8 : i32
    %637 = arith.truncf %600 : vector<8x32xf32> to vector<8x32xbf16>
    %cst_156 = arith.constant dense<0.000000e+00> : vector<8x128xf32>
    %638 = tpu.matmul %637, %10, %cst_156 {dimension_numbers = #tpu.dot_dimension_numbers<[1], [0], [0], [1], [0, 0, 1, 1], [], []>} : vector<8x32xbf16>, vector<32x128xbf16>, vector<8x128xf32> -> vector<8x128xf32>
    %639 = arith.truncf %625 : vector<8x32xf32> to vector<8x32xbf16>
    %cst_157 = arith.constant dense<0.000000e+00> : vector<8x128xf32>
    %640 = tpu.matmul %639, %11, %cst_157 {dimension_numbers = #tpu.dot_dimension_numbers<[1], [0], [0], [1], [0, 0, 1, 1], [], []>} : vector<8x32xbf16>, vector<32x128xbf16>, vector<8x128xf32> -> vector<8x128xf32>
    %641 = arith.index_cast %c8_i32 : i32 to index
    %c0_158 = arith.constant 0 : index
    %c0_159 = arith.constant 0 : index
    %642 = vector.load %arg7[%641, %c0_158, %c0_159] : memref<16x8x256xbf16, #tpu.memory_space<vmem>>, vector<1x8x256xbf16>
    %643 = vector.shape_cast %642 : vector<1x8x256xbf16> to vector<8x256xbf16>
    %644 = vector.extract_strided_slice %643 {offsets = [0, 0], sizes = [8, 128], strides = [1, 1]} : vector<8x256xbf16> to vector<8x128xbf16>
    %645 = arith.extf %644 : vector<8x128xbf16> to vector<8x128xf32>
    %646 = arith.addf %645, %638 : vector<8x128xf32>
    %c15_i32_160 = arith.constant 15 : i32
    %647 = arith.subi %c15_i32_160, %c8_i32 : i32
    %648 = arith.index_cast %647 : i32 to index
    %c0_161 = arith.constant 0 : index
    %c0_162 = arith.constant 0 : index
    %649 = vector.load %arg7[%648, %c0_161, %c0_162] : memref<16x8x256xbf16, #tpu.memory_space<vmem>>, vector<1x8x256xbf16>
    %650 = vector.shape_cast %649 : vector<1x8x256xbf16> to vector<8x256xbf16>
    %651 = vector.extract_strided_slice %650 {offsets = [0, 128], sizes = [8, 128], strides = [1, 1]} : vector<8x256xbf16> to vector<8x128xbf16>
    %652 = arith.extf %651 : vector<8x128xbf16> to vector<8x128xf32>
    %653 = arith.addf %652, %640 : vector<8x128xf32>
    %654 = vector.extract_strided_slice %646 {offsets = [0, 0], sizes = [8, 32], strides = [1, 1]} : vector<8x128xf32> to vector<8x32xf32>
    %655 = arith.negf %654 : vector<8x32xf32>
    %656 = math.exp %655 : vector<8x32xf32>
    %cst_163 = arith.constant 1.000000e+00 : f32
    %657 = vector.broadcast %cst_163 : f32 to vector<8x32xf32>
    %658 = arith.addf %657, %656 : vector<8x32xf32>
    %659 = arith.divf %657, %658 : vector<8x32xf32>
    %660 = vector.extract_strided_slice %646 {offsets = [0, 32], sizes = [8, 32], strides = [1, 1]} : vector<8x128xf32> to vector<8x32xf32>
    %661 = arith.negf %660 : vector<8x32xf32>
    %662 = math.exp %661 : vector<8x32xf32>
    %cst_164 = arith.constant 1.000000e+00 : f32
    %663 = vector.broadcast %cst_164 : f32 to vector<8x32xf32>
    %664 = arith.addf %663, %662 : vector<8x32xf32>
    %665 = arith.divf %663, %664 : vector<8x32xf32>
    %666 = vector.extract_strided_slice %646 {offsets = [0, 64], sizes = [8, 32], strides = [1, 1]} : vector<8x128xf32> to vector<8x32xf32>
    %667 = math.tanh %666 : vector<8x32xf32>
    %668 = vector.extract_strided_slice %646 {offsets = [0, 96], sizes = [8, 32], strides = [1, 1]} : vector<8x128xf32> to vector<8x32xf32>
    %669 = arith.negf %668 : vector<8x32xf32>
    %670 = math.exp %669 : vector<8x32xf32>
    %cst_165 = arith.constant 1.000000e+00 : f32
    %671 = vector.broadcast %cst_165 : f32 to vector<8x32xf32>
    %672 = arith.addf %671, %670 : vector<8x32xf32>
    %673 = arith.divf %671, %672 : vector<8x32xf32>
    %674 = arith.mulf %665, %598 : vector<8x32xf32>
    %675 = arith.mulf %659, %667 : vector<8x32xf32>
    %676 = arith.addf %674, %675 : vector<8x32xf32>
    %677 = math.tanh %676 : vector<8x32xf32>
    %678 = arith.mulf %673, %677 : vector<8x32xf32>
    %679 = vector.extract_strided_slice %653 {offsets = [0, 0], sizes = [8, 32], strides = [1, 1]} : vector<8x128xf32> to vector<8x32xf32>
    %680 = arith.negf %679 : vector<8x32xf32>
    %681 = math.exp %680 : vector<8x32xf32>
    %cst_166 = arith.constant 1.000000e+00 : f32
    %682 = vector.broadcast %cst_166 : f32 to vector<8x32xf32>
    %683 = arith.addf %682, %681 : vector<8x32xf32>
    %684 = arith.divf %682, %683 : vector<8x32xf32>
    %685 = vector.extract_strided_slice %653 {offsets = [0, 32], sizes = [8, 32], strides = [1, 1]} : vector<8x128xf32> to vector<8x32xf32>
    %686 = arith.negf %685 : vector<8x32xf32>
    %687 = math.exp %686 : vector<8x32xf32>
    %cst_167 = arith.constant 1.000000e+00 : f32
    %688 = vector.broadcast %cst_167 : f32 to vector<8x32xf32>
    %689 = arith.addf %688, %687 : vector<8x32xf32>
    %690 = arith.divf %688, %689 : vector<8x32xf32>
    %691 = vector.extract_strided_slice %653 {offsets = [0, 64], sizes = [8, 32], strides = [1, 1]} : vector<8x128xf32> to vector<8x32xf32>
    %692 = math.tanh %691 : vector<8x32xf32>
    %693 = vector.extract_strided_slice %653 {offsets = [0, 96], sizes = [8, 32], strides = [1, 1]} : vector<8x128xf32> to vector<8x32xf32>
    %694 = arith.negf %693 : vector<8x32xf32>
    %695 = math.exp %694 : vector<8x32xf32>
    %cst_168 = arith.constant 1.000000e+00 : f32
    %696 = vector.broadcast %cst_168 : f32 to vector<8x32xf32>
    %697 = arith.addf %696, %695 : vector<8x32xf32>
    %698 = arith.divf %696, %697 : vector<8x32xf32>
    %699 = arith.mulf %690, %623 : vector<8x32xf32>
    %700 = arith.mulf %684, %692 : vector<8x32xf32>
    %701 = arith.addf %699, %700 : vector<8x32xf32>
    %702 = math.tanh %701 : vector<8x32xf32>
    %703 = arith.mulf %698, %702 : vector<8x32xf32>
    %704 = arith.truncf %678 : vector<8x32xf32> to vector<8x32xbf16>
    %705 = arith.index_cast %c8_i32 : i32 to index
    %c0_169 = arith.constant 0 : index
    %c0_170 = arith.constant 0 : index
    %706 = vector.load %arg6[%705, %c0_169, %c0_170] : memref<16x8x64xbf16, #tpu.memory_space<vmem>>, vector<1x8x32xbf16>
    %707 = vector.shape_cast %706 : vector<1x8x32xbf16> to vector<8x32xbf16>
    %708 = vector.shape_cast %704 : vector<8x32xbf16> to vector<1x8x32xbf16>
    tpu.vector_store %arg6[%705, %c0_169, %c0_170], %708 {strides = array<i32>} : memref<16x8x64xbf16, #tpu.memory_space<vmem>>, vector<1x8x32xbf16>,
    %709 = arith.truncf %703 : vector<8x32xf32> to vector<8x32xbf16>
    %c15_i32_171 = arith.constant 15 : i32
    %710 = arith.subi %c15_i32_171, %c8_i32 : i32
    %711 = arith.index_cast %710 : i32 to index
    %c0_172 = arith.constant 0 : index
    %c32_173 = arith.constant 32 : index
    %712 = vector.load %arg6[%711, %c0_172, %c32_173] : memref<16x8x64xbf16, #tpu.memory_space<vmem>>, vector<1x8x32xbf16>
    %713 = vector.shape_cast %712 : vector<1x8x32xbf16> to vector<8x32xbf16>
    %714 = vector.shape_cast %709 : vector<8x32xbf16> to vector<1x8x32xbf16>
    tpu.vector_store %arg6[%711, %c0_172, %c32_173], %714 {strides = array<i32>} : memref<16x8x64xbf16, #tpu.memory_space<vmem>>, vector<1x8x32xbf16>,
    %c9_i32 = arith.constant 9 : i32
    %715 = arith.truncf %678 : vector<8x32xf32> to vector<8x32xbf16>
    %cst_174 = arith.constant dense<0.000000e+00> : vector<8x128xf32>
    %716 = tpu.matmul %715, %10, %cst_174 {dimension_numbers = #tpu.dot_dimension_numbers<[1], [0], [0], [1], [0, 0, 1, 1], [], []>} : vector<8x32xbf16>, vector<32x128xbf16>, vector<8x128xf32> -> vector<8x128xf32>
    %717 = arith.truncf %703 : vector<8x32xf32> to vector<8x32xbf16>
    %cst_175 = arith.constant dense<0.000000e+00> : vector<8x128xf32>
    %718 = tpu.matmul %717, %11, %cst_175 {dimension_numbers = #tpu.dot_dimension_numbers<[1], [0], [0], [1], [0, 0, 1, 1], [], []>} : vector<8x32xbf16>, vector<32x128xbf16>, vector<8x128xf32> -> vector<8x128xf32>
    %719 = arith.index_cast %c9_i32 : i32 to index
    %c0_176 = arith.constant 0 : index
    %c0_177 = arith.constant 0 : index
    %720 = vector.load %arg7[%719, %c0_176, %c0_177] : memref<16x8x256xbf16, #tpu.memory_space<vmem>>, vector<1x8x256xbf16>
    %721 = vector.shape_cast %720 : vector<1x8x256xbf16> to vector<8x256xbf16>
    %722 = vector.extract_strided_slice %721 {offsets = [0, 0], sizes = [8, 128], strides = [1, 1]} : vector<8x256xbf16> to vector<8x128xbf16>
    %723 = arith.extf %722 : vector<8x128xbf16> to vector<8x128xf32>
    %724 = arith.addf %723, %716 : vector<8x128xf32>
    %c15_i32_178 = arith.constant 15 : i32
    %725 = arith.subi %c15_i32_178, %c9_i32 : i32
    %726 = arith.index_cast %725 : i32 to index
    %c0_179 = arith.constant 0 : index
    %c0_180 = arith.constant 0 : index
    %727 = vector.load %arg7[%726, %c0_179, %c0_180] : memref<16x8x256xbf16, #tpu.memory_space<vmem>>, vector<1x8x256xbf16>
    %728 = vector.shape_cast %727 : vector<1x8x256xbf16> to vector<8x256xbf16>
    %729 = vector.extract_strided_slice %728 {offsets = [0, 128], sizes = [8, 128], strides = [1, 1]} : vector<8x256xbf16> to vector<8x128xbf16>
    %730 = arith.extf %729 : vector<8x128xbf16> to vector<8x128xf32>
    %731 = arith.addf %730, %718 : vector<8x128xf32>
    %732 = vector.extract_strided_slice %724 {offsets = [0, 0], sizes = [8, 32], strides = [1, 1]} : vector<8x128xf32> to vector<8x32xf32>
    %733 = arith.negf %732 : vector<8x32xf32>
    %734 = math.exp %733 : vector<8x32xf32>
    %cst_181 = arith.constant 1.000000e+00 : f32
    %735 = vector.broadcast %cst_181 : f32 to vector<8x32xf32>
    %736 = arith.addf %735, %734 : vector<8x32xf32>
    %737 = arith.divf %735, %736 : vector<8x32xf32>
    %738 = vector.extract_strided_slice %724 {offsets = [0, 32], sizes = [8, 32], strides = [1, 1]} : vector<8x128xf32> to vector<8x32xf32>
    %739 = arith.negf %738 : vector<8x32xf32>
    %740 = math.exp %739 : vector<8x32xf32>
    %cst_182 = arith.constant 1.000000e+00 : f32
    %741 = vector.broadcast %cst_182 : f32 to vector<8x32xf32>
    %742 = arith.addf %741, %740 : vector<8x32xf32>
    %743 = arith.divf %741, %742 : vector<8x32xf32>
    %744 = vector.extract_strided_slice %724 {offsets = [0, 64], sizes = [8, 32], strides = [1, 1]} : vector<8x128xf32> to vector<8x32xf32>
    %745 = math.tanh %744 : vector<8x32xf32>
    %746 = vector.extract_strided_slice %724 {offsets = [0, 96], sizes = [8, 32], strides = [1, 1]} : vector<8x128xf32> to vector<8x32xf32>
    %747 = arith.negf %746 : vector<8x32xf32>
    %748 = math.exp %747 : vector<8x32xf32>
    %cst_183 = arith.constant 1.000000e+00 : f32
    %749 = vector.broadcast %cst_183 : f32 to vector<8x32xf32>
    %750 = arith.addf %749, %748 : vector<8x32xf32>
    %751 = arith.divf %749, %750 : vector<8x32xf32>
    %752 = arith.mulf %743, %676 : vector<8x32xf32>
    %753 = arith.mulf %737, %745 : vector<8x32xf32>
    %754 = arith.addf %752, %753 : vector<8x32xf32>
    %755 = math.tanh %754 : vector<8x32xf32>
    %756 = arith.mulf %751, %755 : vector<8x32xf32>
    %757 = vector.extract_strided_slice %731 {offsets = [0, 0], sizes = [8, 32], strides = [1, 1]} : vector<8x128xf32> to vector<8x32xf32>
    %758 = arith.negf %757 : vector<8x32xf32>
    %759 = math.exp %758 : vector<8x32xf32>
    %cst_184 = arith.constant 1.000000e+00 : f32
    %760 = vector.broadcast %cst_184 : f32 to vector<8x32xf32>
    %761 = arith.addf %760, %759 : vector<8x32xf32>
    %762 = arith.divf %760, %761 : vector<8x32xf32>
    %763 = vector.extract_strided_slice %731 {offsets = [0, 32], sizes = [8, 32], strides = [1, 1]} : vector<8x128xf32> to vector<8x32xf32>
    %764 = arith.negf %763 : vector<8x32xf32>
    %765 = math.exp %764 : vector<8x32xf32>
    %cst_185 = arith.constant 1.000000e+00 : f32
    %766 = vector.broadcast %cst_185 : f32 to vector<8x32xf32>
    %767 = arith.addf %766, %765 : vector<8x32xf32>
    %768 = arith.divf %766, %767 : vector<8x32xf32>
    %769 = vector.extract_strided_slice %731 {offsets = [0, 64], sizes = [8, 32], strides = [1, 1]} : vector<8x128xf32> to vector<8x32xf32>
    %770 = math.tanh %769 : vector<8x32xf32>
    %771 = vector.extract_strided_slice %731 {offsets = [0, 96], sizes = [8, 32], strides = [1, 1]} : vector<8x128xf32> to vector<8x32xf32>
    %772 = arith.negf %771 : vector<8x32xf32>
    %773 = math.exp %772 : vector<8x32xf32>
    %cst_186 = arith.constant 1.000000e+00 : f32
    %774 = vector.broadcast %cst_186 : f32 to vector<8x32xf32>
    %775 = arith.addf %774, %773 : vector<8x32xf32>
    %776 = arith.divf %774, %775 : vector<8x32xf32>
    %777 = arith.mulf %768, %701 : vector<8x32xf32>
    %778 = arith.mulf %762, %770 : vector<8x32xf32>
    %779 = arith.addf %777, %778 : vector<8x32xf32>
    %780 = math.tanh %779 : vector<8x32xf32>
    %781 = arith.mulf %776, %780 : vector<8x32xf32>
    %782 = arith.truncf %756 : vector<8x32xf32> to vector<8x32xbf16>
    %783 = arith.index_cast %c9_i32 : i32 to index
    %c0_187 = arith.constant 0 : index
    %c0_188 = arith.constant 0 : index
    %784 = vector.load %arg6[%783, %c0_187, %c0_188] : memref<16x8x64xbf16, #tpu.memory_space<vmem>>, vector<1x8x32xbf16>
    %785 = vector.shape_cast %784 : vector<1x8x32xbf16> to vector<8x32xbf16>
    %786 = vector.shape_cast %782 : vector<8x32xbf16> to vector<1x8x32xbf16>
    tpu.vector_store %arg6[%783, %c0_187, %c0_188], %786 {strides = array<i32>} : memref<16x8x64xbf16, #tpu.memory_space<vmem>>, vector<1x8x32xbf16>,
    %787 = arith.truncf %781 : vector<8x32xf32> to vector<8x32xbf16>
    %c15_i32_189 = arith.constant 15 : i32
    %788 = arith.subi %c15_i32_189, %c9_i32 : i32
    %789 = arith.index_cast %788 : i32 to index
    %c0_190 = arith.constant 0 : index
    %c32_191 = arith.constant 32 : index
    %790 = vector.load %arg6[%789, %c0_190, %c32_191] : memref<16x8x64xbf16, #tpu.memory_space<vmem>>, vector<1x8x32xbf16>
    %791 = vector.shape_cast %790 : vector<1x8x32xbf16> to vector<8x32xbf16>
    %792 = vector.shape_cast %787 : vector<8x32xbf16> to vector<1x8x32xbf16>
    tpu.vector_store %arg6[%789, %c0_190, %c32_191], %792 {strides = array<i32>} : memref<16x8x64xbf16, #tpu.memory_space<vmem>>, vector<1x8x32xbf16>,
    %c10_i32 = arith.constant 10 : i32
    %793 = arith.truncf %756 : vector<8x32xf32> to vector<8x32xbf16>
    %cst_192 = arith.constant dense<0.000000e+00> : vector<8x128xf32>
    %794 = tpu.matmul %793, %10, %cst_192 {dimension_numbers = #tpu.dot_dimension_numbers<[1], [0], [0], [1], [0, 0, 1, 1], [], []>} : vector<8x32xbf16>, vector<32x128xbf16>, vector<8x128xf32> -> vector<8x128xf32>
    %795 = arith.truncf %781 : vector<8x32xf32> to vector<8x32xbf16>
    %cst_193 = arith.constant dense<0.000000e+00> : vector<8x128xf32>
    %796 = tpu.matmul %795, %11, %cst_193 {dimension_numbers = #tpu.dot_dimension_numbers<[1], [0], [0], [1], [0, 0, 1, 1], [], []>} : vector<8x32xbf16>, vector<32x128xbf16>, vector<8x128xf32> -> vector<8x128xf32>
    %797 = arith.index_cast %c10_i32 : i32 to index
    %c0_194 = arith.constant 0 : index
    %c0_195 = arith.constant 0 : index
    %798 = vector.load %arg7[%797, %c0_194, %c0_195] : memref<16x8x256xbf16, #tpu.memory_space<vmem>>, vector<1x8x256xbf16>
    %799 = vector.shape_cast %798 : vector<1x8x256xbf16> to vector<8x256xbf16>
    %800 = vector.extract_strided_slice %799 {offsets = [0, 0], sizes = [8, 128], strides = [1, 1]} : vector<8x256xbf16> to vector<8x128xbf16>
    %801 = arith.extf %800 : vector<8x128xbf16> to vector<8x128xf32>
    %802 = arith.addf %801, %794 : vector<8x128xf32>
    %c15_i32_196 = arith.constant 15 : i32
    %803 = arith.subi %c15_i32_196, %c10_i32 : i32
    %804 = arith.index_cast %803 : i32 to index
    %c0_197 = arith.constant 0 : index
    %c0_198 = arith.constant 0 : index
    %805 = vector.load %arg7[%804, %c0_197, %c0_198] : memref<16x8x256xbf16, #tpu.memory_space<vmem>>, vector<1x8x256xbf16>
    %806 = vector.shape_cast %805 : vector<1x8x256xbf16> to vector<8x256xbf16>
    %807 = vector.extract_strided_slice %806 {offsets = [0, 128], sizes = [8, 128], strides = [1, 1]} : vector<8x256xbf16> to vector<8x128xbf16>
    %808 = arith.extf %807 : vector<8x128xbf16> to vector<8x128xf32>
    %809 = arith.addf %808, %796 : vector<8x128xf32>
    %810 = vector.extract_strided_slice %802 {offsets = [0, 0], sizes = [8, 32], strides = [1, 1]} : vector<8x128xf32> to vector<8x32xf32>
    %811 = arith.negf %810 : vector<8x32xf32>
    %812 = math.exp %811 : vector<8x32xf32>
    %cst_199 = arith.constant 1.000000e+00 : f32
    %813 = vector.broadcast %cst_199 : f32 to vector<8x32xf32>
    %814 = arith.addf %813, %812 : vector<8x32xf32>
    %815 = arith.divf %813, %814 : vector<8x32xf32>
    %816 = vector.extract_strided_slice %802 {offsets = [0, 32], sizes = [8, 32], strides = [1, 1]} : vector<8x128xf32> to vector<8x32xf32>
    %817 = arith.negf %816 : vector<8x32xf32>
    %818 = math.exp %817 : vector<8x32xf32>
    %cst_200 = arith.constant 1.000000e+00 : f32
    %819 = vector.broadcast %cst_200 : f32 to vector<8x32xf32>
    %820 = arith.addf %819, %818 : vector<8x32xf32>
    %821 = arith.divf %819, %820 : vector<8x32xf32>
    %822 = vector.extract_strided_slice %802 {offsets = [0, 64], sizes = [8, 32], strides = [1, 1]} : vector<8x128xf32> to vector<8x32xf32>
    %823 = math.tanh %822 : vector<8x32xf32>
    %824 = vector.extract_strided_slice %802 {offsets = [0, 96], sizes = [8, 32], strides = [1, 1]} : vector<8x128xf32> to vector<8x32xf32>
    %825 = arith.negf %824 : vector<8x32xf32>
    %826 = math.exp %825 : vector<8x32xf32>
    %cst_201 = arith.constant 1.000000e+00 : f32
    %827 = vector.broadcast %cst_201 : f32 to vector<8x32xf32>
    %828 = arith.addf %827, %826 : vector<8x32xf32>
    %829 = arith.divf %827, %828 : vector<8x32xf32>
    %830 = arith.mulf %821, %754 : vector<8x32xf32>
    %831 = arith.mulf %815, %823 : vector<8x32xf32>
    %832 = arith.addf %830, %831 : vector<8x32xf32>
    %833 = math.tanh %832 : vector<8x32xf32>
    %834 = arith.mulf %829, %833 : vector<8x32xf32>
    %835 = vector.extract_strided_slice %809 {offsets = [0, 0], sizes = [8, 32], strides = [1, 1]} : vector<8x128xf32> to vector<8x32xf32>
    %836 = arith.negf %835 : vector<8x32xf32>
    %837 = math.exp %836 : vector<8x32xf32>
    %cst_202 = arith.constant 1.000000e+00 : f32
    %838 = vector.broadcast %cst_202 : f32 to vector<8x32xf32>
    %839 = arith.addf %838, %837 : vector<8x32xf32>
    %840 = arith.divf %838, %839 : vector<8x32xf32>
    %841 = vector.extract_strided_slice %809 {offsets = [0, 32], sizes = [8, 32], strides = [1, 1]} : vector<8x128xf32> to vector<8x32xf32>
    %842 = arith.negf %841 : vector<8x32xf32>
    %843 = math.exp %842 : vector<8x32xf32>
    %cst_203 = arith.constant 1.000000e+00 : f32
    %844 = vector.broadcast %cst_203 : f32 to vector<8x32xf32>
    %845 = arith.addf %844, %843 : vector<8x32xf32>
    %846 = arith.divf %844, %845 : vector<8x32xf32>
    %847 = vector.extract_strided_slice %809 {offsets = [0, 64], sizes = [8, 32], strides = [1, 1]} : vector<8x128xf32> to vector<8x32xf32>
    %848 = math.tanh %847 : vector<8x32xf32>
    %849 = vector.extract_strided_slice %809 {offsets = [0, 96], sizes = [8, 32], strides = [1, 1]} : vector<8x128xf32> to vector<8x32xf32>
    %850 = arith.negf %849 : vector<8x32xf32>
    %851 = math.exp %850 : vector<8x32xf32>
    %cst_204 = arith.constant 1.000000e+00 : f32
    %852 = vector.broadcast %cst_204 : f32 to vector<8x32xf32>
    %853 = arith.addf %852, %851 : vector<8x32xf32>
    %854 = arith.divf %852, %853 : vector<8x32xf32>
    %855 = arith.mulf %846, %779 : vector<8x32xf32>
    %856 = arith.mulf %840, %848 : vector<8x32xf32>
    %857 = arith.addf %855, %856 : vector<8x32xf32>
    %858 = math.tanh %857 : vector<8x32xf32>
    %859 = arith.mulf %854, %858 : vector<8x32xf32>
    %860 = arith.truncf %834 : vector<8x32xf32> to vector<8x32xbf16>
    %861 = arith.index_cast %c10_i32 : i32 to index
    %c0_205 = arith.constant 0 : index
    %c0_206 = arith.constant 0 : index
    %862 = vector.load %arg6[%861, %c0_205, %c0_206] : memref<16x8x64xbf16, #tpu.memory_space<vmem>>, vector<1x8x32xbf16>
    %863 = vector.shape_cast %862 : vector<1x8x32xbf16> to vector<8x32xbf16>
    %864 = vector.shape_cast %860 : vector<8x32xbf16> to vector<1x8x32xbf16>
    tpu.vector_store %arg6[%861, %c0_205, %c0_206], %864 {strides = array<i32>} : memref<16x8x64xbf16, #tpu.memory_space<vmem>>, vector<1x8x32xbf16>,
    %865 = arith.truncf %859 : vector<8x32xf32> to vector<8x32xbf16>
    %c15_i32_207 = arith.constant 15 : i32
    %866 = arith.subi %c15_i32_207, %c10_i32 : i32
    %867 = arith.index_cast %866 : i32 to index
    %c0_208 = arith.constant 0 : index
    %c32_209 = arith.constant 32 : index
    %868 = vector.load %arg6[%867, %c0_208, %c32_209] : memref<16x8x64xbf16, #tpu.memory_space<vmem>>, vector<1x8x32xbf16>
    %869 = vector.shape_cast %868 : vector<1x8x32xbf16> to vector<8x32xbf16>
    %870 = vector.shape_cast %865 : vector<8x32xbf16> to vector<1x8x32xbf16>
    tpu.vector_store %arg6[%867, %c0_208, %c32_209], %870 {strides = array<i32>} : memref<16x8x64xbf16, #tpu.memory_space<vmem>>, vector<1x8x32xbf16>,
    %c11_i32 = arith.constant 11 : i32
    %871 = arith.truncf %834 : vector<8x32xf32> to vector<8x32xbf16>
    %cst_210 = arith.constant dense<0.000000e+00> : vector<8x128xf32>
    %872 = tpu.matmul %871, %10, %cst_210 {dimension_numbers = #tpu.dot_dimension_numbers<[1], [0], [0], [1], [0, 0, 1, 1], [], []>} : vector<8x32xbf16>, vector<32x128xbf16>, vector<8x128xf32> -> vector<8x128xf32>
    %873 = arith.truncf %859 : vector<8x32xf32> to vector<8x32xbf16>
    %cst_211 = arith.constant dense<0.000000e+00> : vector<8x128xf32>
    %874 = tpu.matmul %873, %11, %cst_211 {dimension_numbers = #tpu.dot_dimension_numbers<[1], [0], [0], [1], [0, 0, 1, 1], [], []>} : vector<8x32xbf16>, vector<32x128xbf16>, vector<8x128xf32> -> vector<8x128xf32>
    %875 = arith.index_cast %c11_i32 : i32 to index
    %c0_212 = arith.constant 0 : index
    %c0_213 = arith.constant 0 : index
    %876 = vector.load %arg7[%875, %c0_212, %c0_213] : memref<16x8x256xbf16, #tpu.memory_space<vmem>>, vector<1x8x256xbf16>
    %877 = vector.shape_cast %876 : vector<1x8x256xbf16> to vector<8x256xbf16>
    %878 = vector.extract_strided_slice %877 {offsets = [0, 0], sizes = [8, 128], strides = [1, 1]} : vector<8x256xbf16> to vector<8x128xbf16>
    %879 = arith.extf %878 : vector<8x128xbf16> to vector<8x128xf32>
    %880 = arith.addf %879, %872 : vector<8x128xf32>
    %c15_i32_214 = arith.constant 15 : i32
    %881 = arith.subi %c15_i32_214, %c11_i32 : i32
    %882 = arith.index_cast %881 : i32 to index
    %c0_215 = arith.constant 0 : index
    %c0_216 = arith.constant 0 : index
    %883 = vector.load %arg7[%882, %c0_215, %c0_216] : memref<16x8x256xbf16, #tpu.memory_space<vmem>>, vector<1x8x256xbf16>
    %884 = vector.shape_cast %883 : vector<1x8x256xbf16> to vector<8x256xbf16>
    %885 = vector.extract_strided_slice %884 {offsets = [0, 128], sizes = [8, 128], strides = [1, 1]} : vector<8x256xbf16> to vector<8x128xbf16>
    %886 = arith.extf %885 : vector<8x128xbf16> to vector<8x128xf32>
    %887 = arith.addf %886, %874 : vector<8x128xf32>
    %888 = vector.extract_strided_slice %880 {offsets = [0, 0], sizes = [8, 32], strides = [1, 1]} : vector<8x128xf32> to vector<8x32xf32>
    %889 = arith.negf %888 : vector<8x32xf32>
    %890 = math.exp %889 : vector<8x32xf32>
    %cst_217 = arith.constant 1.000000e+00 : f32
    %891 = vector.broadcast %cst_217 : f32 to vector<8x32xf32>
    %892 = arith.addf %891, %890 : vector<8x32xf32>
    %893 = arith.divf %891, %892 : vector<8x32xf32>
    %894 = vector.extract_strided_slice %880 {offsets = [0, 32], sizes = [8, 32], strides = [1, 1]} : vector<8x128xf32> to vector<8x32xf32>
    %895 = arith.negf %894 : vector<8x32xf32>
    %896 = math.exp %895 : vector<8x32xf32>
    %cst_218 = arith.constant 1.000000e+00 : f32
    %897 = vector.broadcast %cst_218 : f32 to vector<8x32xf32>
    %898 = arith.addf %897, %896 : vector<8x32xf32>
    %899 = arith.divf %897, %898 : vector<8x32xf32>
    %900 = vector.extract_strided_slice %880 {offsets = [0, 64], sizes = [8, 32], strides = [1, 1]} : vector<8x128xf32> to vector<8x32xf32>
    %901 = math.tanh %900 : vector<8x32xf32>
    %902 = vector.extract_strided_slice %880 {offsets = [0, 96], sizes = [8, 32], strides = [1, 1]} : vector<8x128xf32> to vector<8x32xf32>
    %903 = arith.negf %902 : vector<8x32xf32>
    %904 = math.exp %903 : vector<8x32xf32>
    %cst_219 = arith.constant 1.000000e+00 : f32
    %905 = vector.broadcast %cst_219 : f32 to vector<8x32xf32>
    %906 = arith.addf %905, %904 : vector<8x32xf32>
    %907 = arith.divf %905, %906 : vector<8x32xf32>
    %908 = arith.mulf %899, %832 : vector<8x32xf32>
    %909 = arith.mulf %893, %901 : vector<8x32xf32>
    %910 = arith.addf %908, %909 : vector<8x32xf32>
    %911 = math.tanh %910 : vector<8x32xf32>
    %912 = arith.mulf %907, %911 : vector<8x32xf32>
    %913 = vector.extract_strided_slice %887 {offsets = [0, 0], sizes = [8, 32], strides = [1, 1]} : vector<8x128xf32> to vector<8x32xf32>
    %914 = arith.negf %913 : vector<8x32xf32>
    %915 = math.exp %914 : vector<8x32xf32>
    %cst_220 = arith.constant 1.000000e+00 : f32
    %916 = vector.broadcast %cst_220 : f32 to vector<8x32xf32>
    %917 = arith.addf %916, %915 : vector<8x32xf32>
    %918 = arith.divf %916, %917 : vector<8x32xf32>
    %919 = vector.extract_strided_slice %887 {offsets = [0, 32], sizes = [8, 32], strides = [1, 1]} : vector<8x128xf32> to vector<8x32xf32>
    %920 = arith.negf %919 : vector<8x32xf32>
    %921 = math.exp %920 : vector<8x32xf32>
    %cst_221 = arith.constant 1.000000e+00 : f32
    %922 = vector.broadcast %cst_221 : f32 to vector<8x32xf32>
    %923 = arith.addf %922, %921 : vector<8x32xf32>
    %924 = arith.divf %922, %923 : vector<8x32xf32>
    %925 = vector.extract_strided_slice %887 {offsets = [0, 64], sizes = [8, 32], strides = [1, 1]} : vector<8x128xf32> to vector<8x32xf32>
    %926 = math.tanh %925 : vector<8x32xf32>
    %927 = vector.extract_strided_slice %887 {offsets = [0, 96], sizes = [8, 32], strides = [1, 1]} : vector<8x128xf32> to vector<8x32xf32>
    %928 = arith.negf %927 : vector<8x32xf32>
    %929 = math.exp %928 : vector<8x32xf32>
    %cst_222 = arith.constant 1.000000e+00 : f32
    %930 = vector.broadcast %cst_222 : f32 to vector<8x32xf32>
    %931 = arith.addf %930, %929 : vector<8x32xf32>
    %932 = arith.divf %930, %931 : vector<8x32xf32>
    %933 = arith.mulf %924, %857 : vector<8x32xf32>
    %934 = arith.mulf %918, %926 : vector<8x32xf32>
    %935 = arith.addf %933, %934 : vector<8x32xf32>
    %936 = math.tanh %935 : vector<8x32xf32>
    %937 = arith.mulf %932, %936 : vector<8x32xf32>
    %938 = arith.truncf %912 : vector<8x32xf32> to vector<8x32xbf16>
    %939 = arith.index_cast %c11_i32 : i32 to index
    %c0_223 = arith.constant 0 : index
    %c0_224 = arith.constant 0 : index
    %940 = vector.load %arg6[%939, %c0_223, %c0_224] : memref<16x8x64xbf16, #tpu.memory_space<vmem>>, vector<1x8x32xbf16>
    %941 = vector.shape_cast %940 : vector<1x8x32xbf16> to vector<8x32xbf16>
    %942 = vector.shape_cast %938 : vector<8x32xbf16> to vector<1x8x32xbf16>
    tpu.vector_store %arg6[%939, %c0_223, %c0_224], %942 {strides = array<i32>} : memref<16x8x64xbf16, #tpu.memory_space<vmem>>, vector<1x8x32xbf16>,
    %943 = arith.truncf %937 : vector<8x32xf32> to vector<8x32xbf16>
    %c15_i32_225 = arith.constant 15 : i32
    %944 = arith.subi %c15_i32_225, %c11_i32 : i32
    %945 = arith.index_cast %944 : i32 to index
    %c0_226 = arith.constant 0 : index
    %c32_227 = arith.constant 32 : index
    %946 = vector.load %arg6[%945, %c0_226, %c32_227] : memref<16x8x64xbf16, #tpu.memory_space<vmem>>, vector<1x8x32xbf16>
    %947 = vector.shape_cast %946 : vector<1x8x32xbf16> to vector<8x32xbf16>
    %948 = vector.shape_cast %943 : vector<8x32xbf16> to vector<1x8x32xbf16>
    tpu.vector_store %arg6[%945, %c0_226, %c32_227], %948 {strides = array<i32>} : memref<16x8x64xbf16, #tpu.memory_space<vmem>>, vector<1x8x32xbf16>,
    %c12_i32 = arith.constant 12 : i32
    %949 = arith.truncf %912 : vector<8x32xf32> to vector<8x32xbf16>
    %cst_228 = arith.constant dense<0.000000e+00> : vector<8x128xf32>
    %950 = tpu.matmul %949, %10, %cst_228 {dimension_numbers = #tpu.dot_dimension_numbers<[1], [0], [0], [1], [0, 0, 1, 1], [], []>} : vector<8x32xbf16>, vector<32x128xbf16>, vector<8x128xf32> -> vector<8x128xf32>
    %951 = arith.truncf %937 : vector<8x32xf32> to vector<8x32xbf16>
    %cst_229 = arith.constant dense<0.000000e+00> : vector<8x128xf32>
    %952 = tpu.matmul %951, %11, %cst_229 {dimension_numbers = #tpu.dot_dimension_numbers<[1], [0], [0], [1], [0, 0, 1, 1], [], []>} : vector<8x32xbf16>, vector<32x128xbf16>, vector<8x128xf32> -> vector<8x128xf32>
    %953 = arith.index_cast %c12_i32 : i32 to index
    %c0_230 = arith.constant 0 : index
    %c0_231 = arith.constant 0 : index
    %954 = vector.load %arg7[%953, %c0_230, %c0_231] : memref<16x8x256xbf16, #tpu.memory_space<vmem>>, vector<1x8x256xbf16>
    %955 = vector.shape_cast %954 : vector<1x8x256xbf16> to vector<8x256xbf16>
    %956 = vector.extract_strided_slice %955 {offsets = [0, 0], sizes = [8, 128], strides = [1, 1]} : vector<8x256xbf16> to vector<8x128xbf16>
    %957 = arith.extf %956 : vector<8x128xbf16> to vector<8x128xf32>
    %958 = arith.addf %957, %950 : vector<8x128xf32>
    %c15_i32_232 = arith.constant 15 : i32
    %959 = arith.subi %c15_i32_232, %c12_i32 : i32
    %960 = arith.index_cast %959 : i32 to index
    %c0_233 = arith.constant 0 : index
    %c0_234 = arith.constant 0 : index
    %961 = vector.load %arg7[%960, %c0_233, %c0_234] : memref<16x8x256xbf16, #tpu.memory_space<vmem>>, vector<1x8x256xbf16>
    %962 = vector.shape_cast %961 : vector<1x8x256xbf16> to vector<8x256xbf16>
    %963 = vector.extract_strided_slice %962 {offsets = [0, 128], sizes = [8, 128], strides = [1, 1]} : vector<8x256xbf16> to vector<8x128xbf16>
    %964 = arith.extf %963 : vector<8x128xbf16> to vector<8x128xf32>
    %965 = arith.addf %964, %952 : vector<8x128xf32>
    %966 = vector.extract_strided_slice %958 {offsets = [0, 0], sizes = [8, 32], strides = [1, 1]} : vector<8x128xf32> to vector<8x32xf32>
    %967 = arith.negf %966 : vector<8x32xf32>
    %968 = math.exp %967 : vector<8x32xf32>
    %cst_235 = arith.constant 1.000000e+00 : f32
    %969 = vector.broadcast %cst_235 : f32 to vector<8x32xf32>
    %970 = arith.addf %969, %968 : vector<8x32xf32>
    %971 = arith.divf %969, %970 : vector<8x32xf32>
    %972 = vector.extract_strided_slice %958 {offsets = [0, 32], sizes = [8, 32], strides = [1, 1]} : vector<8x128xf32> to vector<8x32xf32>
    %973 = arith.negf %972 : vector<8x32xf32>
    %974 = math.exp %973 : vector<8x32xf32>
    %cst_236 = arith.constant 1.000000e+00 : f32
    %975 = vector.broadcast %cst_236 : f32 to vector<8x32xf32>
    %976 = arith.addf %975, %974 : vector<8x32xf32>
    %977 = arith.divf %975, %976 : vector<8x32xf32>
    %978 = vector.extract_strided_slice %958 {offsets = [0, 64], sizes = [8, 32], strides = [1, 1]} : vector<8x128xf32> to vector<8x32xf32>
    %979 = math.tanh %978 : vector<8x32xf32>
    %980 = vector.extract_strided_slice %958 {offsets = [0, 96], sizes = [8, 32], strides = [1, 1]} : vector<8x128xf32> to vector<8x32xf32>
    %981 = arith.negf %980 : vector<8x32xf32>
    %982 = math.exp %981 : vector<8x32xf32>
    %cst_237 = arith.constant 1.000000e+00 : f32
    %983 = vector.broadcast %cst_237 : f32 to vector<8x32xf32>
    %984 = arith.addf %983, %982 : vector<8x32xf32>
    %985 = arith.divf %983, %984 : vector<8x32xf32>
    %986 = arith.mulf %977, %910 : vector<8x32xf32>
    %987 = arith.mulf %971, %979 : vector<8x32xf32>
    %988 = arith.addf %986, %987 : vector<8x32xf32>
    %989 = math.tanh %988 : vector<8x32xf32>
    %990 = arith.mulf %985, %989 : vector<8x32xf32>
    %991 = vector.extract_strided_slice %965 {offsets = [0, 0], sizes = [8, 32], strides = [1, 1]} : vector<8x128xf32> to vector<8x32xf32>
    %992 = arith.negf %991 : vector<8x32xf32>
    %993 = math.exp %992 : vector<8x32xf32>
    %cst_238 = arith.constant 1.000000e+00 : f32
    %994 = vector.broadcast %cst_238 : f32 to vector<8x32xf32>
    %995 = arith.addf %994, %993 : vector<8x32xf32>
    %996 = arith.divf %994, %995 : vector<8x32xf32>
    %997 = vector.extract_strided_slice %965 {offsets = [0, 32], sizes = [8, 32], strides = [1, 1]} : vector<8x128xf32> to vector<8x32xf32>
    %998 = arith.negf %997 : vector<8x32xf32>
    %999 = math.exp %998 : vector<8x32xf32>
    %cst_239 = arith.constant 1.000000e+00 : f32
    %1000 = vector.broadcast %cst_239 : f32 to vector<8x32xf32>
    %1001 = arith.addf %1000, %999 : vector<8x32xf32>
    %1002 = arith.divf %1000, %1001 : vector<8x32xf32>
    %1003 = vector.extract_strided_slice %965 {offsets = [0, 64], sizes = [8, 32], strides = [1, 1]} : vector<8x128xf32> to vector<8x32xf32>
    %1004 = math.tanh %1003 : vector<8x32xf32>
    %1005 = vector.extract_strided_slice %965 {offsets = [0, 96], sizes = [8, 32], strides = [1, 1]} : vector<8x128xf32> to vector<8x32xf32>
    %1006 = arith.negf %1005 : vector<8x32xf32>
    %1007 = math.exp %1006 : vector<8x32xf32>
    %cst_240 = arith.constant 1.000000e+00 : f32
    %1008 = vector.broadcast %cst_240 : f32 to vector<8x32xf32>
    %1009 = arith.addf %1008, %1007 : vector<8x32xf32>
    %1010 = arith.divf %1008, %1009 : vector<8x32xf32>
    %1011 = arith.mulf %1002, %935 : vector<8x32xf32>
    %1012 = arith.mulf %996, %1004 : vector<8x32xf32>
    %1013 = arith.addf %1011, %1012 : vector<8x32xf32>
    %1014 = math.tanh %1013 : vector<8x32xf32>
    %1015 = arith.mulf %1010, %1014 : vector<8x32xf32>
    %1016 = arith.truncf %990 : vector<8x32xf32> to vector<8x32xbf16>
    %1017 = arith.index_cast %c12_i32 : i32 to index
    %c0_241 = arith.constant 0 : index
    %c0_242 = arith.constant 0 : index
    %1018 = vector.load %arg6[%1017, %c0_241, %c0_242] : memref<16x8x64xbf16, #tpu.memory_space<vmem>>, vector<1x8x32xbf16>
    %1019 = vector.shape_cast %1018 : vector<1x8x32xbf16> to vector<8x32xbf16>
    %1020 = vector.shape_cast %1016 : vector<8x32xbf16> to vector<1x8x32xbf16>
    tpu.vector_store %arg6[%1017, %c0_241, %c0_242], %1020 {strides = array<i32>} : memref<16x8x64xbf16, #tpu.memory_space<vmem>>, vector<1x8x32xbf16>,
    %1021 = arith.truncf %1015 : vector<8x32xf32> to vector<8x32xbf16>
    %c15_i32_243 = arith.constant 15 : i32
    %1022 = arith.subi %c15_i32_243, %c12_i32 : i32
    %1023 = arith.index_cast %1022 : i32 to index
    %c0_244 = arith.constant 0 : index
    %c32_245 = arith.constant 32 : index
    %1024 = vector.load %arg6[%1023, %c0_244, %c32_245] : memref<16x8x64xbf16, #tpu.memory_space<vmem>>, vector<1x8x32xbf16>
    %1025 = vector.shape_cast %1024 : vector<1x8x32xbf16> to vector<8x32xbf16>
    %1026 = vector.shape_cast %1021 : vector<8x32xbf16> to vector<1x8x32xbf16>
    tpu.vector_store %arg6[%1023, %c0_244, %c32_245], %1026 {strides = array<i32>} : memref<16x8x64xbf16, #tpu.memory_space<vmem>>, vector<1x8x32xbf16>,
    %c13_i32 = arith.constant 13 : i32
    %1027 = arith.truncf %990 : vector<8x32xf32> to vector<8x32xbf16>
    %cst_246 = arith.constant dense<0.000000e+00> : vector<8x128xf32>
    %1028 = tpu.matmul %1027, %10, %cst_246 {dimension_numbers = #tpu.dot_dimension_numbers<[1], [0], [0], [1], [0, 0, 1, 1], [], []>} : vector<8x32xbf16>, vector<32x128xbf16>, vector<8x128xf32> -> vector<8x128xf32>
    %1029 = arith.truncf %1015 : vector<8x32xf32> to vector<8x32xbf16>
    %cst_247 = arith.constant dense<0.000000e+00> : vector<8x128xf32>
    %1030 = tpu.matmul %1029, %11, %cst_247 {dimension_numbers = #tpu.dot_dimension_numbers<[1], [0], [0], [1], [0, 0, 1, 1], [], []>} : vector<8x32xbf16>, vector<32x128xbf16>, vector<8x128xf32> -> vector<8x128xf32>
    %1031 = arith.index_cast %c13_i32 : i32 to index
    %c0_248 = arith.constant 0 : index
    %c0_249 = arith.constant 0 : index
    %1032 = vector.load %arg7[%1031, %c0_248, %c0_249] : memref<16x8x256xbf16, #tpu.memory_space<vmem>>, vector<1x8x256xbf16>
    %1033 = vector.shape_cast %1032 : vector<1x8x256xbf16> to vector<8x256xbf16>
    %1034 = vector.extract_strided_slice %1033 {offsets = [0, 0], sizes = [8, 128], strides = [1, 1]} : vector<8x256xbf16> to vector<8x128xbf16>
    %1035 = arith.extf %1034 : vector<8x128xbf16> to vector<8x128xf32>
    %1036 = arith.addf %1035, %1028 : vector<8x128xf32>
    %c15_i32_250 = arith.constant 15 : i32
    %1037 = arith.subi %c15_i32_250, %c13_i32 : i32
    %1038 = arith.index_cast %1037 : i32 to index
    %c0_251 = arith.constant 0 : index
    %c0_252 = arith.constant 0 : index
    %1039 = vector.load %arg7[%1038, %c0_251, %c0_252] : memref<16x8x256xbf16, #tpu.memory_space<vmem>>, vector<1x8x256xbf16>
    %1040 = vector.shape_cast %1039 : vector<1x8x256xbf16> to vector<8x256xbf16>
    %1041 = vector.extract_strided_slice %1040 {offsets = [0, 128], sizes = [8, 128], strides = [1, 1]} : vector<8x256xbf16> to vector<8x128xbf16>
    %1042 = arith.extf %1041 : vector<8x128xbf16> to vector<8x128xf32>
    %1043 = arith.addf %1042, %1030 : vector<8x128xf32>
    %1044 = vector.extract_strided_slice %1036 {offsets = [0, 0], sizes = [8, 32], strides = [1, 1]} : vector<8x128xf32> to vector<8x32xf32>
    %1045 = arith.negf %1044 : vector<8x32xf32>
    %1046 = math.exp %1045 : vector<8x32xf32>
    %cst_253 = arith.constant 1.000000e+00 : f32
    %1047 = vector.broadcast %cst_253 : f32 to vector<8x32xf32>
    %1048 = arith.addf %1047, %1046 : vector<8x32xf32>
    %1049 = arith.divf %1047, %1048 : vector<8x32xf32>
    %1050 = vector.extract_strided_slice %1036 {offsets = [0, 32], sizes = [8, 32], strides = [1, 1]} : vector<8x128xf32> to vector<8x32xf32>
    %1051 = arith.negf %1050 : vector<8x32xf32>
    %1052 = math.exp %1051 : vector<8x32xf32>
    %cst_254 = arith.constant 1.000000e+00 : f32
    %1053 = vector.broadcast %cst_254 : f32 to vector<8x32xf32>
    %1054 = arith.addf %1053, %1052 : vector<8x32xf32>
    %1055 = arith.divf %1053, %1054 : vector<8x32xf32>
    %1056 = vector.extract_strided_slice %1036 {offsets = [0, 64], sizes = [8, 32], strides = [1, 1]} : vector<8x128xf32> to vector<8x32xf32>
    %1057 = math.tanh %1056 : vector<8x32xf32>
    %1058 = vector.extract_strided_slice %1036 {offsets = [0, 96], sizes = [8, 32], strides = [1, 1]} : vector<8x128xf32> to vector<8x32xf32>
    %1059 = arith.negf %1058 : vector<8x32xf32>
    %1060 = math.exp %1059 : vector<8x32xf32>
    %cst_255 = arith.constant 1.000000e+00 : f32
    %1061 = vector.broadcast %cst_255 : f32 to vector<8x32xf32>
    %1062 = arith.addf %1061, %1060 : vector<8x32xf32>
    %1063 = arith.divf %1061, %1062 : vector<8x32xf32>
    %1064 = arith.mulf %1055, %988 : vector<8x32xf32>
    %1065 = arith.mulf %1049, %1057 : vector<8x32xf32>
    %1066 = arith.addf %1064, %1065 : vector<8x32xf32>
    %1067 = math.tanh %1066 : vector<8x32xf32>
    %1068 = arith.mulf %1063, %1067 : vector<8x32xf32>
    %1069 = vector.extract_strided_slice %1043 {offsets = [0, 0], sizes = [8, 32], strides = [1, 1]} : vector<8x128xf32> to vector<8x32xf32>
    %1070 = arith.negf %1069 : vector<8x32xf32>
    %1071 = math.exp %1070 : vector<8x32xf32>
    %cst_256 = arith.constant 1.000000e+00 : f32
    %1072 = vector.broadcast %cst_256 : f32 to vector<8x32xf32>
    %1073 = arith.addf %1072, %1071 : vector<8x32xf32>
    %1074 = arith.divf %1072, %1073 : vector<8x32xf32>
    %1075 = vector.extract_strided_slice %1043 {offsets = [0, 32], sizes = [8, 32], strides = [1, 1]} : vector<8x128xf32> to vector<8x32xf32>
    %1076 = arith.negf %1075 : vector<8x32xf32>
    %1077 = math.exp %1076 : vector<8x32xf32>
    %cst_257 = arith.constant 1.000000e+00 : f32
    %1078 = vector.broadcast %cst_257 : f32 to vector<8x32xf32>
    %1079 = arith.addf %1078, %1077 : vector<8x32xf32>
    %1080 = arith.divf %1078, %1079 : vector<8x32xf32>
    %1081 = vector.extract_strided_slice %1043 {offsets = [0, 64], sizes = [8, 32], strides = [1, 1]} : vector<8x128xf32> to vector<8x32xf32>
    %1082 = math.tanh %1081 : vector<8x32xf32>
    %1083 = vector.extract_strided_slice %1043 {offsets = [0, 96], sizes = [8, 32], strides = [1, 1]} : vector<8x128xf32> to vector<8x32xf32>
    %1084 = arith.negf %1083 : vector<8x32xf32>
    %1085 = math.exp %1084 : vector<8x32xf32>
    %cst_258 = arith.constant 1.000000e+00 : f32
    %1086 = vector.broadcast %cst_258 : f32 to vector<8x32xf32>
    %1087 = arith.addf %1086, %1085 : vector<8x32xf32>
    %1088 = arith.divf %1086, %1087 : vector<8x32xf32>
    %1089 = arith.mulf %1080, %1013 : vector<8x32xf32>
    %1090 = arith.mulf %1074, %1082 : vector<8x32xf32>
    %1091 = arith.addf %1089, %1090 : vector<8x32xf32>
    %1092 = math.tanh %1091 : vector<8x32xf32>
    %1093 = arith.mulf %1088, %1092 : vector<8x32xf32>
    %1094 = arith.truncf %1068 : vector<8x32xf32> to vector<8x32xbf16>
    %1095 = arith.index_cast %c13_i32 : i32 to index
    %c0_259 = arith.constant 0 : index
    %c0_260 = arith.constant 0 : index
    %1096 = vector.load %arg6[%1095, %c0_259, %c0_260] : memref<16x8x64xbf16, #tpu.memory_space<vmem>>, vector<1x8x32xbf16>
    %1097 = vector.shape_cast %1096 : vector<1x8x32xbf16> to vector<8x32xbf16>
    %1098 = vector.shape_cast %1094 : vector<8x32xbf16> to vector<1x8x32xbf16>
    tpu.vector_store %arg6[%1095, %c0_259, %c0_260], %1098 {strides = array<i32>} : memref<16x8x64xbf16, #tpu.memory_space<vmem>>, vector<1x8x32xbf16>,
    %1099 = arith.truncf %1093 : vector<8x32xf32> to vector<8x32xbf16>
    %c15_i32_261 = arith.constant 15 : i32
    %1100 = arith.subi %c15_i32_261, %c13_i32 : i32
    %1101 = arith.index_cast %1100 : i32 to index
    %c0_262 = arith.constant 0 : index
    %c32_263 = arith.constant 32 : index
    %1102 = vector.load %arg6[%1101, %c0_262, %c32_263] : memref<16x8x64xbf16, #tpu.memory_space<vmem>>, vector<1x8x32xbf16>
    %1103 = vector.shape_cast %1102 : vector<1x8x32xbf16> to vector<8x32xbf16>
    %1104 = vector.shape_cast %1099 : vector<8x32xbf16> to vector<1x8x32xbf16>
    tpu.vector_store %arg6[%1101, %c0_262, %c32_263], %1104 {strides = array<i32>} : memref<16x8x64xbf16, #tpu.memory_space<vmem>>, vector<1x8x32xbf16>,
    %c14_i32 = arith.constant 14 : i32
    %1105 = arith.truncf %1068 : vector<8x32xf32> to vector<8x32xbf16>
    %cst_264 = arith.constant dense<0.000000e+00> : vector<8x128xf32>
    %1106 = tpu.matmul %1105, %10, %cst_264 {dimension_numbers = #tpu.dot_dimension_numbers<[1], [0], [0], [1], [0, 0, 1, 1], [], []>} : vector<8x32xbf16>, vector<32x128xbf16>, vector<8x128xf32> -> vector<8x128xf32>
    %1107 = arith.truncf %1093 : vector<8x32xf32> to vector<8x32xbf16>
    %cst_265 = arith.constant dense<0.000000e+00> : vector<8x128xf32>
    %1108 = tpu.matmul %1107, %11, %cst_265 {dimension_numbers = #tpu.dot_dimension_numbers<[1], [0], [0], [1], [0, 0, 1, 1], [], []>} : vector<8x32xbf16>, vector<32x128xbf16>, vector<8x128xf32> -> vector<8x128xf32>
    %1109 = arith.index_cast %c14_i32 : i32 to index
    %c0_266 = arith.constant 0 : index
    %c0_267 = arith.constant 0 : index
    %1110 = vector.load %arg7[%1109, %c0_266, %c0_267] : memref<16x8x256xbf16, #tpu.memory_space<vmem>>, vector<1x8x256xbf16>
    %1111 = vector.shape_cast %1110 : vector<1x8x256xbf16> to vector<8x256xbf16>
    %1112 = vector.extract_strided_slice %1111 {offsets = [0, 0], sizes = [8, 128], strides = [1, 1]} : vector<8x256xbf16> to vector<8x128xbf16>
    %1113 = arith.extf %1112 : vector<8x128xbf16> to vector<8x128xf32>
    %1114 = arith.addf %1113, %1106 : vector<8x128xf32>
    %c15_i32_268 = arith.constant 15 : i32
    %1115 = arith.subi %c15_i32_268, %c14_i32 : i32
    %1116 = arith.index_cast %1115 : i32 to index
    %c0_269 = arith.constant 0 : index
    %c0_270 = arith.constant 0 : index
    %1117 = vector.load %arg7[%1116, %c0_269, %c0_270] : memref<16x8x256xbf16, #tpu.memory_space<vmem>>, vector<1x8x256xbf16>
    %1118 = vector.shape_cast %1117 : vector<1x8x256xbf16> to vector<8x256xbf16>
    %1119 = vector.extract_strided_slice %1118 {offsets = [0, 128], sizes = [8, 128], strides = [1, 1]} : vector<8x256xbf16> to vector<8x128xbf16>
    %1120 = arith.extf %1119 : vector<8x128xbf16> to vector<8x128xf32>
    %1121 = arith.addf %1120, %1108 : vector<8x128xf32>
    %1122 = vector.extract_strided_slice %1114 {offsets = [0, 0], sizes = [8, 32], strides = [1, 1]} : vector<8x128xf32> to vector<8x32xf32>
    %1123 = arith.negf %1122 : vector<8x32xf32>
    %1124 = math.exp %1123 : vector<8x32xf32>
    %cst_271 = arith.constant 1.000000e+00 : f32
    %1125 = vector.broadcast %cst_271 : f32 to vector<8x32xf32>
    %1126 = arith.addf %1125, %1124 : vector<8x32xf32>
    %1127 = arith.divf %1125, %1126 : vector<8x32xf32>
    %1128 = vector.extract_strided_slice %1114 {offsets = [0, 32], sizes = [8, 32], strides = [1, 1]} : vector<8x128xf32> to vector<8x32xf32>
    %1129 = arith.negf %1128 : vector<8x32xf32>
    %1130 = math.exp %1129 : vector<8x32xf32>
    %cst_272 = arith.constant 1.000000e+00 : f32
    %1131 = vector.broadcast %cst_272 : f32 to vector<8x32xf32>
    %1132 = arith.addf %1131, %1130 : vector<8x32xf32>
    %1133 = arith.divf %1131, %1132 : vector<8x32xf32>
    %1134 = vector.extract_strided_slice %1114 {offsets = [0, 64], sizes = [8, 32], strides = [1, 1]} : vector<8x128xf32> to vector<8x32xf32>
    %1135 = math.tanh %1134 : vector<8x32xf32>
    %1136 = vector.extract_strided_slice %1114 {offsets = [0, 96], sizes = [8, 32], strides = [1, 1]} : vector<8x128xf32> to vector<8x32xf32>
    %1137 = arith.negf %1136 : vector<8x32xf32>
    %1138 = math.exp %1137 : vector<8x32xf32>
    %cst_273 = arith.constant 1.000000e+00 : f32
    %1139 = vector.broadcast %cst_273 : f32 to vector<8x32xf32>
    %1140 = arith.addf %1139, %1138 : vector<8x32xf32>
    %1141 = arith.divf %1139, %1140 : vector<8x32xf32>
    %1142 = arith.mulf %1133, %1066 : vector<8x32xf32>
    %1143 = arith.mulf %1127, %1135 : vector<8x32xf32>
    %1144 = arith.addf %1142, %1143 : vector<8x32xf32>
    %1145 = math.tanh %1144 : vector<8x32xf32>
    %1146 = arith.mulf %1141, %1145 : vector<8x32xf32>
    %1147 = vector.extract_strided_slice %1121 {offsets = [0, 0], sizes = [8, 32], strides = [1, 1]} : vector<8x128xf32> to vector<8x32xf32>
    %1148 = arith.negf %1147 : vector<8x32xf32>
    %1149 = math.exp %1148 : vector<8x32xf32>
    %cst_274 = arith.constant 1.000000e+00 : f32
    %1150 = vector.broadcast %cst_274 : f32 to vector<8x32xf32>
    %1151 = arith.addf %1150, %1149 : vector<8x32xf32>
    %1152 = arith.divf %1150, %1151 : vector<8x32xf32>
    %1153 = vector.extract_strided_slice %1121 {offsets = [0, 32], sizes = [8, 32], strides = [1, 1]} : vector<8x128xf32> to vector<8x32xf32>
    %1154 = arith.negf %1153 : vector<8x32xf32>
    %1155 = math.exp %1154 : vector<8x32xf32>
    %cst_275 = arith.constant 1.000000e+00 : f32
    %1156 = vector.broadcast %cst_275 : f32 to vector<8x32xf32>
    %1157 = arith.addf %1156, %1155 : vector<8x32xf32>
    %1158 = arith.divf %1156, %1157 : vector<8x32xf32>
    %1159 = vector.extract_strided_slice %1121 {offsets = [0, 64], sizes = [8, 32], strides = [1, 1]} : vector<8x128xf32> to vector<8x32xf32>
    %1160 = math.tanh %1159 : vector<8x32xf32>
    %1161 = vector.extract_strided_slice %1121 {offsets = [0, 96], sizes = [8, 32], strides = [1, 1]} : vector<8x128xf32> to vector<8x32xf32>
    %1162 = arith.negf %1161 : vector<8x32xf32>
    %1163 = math.exp %1162 : vector<8x32xf32>
    %cst_276 = arith.constant 1.000000e+00 : f32
    %1164 = vector.broadcast %cst_276 : f32 to vector<8x32xf32>
    %1165 = arith.addf %1164, %1163 : vector<8x32xf32>
    %1166 = arith.divf %1164, %1165 : vector<8x32xf32>
    %1167 = arith.mulf %1158, %1091 : vector<8x32xf32>
    %1168 = arith.mulf %1152, %1160 : vector<8x32xf32>
    %1169 = arith.addf %1167, %1168 : vector<8x32xf32>
    %1170 = math.tanh %1169 : vector<8x32xf32>
    %1171 = arith.mulf %1166, %1170 : vector<8x32xf32>
    %1172 = arith.truncf %1146 : vector<8x32xf32> to vector<8x32xbf16>
    %1173 = arith.index_cast %c14_i32 : i32 to index
    %c0_277 = arith.constant 0 : index
    %c0_278 = arith.constant 0 : index
    %1174 = vector.load %arg6[%1173, %c0_277, %c0_278] : memref<16x8x64xbf16, #tpu.memory_space<vmem>>, vector<1x8x32xbf16>
    %1175 = vector.shape_cast %1174 : vector<1x8x32xbf16> to vector<8x32xbf16>
    %1176 = vector.shape_cast %1172 : vector<8x32xbf16> to vector<1x8x32xbf16>
    tpu.vector_store %arg6[%1173, %c0_277, %c0_278], %1176 {strides = array<i32>} : memref<16x8x64xbf16, #tpu.memory_space<vmem>>, vector<1x8x32xbf16>,
    %1177 = arith.truncf %1171 : vector<8x32xf32> to vector<8x32xbf16>
    %c15_i32_279 = arith.constant 15 : i32
    %1178 = arith.subi %c15_i32_279, %c14_i32 : i32
    %1179 = arith.index_cast %1178 : i32 to index
    %c0_280 = arith.constant 0 : index
    %c32_281 = arith.constant 32 : index
    %1180 = vector.load %arg6[%1179, %c0_280, %c32_281] : memref<16x8x64xbf16, #tpu.memory_space<vmem>>, vector<1x8x32xbf16>
    %1181 = vector.shape_cast %1180 : vector<1x8x32xbf16> to vector<8x32xbf16>
    %1182 = vector.shape_cast %1177 : vector<8x32xbf16> to vector<1x8x32xbf16>
    tpu.vector_store %arg6[%1179, %c0_280, %c32_281], %1182 {strides = array<i32>} : memref<16x8x64xbf16, #tpu.memory_space<vmem>>, vector<1x8x32xbf16>,
    %c15_i32_282 = arith.constant 15 : i32
    %1183 = arith.truncf %1146 : vector<8x32xf32> to vector<8x32xbf16>
    %cst_283 = arith.constant dense<0.000000e+00> : vector<8x128xf32>
    %1184 = tpu.matmul %1183, %10, %cst_283 {dimension_numbers = #tpu.dot_dimension_numbers<[1], [0], [0], [1], [0, 0, 1, 1], [], []>} : vector<8x32xbf16>, vector<32x128xbf16>, vector<8x128xf32> -> vector<8x128xf32>
    %1185 = arith.truncf %1171 : vector<8x32xf32> to vector<8x32xbf16>
    %cst_284 = arith.constant dense<0.000000e+00> : vector<8x128xf32>
    %1186 = tpu.matmul %1185, %11, %cst_284 {dimension_numbers = #tpu.dot_dimension_numbers<[1], [0], [0], [1], [0, 0, 1, 1], [], []>} : vector<8x32xbf16>, vector<32x128xbf16>, vector<8x128xf32> -> vector<8x128xf32>
    %1187 = arith.index_cast %c15_i32_282 : i32 to index
    %c0_285 = arith.constant 0 : index
    %c0_286 = arith.constant 0 : index
    %1188 = vector.load %arg7[%1187, %c0_285, %c0_286] : memref<16x8x256xbf16, #tpu.memory_space<vmem>>, vector<1x8x256xbf16>
    %1189 = vector.shape_cast %1188 : vector<1x8x256xbf16> to vector<8x256xbf16>
    %1190 = vector.extract_strided_slice %1189 {offsets = [0, 0], sizes = [8, 128], strides = [1, 1]} : vector<8x256xbf16> to vector<8x128xbf16>
    %1191 = arith.extf %1190 : vector<8x128xbf16> to vector<8x128xf32>
    %1192 = arith.addf %1191, %1184 : vector<8x128xf32>
    %c15_i32_287 = arith.constant 15 : i32
    %1193 = arith.subi %c15_i32_287, %c15_i32_282 : i32
    %1194 = arith.index_cast %1193 : i32 to index
    %c0_288 = arith.constant 0 : index
    %c0_289 = arith.constant 0 : index
    %1195 = vector.load %arg7[%1194, %c0_288, %c0_289] : memref<16x8x256xbf16, #tpu.memory_space<vmem>>, vector<1x8x256xbf16>
    %1196 = vector.shape_cast %1195 : vector<1x8x256xbf16> to vector<8x256xbf16>
    %1197 = vector.extract_strided_slice %1196 {offsets = [0, 128], sizes = [8, 128], strides = [1, 1]} : vector<8x256xbf16> to vector<8x128xbf16>
    %1198 = arith.extf %1197 : vector<8x128xbf16> to vector<8x128xf32>
    %1199 = arith.addf %1198, %1186 : vector<8x128xf32>
    %1200 = vector.extract_strided_slice %1192 {offsets = [0, 0], sizes = [8, 32], strides = [1, 1]} : vector<8x128xf32> to vector<8x32xf32>
    %1201 = arith.negf %1200 : vector<8x32xf32>
    %1202 = math.exp %1201 : vector<8x32xf32>
    %cst_290 = arith.constant 1.000000e+00 : f32
    %1203 = vector.broadcast %cst_290 : f32 to vector<8x32xf32>
    %1204 = arith.addf %1203, %1202 : vector<8x32xf32>
    %1205 = arith.divf %1203, %1204 : vector<8x32xf32>
    %1206 = vector.extract_strided_slice %1192 {offsets = [0, 32], sizes = [8, 32], strides = [1, 1]} : vector<8x128xf32> to vector<8x32xf32>
    %1207 = arith.negf %1206 : vector<8x32xf32>
    %1208 = math.exp %1207 : vector<8x32xf32>
    %cst_291 = arith.constant 1.000000e+00 : f32
    %1209 = vector.broadcast %cst_291 : f32 to vector<8x32xf32>
    %1210 = arith.addf %1209, %1208 : vector<8x32xf32>
    %1211 = arith.divf %1209, %1210 : vector<8x32xf32>
    %1212 = vector.extract_strided_slice %1192 {offsets = [0, 64], sizes = [8, 32], strides = [1, 1]} : vector<8x128xf32> to vector<8x32xf32>
    %1213 = math.tanh %1212 : vector<8x32xf32>
    %1214 = vector.extract_strided_slice %1192 {offsets = [0, 96], sizes = [8, 32], strides = [1, 1]} : vector<8x128xf32> to vector<8x32xf32>
    %1215 = arith.negf %1214 : vector<8x32xf32>
    %1216 = math.exp %1215 : vector<8x32xf32>
    %cst_292 = arith.constant 1.000000e+00 : f32
    %1217 = vector.broadcast %cst_292 : f32 to vector<8x32xf32>
    %1218 = arith.addf %1217, %1216 : vector<8x32xf32>
    %1219 = arith.divf %1217, %1218 : vector<8x32xf32>
    %1220 = arith.mulf %1211, %1144 : vector<8x32xf32>
    %1221 = arith.mulf %1205, %1213 : vector<8x32xf32>
    %1222 = arith.addf %1220, %1221 : vector<8x32xf32>
    %1223 = math.tanh %1222 : vector<8x32xf32>
    %1224 = arith.mulf %1219, %1223 : vector<8x32xf32>
    %1225 = vector.extract_strided_slice %1199 {offsets = [0, 0], sizes = [8, 32], strides = [1, 1]} : vector<8x128xf32> to vector<8x32xf32>
    %1226 = arith.negf %1225 : vector<8x32xf32>
    %1227 = math.exp %1226 : vector<8x32xf32>
    %cst_293 = arith.constant 1.000000e+00 : f32
    %1228 = vector.broadcast %cst_293 : f32 to vector<8x32xf32>
    %1229 = arith.addf %1228, %1227 : vector<8x32xf32>
    %1230 = arith.divf %1228, %1229 : vector<8x32xf32>
    %1231 = vector.extract_strided_slice %1199 {offsets = [0, 32], sizes = [8, 32], strides = [1, 1]} : vector<8x128xf32> to vector<8x32xf32>
    %1232 = arith.negf %1231 : vector<8x32xf32>
    %1233 = math.exp %1232 : vector<8x32xf32>
    %cst_294 = arith.constant 1.000000e+00 : f32
    %1234 = vector.broadcast %cst_294 : f32 to vector<8x32xf32>
    %1235 = arith.addf %1234, %1233 : vector<8x32xf32>
    %1236 = arith.divf %1234, %1235 : vector<8x32xf32>
    %1237 = vector.extract_strided_slice %1199 {offsets = [0, 64], sizes = [8, 32], strides = [1, 1]} : vector<8x128xf32> to vector<8x32xf32>
    %1238 = math.tanh %1237 : vector<8x32xf32>
    %1239 = vector.extract_strided_slice %1199 {offsets = [0, 96], sizes = [8, 32], strides = [1, 1]} : vector<8x128xf32> to vector<8x32xf32>
    %1240 = arith.negf %1239 : vector<8x32xf32>
    %1241 = math.exp %1240 : vector<8x32xf32>
    %cst_295 = arith.constant 1.000000e+00 : f32
    %1242 = vector.broadcast %cst_295 : f32 to vector<8x32xf32>
    %1243 = arith.addf %1242, %1241 : vector<8x32xf32>
    %1244 = arith.divf %1242, %1243 : vector<8x32xf32>
    %1245 = arith.mulf %1236, %1169 : vector<8x32xf32>
    %1246 = arith.mulf %1230, %1238 : vector<8x32xf32>
    %1247 = arith.addf %1245, %1246 : vector<8x32xf32>
    %1248 = math.tanh %1247 : vector<8x32xf32>
    %1249 = arith.mulf %1244, %1248 : vector<8x32xf32>
    %1250 = arith.truncf %1224 : vector<8x32xf32> to vector<8x32xbf16>
    %1251 = arith.index_cast %c15_i32_282 : i32 to index
    %c0_296 = arith.constant 0 : index
    %c0_297 = arith.constant 0 : index
    %1252 = vector.load %arg6[%1251, %c0_296, %c0_297] : memref<16x8x64xbf16, #tpu.memory_space<vmem>>, vector<1x8x32xbf16>
    %1253 = vector.shape_cast %1252 : vector<1x8x32xbf16> to vector<8x32xbf16>
    %1254 = vector.shape_cast %1250 : vector<8x32xbf16> to vector<1x8x32xbf16>
    tpu.vector_store %arg6[%1251, %c0_296, %c0_297], %1254 {strides = array<i32>} : memref<16x8x64xbf16, #tpu.memory_space<vmem>>, vector<1x8x32xbf16>,
    %1255 = arith.truncf %1249 : vector<8x32xf32> to vector<8x32xbf16>
    %c15_i32_298 = arith.constant 15 : i32
    %1256 = arith.subi %c15_i32_298, %c15_i32_282 : i32
    %1257 = arith.index_cast %1256 : i32 to index
    %c0_299 = arith.constant 0 : index
    %c32_300 = arith.constant 32 : index
    %1258 = vector.load %arg6[%1257, %c0_299, %c32_300] : memref<16x8x64xbf16, #tpu.memory_space<vmem>>, vector<1x8x32xbf16>
    %1259 = vector.shape_cast %1258 : vector<1x8x32xbf16> to vector<8x32xbf16>
    %1260 = vector.shape_cast %1255 : vector<8x32xbf16> to vector<1x8x32xbf16>
    tpu.vector_store %arg6[%1257, %c0_299, %c32_300], %1260 {strides = array<i32>} : memref<16x8x64xbf16, #tpu.memory_space<vmem>>, vector<1x8x32xbf16>,
    %c16_i32 = arith.constant 16 : i32
    return
  }
  func.func @transform_0(%arg0: i32) -> (i32, i32, i32) {
    %c0_i32 = arith.constant 0 : i32
    %c0_i32_0 = arith.constant 0 : i32
    %c0_i32_1 = arith.constant 0 : i32
    return %c0_i32, %arg0, %c0_i32_0 : i32, i32, i32
  }
  func.func @transform_1(%arg0: i32) -> (i32, i32) {
    %c0_i32 = arith.constant 0 : i32
    %c0_i32_0 = arith.constant 0 : i32
    %c0_i32_1 = arith.constant 0 : i32
    return %c0_i32, %c0_i32_0 : i32, i32
  }
  func.func @transform_2(%arg0: i32) -> (i32, i32) {
    %c0_i32 = arith.constant 0 : i32
    %c0_i32_0 = arith.constant 0 : i32
    %c0_i32_1 = arith.constant 0 : i32
    return %c0_i32, %c0_i32_0 : i32, i32
  }
  func.func @transform_3(%arg0: i32) -> (i32, i32) {
    %c0_i32 = arith.constant 0 : i32
    %c0_i32_0 = arith.constant 0 : i32
    %c0_i32_1 = arith.constant 0 : i32
    return %c0_i32, %c0_i32_0 : i32, i32
  }
  func.func @transform_4(%arg0: i32) -> (i32, i32) {
    %c0_i32 = arith.constant 0 : i32
    %c0_i32_0 = arith.constant 0 : i32
    %c0_i32_1 = arith.constant 0 : i32
    return %c0_i32, %c0_i32_0 : i32, i32
  }
  func.func @transform_5(%arg0: i32) -> (i32, i32, i32) {
    %c0_i32 = arith.constant 0 : i32
    %c0_i32_0 = arith.constant 0 : i32
    %c0_i32_1 = arith.constant 0 : i32
    return %c0_i32, %arg0, %c0_i32_0 : i32, i32, i32
  }
}

</mosaic_0001>

<bundles_post_ra>
// kernel: traj_module_forward.5
= control target key start
LH: loop header
LB: loop body
LE: loop exit
PB: predicated region body
PF: predicated region fallthrough
CT: control target
= control target key end

     0   :  { %vm431_vm0 = vcmask 130048   ;;  %vm215_vm1 = vcmask 523264   ;;  %vm680_vm2 = vcmask 261120   ;;  %s1289_s3 = inlined_call_operand.vmem [shape: bf16[64,32], index: 3, kind: input, shape index: {}]   ;;  %s1290_s2 = inlined_call_operand.vmem [shape: bf16[16,32], index: 2, kind: input, shape index: {}]   ;;  %s1291_s0 = inlined_call_operand.vmem [shape: f32[256,16], index: 0, kind: input, shape index: {}]   ;;  %s1292_s1 = inlined_call_operand.vmem [shape: bf16[256,64], index: 1, kind: input, shape index: {}]   ;;  %s1293_s4 = inlined_call_operand.vmem [shape: f32[1,32], index: 4, kind: input, shape index: {}]   ;;  %s1294_s5 = inlined_call_operand.vmem [shape: f32[256,32], index: 5, kind: output, shape index: {}]  }
   0x1   :  { %v882_v0 = vld [vmem:[%s1289_s3 + $0x18] sm:$0xff]   ;;  %v883_v1 = vld [vmem:[%s1289_s3 + $0x10] sm:$0xff]   ;;  %v884_v2 = vld [vmem:[%s1290_s2] sm:$0xff]  }
   0x2   :  { %808 = vmatprep.subr.bf16.mxu0 %v882_v0  ;;  %v885_v3 = vld [vmem:[%s1289_s3 + $0x8] sm:$0xff]   ;;  %848 = vmatprep.subr.bf16.mxu1 %v884_v2  ;;  %v21_v4 = vld [vmem:[%s1291_s0] sm:$0xff]  ;;  %v23_v6 = vld [vmem:[%s1291_s0 + $0x10] sm:$0xff] }
   0x3   :  { %809 = vmatpush3.bf16.msra.mxu0 %v882_v0  ;;  %v22_v5 = vld [vmem:[%s1291_s0 + $0x8] sm:$0xff]  ;;  %849 = vmatpush3.bf16.msra.mxu1 %v884_v2  ;;  %v24_v8 = vld [vmem:[%s1291_s0 + $0x18] sm:$0xff]  ;;  %v887_v10 = vld [vmem:[%s1292_s1] sm:$0xff]  }
   0x4   :  { %810 = vmatprep.subr.bf16.mxu0 %v883_v1  ;;  %v53_v7 = vpack.c.bf16 %v22_v5, %v21_v4  ;;  %v54_v9 = vpack.c.bf16 %v24_v8, %v23_v6  ;;  %v886_v11 = vld [vmem:[%s1289_s3] sm:$0xff]   ;;  %v26_v13 = vld [vmem:[%s1291_s0 + $0x28] sm:$0xff]  ;;  %816 = vmatprep.mubr.msk.bf16.mxu0 %vm215_vm1, %v887_v10  ;;  %v27_v15 = vld [vmem:[%s1291_s0 + $0x30] sm:$0xff] }
   0x5   :  { %v25_v12 = vld [vmem:[%s1291_s0 + $0x20] sm:$0xff]  ;;  %v28_v16 = vld [vmem:[%s1291_s0 + $0x38] sm:$0xff]  ;;  %v30_v19 = vld [vmem:[%s1291_s0 + $0x48] sm:$0xff] }
   0x6   :  { %850 = vmatprep.mubr.msk.bf16.mxu1 %vm431_vm0, %v53_v7  ;;  %v55_v14 = vpack.c.bf16 %v26_v13, %v25_v12  ;;  %v29_v17 = vld [vmem:[%s1291_s0 + $0x40] sm:$0xff]  ;;  %v56_v18 = vpack.c.bf16 %v28_v16, %v27_v15  ;;  %v888_v21 = vld [vmem:[%s1292_s1 + $0x8] sm:$0xff]   ;;  %v889_v22 = vld [vmem:[%s1292_s1 + $0x10] sm:$0xff]  }
   0x7   :  { %811 = vmatpush3.bf16.msra.mxu0 %v883_v1  ;;  %851 = vmatmul.mubr.msk.bf16.vlgmr.msra.gmra.mxu1 %vm431_vm0, %v54_v9  ;;  %v57_v20 = vpack.c.bf16 %v30_v19, %v29_v17  ;;  %v31_v23 = vld [vmem:[%s1291_s0 + $0x50] sm:$0xff]  ;;  %v32_v24 = vld [vmem:[%s1291_s0 + $0x58] sm:$0xff]  ;;  %v33_v25 = vld [vmem:[%s1291_s0 + $0x60] sm:$0xff] }
   0x8   :  { %812 = vmatprep.subr.bf16.mxu0 %v885_v3  ;;  %854 = vmatprep.mubr.msk.bf16.mxu1 %vm431_vm0, %v55_v14  ;;  %v34_v26 = vld [vmem:[%s1291_s0 + $0x68] sm:$0xff]  ;;  %v58_v27 = vpack.c.bf16 %v32_v24, %v31_v23  ;;  %v890_v29 = vld [vmem:[%s1292_s1 + $0x18] sm:$0xff]   ;;  %v891_v30 = vld [vmem:[%s1292_s1 + $0x20] sm:$0xff]  }
   0x9   :  { %v59_v28 = vpack.c.bf16 %v34_v26, %v33_v25  ;;  %v35_v31 = vld [vmem:[%s1291_s0 + $0x70] sm:$0xff]  ;;  %v36_v32 = vld [vmem:[%s1291_s0 + $0x78] sm:$0xff]  ;;  %v37_v33 = vld [vmem:[%s1291_s0 + $0x80] sm:$0xff] }
   0xa   :  { %v38_v34 = vld [vmem:[%s1291_s0 + $0x88] sm:$0xff]  ;;  %v60_v35 = vpack.c.bf16 %v36_v32, %v35_v31  ;;  %v893_v38 = vld [vmem:[%s1292_s1 + $0x30] sm:$0xff]   ;;  %v40_v40 = vld [vmem:[%s1291_s0 + $0x98] sm:$0xff] }
   0xb   :  { %813 = vmatpush3.bf16.msra.mxu0 %v885_v3  ;;  %v61_v36 = vpack.c.bf16 %v38_v34, %v37_v33  ;;  %v892_v37 = vld [vmem:[%s1292_s1 + $0x28] sm:$0xff]   ;;  %v39_v39 = vld [vmem:[%s1291_s0 + $0x90] sm:$0xff]  ;;  %v41_v41 = vld [vmem:[%s1291_s0 + $0xa0] sm:$0xff] }
   0xc   :  { %814 = vmatprep.subr.bf16.mxu0 %v886_v11  ;;  %v42_v42 = vld [vmem:[%s1291_s0 + $0xa8] sm:$0xff]  ;;  %v62_v43 = vpack.c.bf16 %v40_v40, %v39_v39  ;;  %v894_v45 = vld [vmem:[%s1292_s1 + $0x38] sm:$0xff]   ;;  %v895_v46 = vld [vmem:[%s1292_s1 + $0x40] sm:$0xff]  }
   0xd   :  { %v63_v44 = vpack.c.bf16 %v42_v42, %v41_v41  ;;  %v43_v47 = vld [vmem:[%s1291_s0 + $0xb0] sm:$0xff]  ;;  %v44_v48 = vld [vmem:[%s1291_s0 + $0xb8] sm:$0xff]  ;;  %v45_v49 = vld [vmem:[%s1291_s0 + $0xc0] sm:$0xff] }
   0xe   :  { %v46_v50 = vld [vmem:[%s1291_s0 + $0xc8] sm:$0xff]  ;;  %v64_v51 = vpack.c.bf16 %v44_v48, %v43_v47  ;;  %v897_v54 = vld [vmem:[%s1292_s1 + $0x50] sm:$0xff]   ;;  %v48_v56 = vld [vmem:[%s1291_s0 + $0xd8] sm:$0xff] }
   0xf   :  { %815 = vmatpush3.bf16.msra.mxu0 %v886_v11  ;;  %855 = vmatmul.mubr.msk.bf16.gmra.mxu1 %vm431_vm0, %v56_v18  ;;  %v65_v52 = vpack.c.bf16 %v46_v50, %v45_v49  ;;  %v896_v53 = vld [vmem:[%s1292_s1 + $0x48] sm:$0xff]   ;;  %v47_v55 = vld [vmem:[%s1291_s0 + $0xd0] sm:$0xff]  ;;  %v49_v57 = vld [vmem:[%s1291_s0 + $0xe0] sm:$0xff] }
  0x10   :  { %858 = vmatprep.mubr.msk.bf16.mxu1 %vm431_vm0, %v57_v20  ;;  %v50_v58 = vld [vmem:[%s1291_s0 + $0xe8] sm:$0xff]  ;;  %v66_v59 = vpack.c.bf16 %v48_v56, %v47_v55  ;;  %v898_v61 = vld [vmem:[%s1292_s1 + $0x58] sm:$0xff]   ;;  %v899_v62 = vld [vmem:[%s1292_s1 + $0x60] sm:$0xff]  }
  0x11   :  { %v67_v60 = vpack.c.bf16 %v50_v58, %v49_v57  ;;  %v51_v63 = vld [vmem:[%s1291_s0 + $0xf0] sm:$0xff]  ;;  %v52_v0 = vld [vmem:[%s1291_s0 + $0xf8] sm:$0xff]  ;;  %v900_v2 = vld [vmem:[%s1292_s1 + $0x68] sm:$0xff]  }
  0x12   :  { %817 = vmatmul.mubr.msk.bf16.vlgmr.msra.gmra.mxu0 %vm215_vm1, %v888_v21  ;;  %v68_v1 = vpack.c.bf16 %v52_v0, %v51_v63  ;;  %v901_v3 = vld [vmem:[%s1292_s1 + $0x70] sm:$0xff]   ;;  %v902_v4 = vld [vmem:[%s1292_s1 + $0x78] sm:$0xff]   ;;  %v1127_v11 = vld [vmem:[%s1293_s4] ss:$0 sm:$0xff] }
  0x13   :  { %820 = vmatprep.mubr.msk.bf16.mxu0 %vm215_vm1, %v889_v22 }
  0x17   :  { %859 = vmatmul.mubr.msk.bf16.gmra.mxu1 %vm431_vm0, %v58_v27 }
  0x18   :  { %862 = vmatprep.mubr.msk.bf16.mxu1 %vm431_vm0, %v59_v28 }
  0x1a   :  { %821 = vmatmul.mubr.msk.bf16.gmra.mxu0 %vm215_vm1, %v890_v29 }
  0x1b   :  { %824 = vmatprep.mubr.msk.bf16.mxu0 %vm215_vm1, %v891_v30 }
  0x1f   :  { %863 = vmatmul.mubr.msk.bf16.gmra.mxu1 %vm431_vm0, %v60_v35 }
  0x20   :  { %866 = vmatprep.mubr.msk.bf16.mxu1 %vm431_vm0, %v61_v36 }
  0x22   :  { %825 = vmatmul.mubr.msk.bf16.gmra.mxu0 %vm215_vm1, %v892_v37 }
  0x23   :  { %828 = vmatprep.mubr.msk.bf16.mxu0 %vm215_vm1, %v893_v38 }
  0x27   :  { %867 = vmatmul.mubr.msk.bf16.gmra.mxu1 %vm431_vm0, %v62_v43 }
  0x28   :  { %870 = vmatprep.mubr.msk.bf16.mxu1 %vm431_vm0, %v63_v44 }
  0x2a   :  { %829 = vmatmul.mubr.msk.bf16.gmra.mxu0 %vm215_vm1, %v894_v45 }
  0x2b   :  { %832 = vmatprep.mubr.msk.bf16.mxu0 %vm215_vm1, %v895_v46 }
  0x2f   :  { %871 = vmatmul.mubr.msk.bf16.gmra.mxu1 %vm431_vm0, %v64_v51 }
  0x30   :  { %874 = vmatprep.mubr.msk.bf16.mxu1 %vm431_vm0, %v65_v52 }
  0x32   :  { %833 = vmatmul.mubr.msk.bf16.gmra.mxu0 %vm215_vm1, %v896_v53 }
  0x33   :  { %836 = vmatprep.mubr.msk.bf16.mxu0 %vm215_vm1, %v897_v54 }
  0x37   :  { %875 = vmatmul.mubr.msk.bf16.gmra.mxu1 %vm431_vm0, %v66_v59 }
  0x38   :  { %878 = vmatprep.mubr.msk.bf16.mxu1 %vm431_vm0, %v67_v60 }
  0x3a   :  { %837 = vmatmul.mubr.msk.bf16.gmra.mxu0 %vm215_vm1, %v898_v61 }
  0x3b   :  { %840 = vmatprep.mubr.msk.bf16.mxu0 %vm215_vm1, %v899_v62 }
  0x3f   :  { %879 = vmatmul.mubr.msk.bf16.gmra.mxu1 %vm431_vm0, %v68_v1 }
  0x42   :  { %841 = vmatmul.mubr.msk.bf16.gmra.mxu0 %vm215_vm1, %v900_v2 }
  0x43   :  { %844 = vmatprep.mubr.msk.bf16.mxu0 %vm215_vm1, %v901_v3 }
  0x4a   :  { %845 = vmatmul.mubr.msk.bf16.gmra.mxu0 %vm215_vm1, %v902_v4 }
  0xc7   :  { %v852_v5 = vpop.f32.mrf.mxu1 }
  0xc9   :  { %v514_v6 = vpop.f32.mrf.mxu1 }
  0xcb   :  { %v853_v7 = vpop.f32.mrf.mxu1 }
  0xcd   :  { %v517_v8 = vpop.f32.mrf.mxu1 }
  0xcf   :  { %v856_v9 = vpop.f32.mrf.mxu1 }
  0xd1   :  { %v530_v12 = vpop.f32.mrf.mxu1 }
  0xd2   :  { %v818_v10 = vpop.f32.mrf.mxu0 }
  0xd3   :  { %v523_v13 = vadd.f32 %v852_v5, %v818_v10  ;;  %v857_v15 = vpop.f32.mrf.mxu1 }
  0xd4   :  { %v298_v14 = vpop.f32.mrf.mxu0 }
  0xd5   :  { %v650_v16 = vadd.f32 %v1127_v11, %v523_v13  ;;  %v515_v17 = vadd.f32 %v514_v6, %v298_v14  ;;  %v533_v19 = vpop.f32.mrf.mxu1 }
  0xd6   :  { %v819_v18 = vpop.f32.mrf.mxu0 }
  0xd7   :  { %683 = vst.msk [vmem:[%s1294_s5 + $0x10] sm:$0xff] %vm680_vm2, %v650_v16  ;;  %v648_v20 = vadd.f32 %v1127_v11, %v515_v17  ;;  %v526_v21 = vadd.f32 %v853_v7, %v819_v18  ;;  %v860_v23 = vpop.f32.mrf.mxu1 }
  0xd8   :  { %v301_v22 = vpop.f32.mrf.mxu0 }
  0xd9   :  { %681 = vst.msk [vmem:[%s1294_s5] sm:$0xff] %vm680_vm2, %v648_v20  ;;  %v651_v24 = vadd.f32 %v1127_v11, %v526_v21  ;;  %v518_v25 = vadd.f32 %v517_v8, %v301_v22  ;;  %v546_v27 = vpop.f32.mrf.mxu1 }
  0xda   :  { %v822_v26 = vpop.f32.mrf.mxu0 }
  0xdb   :  { %684 = vst.msk [vmem:[%s1294_s5 + $0x18] sm:$0xff] %vm680_vm2, %v651_v24  ;;  %v649_v28 = vadd.f32 %v1127_v11, %v518_v25  ;;  %v539_v29 = vadd.f32 %v856_v9, %v822_v26  ;;  %v861_v31 = vpop.f32.mrf.mxu1 }
  0xdc   :  { %v314_v30 = vpop.f32.mrf.mxu0 }
  0xdd   :  { %682 = vst.msk [vmem:[%s1294_s5 + $0x8] sm:$0xff] %vm680_vm2, %v649_v28  ;;  %v654_v32 = vadd.f32 %v1127_v11, %v539_v29  ;;  %v531_v33 = vadd.f32 %v530_v12, %v314_v30  ;;  %v549_v35 = vpop.f32.mrf.mxu1 }
  0xde   :  { %v823_v34 = vpop.f32.mrf.mxu0 }
  0xdf   :  { %687 = vst.msk [vmem:[%s1294_s5 + $0x30] sm:$0xff] %vm680_vm2, %v654_v32  ;;  %v652_v36 = vadd.f32 %v1127_v11, %v531_v33  ;;  %v542_v37 = vadd.f32 %v857_v15, %v823_v34  ;;  %v864_v39 = vpop.f32.mrf.mxu1 }
  0xe0   :  { %v317_v38 = vpop.f32.mrf.mxu0 }
  0xe1   :  { %685 = vst.msk [vmem:[%s1294_s5 + $0x20] sm:$0xff] %vm680_vm2, %v652_v36  ;;  %v655_v40 = vadd.f32 %v1127_v11, %v542_v37  ;;  %v534_v41 = vadd.f32 %v533_v19, %v317_v38  ;;  %v562_v43 = vpop.f32.mrf.mxu1 }
  0xe2   :  { %v826_v42 = vpop.f32.mrf.mxu0 }
  0xe3   :  { %688 = vst.msk [vmem:[%s1294_s5 + $0x38] sm:$0xff] %vm680_vm2, %v655_v40  ;;  %v653_v44 = vadd.f32 %v1127_v11, %v534_v41  ;;  %v555_v45 = vadd.f32 %v860_v23, %v826_v42  ;;  %v865_v47 = vpop.f32.mrf.mxu1 }
  0xe4   :  { %v330_v46 = vpop.f32.mrf.mxu0 }
  0xe5   :  { %686 = vst.msk [vmem:[%s1294_s5 + $0x28] sm:$0xff] %vm680_vm2, %v653_v44  ;;  %v658_v48 = vadd.f32 %v1127_v11, %v555_v45  ;;  %v547_v49 = vadd.f32 %v546_v27, %v330_v46  ;;  %v565_v51 = vpop.f32.mrf.mxu1 }
  0xe6   :  { %v827_v50 = vpop.f32.mrf.mxu0 }
  0xe7   :  { %691 = vst.msk [vmem:[%s1294_s5 + $0x50] sm:$0xff] %vm680_vm2, %v658_v48  ;;  %v656_v52 = vadd.f32 %v1127_v11, %v547_v49  ;;  %v558_v53 = vadd.f32 %v861_v31, %v827_v50  ;;  %v868_v55 = vpop.f32.mrf.mxu1 }
  0xe8   :  { %v333_v54 = vpop.f32.mrf.mxu0 }
  0xe9   :  { %689 = vst.msk [vmem:[%s1294_s5 + $0x40] sm:$0xff] %vm680_vm2, %v656_v52  ;;  %v659_v56 = vadd.f32 %v1127_v11, %v558_v53  ;;  %v550_v57 = vadd.f32 %v549_v35, %v333_v54  ;;  %v578_v59 = vpop.f32.mrf.mxu1 }
  0xea   :  { %v830_v58 = vpop.f32.mrf.mxu0 }
  0xeb   :  { %692 = vst.msk [vmem:[%s1294_s5 + $0x58] sm:$0xff] %vm680_vm2, %v659_v56  ;;  %v657_v60 = vadd.f32 %v1127_v11, %v550_v57  ;;  %v571_v61 = vadd.f32 %v864_v39, %v830_v58  ;;  %v869_v63 = vpop.f32.mrf.mxu1 }
  0xec   :  { %v346_v62 = vpop.f32.mrf.mxu0 }
  0xed   :  { %690 = vst.msk [vmem:[%s1294_s5 + $0x48] sm:$0xff] %vm680_vm2, %v657_v60  ;;  %v662_v0 = vadd.f32 %v1127_v11, %v571_v61  ;;  %v563_v1 = vadd.f32 %v562_v43, %v346_v62  ;;  %v581_v3 = vpop.f32.mrf.mxu1 }
  0xee   :  { %v831_v2 = vpop.f32.mrf.mxu0 }
  0xef   :  { %695 = vst.msk [vmem:[%s1294_s5 + $0x70] sm:$0xff] %vm680_vm2, %v662_v0  ;;  %v660_v4 = vadd.f32 %v1127_v11, %v563_v1  ;;  %v574_v5 = vadd.f32 %v865_v47, %v831_v2  ;;  %v872_v7 = vpop.f32.mrf.mxu1 }
  0xf0   :  { %v349_v6 = vpop.f32.mrf.mxu0 }
  0xf1   :  { %693 = vst.msk [vmem:[%s1294_s5 + $0x60] sm:$0xff] %vm680_vm2, %v660_v4  ;;  %v663_v8 = vadd.f32 %v1127_v11, %v574_v5  ;;  %v566_v9 = vadd.f32 %v565_v51, %v349_v6  ;;  %v594_v12 = vpop.f32.mrf.mxu1 }
  0xf2   :  { %v834_v10 = vpop.f32.mrf.mxu0 }
  0xf3   :  { %696 = vst.msk [vmem:[%s1294_s5 + $0x78] sm:$0xff] %vm680_vm2, %v663_v8  ;;  %v661_v13 = vadd.f32 %v1127_v11, %v566_v9  ;;  %v587_v14 = vadd.f32 %v868_v55, %v834_v10  ;;  %v873_v16 = vpop.f32.mrf.mxu1 }
  0xf4   :  { %v362_v15 = vpop.f32.mrf.mxu0 }
  0xf5   :  { %694 = vst.msk [vmem:[%s1294_s5 + $0x68] sm:$0xff] %vm680_vm2, %v661_v13  ;;  %v666_v17 = vadd.f32 %v1127_v11, %v587_v14  ;;  %v579_v18 = vadd.f32 %v578_v59, %v362_v15  ;;  %v597_v20 = vpop.f32.mrf.mxu1 }
  0xf6   :  { %v835_v19 = vpop.f32.mrf.mxu0 }
  0xf7   :  { %699 = vst.msk [vmem:[%s1294_s5 + $0x90] sm:$0xff] %vm680_vm2, %v666_v17  ;;  %v664_v21 = vadd.f32 %v1127_v11, %v579_v18  ;;  %v590_v22 = vadd.f32 %v869_v63, %v835_v19  ;;  %v876_v24 = vpop.f32.mrf.mxu1 }
  0xf8   :  { %v365_v23 = vpop.f32.mrf.mxu0 }
  0xf9   :  { %697 = vst.msk [vmem:[%s1294_s5 + $0x80] sm:$0xff] %vm680_vm2, %v664_v21  ;;  %v667_v25 = vadd.f32 %v1127_v11, %v590_v22  ;;  %v582_v26 = vadd.f32 %v581_v3, %v365_v23  ;;  %v610_v28 = vpop.f32.mrf.mxu1 }
  0xfa   :  { %v838_v27 = vpop.f32.mrf.mxu0 }
  0xfb   :  { %700 = vst.msk [vmem:[%s1294_s5 + $0x98] sm:$0xff] %vm680_vm2, %v667_v25  ;;  %v665_v29 = vadd.f32 %v1127_v11, %v582_v26  ;;  %v603_v30 = vadd.f32 %v872_v7, %v838_v27  ;;  %v877_v32 = vpop.f32.mrf.mxu1 }
  0xfc   :  { %v378_v31 = vpop.f32.mrf.mxu0 }
  0xfd   :  { %698 = vst.msk [vmem:[%s1294_s5 + $0x88] sm:$0xff] %vm680_vm2, %v665_v29  ;;  %v670_v33 = vadd.f32 %v1127_v11, %v603_v30  ;;  %v595_v34 = vadd.f32 %v594_v12, %v378_v31  ;;  %v613_v39 = vpop.f32.mrf.mxu1 }
  0xfe   :  { %v839_v35 = vpop.f32.mrf.mxu0 }
  0xff   :  { %703 = vst.msk [vmem:[%s1294_s5 + $0xb0] sm:$0xff] %vm680_vm2, %v670_v33  ;;  %v668_v36 = vadd.f32 %v1127_v11, %v595_v34  ;;  %v606_v37 = vadd.f32 %v873_v16, %v839_v35  ;;  %v880_v46 = vpop.f32.mrf.mxu1 }
 0x100   :  { %v381_v38 = vpop.f32.mrf.mxu0 }
 0x101   :  { %701 = vst.msk [vmem:[%s1294_s5 + $0xa0] sm:$0xff] %vm680_vm2, %v668_v36  ;;  %v671_v40 = vadd.f32 %v1127_v11, %v606_v37  ;;  %v598_v41 = vadd.f32 %v597_v20, %v381_v38  ;;  %v626_v52 = vpop.f32.mrf.mxu1 }
 0x102   :  { %v842_v42 = vpop.f32.mrf.mxu0 }
 0x103   :  { %704 = vst.msk [vmem:[%s1294_s5 + $0xb8] sm:$0xff] %vm680_vm2, %v671_v40  ;;  %v669_v43 = vadd.f32 %v1127_v11, %v598_v41  ;;  %v619_v44 = vadd.f32 %v876_v24, %v842_v42  ;;  %v881_v59 = vpop.f32.mrf.mxu1 }
 0x104   :  { %v394_v45 = vpop.f32.mrf.mxu0 }
 0x105   :  { %702 = vst.msk [vmem:[%s1294_s5 + $0xa8] sm:$0xff] %vm680_vm2, %v669_v43  ;;  %v674_v47 = vadd.f32 %v1127_v11, %v619_v44  ;;  %v611_v48 = vadd.f32 %v610_v28, %v394_v45  ;;  %v629_v2 = vpop.f32.mrf.mxu1 }
 0x106   :  { %v843_v49 = vpop.f32.mrf.mxu0 }
 0x107   :  { %707 = vst.msk [vmem:[%s1294_s5 + $0xd0] sm:$0xff] %vm680_vm2, %v674_v47  ;;  %v672_v50 = vadd.f32 %v1127_v11, %v611_v48  ;;  %v622_v51 = vadd.f32 %v877_v32, %v843_v49 }
 0x108   :  { %v397_v53 = vpop.f32.mrf.mxu0 }
 0x109   :  { %705 = vst.msk [vmem:[%s1294_s5 + $0xc0] sm:$0xff] %vm680_vm2, %v672_v50  ;;  %v675_v54 = vadd.f32 %v1127_v11, %v622_v51  ;;  %v614_v55 = vadd.f32 %v613_v39, %v397_v53 }
 0x10a   :  { %v846_v56 = vpop.f32.mrf.mxu0 }
 0x10b   :  { %708 = vst.msk [vmem:[%s1294_s5 + $0xd8] sm:$0xff] %vm680_vm2, %v675_v54  ;;  %v673_v57 = vadd.f32 %v1127_v11, %v614_v55  ;;  %v635_v58 = vadd.f32 %v880_v46, %v846_v56 }
 0x10c   :  { %v410_v60 = vpop.f32.mrf.mxu0 }
 0x10d   :  { %706 = vst.msk [vmem:[%s1294_s5 + $0xc8] sm:$0xff] %vm680_vm2, %v673_v57  ;;  %v678_v61 = vadd.f32 %v1127_v11, %v635_v58  ;;  %v627_v62 = vadd.f32 %v626_v52, %v410_v60 }
 0x10e   :  { %v847_v63 = vpop.f32.mrf.mxu0 }
 0x10f   :  { %711 = vst.msk [vmem:[%s1294_s5 + $0xf0] sm:$0xff] %vm680_vm2, %v678_v61  ;;  %v676_v0 = vadd.f32 %v1127_v11, %v627_v62  ;;  %v638_v1 = vadd.f32 %v881_v59, %v847_v63 }
 0x110   :  { %v413_v3 = vpop.f32.mrf.mxu0 }
 0x111   :  { %709 = vst.msk [vmem:[%s1294_s5 + $0xe0] sm:$0xff] %vm680_vm2, %v676_v0  ;;  %v679_v4 = vadd.f32 %v1127_v11, %v638_v1  ;;  %v630_v5 = vadd.f32 %v629_v2, %v413_v3 }
 0x113   :  { %712 = vst.msk [vmem:[%s1294_s5 + $0xf8] sm:$0xff] %vm680_vm2, %v679_v4  ;;  %v677_v6 = vadd.f32 %v1127_v11, %v630_v5 }
 0x115   :  { %710 = vst.msk [vmem:[%s1294_s5 + $0xe8] sm:$0xff] %vm680_vm2, %v677_v6 }

// kernel: traj_module_forward.3
= control target key start
LH: loop header
LB: loop body
LE: loop exit
PB: predicated region body
PF: predicated region fallthrough
CT: control target
= control target key end

     0   :  { %s3269_s24 = smov 0   ;;  %s3271_s25 = smov 0   ;;  %s4166_s0 = inlined_call_operand.vmem [shape: f32[16,16,16], index: 0, kind: input, shape index: {}]   ;;  %s4167_s1 = inlined_call_operand.vmem [shape: bf16[3,16,32], index: 1, kind: input, shape index: {}]   ;;  %s4168_s2 = inlined_call_operand.vmem [shape: f32[1,32], index: 2, kind: input, shape index: {}]   ;;  %s4169_s3 = inlined_call_operand.vmem [shape: bf16[5,3,32,64], index: 3, kind: input, shape index: {}]   ;;  %s4170_s4 = inlined_call_operand.vmem [shape: f32[5,1,64], index: 4, kind: input, shape index: {}]   ;;  %s4171_s5 = inlined_call_operand.vmem [shape: bf16[32,32], index: 5, kind: input, shape index: {}]   ;;  %s4172_s6 = inlined_call_operand.vmem [shape: f32[1,32], index: 6, kind: input, shape index: {}]   ;;  %s4173_s7 = inlined_call_operand.vmem [shape: bf16[16,16,32], index: 7, kind: output, shape index: {}]  }
   0x1   :  { %s3273_s26 = smov 0  }
   0x2 LB: > { %s2231_s27 = sadd.s32 4294967295, %s3092_s26   ;;  %s3286_s28 = sadd.s32 1, %s3092_s26   ;;  %s3092_s26 = sphi %s3273_s26, %s4227_s26   ;;  %s3088_s25 = sphi %s3271_s25, %s4226_s25   ;;  %s3084_s24 = sphi %s3269_s24, %s4225_s24  }
   0x3   : > { %s21_s29 = ssub.s32 %s3092_s26, %s3286_s28  ;;  %s24_s30 = sadd.s32 1, %s3088_s25 }
   0x4   : > { %p22_p0 = scmp.eq.s32.totalorder %s21_s29, 0  ;;  %p31_p1 = scmp.ne.s32.totalorder %s3088_s25, %s3084_s24 }
   0x5   : > { %p32_p2 = scmp.eq.s32.totalorder %s3092_s26, 0  ;;  %p187_p3 = scmp.eq.s32.totalorder %s2231_s27, 1 }
   0x6   : > { %s3297_s8 = scalar_select %p22_p0, %s3088_s25, %s24_s30  }
   0x7   : > { %p33_p4 = por %p32_p2, %p31_p1  ;;  %p3299_p5 = por %p187_p3, %p31_p1 }
   0x8   : > { %p2234_p6 = scmp.ge.s32.totalorder %s3092_s26, 2 }
   0xa   : > { %227 = sbr.rel (%p2234_p6) target bundleno = 27 (0x1b), region = 40 }
   0xf   : > { %230 = sbr.rel (!%p33_p4) target bundleno = 27 (0x1b), region = 44  ;;  %s232_s10 = sand.u32 (%p33_p4), 1, %s3088_s25  }
  0x10   : > { %s2236_s11 = sshll.u32 (%p33_p4), %s3092_s26, 3  ;;  %s2235_s12 = sshll.u32 (%p33_p4), %s232_s10, 7 }
  0x11   : > { %s3309_s15 = scalar_lea.vmem (%p33_p4), %s4166_s0, %s2236_s11  ;;  %s234_s16 = scalar_lea.vmem (%p33_p4), [#allocation4], %s2235_s12 }
  0x12   : > { %v295_v0 = vld [vmem:[%s3309_s15] sm:$0xff] (%p33_p4)  ;;  %v297_v1 = vld [vmem:[%s3309_s15 + $0x10] sm:$0xff] (%p33_p4) }
  0x13   : > { %v299_v2 = vld [vmem:[%s3309_s15 + $0x20] sm:$0xff] (%p33_p4)  ;;  %296 = vst [vmem:[%s234_s16] sm:$0xff] (%p33_p4), %v295_v0  ;;  %298 = vst [vmem:[%s234_s16 + $0x8] sm:$0xff] (%p33_p4), %v297_v1  ;;  %v301_v3 = vld [vmem:[%s3309_s15 + $0x30] sm:$0xff] (%p33_p4) }
  0x14   : > { %300 = vst [vmem:[%s234_s16 + $0x10] sm:$0xff] %v299_v2  ;;  %v303_v4 = vld [vmem:[%s3309_s15 + $0x40] sm:$0xff]  ;;  %v305_v5 = vld [vmem:[%s3309_s15 + $0x50] sm:$0xff]  ;;  %302 = vst [vmem:[%s234_s16 + $0x18] sm:$0xff] %v301_v3 }
  0x15   : > { %304 = vst [vmem:[%s234_s16 + $0x20] sm:$0xff] %v303_v4  ;;  %306 = vst [vmem:[%s234_s16 + $0x28] sm:$0xff] %v305_v5  ;;  %v307_v6 = vld [vmem:[%s3309_s15 + $0x60] sm:$0xff]  ;;  %v309_v7 = vld [vmem:[%s3309_s15 + $0x70] sm:$0xff] }
  0x16   : > { %v311_v8 = vld [vmem:[%s3309_s15 + $0x80] sm:$0xff]  ;;  %308 = vst [vmem:[%s234_s16 + $0x30] sm:$0xff] %v307_v6  ;;  %310 = vst [vmem:[%s234_s16 + $0x38] sm:$0xff] %v309_v7  ;;  %v313_v9 = vld [vmem:[%s3309_s15 + $0x90] sm:$0xff] }
  0x17   : > { %312 = vst [vmem:[%s234_s16 + $0x40] sm:$0xff] %v311_v8  ;;  %v315_v10 = vld [vmem:[%s3309_s15 + $0xa0] sm:$0xff]  ;;  %v317_v11 = vld [vmem:[%s3309_s15 + $0xb0] sm:$0xff]  ;;  %314 = vst [vmem:[%s234_s16 + $0x48] sm:$0xff] %v313_v9 }
  0x18   : > { %316 = vst [vmem:[%s234_s16 + $0x50] sm:$0xff] %v315_v10  ;;  %318 = vst [vmem:[%s234_s16 + $0x58] sm:$0xff] %v317_v11  ;;  %v319_v12 = vld [vmem:[%s3309_s15 + $0xc0] sm:$0xff]  ;;  %v321_v13 = vld [vmem:[%s3309_s15 + $0xd0] sm:$0xff] }
  0x19   : > { %v323_v14 = vld [vmem:[%s3309_s15 + $0xe0] sm:$0xff]  ;;  %320 = vst [vmem:[%s234_s16 + $0x60] sm:$0xff] %v319_v12  ;;  %322 = vst [vmem:[%s234_s16 + $0x68] sm:$0xff] %v321_v13  ;;  %v325_v15 = vld [vmem:[%s3309_s15 + $0xf0] sm:$0xff] }
  0x1a   : > { %324 = vst [vmem:[%s234_s16 + $0x70] sm:$0xff] %v323_v14  ;;  %326 = vst [vmem:[%s234_s16 + $0x78] sm:$0xff] %v325_v15 }
  0x1b PF: > { %p2237_p7 = scmp.ge.s32.totalorder %s3092_s26, 1  ;;  %p331_p8 = scmp.lt.s32.totalorder %s3092_s26, 3 }
  0x1d   : > { %p332_p9 = pnand %p2237_p7, %p331_p8 }
  0x1e   : > { %s338_s19 = sand.u32 (!%p332_p9), 1, %s3084_s24  }
  0x1f   : > { %335 = sbr.rel (%p332_p9) target bundleno = 964 (0x3c4), region = 82  ;;  %s3333_s20 = sshll.u32 (!%p332_p9), %s338_s19, 7 }
  0x20   : > { %s3335_s21 = sshll.u32 (!%p332_p9), %s338_s19, 6  ;;  %s3377_s24 = scalar_lea.vmem (!%p332_p9), [#allocation4], %s3333_s20 }
  0x21   : > { %s3513_s23 = scalar_lea.vmem (!%p332_p9), [#allocation5], %s3335_s21  ;;  %s3593_s21 = smov (!%p332_p9), 0  }
  0x24   : > { %v2833_v16 = vld [vmem:[%s4167_s1] sm:$0xff]   ;;  %vm369_vm0 = vcmask 130048   ;;  %vm923_vm1 = vcmask 261120   ;;  %v3340_v17 = vld [vmem:[%s4167_s1 + $0x8] sm:$0xff]   ;;  %v3226_v18 = vmov 0.0   ;;  %v373_v19 = vld [vmem:[%s3377_s24] sm:$0xff] }
  0x25   : > { %2540 = vmatprep.subr.bf16.mxu1 %v2833_v16  ;;  %2406 = vmatprep.subr.bf16.mxu0 %v2833_v16  ;;  %370 = vst.msk [vmem:[#allocation2] sm:$0xff] %vm369_vm0, %v3226_v18  ;;  %372 = vst.msk [vmem:[#allocation2 + $0x88] sm:$0xff] %vm369_vm0, %v3226_v18  ;;  %v380_v20 = vld [vmem:[%s3377_s24 + $0x38] sm:$0xff]  ;;  %v381_v21 = vld [vmem:[%s3377_s24 + $0x40] sm:$0xff] }
  0x26   : > { %924 = vst.msk [vmem:[#allocation3] sm:$0xff] %vm923_vm1, %v3226_v18  ;;  %925 = vst.msk [vmem:[#allocation3 + $0x8] sm:$0xff] %vm923_vm1, %v3226_v18  ;;  %2541 = vmatpush3.bf16.msra.mxu1 %v2833_v16  ;;  %2407 = vmatpush3.bf16.msra.mxu0 %v2833_v16  ;;  %v374_v22 = vld [vmem:[%s3377_s24 + $0x8] sm:$0xff]  ;;  %v375_v23 = vld [vmem:[%s3377_s24 + $0x10] sm:$0xff] }
  0x27   : > { %926 = vst.msk [vmem:[#allocation3 + $0x10] sm:$0xff] %vm923_vm1, %v3226_v18  ;;  %927 = vst.msk [vmem:[#allocation3 + $0x18] sm:$0xff] %vm923_vm1, %v3226_v18  ;;  %2424 = vmatprep.subr.bf16.mxu1 %v3340_v17  ;;  %v382_v24 = vld [vmem:[%s3377_s24 + $0x48] sm:$0xff]  ;;  %v383_v25 = vld [vmem:[%s3377_s24 + $0x50] sm:$0xff] }
  0x28   : > { %928 = vst.msk [vmem:[#allocation3 + $0x20] sm:$0xff] %vm923_vm1, %v3226_v18  ;;  %929 = vst.msk [vmem:[#allocation3 + $0x28] sm:$0xff] %vm923_vm1, %v3226_v18  ;;  %v2835_v26 = vld [vmem:[%s4167_s1 + $0x10] sm:$0xff]   ;;  %v376_v27 = vld [vmem:[%s3377_s24 + $0x18] sm:$0xff] }
  0x29   : > { %930 = vst.msk [vmem:[#allocation3 + $0x30] sm:$0xff] %vm923_vm1, %v3226_v18  ;;  %931 = vst.msk [vmem:[#allocation3 + $0x38] sm:$0xff] %vm923_vm1, %v3226_v18  ;;  %v377_v28 = vld [vmem:[%s3377_s24 + $0x20] sm:$0xff]  ;;  %v384_v29 = vld [vmem:[%s3377_s24 + $0x58] sm:$0xff]  ;;  %2442 = vmatprep.subr.bf16.mxu0 %v2835_v26 }
  0x2a   : > { %932 = vst.msk [vmem:[#allocation3 + $0x40] sm:$0xff] %vm923_vm1, %v3226_v18  ;;  %933 = vst.msk [vmem:[#allocation3 + $0x48] sm:$0xff] %vm923_vm1, %v3226_v18  ;;  %v385_v30 = vld [vmem:[%s3377_s24 + $0x60] sm:$0xff]  ;;  %v378_v31 = vld [vmem:[%s3377_s24 + $0x28] sm:$0xff] }
  0x2b   : > { %934 = vst.msk [vmem:[#allocation3 + $0x50] sm:$0xff] %vm923_vm1, %v3226_v18  ;;  %935 = vst.msk [vmem:[#allocation3 + $0x58] sm:$0xff] %vm923_vm1, %v3226_v18  ;;  %v379_v32 = vld [vmem:[%s3377_s24 + $0x30] sm:$0xff]  ;;  %v386_v33 = vld [vmem:[%s3377_s24 + $0x68] sm:$0xff] }
  0x2c   : > { %936 = vst.msk [vmem:[#allocation3 + $0x60] sm:$0xff] %vm923_vm1, %v3226_v18  ;;  %937 = vst.msk [vmem:[#allocation3 + $0x68] sm:$0xff] %vm923_vm1, %v3226_v18  ;;  %v387_v34 = vld [vmem:[%s3377_s24 + $0x70] sm:$0xff]  ;;  %v388_v36 = vld [vmem:[%s3377_s24 + $0x78] sm:$0xff] }
  0x2d   : > { %938 = vst.msk [vmem:[#allocation3 + $0x70] sm:$0xff] %vm923_vm1, %v3226_v18  ;;  %939 = vst.msk [vmem:[#allocation3 + $0x78] sm:$0xff] %vm923_vm1, %v3226_v18  ;;  %v407_v35 = vld [vmem:[#allocation2] sm:$0xff]  ;;  %v768_v4 = vld [vmem:[#allocation2 + $0x88] sm:$0xff] }
  0x2e   : > { %941 = vst.msk [vmem:[#allocation3 + $0x100] sm:$0xff] %vm923_vm1, %v3226_v18  ;;  %942 = vst.msk [vmem:[#allocation3 + $0x108] sm:$0xff] %vm923_vm1, %v3226_v18  ;;  %v3443_v7 = vld [vmem:[%s4171_s5] sm:$0xf]  ;;  %v3448_v8 = vld [vmem:[%s4171_s5 + $0x4] sm:$0xf] }
  0x2f   : > { %943 = vst.msk [vmem:[#allocation3 + $0x110] sm:$0xff] %vm923_vm1, %v3226_v18  ;;  %944 = vst.msk [vmem:[#allocation3 + $0x118] sm:$0xff] %vm923_vm1, %v3226_v18  ;;  %v3453_v9 = vld [vmem:[%s4171_s5 + $0x8] sm:$0xf]  ;;  %v3458_v10 = vld [vmem:[%s4171_s5 + $0xc] sm:$0xf] }
  0x30   : > { %945 = vst.msk [vmem:[#allocation3 + $0x120] sm:$0xff] %vm923_vm1, %v3226_v18  ;;  %946 = vst.msk [vmem:[#allocation3 + $0x128] sm:$0xff] %vm923_vm1, %v3226_v18  ;;  %v3463_v11 = vld [vmem:[%s4172_s6] ss:$0 sm:$0xff] }
  0x31   : > { %947 = vst.msk [vmem:[#allocation3 + $0x130] sm:$0xff] %vm923_vm1, %v3226_v18  ;;  %948 = vst.msk [vmem:[#allocation3 + $0x138] sm:$0xff] %vm923_vm1, %v3226_v18 }
  0x32   : > { %949 = vst.msk [vmem:[#allocation3 + $0x140] sm:$0xff] %vm923_vm1, %v3226_v18  ;;  %950 = vst.msk [vmem:[#allocation3 + $0x148] sm:$0xff] %vm923_vm1, %v3226_v18 }
  0x33   : > { %951 = vst.msk [vmem:[#allocation3 + $0x150] sm:$0xff] %vm923_vm1, %v3226_v18  ;;  %952 = vst.msk [vmem:[#allocation3 + $0x158] sm:$0xff] %vm923_vm1, %v3226_v18 }
  0x34   : > { %953 = vst.msk [vmem:[#allocation3 + $0x160] sm:$0xff] %vm923_vm1, %v3226_v18  ;;  %954 = vst.msk [vmem:[#allocation3 + $0x168] sm:$0xff] %vm923_vm1, %v3226_v18 }
  0x35   : > { %955 = vst.msk [vmem:[#allocation3 + $0x170] sm:$0xff] %vm923_vm1, %v3226_v18  ;;  %956 = vst.msk [vmem:[#allocation3 + $0x178] sm:$0xff] %vm923_vm1, %v3226_v18 }
  0x36   : > { %390 = vst.msk [vmem:[#allocation2 + $0x8] sm:$0xff] %vm369_vm0, %v373_v19  ;;  %397 = vst.msk [vmem:[#allocation2 + $0x40] sm:$0xff] %vm369_vm0, %v380_v20 }
  0x37   : > { %398 = vst.msk [vmem:[#allocation2 + $0x48] sm:$0xff] %vm369_vm0, %v381_v21  ;;  %391 = vst.msk [vmem:[#allocation2 + $0x10] sm:$0xff] %vm369_vm0, %v374_v22 }
  0x38   : > { %392 = vst.msk [vmem:[#allocation2 + $0x18] sm:$0xff] %vm369_vm0, %v375_v23  ;;  %399 = vst.msk [vmem:[#allocation2 + $0x50] sm:$0xff] %vm369_vm0, %v382_v24 }
  0x39   : > { %400 = vst.msk [vmem:[#allocation2 + $0x58] sm:$0xff] %vm369_vm0, %v383_v25  ;;  %393 = vst.msk [vmem:[#allocation2 + $0x20] sm:$0xff] %vm369_vm0, %v376_v27  ;;  %v3474_v27 = vld [vmem:[%s4168_s2] ss:$0 sm:$0xff] }
  0x3a   : > { %394 = vst.msk [vmem:[#allocation2 + $0x28] sm:$0xff] %vm369_vm0, %v377_v28  ;;  %401 = vst.msk [vmem:[#allocation2 + $0x60] sm:$0xff] %vm369_vm0, %v384_v29 }
  0x3b   : > { %402 = vst.msk [vmem:[#allocation2 + $0x68] sm:$0xff] %vm369_vm0, %v385_v30  ;;  %395 = vst.msk [vmem:[#allocation2 + $0x30] sm:$0xff] %vm369_vm0, %v378_v31 }
  0x3c   : > { %396 = vst.msk [vmem:[#allocation2 + $0x38] sm:$0xff] %vm369_vm0, %v379_v32  ;;  %403 = vst.msk [vmem:[#allocation2 + $0x70] sm:$0xff] %vm369_vm0, %v386_v33 }
  0x3d   : > { %404 = vst.msk [vmem:[#allocation2 + $0x78] sm:$0xff] %vm369_vm0, %v387_v34  ;;  %405 = vst.msk [vmem:[#allocation2 + $0x80] sm:$0xff] %vm369_vm0, %v388_v36  ;;  %v408_v37 = vld [vmem:[#allocation2 + $0x8] sm:$0xff]  ;;  %v415_v38 = vld [vmem:[#allocation2 + $0x40] sm:$0xff] }
  0x3e   : > { %v416_v39 = vld [vmem:[#allocation2 + $0x48] sm:$0xff]  ;;  %v423_v40 = vpack.c.bf16 %v408_v37, %v407_v35  ;;  %v409_v42 = vld [vmem:[#allocation2 + $0x10] sm:$0xff] }
  0x3f   : > { %v427_v41 = vpack.c.bf16 %v416_v39, %v415_v38  ;;  %v410_v43 = vld [vmem:[#allocation2 + $0x18] sm:$0xff]  ;;  %v417_v44 = vld [vmem:[#allocation2 + $0x50] sm:$0xff]  ;;  %v598_v60 = vpack.c.bf16 %v409_v42, %v408_v37 }
  0x40   : > { %v424_v45 = vpack.c.bf16 %v410_v43, %v409_v42  ;;  %v418_v46 = vld [vmem:[#allocation2 + $0x58] sm:$0xff]  ;;  %2408 = vmatprep.mubr.msk.bf16.mxu0 %vm369_vm0, %v423_v40  ;;  %v411_v48 = vld [vmem:[#allocation2 + $0x20] sm:$0xff]  ;;  %v602_v0 = vpack.c.bf16 %v417_v44, %v416_v39 }
  0x41   : > { %2416 = vmatprep.mubr.msk.bf16.mxu1 %vm369_vm0, %v427_v41  ;;  %v428_v47 = vpack.c.bf16 %v418_v46, %v417_v44  ;;  %v412_v49 = vld [vmem:[#allocation2 + $0x28] sm:$0xff]  ;;  %v419_v51 = vld [vmem:[#allocation2 + $0x60] sm:$0xff]  ;;  %v599_v61 = vpack.c.bf16 %v411_v48, %v410_v43 }
  0x42   : > { %2409 = vmatmul.mubr.msk.bf16.vlgmr.msra.gmra.mxu0 %vm369_vm0, %v424_v45  ;;  %v425_v50 = vpack.c.bf16 %v412_v49, %v411_v48  ;;  %v420_v52 = vld [vmem:[#allocation2 + $0x68] sm:$0xff]  ;;  %v413_v54 = vld [vmem:[#allocation2 + $0x30] sm:$0xff]  ;;  %v603_v1 = vpack.c.bf16 %v419_v51, %v418_v46 }
  0x43   : > { %2417 = vmatmul.mubr.msk.bf16.vlgmr.msra.gmra.mxu1 %vm369_vm0, %v428_v47  ;;  %2443 = vmatpush3.bf16.msra.mxu0 %v2835_v26  ;;  %v429_v53 = vpack.c.bf16 %v420_v52, %v419_v51  ;;  %v414_v55 = vld [vmem:[#allocation2 + $0x38] sm:$0xff]  ;;  %v421_v56 = vld [vmem:[#allocation2 + $0x70] sm:$0xff]  ;;  %v600_v62 = vpack.c.bf16 %v413_v54, %v412_v49 }
  0x44   : > { %2425 = vmatpush3.bf16.msra.mxu1 %v3340_v17  ;;  %2412 = vmatprep.mubr.msk.bf16.mxu0 %vm369_vm0, %v425_v50  ;;  %v422_v57 = vld [vmem:[#allocation2 + $0x78] sm:$0xff]  ;;  %v426_v58 = vpack.c.bf16 %v414_v55, %v413_v54  ;;  %v601_v63 = vpack.c.bf16 %v415_v38, %v414_v55  ;;  %v604_v2 = vpack.c.bf16 %v421_v56, %v420_v52  ;;  %v597_v3 = vld [vmem:[#allocation2 + $0x80] sm:$0xff] }
  0x45   : > { %2420 = vmatprep.mubr.msk.bf16.mxu1 %vm369_vm0, %v429_v53  ;;  %v430_v59 = vpack.c.bf16 %v422_v57, %v421_v56  ;;  %v776_v5 = vpack.c.bf16 %v768_v4, %v597_v3  ;;  %v605_v6 = vpack.c.bf16 %v597_v3, %v422_v57 }
  0x4a   : > { %2413 = vmatmul.mubr.msk.bf16.gmra.mxu0 %vm369_vm0, %v426_v58 }
  0x4b   : > { %2421 = vmatmul.mubr.msk.bf16.gmra.mxu1 %vm369_vm0, %v430_v59  ;;  %2444 = vmatprep.mubr.msk.bf16.mxu0 %vm369_vm0, %v424_v45 }
  0x4c   : > { %2426 = vmatprep.mubr.msk.bf16.mxu1 %vm369_vm0, %v598_v60 }
  0x52   : > { %2445 = vmatmul.mubr.msk.bf16.vlgmr.msra.gmra.mxu0 %vm369_vm0, %v425_v50 }
  0x53   : > { %2427 = vmatmul.mubr.msk.bf16.vlgmr.msra.gmra.mxu1 %vm369_vm0, %v599_v61  ;;  %2448 = vmatprep.mubr.msk.bf16.mxu0 %vm369_vm0, %v426_v58 }
  0x54   : > { %2430 = vmatprep.mubr.msk.bf16.mxu1 %vm369_vm0, %v600_v62 }
  0x5a   : > { %2449 = vmatmul.mubr.msk.bf16.gmra.mxu0 %vm369_vm0, %v427_v41 }
  0x5b   : > { %2431 = vmatmul.mubr.msk.bf16.gmra.mxu1 %vm369_vm0, %v601_v63  ;;  %2452 = vmatprep.mubr.msk.bf16.mxu0 %vm369_vm0, %v428_v47 }
  0x5c   : > { %2434 = vmatprep.mubr.msk.bf16.mxu1 %vm369_vm0, %v602_v0 }
  0x62   : > { %2453 = vmatmul.mubr.msk.bf16.gmra.mxu0 %vm369_vm0, %v429_v53 }
  0x63   : > { %2435 = vmatmul.mubr.msk.bf16.gmra.mxu1 %vm369_vm0, %v603_v1  ;;  %2456 = vmatprep.mubr.msk.bf16.mxu0 %vm369_vm0, %v430_v59 }
  0x64   : > { %2438 = vmatprep.mubr.msk.bf16.mxu1 %vm369_vm0, %v604_v2 }
  0x6a   : > { %2457 = vmatmul.mubr.msk.bf16.gmra.mxu0 %vm369_vm0, %v776_v5 }
  0x6b   : > { %2439 = vmatmul.mubr.msk.bf16.gmra.mxu1 %vm369_vm0, %v605_v6 }
 0x102   : > { %v2410_v12 = vpop.f32.mrf.mxu0 }
 0x103   : > { %v2418_v13 = vpop.f32.mrf.mxu1  ;;  %v568_v29 = vadd.f32 %v2410_v12, %v3474_v27 }
 0x104   : > { %v497_v14 = vpop.f32.mrf.mxu0  ;;  %v576_v2 = vadd.f32 %v2418_v13, %v3474_v27 }
 0x105   : > { %v529_v15 = vpop.f32.mrf.mxu1  ;;  %v566_v32 = vadd.f32 %v3474_v27, %v497_v14 }
 0x106   : > { %v2411_v16 = vpop.f32.mrf.mxu0  ;;  %v574_v12 = vadd.f32 %v3474_v27, %v529_v15 }
 0x107   : > { %v2419_v17 = vpop.f32.mrf.mxu1  ;;  %v569_v36 = vadd.f32 %v2411_v16, %v3474_v27 }
 0x108   : > { %v500_v18 = vpop.f32.mrf.mxu0 }
 0x109   : > { %v532_v19 = vpop.f32.mrf.mxu1  ;;  %v567_v41 = vadd.f32 %v3474_v27, %v500_v18 }
 0x10a   : > { %v2414_v20 = vpop.f32.mrf.mxu0 }
 0x10b   : > { %v3465_v21 = vpop.f32.mrf.mxu1  ;;  %v572_v46 = vadd.f32 %v2414_v20, %v3474_v27 }
 0x10c   : > { %v513_v22 = vpop.f32.mrf.mxu0 }
 0x10d   : > { %v3467_v23 = vpop.f32.mrf.mxu1  ;;  %v570_v51 = vadd.f32 %v3474_v27, %v513_v22  ;;  %v577_v22 = vadd.f32 %v2419_v17, %v3474_v27 }
 0x10e   : > { %v2415_v24 = vpop.f32.mrf.mxu0  ;;  %v578_v17 = vadd.f32 %v3474_v27, %v3467_v23 }
 0x10f   : > { %v3469_v25 = vpop.f32.mrf.mxu1  ;;  %v573_v56 = vadd.f32 %v2415_v24, %v3474_v27 }
 0x110   : > { %v516_v26 = vpop.f32.mrf.mxu0 }
 0x111   : > { %v3476_v28 = vpop.f32.mrf.mxu1  ;;  %v571_v61 = vadd.f32 %v3474_v27, %v516_v26 }
 0x112   : > { %v2446_v30 = vpop.f32.mrf.mxu0 }
 0x113   : > { %v2428_v31 = vpop.f32.mrf.mxu1 }
 0x114   : > { %v738_v33 = vadd.f32 %v2428_v31, %v568_v29  ;;  %v844_v34 = vpop.f32.mrf.mxu0  ;;  %v575_v31 = vadd.f32 %v3474_v27, %v532_v19  ;;  %v581_v19 = vadd.f32 %v3469_v25, %v3474_v27 }
 0x115   : > { %v673_v35 = vpop.f32.mrf.mxu1 }
 0x116   : > { %v3481_v37 = vadd.f32 %v2446_v30, %v738_v33   ;;  %v736_v38 = vadd.f32 %v673_v35, %v566_v32  ;;  %v2447_v39 = vpop.f32.mrf.mxu0  ;;  %v580_v35 = vadd.f32 %v3465_v21, %v3474_v27  ;;  %v579_v21 = vadd.f32 %v3474_v27, %v3476_v28 }
 0x117   : > { %v2429_v40 = vpop.f32.mrf.mxu1 }
 0x118   : > { %v3484_v42 = vadd.f32 %v844_v34, %v736_v38   ;;  %v739_v43 = vadd.f32 %v2429_v40, %v569_v36  ;;  %v847_v44 = vpop.f32.mrf.mxu0 }
 0x119   : > { %v676_v45 = vpop.f32.mrf.mxu1 }
 0x11a   : > { %v3487_v47 = vadd.f32 %v2447_v39, %v739_v43   ;;  %v737_v48 = vadd.f32 %v676_v45, %v567_v41  ;;  %v2450_v49 = vpop.f32.mrf.mxu0 }
 0x11b   : > { %v2432_v50 = vpop.f32.mrf.mxu1 }
 0x11c   : > { %v3490_v52 = vadd.f32 %v847_v44, %v737_v48   ;;  %v742_v53 = vadd.f32 %v2432_v50, %v572_v46  ;;  %v860_v54 = vpop.f32.mrf.mxu0 }
 0x11d   : > { %v689_v55 = vpop.f32.mrf.mxu1 }
 0x11e   : > { %v3493_v57 = vadd.f32 %v2450_v49, %v742_v53   ;;  %v740_v58 = vadd.f32 %v689_v55, %v570_v51  ;;  %v2451_v59 = vpop.f32.mrf.mxu0  ;;  %v4181_v28 = vmov %v3490_v52 }
 0x11f   : > { %v2433_v60 = vpop.f32.mrf.mxu1 }
 0x120   : > { %v3496_v62 = vadd.f32 %v860_v54, %v740_v58   ;;  %v743_v63 = vadd.f32 %v2433_v60, %v573_v56  ;;  %v863_v0 = vpop.f32.mrf.mxu0 }
 0x121   : > { %v692_v1 = vpop.f32.mrf.mxu1 }
 0x122   : > { %v3499_v3 = vadd.f32 %v2451_v59, %v743_v63   ;;  %v741_v4 = vadd.f32 %v692_v1, %v571_v61  ;;  %v2454_v5 = vpop.f32.mrf.mxu0  ;;  %v4180_v27 = vmov %v3496_v62  ;;  %v4182_v63 = vmov %v3484_v42 }
 0x123   : > { %v2436_v6 = vpop.f32.mrf.mxu1 }
 0x124   : > { %v912_v14 = vadd.f32 %v863_v0, %v741_v4   ;;  %v746_v16 = vadd.f32 %v2436_v6, %v576_v2  ;;  %v876_v18 = vpop.f32.mrf.mxu0  ;;  %v4188_v6 = vmov %v3493_v57 }
 0x125   : > { %v705_v20 = vpop.f32.mrf.mxu1 }
 0x126   : > { %v917_v24 = vadd.f32 %v2454_v5, %v746_v16   ;;  %v744_v26 = vadd.f32 %v705_v20, %v574_v12  ;;  %v2455_v29 = vpop.f32.mrf.mxu0  ;;  %v4179_v61 = vmov %v912_v14  ;;  %v4187_v5 = vmov %v3499_v3 }
 0x127   : > { %v2437_v30 = vpop.f32.mrf.mxu1  ;;  %v4189_v12 = vmov %v3487_v47  ;;  %v4190_v16 = vmov %v3481_v37 }
 0x128   : > { %v915_v13 = vadd.f32 %v876_v18, %v744_v26   ;;  %v747_v32 = vadd.f32 %v2437_v30, %v577_v22  ;;  %v879_v33 = vpop.f32.mrf.mxu0  ;;  %v4186_v4 = vmov %v917_v24 }
 0x129   : > { %v708_v34 = vpop.f32.mrf.mxu1 }
 0x12a   : > { %v918_v15 = vadd.f32 %v2455_v29, %v747_v32   ;;  %v745_v36 = vadd.f32 %v708_v34, %v575_v31  ;;  %v2458_v38 = vpop.f32.mrf.mxu0  ;;  %v4178_v60 = vmov %v915_v13 }
 0x12b   : > { %v2440_v39 = vpop.f32.mrf.mxu1 }
 0x12c   : > { %v916_v40 = vadd.f32 %v879_v33, %v745_v36   ;;  %v750_v41 = vadd.f32 %v2440_v39, %v580_v35  ;;  %v892_v43 = vpop.f32.mrf.mxu0  ;;  %v4185_v2 = vmov %v918_v15 }
 0x12d   : > { %v721_v44 = vpop.f32.mrf.mxu1 }
 0x12e   : > { %v921_v45 = vadd.f32 %v2458_v38, %v750_v41   ;;  %v748_v46 = vadd.f32 %v721_v44, %v578_v17  ;;  %v2459_v49 = vpop.f32.mrf.mxu0  ;;  %v4177_v59 = vmov %v916_v40 }
 0x12f   : > { %v2441_v48 = vpop.f32.mrf.mxu1 }
 0x130   : > { %v919_v50 = vadd.f32 %v892_v43, %v748_v46   ;;  %v751_v51 = vadd.f32 %v2441_v48, %v581_v19  ;;  %v895_v55 = vpop.f32.mrf.mxu0  ;;  %v4184_v1 = vmov %v921_v45 }
 0x131   : > { %v724_v53 = vpop.f32.mrf.mxu1 }
 0x132   : > { %v922_v54 = vadd.f32 %v2459_v49, %v751_v51   ;;  %v749_v23 = vadd.f32 %v724_v53, %v579_v21  ;;  %v4176_v25 = vmov %v919_v50 }
 0x134   : > { %v920_v56 = vadd.f32 %v895_v55, %v749_v23   ;;  %v4183_v0 = vmov %v922_v54 }
 0x136   : > { %v4175_v58 = vmov %v920_v56 }
 0x137 LB: >> { %s3227_s24 = smov 1   ;;  %s2338_s30 = smul.u32 48, %s3224_s21  ;;  %v1217_v18 = vld [vmem:[#allocation3 + $0x80] sm:$0xff]  ;;  %v1218_v20 = vld [vmem:[#allocation3 + $0x88] sm:$0xff]  ;;  %1003 = vst.msk [vmem:[#allocation3 + $0x90] sm:$0xff] %vm923_vm1, %v3220_v37  ;;  %1004 = vst.msk [vmem:[#allocation3 + $0x98] sm:$0xff] %vm923_vm1, %v3216_v47  ;;  %s3224_s21 = sphi %s3593_s21, %s4224_s21   ;;  %v3220_v37 = vphi %v3481_v37, %v3901_v37   ;;  %v3216_v47 = vphi %v3487_v47, %v3912_v47   ;;  %v3212_v57 = vphi %v3493_v57, %v3923_v57   ;;  %v3208_v3 = vphi %v3499_v3, %v1871_v3   ;;  %v3204_v24 = vphi %v917_v24, %v1884_v24   ;;  %v3200_v15 = vphi %v918_v15, %v1887_v15   ;;  %v3196_v45 = vphi %v921_v45, %v1900_v45   ;;  %v3192_v54 = vphi %v922_v54, %v1903_v54   ;;  %v3188_v42 = vphi %v3484_v42, %v4223_v42   ;;  %v3184_v52 = vphi %v3490_v52, %v4222_v52   ;;  %v3180_v16 = vphi %v4190_v16, %v4221_v16   ;;  %v3176_v12 = vphi %v4189_v12, %v4220_v12   ;;  %v3172_v62 = vphi %v3496_v62, %v4219_v62   ;;  %v3168_v14 = vphi %v912_v14, %v4218_v14   ;;  %v3164_v6 = vphi %v4188_v6, %v4217_v6   ;;  %v3160_v5 = vphi %v4187_v5, %v4216_v5   ;;  %v3156_v13 = vphi %v915_v13, %v4215_v13   ;;  %v3152_v40 = vphi %v916_v40, %v4214_v40   ;;  %v3148_v4 = vphi %v4186_v4, %v4213_v4   ;;  %v3144_v2 = vphi %v4185_v2, %v4212_v2   ;;  %v3140_v50 = vphi %v919_v50, %v4211_v50   ;;  %v3136_v56 = vphi %v920_v56, %v4210_v56   ;;  %v3132_v1 = vphi %v4184_v1, %v4209_v1   ;;  %v3128_v0 = vphi %v4183_v0, %v4208_v0   ;;  %v3124_v63 = vphi %v4182_v63, %v1844_v63   ;;  %v3120_v28 = vphi %v4181_v28, %v1847_v28   ;;  %v3116_v27 = vphi %v4180_v27, %v1860_v27   ;;  %v3112_v61 = vphi %v4179_v61, %v1863_v61   ;;  %v3108_v60 = vphi %v4178_v60, %v1876_v60   ;;  %v3104_v59 = vphi %v4177_v59, %v1879_v59   ;;  %v3100_v25 = vphi %v4176_v25, %v1892_v25   ;;  %v3096_v58 = vphi %v4175_v58, %v1895_v58  }
 0x138   : >> { %s3679_s29 = sshll.u32 %s3227_s24, %s3224_s21  ;;  %1007 = vst.msk [vmem:[#allocation3 + $0xb0] sm:$0xff] %vm923_vm1, %v3212_v57  ;;  %1008 = vst.msk [vmem:[#allocation3 + $0xb8] sm:$0xff] %vm923_vm1, %v3208_v3  ;;  %v1233_v29 = vpack.c.bf16 %v1218_v20, %v1217_v18  ;;  %v1221_v57 = vld [vmem:[#allocation3 + $0xa0] sm:$0xff]  ;;  %v1226_v21 = vld [vmem:[#allocation3 + $0xc8] sm:$0xff]  ;;  %s1033_s24 = scalar_lea.vmem %s4170_s4, %s3224_s21 }
 0x139   : >> { %s3685_s12 = scalar_lea.vmem %s4169_s3, %s2338_s30  ;;  %s1035_s13 = ssub.s32 16, %s3679_s29  ;;  %1011 = vst.msk [vmem:[#allocation3 + $0xd0] sm:$0xff] %vm923_vm1, %v3204_v24  ;;  %1012 = vst.msk [vmem:[#allocation3 + $0xd8] sm:$0xff] %vm923_vm1, %v3200_v15  ;;  %v1222_v24 = vld [vmem:[#allocation3 + $0xa8] sm:$0xff]  ;;  %v1225_v46 = vld [vmem:[#allocation3 + $0xc0] sm:$0xff] }
 0x13a   : >> { %v2836_v22 = vld [vmem:[%s3685_s12 + $0x8] sm:$0xff]   ;;  %v2837_v26 = vld [vmem:[%s3685_s12 + $0x18] sm:$0xff]   ;;  %1015 = vst.msk [vmem:[#allocation3 + $0xf0] sm:$0xff] %vm923_vm1, %v3196_v45  ;;  %1016 = vst.msk [vmem:[#allocation3 + $0xf8] sm:$0xff] %vm923_vm1, %v3192_v54  ;;  %s2273_s14 = sshll.u32 %s1035_s13, 3  ;;  %2484 = vmatprep.mubr.msk.bf16.mxu1 %vm923_vm1, %v1233_v29  ;;  %s2295_s15 = sshll.u32 %s3679_s29, 1  ;;  %v1235_v15 = vpack.c.bf16 %v1222_v24, %v1221_v57  ;;  %v1237_v55 = vpack.c.bf16 %v1226_v21, %v1225_v46 }
 0x13b   : >> { %2460 = vmatprep.subr.bf16.mxu0 %v2836_v22  ;;  %v2838_v37 = vld [vmem:[%s3685_s12] sm:$0xff]   ;;  %2480 = vmatprep.subr.bf16.mxu1 %v2837_v26  ;;  %v2839_v47 = vld [vmem:[%s3685_s12 + $0x10] sm:$0xff]   ;;  %v2840_v3 = vld [vmem:[%s3685_s12 + $0x28] sm:$0xff]   ;;  %s3705_s16 = scalar_lea.vmem [#allocation3], %s2273_s14  ;;  %s3712_s17 = sadd.s32 %s2295_s15, %s1035_s13 }
 0x13c   : >> { %2461 = vmatpush3.bf16.msra.mxu0 %v2836_v22  ;;  %2481 = vmatpush3.bf16.msra.mxu1 %v2837_v26  ;;  %v2841_v44 = vld [vmem:[%s3685_s12 + $0x20] sm:$0xff]   ;;  %s2296_s18 = sshll.u32 %s3712_s17, 3  ;;  %v1229_v24 = vld [vmem:[#allocation3 + $0xe0] sm:$0xff]  ;;  %s3228_s29 = smov 96  }
 0x13d   : >> { %2462 = vmatprep.subr.bf16.mxu0 %v2838_v37  ;;  %2482 = vmatprep.subr.bf16.mxu1 %v2839_v47  ;;  %s1393_s19 = scalar_lea.vmem [#allocation3], %s2296_s18  ;;  %s967_s30 = sadd.s32 1, %s3224_s21  }
 0x13e   : >> { %v1219_v30 = vld [vmem:[#allocation3 + $0x90] sm:$0xff]  ;;  %v1220_v31 = vld [vmem:[#allocation3 + $0x98] sm:$0xff]  ;;  %p3976_p10 = scmp.ge.s32.totalorder %s967_s30, 5   ;;  %s4224_s21 = smov %s967_s30 }
 0x13f   : >> { %v1234_v35 = vpack.c.bf16 %v1220_v31, %v1219_v30  ;;  %v1223_v19 = vld [vmem:[#allocation3 + $0xb0] sm:$0xff]  ;;  %v1224_v45 = vld [vmem:[#allocation3 + $0xb8] sm:$0xff]  ;;  %v1230_v30 = vld [vmem:[#allocation3 + $0xe8] sm:$0xff]  ;;  %vm1938_vm2 = vcmask (%p3976_p10), 257024  }
 0x140   : >> { %2463 = vmatpush3.bf16.msra.mxu0 %v2838_v37  ;;  %2483 = vmatpush3.bf16.msra.mxu1 %v2839_v47  ;;  %v1236_v54 = vpack.c.bf16 %v1224_v45, %v1223_v19  ;;  %v1227_v26 = vld [vmem:[#allocation3 + $0xd0] sm:$0xff]  ;;  %v1228_v29 = vld [vmem:[#allocation3 + $0xd8] sm:$0xff] }
 0x141   : >> { %v1038_v32 = vld [vmem:[%s3705_s16] sm:$0xff]  ;;  %v1039_v33 = vld [vmem:[%s3705_s16 + $0x8] sm:$0xff]  ;;  %v1040_v34 = vld [vmem:[%s3705_s16 + $0x10] sm:$0xff]  ;;  %2500 = vmatprep.subr.bf16.mxu0 %v2840_v3 }
 0x142   : >> { %v1054_v36 = vpack.c.bf16 %v1039_v33, %v1038_v32  ;;  %v1041_v38 = vld [vmem:[%s3705_s16 + $0x18] sm:$0xff]  ;;  %v1042_v39 = vld [vmem:[%s3705_s16 + $0x20] sm:$0xff]  ;;  %v1043_v17 = vld [vmem:[%s3705_s16 + $0x28] sm:$0xff] }
 0x143   : >> { %v1055_v41 = vpack.c.bf16 %v1041_v38, %v1040_v34  ;;  %v1056_v43 = vpack.c.bf16 %v1043_v17, %v1042_v39  ;;  %2485 = vmatmul.mubr.msk.bf16.vlgmr.msra.gmra.mxu1 %vm923_vm1, %v1234_v35  ;;  %v1044_v48 = vld [vmem:[%s3705_s16 + $0x30] sm:$0xff]  ;;  %v1045_v49 = vld [vmem:[%s3705_s16 + $0x38] sm:$0xff]  ;;  %v1046_v51 = vld [vmem:[%s3705_s16 + $0x40] sm:$0xff] }
 0x144   : >> { %2464 = vmatprep.mubr.msk.bf16.mxu0 %vm923_vm1, %v1054_v36  ;;  %2488 = vmatprep.mubr.msk.bf16.mxu1 %vm923_vm1, %v1235_v15  ;;  %v1047_v53 = vld [vmem:[%s3705_s16 + $0x48] sm:$0xff]  ;;  %v1057_v23 = vpack.c.bf16 %v1045_v49, %v1044_v48  ;;  %v1048_v20 = vld [vmem:[%s3705_s16 + $0x50] sm:$0xff]  ;;  %v1049_v22 = vld [vmem:[%s3705_s16 + $0x58] sm:$0xff]  ;;  %v1239_v48 = vpack.c.bf16 %v1230_v30, %v1229_v24 }
 0x145   : >> { %2465 = vmatmul.mubr.msk.bf16.vlgmr.msra.gmra.mxu0 %vm923_vm1, %v1055_v41  ;;  %v1058_v18 = vpack.c.bf16 %v1047_v53, %v1046_v51  ;;  %v1050_v37 = vld [vmem:[%s3705_s16 + $0x60] sm:$0xff]  ;;  %v1051_v47 = vld [vmem:[%s3705_s16 + $0x68] sm:$0xff]  ;;  %v1052_v57 = vld [vmem:[%s3705_s16 + $0x70] sm:$0xff] }
 0x146   : >> { %2501 = vmatpush3.bf16.msra.mxu0 %v2840_v3  ;;  %2468 = vmatprep.mubr.msk.bf16.mxu0 %vm923_vm1, %v1056_v43  ;;  %v1053_v3 = vld [vmem:[%s3705_s16 + $0x78] sm:$0xff]  ;;  %v1394_v31 = vld [vmem:[%s1393_s19] sm:$0xff]  ;;  %v1395_v32 = vld [vmem:[%s1393_s19 + $0x8] sm:$0xff]  ;;  %v1060_v49 = vpack.c.bf16 %v1051_v47, %v1050_v37 }
 0x147   : >> { %2502 = vmatprep.subr.bf16.mxu0 %v2841_v44  ;;  %v1396_v33 = vld [vmem:[%s1393_s19 + $0x10] sm:$0xff]  ;;  %v1397_v34 = vld [vmem:[%s1393_s19 + $0x18] sm:$0xff]  ;;  %v1398_v35 = vld [vmem:[%s1393_s19 + $0x20] sm:$0xff] }
 0x148   : >> { %v1399_v15 = vld [vmem:[%s1393_s19 + $0x28] sm:$0xff]  ;;  %v1400_v36 = vld [vmem:[%s1393_s19 + $0x30] sm:$0xff]  ;;  %v1401_v38 = vld [vmem:[%s1393_s19 + $0x38] sm:$0xff] }
 0x149   : >> { %v1402_v39 = vld [vmem:[%s1393_s19 + $0x40] sm:$0xff]  ;;  %v1403_v17 = vld [vmem:[%s1393_s19 + $0x48] sm:$0xff]  ;;  %v1404_v41 = vld [vmem:[%s1393_s19 + $0x50] sm:$0xff]  ;;  %v1412_v21 = vpack.c.bf16 %v1399_v15, %v1398_v35  ;;  %v1413_v51 = vpack.c.bf16 %v1401_v38, %v1400_v36 }
 0x14a   : >> { %2503 = vmatpush3.bf16.msra.mxu0 %v2841_v44  ;;  %v1405_v43 = vld [vmem:[%s1393_s19 + $0x58] sm:$0xff]  ;;  %v1406_v44 = vld [vmem:[%s1393_s19 + $0x60] sm:$0xff]  ;;  %v1407_v19 = vld [vmem:[%s1393_s19 + $0x68] sm:$0xff]  ;;  %v1414_v53 = vpack.c.bf16 %v1403_v17, %v1402_v39 }
 0x14b   : >> { %2489 = vmatmul.mubr.msk.bf16.gmra.mxu1 %vm923_vm1, %v1236_v54  ;;  %v1408_v45 = vld [vmem:[%s1393_s19 + $0x70] sm:$0xff]  ;;  %v1409_v46 = vld [vmem:[%s1393_s19 + $0x78] sm:$0xff]  ;;  %v1415_v54 = vpack.c.bf16 %v1405_v43, %v1404_v41  ;;  %v3780_v39 = vld [vmem:[%s1033_s24] ss:$0 sm:$0xff] }
 0x14c   : >> { %2492 = vmatprep.mubr.msk.bf16.mxu1 %vm923_vm1, %v1237_v55  ;;  %1001 = vst.msk [vmem:[#allocation3 + $0x80] sm:$0xff] %vm923_vm1, %v3124_v63  ;;  %1002 = vst.msk [vmem:[#allocation3 + $0x88] sm:$0xff] %vm923_vm1, %v3120_v28  ;;  %v1238_v63 = vpack.c.bf16 %v1228_v29, %v1227_v26  ;;  %v1059_v28 = vpack.c.bf16 %v1049_v22, %v1048_v20  ;;  %v1417_v55 = vpack.c.bf16 %v1409_v46, %v1408_v45 }
 0x14d   : >> { %2469 = vmatmul.mubr.msk.bf16.gmra.mxu0 %vm923_vm1, %v1057_v23  ;;  %1005 = vst.msk [vmem:[#allocation3 + $0xa0] sm:$0xff] %vm923_vm1, %v3116_v27  ;;  %1006 = vst.msk [vmem:[#allocation3 + $0xa8] sm:$0xff] %vm923_vm1, %v3112_v61  ;;  %v1232_v61 = vld [vmem:[#allocation3 + $0xf8] sm:$0xff]  ;;  %v1061_v27 = vpack.c.bf16 %v1053_v3, %v1052_v57  ;;  %v1416_v23 = vpack.c.bf16 %v1407_v19, %v1406_v44  ;;  %v2324_v20 = vcombine.low %v3443_v7, %v3448_v8 }
 0x14e   : >> { %2472 = vmatprep.mubr.msk.bf16.mxu0 %vm923_vm1, %v1058_v18  ;;  %1009 = vst.msk [vmem:[#allocation3 + $0xc0] sm:$0xff] %vm923_vm1, %v3108_v60  ;;  %1010 = vst.msk [vmem:[#allocation3 + $0xc8] sm:$0xff] %vm923_vm1, %v3104_v59  ;;  %v1231_v60 = vld [vmem:[#allocation3 + $0xf0] sm:$0xff]  ;;  %v2325_v18 = vcombine.low %v3453_v9, %v3458_v10 }
 0x14f   : >> { %1013 = vst.msk [vmem:[#allocation3 + $0xe0] sm:$0xff] %vm923_vm1, %v3100_v25  ;;  %1014 = vst.msk [vmem:[#allocation3 + $0xe8] sm:$0xff] %vm923_vm1, %v3096_v58  ;;  %v1240_v59 = vpack.c.bf16 %v1232_v61, %v1231_v60  ;;  %v1410_v25 = vpack.c.bf16 %v1395_v32, %v1394_v31  ;;  %v1411_v58 = vpack.c.bf16 %v1397_v34, %v1396_v33 }
 0x150   : >> { %2520 = vmatprep.subr.bf16.mxu1 %v2325_v18 }
 0x151   : >> { %2521 = vmatpush3.bf16.msra.mxu1 %v2325_v18 }
 0x152   : >> { %2522 = vmatprep.subr.bf16.mxu1 %v2324_v20 }
 0x153   : >> { %2493 = vmatmul.mubr.msk.bf16.gmra.mxu1 %vm923_vm1, %v1238_v63 }
 0x154   : >> { %2496 = vmatprep.mubr.msk.bf16.mxu1 %vm923_vm1, %v1239_v48 }
 0x155   : >> { %2473 = vmatmul.mubr.msk.bf16.gmra.mxu0 %vm923_vm1, %v1059_v28  ;;  %2523 = vmatpush3.bf16.msra.mxu1 %v2324_v20 }
 0x156   : >> { %2476 = vmatprep.mubr.msk.bf16.mxu0 %vm923_vm1, %v1060_v49 }
 0x15b   : >> { %2497 = vmatmul.mubr.msk.bf16.gmra.mxu1 %vm923_vm1, %v1240_v59 }
 0x15d   : >> { %2477 = vmatmul.mubr.msk.bf16.gmra.mxu0 %vm923_vm1, %v1061_v27 }
 0x15e   : >> { %2504 = vmatprep.mubr.msk.bf16.mxu0 %vm923_vm1, %v1410_v25 }
 0x165   : >> { %2505 = vmatmul.mubr.msk.bf16.vlgmr.msra.gmra.mxu0 %vm923_vm1, %v1411_v58 }
 0x166   : >> { %2508 = vmatprep.mubr.msk.bf16.mxu0 %vm923_vm1, %v1412_v21 }
 0x16d   : >> { %2509 = vmatmul.mubr.msk.bf16.gmra.mxu0 %vm923_vm1, %v1413_v51 }
 0x16e   : >> { %2512 = vmatprep.mubr.msk.bf16.mxu0 %vm923_vm1, %v1414_v53 }
 0x175   : >> { %2513 = vmatmul.mubr.msk.bf16.gmra.mxu0 %vm923_vm1, %v1415_v54 }
 0x176   : >> { %2516 = vmatprep.mubr.msk.bf16.mxu0 %vm923_vm1, %v1416_v23 }
 0x17d   : >> { %2517 = vmatmul.mubr.msk.bf16.gmra.mxu0 %vm923_vm1, %v1417_v55 }
 0x203   : >> { %v2486_v29 = vpop.f32.mrf.mxu1 }
 0x205   : >> { %v2466_v22 = vpop.f32.mrf.mxu0  ;;  %v1311_v57 = vpop.f32.mrf.mxu1 }
 0x206   : >> { %v1203_v44 = vadd.f32 %v2466_v22, %v3780_v39 }
 0x207   : >> { %v1132_v26 = vpop.f32.mrf.mxu0  ;;  %v2487_v30 = vpop.f32.mrf.mxu1 }
 0x208   : >> { %v1201_v46 = vadd.f32 %v3780_v39, %v1132_v26  ;;  %v1376_v28 = vadd.f32 %v2486_v29, %v1203_v44 }
 0x209   : >> { %v2467_v37 = vpop.f32.mrf.mxu0  ;;  %v1314_v33 = vpop.f32.mrf.mxu1 }
 0x20a   : >> { %v1204_v48 = vadd.f32 %v2467_v37, %v3780_v39  ;;  %v1374_v59 = vadd.f32 %v1311_v57, %v1201_v46 }
 0x20b   : >> { %v1135_v47 = vpop.f32.mrf.mxu0  ;;  %v2490_v15 = vpop.f32.mrf.mxu1 }
 0x20c   : >> { %v1202_v49 = vadd.f32 %v3780_v39, %v1135_v47  ;;  %v1377_v58 = vadd.f32 %v2487_v30, %v1204_v48 }
 0x20d   : >> { %v2470_v3 = vpop.f32.mrf.mxu0  ;;  %v1327_v17 = vpop.f32.mrf.mxu1 }
 0x20e   : >> { %v1207_v21 = vadd.f32 %v2470_v3, %v3780_v39  ;;  %v1375_v54 = vadd.f32 %v1314_v33, %v1202_v49 }
 0x20f   : >> { %v1148_v24 = vpop.f32.mrf.mxu0  ;;  %v2491_v19 = vpop.f32.mrf.mxu1 }
 0x210   : >> { %v1205_v18 = vadd.f32 %v3780_v39, %v1148_v24  ;;  %v1380_v37 = vadd.f32 %v2490_v15, %v1207_v21 }
 0x211   : >> { %v2471_v31 = vpop.f32.mrf.mxu0  ;;  %v1330_v60 = vpop.f32.mrf.mxu1 }
 0x212   : >> { %v1208_v26 = vadd.f32 %v2471_v31, %v3780_v39  ;;  %v1378_v44 = vadd.f32 %v1327_v17, %v1205_v18 }
 0x213   : >> { %v1151_v32 = vpop.f32.mrf.mxu0  ;;  %v2494_v23 = vpop.f32.mrf.mxu1 }
 0x214   : >> { %v1206_v3 = vadd.f32 %v3780_v39, %v1151_v32 }
 0x215   : >> { %v2474_v34 = vpop.f32.mrf.mxu0  ;;  %v1343_v30 = vpop.f32.mrf.mxu1 }
 0x216   : >> { %v1211_v31 = vadd.f32 %v2474_v34, %v3780_v39 }
 0x217   : >> { %v1164_v35 = vpop.f32.mrf.mxu0 }
 0x219   : >> { %v3772_v36 = vpop.f32.mrf.mxu0 }
 0x21b   : >> { %v3778_v38 = vpop.f32.mrf.mxu0 }
 0x21d   : >> { %v3782_v41 = vpop.f32.mrf.mxu0 }
 0x21f   : >> { %v3784_v43 = vpop.f32.mrf.mxu0 }
 0x221   : >> { %v3787_v45 = vpop.f32.mrf.mxu0 }
 0x223   : >> { %v3790_v63 = vpop.f32.mrf.mxu0 }
 0x225   : >> { %v2506_v61 = vpop.f32.mrf.mxu0 }
 0x226   : >> { %v3794_v27 = vadd.f32 %v2506_v61, %v1376_v28  ;;  %v1381_v28 = vadd.f32 %v2491_v19, %v1208_v26  ;;  %v1379_v61 = vadd.f32 %v1330_v60, %v1206_v3  ;;  %v1384_v19 = vadd.f32 %v2494_v23, %v1211_v31 }
 0x227   : >> { %v1488_v25 = vpop.f32.mrf.mxu0  ;;  %v1210_v3 = vadd.f32 %v3780_v39, %v3778_v38  ;;  %v1215_v38 = vadd.f32 %v3782_v41, %v3780_v39 }
 0x228   : >> { %v2309_v51 = vmul.f32 -1.442695, %v3794_v27  ;;  %v3798_v53 = vadd.f32 %v1488_v25, %v1374_v59  ;;  %v2495_v59 = vpop.f32.mrf.mxu1  ;;  %v1209_v25 = vadd.f32 %v3780_v39, %v1164_v35 }
 0x229   : >> { %v2507_v55 = vpop.f32.mrf.mxu0 }
 0x22a   : >> { %2842 = vpow2.f32 %v2309_v51  ;;  %v2307_v20 = vmul.f32 -1.442695, %v3798_v53  ;;  %v3802_v22 = vadd.f32 %v2507_v55, %v1377_v58  ;;  %v1382_v18 = vadd.f32 %v1343_v30, %v1209_v25 }
 0x22b   : >> { %v1491_v29 = vpop.f32.mrf.mxu0 }
 0x22c   : >> { %2844 = vpow2.f32 %v2307_v20  ;;  %v2310_v47 = vmul.f32 -1.442695, %v3802_v22  ;;  %v3806_v57 = vadd.f32 %v1491_v29, %v1375_v54  ;;  %v1346_v54 = vpop.f32.mrf.mxu1  ;;  %v1212_v29 = vadd.f32 %v3772_v36, %v3780_v39 }
 0x22d   : >> { %v2510_v33 = vpop.f32.mrf.mxu0 }
 0x22e   : >> { %2846 = vpow2.f32 %v2310_v47  ;;  %v2308_v24 = vmul.f32 -1.442695, %v3806_v57  ;;  %v3810_v46 = vadd.f32 %v2510_v33, %v1380_v37  ;;  %v2498_v33 = vpop.f32.mrf.mxu1 }
 0x22f   : >> { %v1504_v48 = vpop.f32.mrf.mxu0 }
 0x230   : >> { %2848 = vpow2.f32 %v2308_v24  ;;  %v2313_v15 = vmul.f32 -1.442695, %v3810_v46  ;;  %v3814_v49 = vadd.f32 %v1504_v48, %v1378_v44  ;;  %v1359_v25 = vpop.f32.mrf.mxu1 }
 0x231   : >> { %v2511_v32 = vpop.f32.mrf.mxu0 }
 0x232   : >> { %2850 = vpow2.f32 %v2313_v15  ;;  %v2311_v17 = vmul.f32 -1.442695, %v3814_v49  ;;  %v3818_v58 = vadd.f32 %v2511_v32, %v1381_v28  ;;  %v1385_v15 = vadd.f32 %v2495_v59, %v1212_v29 }
 0x233   : >> { %v1507_v21 = vpop.f32.mrf.mxu0  ;;  %v1383_v32 = vadd.f32 %v1346_v54, %v1210_v3 }
 0x234   : >> { %2852 = vpow2.f32 %v2311_v17  ;;  %v2314_v34 = vmul.f32 -1.442695, %v3818_v58  ;;  %v3821_v51 = vadd.f32 %v1507_v21, %v1379_v61 }
 0x235   : >> { %v2514_v55 = vpop.f32.mrf.mxu0 }
 0x236   : >> { %v2312_v60 = vmul.f32 -1.442695, %v3821_v51  ;;  %v3824_v20 = vadd.f32 %v2514_v55, %v1384_v19  ;;  %2854 = vpow2.f32 %v2314_v34  ;;  %v1213_v55 = vadd.f32 %v3780_v39, %v3784_v43 }
 0x237   : >> { %v2843_v35 = vpop.eup %2842  ;;  %v1520_v26 = vpop.f32.mrf.mxu0 }
 0x238   : >> { %v1633_v37 = vadd.f32 1.0, %v2843_v35  ;;  %2856 = vpow2.f32 %v2312_v60  ;;  %v3828_v23 = vadd.f32 %v1520_v26, %v1382_v18  ;;  %v2317_v30 = vmul.f32 -1.442695, %v3824_v20  ;;  %v2499_v60 = vpop.f32.mrf.mxu1 }
 0x239   : >> { %v2845_v47 = vpop.eup %2844  ;;  %v2515_v44 = vpop.f32.mrf.mxu0  ;;  %v1388_v26 = vadd.f32 %v2498_v33, %v1215_v38 }
 0x23a   : >> { %2858 = vrcp.f32 %v1633_v37  ;;  %v1631_v24 = vadd.f32 1.0, %v2845_v47  ;;  %v2315_v48 = vmul.f32 -1.442695, %v3828_v23  ;;  %v3836_v19 = vadd.f32 %v2515_v44, %v1385_v15 }
 0x23b   : >> { %v2847_v28 = vpop.eup %2846  ;;  %v1523_v31 = vpop.f32.mrf.mxu0  ;;  %v1216_v37 = vadd.f32 %v3787_v45, %v3780_v39  ;;  %v1386_v47 = vadd.f32 %v1359_v25, %v1213_v55  ;;  %v1214_v44 = vadd.f32 %v3780_v39, %v3790_v63 }
 0x23c   : >> { %2860 = vrcp.f32 %v1631_v24  ;;  %v1634_v36 = vadd.f32 1.0, %v2847_v28  ;;  %v3840_v59 = vadd.f32 %v1523_v31, %v1383_v32  ;;  %v2318_v41 = vmul.f32 -1.442695, %v3836_v19 }
 0x23d   : >> { %v2849_v61 = vpop.eup %2848  ;;  %2862 = vpow2.f32 %v2317_v30  ;;  %v2518_v17 = vpop.f32.mrf.mxu0  ;;  %v1389_v45 = vadd.f32 %v2499_v60, %v1216_v37 }
 0x23e   : >> { %2864 = vrcp.f32 %v1634_v36  ;;  %v1632_v21 = vadd.f32 1.0, %v2849_v61  ;;  %v2316_v3 = vmul.f32 -1.442695, %v3840_v59  ;;  %v3848_v24 = vadd.f32 %v2518_v17, %v1388_v26 }
 0x23f   : >> { %v2851_v34 = vpop.eup %2850  ;;  %2866 = vpow2.f32 %v2315_v48  ;;  %v1536_v18 = vpop.f32.mrf.mxu0 }
 0x240   : >> { %2868 = vrcp.f32 %v1632_v21  ;;  %v1637_v35 = vadd.f32 1.0, %v2851_v34  ;;  %v1362_v48 = vpop.f32.mrf.mxu1  ;;  %v3850_v33 = vadd.f32 %v1536_v18, %v1386_v47  ;;  %v2321_v25 = vmul.f32 -1.442695, %v3848_v24 }
 0x241   : >> { %v2853_v54 = vpop.eup %2852  ;;  %v2519_v30 = vpop.f32.mrf.mxu0  ;;  %v1387_v32 = vadd.f32 %v1362_v48, %v1214_v44 }
 0x242   : >> { %v1635_v29 = vadd.f32 1.0, %v2853_v54  ;;  %v2319_v63 = vmul.f32 -1.442695, %v3850_v33  ;;  %v3855_v17 = vadd.f32 %v2519_v30, %v1389_v45 }
 0x243   : >> { %v2855_v43 = vpop.eup %2854  ;;  %v1539_v61 = vpop.f32.mrf.mxu0 }
 0x244   : >> { %2870 = vrcp.f32 %v1635_v29  ;;  %v1638_v36 = vadd.f32 1.0, %v2855_v43  ;;  %v3857_v21 = vadd.f32 %v1539_v61, %v1387_v32  ;;  %v2322_v60 = vmul.f32 -1.442695, %v3855_v17 }
 0x245   : >> { %v2857_v28 = vpop.eup %2856  ;;  %2872 = vrcp.f32 %v1637_v35 }
 0x246   : >> { %v1636_v31 = vadd.f32 1.0, %v2857_v28  ;;  %2874 = vpow2.f32 %v2318_v41  ;;  %v2320_v35 = vmul.f32 -1.442695, %v3857_v21 }
 0x247   : >> { %v2859_v15 = vpop.eup %2858  ;;  %2876 = vpow2.f32 %v2316_v3 }
 0x248   : >> { %2878 = vrcp.f32 %v1636_v31  ;;  %1699 = vrot.lane.b32.xlu1 %v2859_v15, %s3228_s29 }
 0x249   : >> { %v2861_v39 = vpop.eup %2860  ;;  %2880 = vrcp.f32 %v1638_v36 }
 0x24a   : >> { %v2863_v38 = vpop.eup %2862  ;;  %1695 = vrot.lane.b32.xlu0 %v2861_v39, %s3228_s29  ;;  %2882 = vpow2.f32 %v2321_v25 }
 0x24b   : >> { %v2865_v34 = vpop.eup %2864  ;;  %2884 = vpow2.f32 %v2319_v63  ;;  %v1641_v26 = vadd.f32 1.0, %v2863_v38 }
 0x24c   : >> { %v2867_v55 = vpop.eup %2866  ;;  %1701 = vrot.lane.b32.xlu1 %v2865_v34, %s3228_s29 }
 0x24d   : >> { %v2869_v18 = vpop.eup %2868  ;;  %v1639_v54 = vadd.f32 1.0, %v2867_v55 }
 0x24e   : >> { %1697 = vrot.lane.b32.xlu0 %v2869_v18, %s3228_s29 }
 0x24f   : >> { %2886 = vrcp.f32 %v1639_v54 }
 0x250   : >> { %2888 = vpow2.f32 %v2322_v60 }
 0x251   : >> { %v2871_v29 = vpop.eup %2870  ;;  %2890 = vpow2.f32 %v2320_v35 }
 0x252   : >> { %v2873_v41 = vpop.eup %2872  ;;  %1703 = vrot.lane.b32.xlu0 %v2871_v29, %s3228_s29  ;;  %2892 = vrcp.f32 %v1641_v26 }
 0x253   : >> { %v2875_v37 = vpop.eup %2874 }
 0x254   : >> { %v2877_v47 = vpop.eup %2876  ;;  %v1642_v43 = vadd.f32 1.0, %v2875_v37 }
 0x255   : >> { %v2879_v3 = vpop.eup %2878  ;;  %v1640_v30 = vadd.f32 1.0, %v2877_v47 }
 0x256   : >> { %1707 = vrot.lane.b32.xlu0 %v2873_v41, %s3228_s29  ;;  %1705 = vrot.lane.b32.xlu1 %v2879_v3, %s3228_s29  ;;  %v2881_v44 = vpop.eup %2880 }
 0x257   : >> { %2894 = vrcp.f32 %v1640_v30  ;;  %v2883_v28 = vpop.eup %2882 }
 0x258   : >> { %v2885_v48 = vpop.eup %2884  ;;  %2896 = vrcp.f32 %v1642_v43  ;;  %v1645_v45 = vadd.f32 1.0, %v2883_v28 }
 0x259   : >> { %v1643_v31 = vadd.f32 1.0, %v2885_v48 }
 0x25a   : >> { %1709 = vrot.lane.b32.xlu1 %v2881_v44, %s3228_s29 }
 0x25b   : >> { %2898 = vrcp.f32 %v1643_v31 }
 0x25c   : >> { %v2887_v15 = vpop.eup %2886  ;;  %2900 = vrcp.f32 %v1645_v45 }
 0x25d   : >> { %1711 = vrot.lane.b32.xlu0 %v2887_v15, %s3228_s29  ;;  %v2889_v36 = vpop.eup %2888 }
 0x25e   : >> { %v2891_v61 = vpop.eup %2890  ;;  %v1646_v39 = vadd.f32 1.0, %v2889_v36 }
 0x25f   : >> { %v2893_v32 = vpop.eup %2892  ;;  %v1644_v25 = vadd.f32 1.0, %v2891_v61 }
 0x261   : >> { %1715 = vrot.lane.b32.xlu0 %v2893_v32, %s3228_s29  ;;  %2902 = vrcp.f32 %v1644_v25 }
 0x262   : >> { %2904 = vrcp.f32 %v1646_v39 }
 0x263   : >> { %2906 = vtanh.f32 %v3794_v27 }
 0x264   : >> { %v2895_v63 = vpop.eup %2894  ;;  %2908 = vtanh.f32 %v3802_v22 }
 0x265   : >> { %1713 = vrot.lane.b32.xlu1 %v2895_v63, %s3228_s29  ;;  %v2897_v38 = vpop.eup %2896  ;;  %2910 = vtanh.f32 %v3798_v53 }
 0x266   : >> { %2912 = vtanh.f32 %v3806_v57 }
 0x267   : >> { %2914 = vtanh.f32 %v3814_v49 }
 0x268   : >> { %v2899_v34 = vpop.eup %2898  ;;  %2916 = vtanh.f32 %v3821_v51 }
 0x269   : >> { %1717 = vrot.lane.b32.xlu1 %v2897_v38, %s3228_s29  ;;  %1719 = vrot.lane.b32.xlu0 %v2899_v34, %s3228_s29  ;;  %v2901_v55 = vpop.eup %2900  ;;  %2918 = vtanh.f32 %v3810_v46 }
 0x26a   : >> { %2920 = vtanh.f32 %v3818_v58 }
 0x26b   : >> { %2922 = vtanh.f32 %v3828_v23 }
 0x26c   : >> { %2924 = vtanh.f32 %v3840_v59 }
 0x26d   : >> { %1723 = vrot.lane.b32.xlu0 %v2901_v55, %s3228_s29  ;;  %2926 = vtanh.f32 %v3824_v20 }
 0x26e   : >> { %v2903_v18 = vpop.eup %2902  ;;  %2928 = vtanh.f32 %v3836_v19 }
 0x26f   : >> { %1721 = vrot.lane.b32.xlu1 %v2903_v18, %s3228_s29  ;;  %v2905_v54 = vpop.eup %2904  ;;  %2930 = vtanh.f32 %v3850_v33 }
 0x270   : >> { %v2907_v26 = vpop.eup %2906  ;;  %2932 = vtanh.f32 %v3857_v21 }
 0x271   : >> { %v2909_v29 = vpop.eup %2908  ;;  %2934 = vtanh.f32 %v3848_v24 }
 0x272   : >> { %v2911_v37 = vpop.eup %2910  ;;  %2936 = vtanh.f32 %v3855_v17 }
 0x273   : >> { %1725 = vrot.lane.b32.xlu1 %v2905_v54, %s3228_s29  ;;  %v2913_v47 = vpop.eup %2912 }
 0x274   : >> { %v2915_v51 = vpop.eup %2914 }
 0x275   : >> { %v2917_v44 = vpop.eup %2916 }
 0x276   : >> { %v2919_v31 = vpop.eup %2918 }
 0x277   : >> { %v2921_v45 = vpop.eup %2920 }
 0x278   : >> { %v2923_v59 = vpop.eup %2922 }
 0x279   : >> { %v2925_v39 = vpop.eup %2924 }
 0x27a   : >> { %v2927_v55 = vpop.eup %2926 }
 0x27b   : >> { %v2929_v18 = vpop.eup %2928 }
 0x2ba   : >> { %v1700_v60 = vpop.permute.xlu1 %1699 }
 0x2bb   : >> { %v1745_v27 = vmul.f32 %v2907_v26, %v1700_v60  ;;  %v2931_v26 = vpop.eup %2930 }
 0x2bc   : >> { %v1696_v35 = vpop.permute.xlu0 %1695 }
 0x2bd   : >> { %v1743_v3 = vmul.f32 %v2911_v37, %v1696_v35 }
 0x2be   : >> { %v1702_v41 = vpop.permute.xlu1 %1701 }
 0x2bf   : >> { %v1746_v22 = vmul.f32 %v2909_v29, %v1702_v41  ;;  %v2933_v29 = vpop.eup %2932 }
 0x2c0   : >> { %v1698_v53 = vpop.permute.xlu0 %1697 }
 0x2c1   : >> { %v1760_v57 = vpack.c.bf16 %v1746_v22, %v1745_v27  ;;  %v1744_v30 = vmul.f32 %v2913_v47, %v1698_v53  ;;  %v2935_v22 = vpop.eup %2934 }
 0x2c2   : >> { %v2937_v47 = vpop.eup %2936 }
 0x2c3   : >> { %v1759_v49 = vpack.c.bf16 %v1744_v30, %v1743_v3 }
 0x2c4   : >> { %v1704_v43 = vpop.permute.xlu0 %1703 }
 0x2c5   : >> { %2524 = vmatprep.mubr.msk.bf16.mxu1 %vm923_vm1, %v1759_v49  ;;  %v1747_v28 = vmul.f32 %v2915_v51, %v1704_v43 }
 0x2c6   : >> { %2525 = vmatmul.mubr.msk.bf16.vlgmr.msra.gmra.mxu1 %vm923_vm1, %v1760_v57 }
 0x2c8   : >> { %v1706_v46 = vpop.permute.xlu1 %1705  ;;  %v1708_v48 = vpop.permute.xlu0 %1707 }
 0x2c9   : >> { %v1748_v58 = vmul.f32 %v2917_v44, %v1706_v46  ;;  %v1749_v61 = vmul.f32 %v2919_v31, %v1708_v48 }
 0x2cb   : >> { %v1761_v15 = vpack.c.bf16 %v1748_v58, %v1747_v28 }
 0x2cc   : >> { %v1710_v36 = vpop.permute.xlu1 %1709 }
 0x2cd   : >> { %v1750_v32 = vmul.f32 %v2921_v45, %v1710_v36  ;;  %2528 = vmatprep.mubr.msk.bf16.mxu1 %vm923_vm1, %v1761_v15 }
 0x2cf   : >> { %v1762_v25 = vpack.c.bf16 %v1750_v32, %v1749_v61  ;;  %v1712_v23 = vpop.permute.xlu0 %1711 }
 0x2d0   : >> { %v1751_v20 = vmul.f32 %v2923_v59, %v1712_v23 }
 0x2d1   : >> { %2529 = vmatmul.mubr.msk.bf16.gmra.mxu1 %vm923_vm1, %v1762_v25 }
 0x2d3   : >> { %v1716_v38 = vpop.permute.xlu0 %1715 }
 0x2d4   : >> { %v1753_v60 = vmul.f32 %v2927_v55, %v1716_v38 }
 0x2d7   : >> { %v1714_v63 = vpop.permute.xlu1 %1713 }
 0x2d8   : >> { %v1752_v34 = vmul.f32 %v2925_v39, %v1714_v63 }
 0x2da   : >> { %v1763_v19 = vpack.c.bf16 %v1752_v34, %v1751_v20 }
 0x2db   : >> { %v1718_v54 = vpop.permute.xlu1 %1717  ;;  %v1720_v21 = vpop.permute.xlu0 %1719 }
 0x2dc   : >> { %v1754_v35 = vmul.f32 %v2929_v18, %v1718_v54  ;;  %2532 = vmatprep.mubr.msk.bf16.mxu1 %vm923_vm1, %v1763_v19  ;;  %v1755_v41 = vmul.f32 %v2931_v26, %v1720_v21 }
 0x2de   : >> { %v1764_v33 = vpack.c.bf16 %v1754_v35, %v1753_v60 }
 0x2df   : >> { %v1724_v27 = vpop.permute.xlu0 %1723 }
 0x2e0   : >> { %2533 = vmatmul.mubr.msk.bf16.gmra.mxu1 %vm923_vm1, %v1764_v33  ;;  %v1757_v3 = vmul.f32 %v2935_v22, %v1724_v27 }
 0x2e1   : >> { %v1722_v24 = vpop.permute.xlu1 %1721 }
 0x2e2   : >> { %v1756_v37 = vmul.f32 %v2933_v29, %v1722_v24 }
 0x2e4   : >> { %v1765_v17 = vpack.c.bf16 %v1756_v37, %v1755_v41 }
 0x2e5   : >> { %v1726_v53 = vpop.permute.xlu1 %1725 }
 0x2e6   : >> { %v1758_v57 = vmul.f32 %v2937_v47, %v1726_v53  ;;  %2536 = vmatprep.mubr.msk.bf16.mxu1 %vm923_vm1, %v1765_v17 }
 0x2e8   : >> { %v1766_v30 = vpack.c.bf16 %v1758_v57, %v1757_v3 }
 0x2ea   : >> { %2537 = vmatmul.mubr.msk.bf16.gmra.mxu1 %vm923_vm1, %v1766_v30 }
 0x386   : >> { %v2526_v49 = vpop.f32.mrf.mxu1 }
 0x387   : >> { %v3901_v37 = vadd.f32 %v2526_v49, %v3463_v11  }
 0x388   : >> { %v1843_v43 = vpop.f32.mrf.mxu1 }
 0x389   : >> { %v3905_v16 = vadd.f32 %v3180_v16, %v3901_v37   ;;  %v1844_v63 = vadd.f32 %v3463_v11, %v1843_v43  }
 0x38a   : >> { %v2527_v44 = vpop.f32.mrf.mxu1 }
 0x38b   : >> { %v4191_v51 = vmov %v3905_v16  ;;  %v3909_v42 = vadd.f32 %v3188_v42, %v1844_v63   ;;  %v3912_v47 = vadd.f32 %v2527_v44, %v3463_v11  }
 0x38c   : >> { %v1846_v28 = vpop.f32.mrf.mxu1  ;;  %v1924_v29 = vpack.c.bf16 (%p3976_p10), %v4191_v51, %v4191_v51 }
 0x38d   : >> { %v4192_v46 = vmov %v3909_v42  ;;  %v3916_v12 = vadd.f32 %v3176_v12, %v3912_v47   ;;  %v1847_v28 = vadd.f32 %v3463_v11, %v1846_v28  }
 0x38e   : > { %v1922_v21 = vpack.c.bf16 (%p3976_p10), %v4192_v46, %v4192_v46  ;;  %1941 = vst.msk [vmem:[%s3513_s23 + $0x8] sm:$0xf] (%p3976_p10), %vm1938_vm2, %v1924_v29 }
 0x38f   : >> { %v4193_v48 = vmov %v3916_v12  ;;  %v3920_v52 = vadd.f32 %v3184_v52, %v1847_v28  }
 0x390   : > { %v1925_v41 = vpack.c.bf16 (%p3976_p10), %v4193_v48, %v4193_v48  ;;  %1939 = vst.msk [vmem:[%s3513_s23] sm:$0xf] (%p3976_p10), %vm1938_vm2, %v1922_v21 }
 0x391   : >> { %v4194_v31 = vmov %v3920_v52  ;;  %v2530_v16 = vpop.f32.mrf.mxu1 }
 0x392   : >> { %v3923_v57 = vadd.f32 %v2530_v16, %v3463_v11   ;;  %v4221_v16 = vmov %v4191_v51  ;;  %v1923_v26 = vpack.c.bf16 (%p3976_p10), %v4194_v31, %v4194_v31  ;;  %1942 = vst.msk [vmem:[%s3513_s23 + $0xc] sm:$0xf] (%p3976_p10), %vm1938_vm2, %v1925_v41 }
 0x393   : >> { %v1859_v58 = vpop.f32.mrf.mxu1 }
 0x394   : >> { %v3927_v6 = vadd.f32 %v3164_v6, %v3923_v57   ;;  %v1860_v27 = vadd.f32 %v3463_v11, %v1859_v58   ;;  %1940 = vst.msk [vmem:[%s3513_s23 + $0x4] sm:$0xf] (%p3976_p10), %vm1938_vm2, %v1923_v26 }
 0x395   : >> { %v2531_v42 = vpop.f32.mrf.mxu1 }
 0x396   : >> { %v4195_v36 = vmov %v3927_v6  ;;  %v3931_v62 = vadd.f32 %v3172_v62, %v1860_v27   ;;  %v1871_v3 = vadd.f32 %v2531_v42, %v3463_v11   ;;  %v4223_v42 = vmov %v4192_v46 }
 0x397   : >> { %v1862_v12 = vpop.f32.mrf.mxu1  ;;  %v1928_v9 = vpack.c.bf16 (%p3976_p10), %v4195_v36, %v4195_v36 }
 0x398   : >> { %v4196_v32 = vmov %v3931_v62  ;;  %v3935_v5 = vadd.f32 %v3160_v5, %v1871_v3   ;;  %v1863_v61 = vadd.f32 %v3463_v11, %v1862_v12   ;;  %v4220_v12 = vmov %v4193_v48 }
 0x399   : > { %v1926_v7 = vpack.c.bf16 (%p3976_p10), %v4196_v32, %v4196_v32  ;;  %1945 = vst.msk [vmem:[%s3513_s23 + $0x18] sm:$0xf] (%p3976_p10), %vm1938_vm2, %v1928_v9 }
 0x39a   : >> { %v4197_v23 = vmov %v3935_v5  ;;  %v3939_v14 = vadd.f32 %v3168_v14, %v1863_v61  }
 0x39b   : > { %v1929_v10 = vpack.c.bf16 (%p3976_p10), %v4197_v23, %v4197_v23  ;;  %1943 = vst.msk [vmem:[%s3513_s23 + $0x10] sm:$0xf] (%p3976_p10), %vm1938_vm2, %v1926_v7 }
 0x39c   : >> { %v4198_v39 = vmov %v3939_v14 }
 0x39d   : > { %v1927_v8 = vpack.c.bf16 (%p3976_p10), %v4198_v39, %v4198_v39  ;;  %1946 = vst.msk [vmem:[%s3513_s23 + $0x1c] sm:$0xf] (%p3976_p10), %vm1938_vm2, %v1929_v10 }
 0x39f   : > { %1944 = vst.msk [vmem:[%s3513_s23 + $0x14] sm:$0xf] (%p3976_p10), %vm1938_vm2, %v1927_v8 }
 0x3a0   : >> { %v2534_v52 = vpop.f32.mrf.mxu1 }
 0x3a1   : >> { %v1884_v24 = vadd.f32 %v2534_v52, %v3463_v11   ;;  %v4222_v52 = vmov %v4194_v31 }
 0x3a2   : >> { %v1875_v6 = vpop.f32.mrf.mxu1 }
 0x3a3   : >> { %v3943_v4 = vadd.f32 %v3148_v4, %v1884_v24   ;;  %v1876_v60 = vadd.f32 %v3463_v11, %v1875_v6   ;;  %v4217_v6 = vmov %v4195_v36 }
 0x3a4   : >> { %v2535_v62 = vpop.f32.mrf.mxu1 }
 0x3a5   : >> { %v4199_v20 = vmov %v3943_v4  ;;  %v3947_v13 = vadd.f32 %v3156_v13, %v1876_v60   ;;  %v1887_v15 = vadd.f32 %v2535_v62, %v3463_v11   ;;  %v4219_v62 = vmov %v4196_v32 }
 0x3a6   : >> { %v1878_v5 = vpop.f32.mrf.mxu1 }
 0x3a7   : >> { %v4200_v38 = vmov %v3947_v13  ;;  %v3951_v2 = vadd.f32 %v3144_v2, %v1887_v15   ;;  %v1879_v59 = vadd.f32 %v3463_v11, %v1878_v5   ;;  %v4216_v5 = vmov %v4197_v23 }
 0x3a9   : >> { %v4201_v34 = vmov %v3951_v2  ;;  %v3955_v40 = vadd.f32 %v3152_v40, %v1879_v59  }
 0x3aa   : >> { %v2538_v14 = vpop.f32.mrf.mxu1 }
 0x3ab   : >> { %v4202_v55 = vmov %v3955_v40  ;;  %v1900_v45 = vadd.f32 %v2538_v14, %v3463_v11   ;;  %v4218_v14 = vmov %v4198_v39 }
 0x3ac   : >> { %v1891_v4 = vpop.f32.mrf.mxu1  ;;  %v4214_v40 = vmov %v4202_v55 }
 0x3ad   : >> { %v3959_v1 = vadd.f32 %v3132_v1, %v1900_v45   ;;  %v1892_v25 = vadd.f32 %v3463_v11, %v1891_v4   ;;  %v4213_v4 = vmov %v4199_v20  ;;  %v1931_v40 = vpack.c.bf16 (%p3976_p10), %v4202_v55, %v4202_v55 }
 0x3ae   : >> { %v2539_v13 = vpop.f32.mrf.mxu1 }
 0x3af   : >> { %v4203_v19 = vmov %v3959_v1  ;;  %v3963_v50 = vadd.f32 %v3140_v50, %v1892_v25   ;;  %v1903_v54 = vadd.f32 %v2539_v13, %v3463_v11   ;;  %v4215_v13 = vmov %v4200_v38  ;;  %1948 = vst.msk [vmem:[%s3513_s23 + $0x24] sm:$0xf] (%p3976_p10), %vm1938_vm2, %v1931_v40 }
 0x3b0   : >> { %v1894_v2 = vpop.f32.mrf.mxu1  ;;  %v4209_v1 = vmov %v4203_v19  ;;  %v1936_v15 = vpack.c.bf16 (%p3976_p10), %v4203_v19, %v4203_v19 }
 0x3b1   : >> { %v4204_v18 = vmov %v3963_v50  ;;  %v3967_v0 = vadd.f32 %v3128_v0, %v1903_v54   ;;  %v1895_v58 = vadd.f32 %v3463_v11, %v1894_v2   ;;  %v4212_v2 = vmov %v4201_v34 }
 0x3b2   : >> { %v4211_v50 = vmov %v4204_v18  ;;  %966 = sbr.rel (!%p3976_p10) target bundleno = 311 (0x137), region = 180  ;;  %v1930_v11 = vpack.c.bf16 (%p3976_p10), %v4200_v38, %v4200_v38  ;;  %1953 = vst.msk [vmem:[%s3513_s23 + $0x38] sm:$0xf] (%p3976_p10), %vm1938_vm2, %v1936_v15 }
 0x3b3   : >> { %v4205_v35 = vmov %v3967_v0  ;;  %v3971_v56 = vadd.f32 %v3136_v56, %v1895_v58   ;;  %v1932_v50 = vpack.c.bf16 (%p3976_p10), %v4199_v20, %v4199_v20 }
 0x3b4   : >> { %v4208_v0 = vmov %v4205_v35  ;;  %1947 = vst.msk [vmem:[%s3513_s23 + $0x20] sm:$0xf] (%p3976_p10), %vm1938_vm2, %v1930_v11  ;;  %v1937_v45 = vpack.c.bf16 (%p3976_p10), %v4205_v35, %v4205_v35 }
 0x3b5   : >> { %v4206_v33 = vmov %v3971_v56  ;;  %v1934_v0 = vpack.c.bf16 (%p3976_p10), %v4204_v18, %v4204_v18  ;;  %1949 = vst.msk [vmem:[%s3513_s23 + $0x28] sm:$0xf] (%p3976_p10), %vm1938_vm2, %v1932_v50 }
 0x3b6   : >> { %v4210_v56 = vmov %v4206_v33  ;;  %v1935_v1 = vpack.c.bf16 (%p3976_p10), %v4206_v33, %v4206_v33  ;;  %1954 = vst.msk [vmem:[%s3513_s23 + $0x3c] sm:$0xf] (%p3976_p10), %vm1938_vm2, %v1937_v45 }
 0x3b7   : > { %v1933_v56 = vpack.c.bf16 %v4201_v34, %v4201_v34  ;;  %1951 = vst.msk [vmem:[%s3513_s23 + $0x30] sm:$0xf] %vm1938_vm2, %v1934_v0  ;;  %1961 = sbr.rel (!%p3299_p5) target bundleno = 964 (0x3c4), region = 97  ;;  %s2335_s21 = sshll.u32 (%p3299_p5), %s2231_s27, 2  ;;  %v1980_v61 = vld [vmem:[%s3513_s23] sm:$0xf] (%p3299_p5) }
 0x3b8   : > { %1952 = vst.msk [vmem:[%s3513_s23 + $0x34] sm:$0xf] %vm1938_vm2, %v1935_v1  ;;  %v1982_v25 = vld [vmem:[%s3513_s23 + $0x4] sm:$0xf] (%p3299_p5)  ;;  %s1963_s13 = scalar_lea.vmem (%p3299_p5), %s4173_s7, %s2335_s21  ;;  %v1984_v59 = vld [vmem:[%s3513_s23 + $0x8] sm:$0xf] (%p3299_p5) }
 0x3b9   : > { %1950 = vst.msk [vmem:[%s3513_s23 + $0x2c] sm:$0xf] %vm1938_vm2, %v1933_v56  ;;  %v1986_v63 = vld [vmem:[%s3513_s23 + $0xc] sm:$0xf] (%p3299_p5)  ;;  %v1988_v54 = vld [vmem:[%s3513_s23 + $0x10] sm:$0xf] (%p3299_p5) }
 0x3ba   : > { %1981 = vst [vmem:[%s1963_s13] sm:$0xf] (%p3299_p5), %v1980_v61  ;;  %1983 = vst [vmem:[%s1963_s13 + $0x8] sm:$0xf] (%p3299_p5), %v1982_v25  ;;  %v1990_v60 = vld [vmem:[%s3513_s23 + $0x14] sm:$0xf] (%p3299_p5) }
 0x3bb   : > { %1985 = vst [vmem:[%s1963_s13 + $0x10] sm:$0xf] (%p3299_p5), %v1984_v59  ;;  %1987 = vst [vmem:[%s1963_s13 + $0x18] sm:$0xf] (%p3299_p5), %v1986_v63  ;;  %v1992_v24 = vld [vmem:[%s3513_s23 + $0x18] sm:$0xf] (%p3299_p5) }
 0x3bc   : > { %1989 = vst [vmem:[%s1963_s13 + $0x20] sm:$0xf] %v1988_v54  ;;  %v1994_v37 = vld [vmem:[%s3513_s23 + $0x1c] sm:$0xf]  ;;  %1991 = vst [vmem:[%s1963_s13 + $0x28] sm:$0xf] %v1990_v60 }
 0x3bd   : > { %1993 = vst [vmem:[%s1963_s13 + $0x30] sm:$0xf] %v1992_v24  ;;  %1995 = vst [vmem:[%s1963_s13 + $0x38] sm:$0xf] %v1994_v37  ;;  %v1996_v27 = vld [vmem:[%s3513_s23 + $0x20] sm:$0xf] }
 0x3be   : > { %v1998_v22 = vld [vmem:[%s3513_s23 + $0x24] sm:$0xf]  ;;  %v2000_v17 = vld [vmem:[%s3513_s23 + $0x28] sm:$0xf]  ;;  %1997 = vst [vmem:[%s1963_s13 + $0x40] sm:$0xf] %v1996_v27 }
 0x3bf   : > { %1999 = vst [vmem:[%s1963_s13 + $0x48] sm:$0xf] %v1998_v22  ;;  %2001 = vst [vmem:[%s1963_s13 + $0x50] sm:$0xf] %v2000_v17  ;;  %v2004_v53 = vld [vmem:[%s3513_s23 + $0x30] sm:$0xf] }
 0x3c0   : > { %v2002_v47 = vld [vmem:[%s3513_s23 + $0x2c] sm:$0xf]  ;;  %v2006_v3 = vld [vmem:[%s3513_s23 + $0x34] sm:$0xf]  ;;  %2005 = vst [vmem:[%s1963_s13 + $0x60] sm:$0xf] %v2004_v53 }
 0x3c1   : > { %2003 = vst [vmem:[%s1963_s13 + $0x58] sm:$0xf] %v2002_v47  ;;  %2007 = vst [vmem:[%s1963_s13 + $0x68] sm:$0xf] %v2006_v3  ;;  %v2008_v57 = vld [vmem:[%s3513_s23 + $0x38] sm:$0xf] }
 0x3c2   : > { %v2010_v30 = vld [vmem:[%s3513_s23 + $0x3c] sm:$0xf]  ;;  %2009 = vst [vmem:[%s1963_s13 + $0x70] sm:$0xf] %v2008_v57 }
 0x3c3   : > { %2011 = vst [vmem:[%s1963_s13 + $0x78] sm:$0xf] %v2010_v30 }
 0x3c4 PF: > { %p14_p11 = scmp.ge.s32.totalorder %s3286_s28, 4   ;;  %s4225_s24 = smov %s3088_s25 }
 0x3c5   : > { %s4226_s25 = smov %s3297_s8  ;;  %s4227_s26 = smov %s3286_s28 }
 0x3c6   :  { %16 = sbr.rel (!%p14_p11) target bundleno = 2 (0x2), region = 191 }

// kernel: traj_module_forward.4
= control target key start
LH: loop header
LB: loop body
LE: loop exit
PB: predicated region body
PF: predicated region fallthrough
CT: control target
= control target key end

     0   :  { %s4475_s18 = smov 0   ;;  %s4477_s19 = smov 0   ;;  %s5448_s0 = inlined_call_operand.vmem [shape: bf16[16,16,32], index: 0, kind: input, shape index: {}]   ;;  %s5449_s1 = inlined_call_operand.vmem [shape: bf16[32,256], index: 1, kind: input, shape index: {}]   ;;  %s5450_s2 = inlined_call_operand.vmem [shape: f32[1,256], index: 2, kind: input, shape index: {}]   ;;  %s5451_s3 = inlined_call_operand.vmem [shape: bf16[32,128], index: 3, kind: input, shape index: {}]   ;;  %s5452_s4 = inlined_call_operand.vmem [shape: bf16[32,128], index: 4, kind: input, shape index: {}]   ;;  %s5453_s5 = inlined_call_operand.vmem [shape: bf16[16,16,64], index: 5, kind: output, shape index: {}]  }
   0x1   :  { %s4479_s20 = smov 0  }
   0x2 LB: > { %s3528_s21 = sadd.s32 4294967295, %s4438_s20   ;;  %s4492_s22 = sadd.s32 1, %s4438_s20   ;;  %s4438_s20 = sphi %s4479_s20, %s5457_s20   ;;  %s4434_s19 = sphi %s4477_s19, %s5456_s19   ;;  %s4430_s18 = sphi %s4475_s18, %s5455_s18  }
   0x3   : > { %s19_s23 = ssub.s32 %s4438_s20, %s4492_s22  ;;  %s22_s24 = sadd.s32 1, %s4434_s19 }
   0x4   : > { %p20_p0 = scmp.eq.s32.totalorder %s19_s23, 0  ;;  %p29_p1 = scmp.ne.s32.totalorder %s4434_s19, %s4430_s18 }
   0x5   : > { %p30_p2 = scmp.eq.s32.totalorder %s4438_s20, 0  ;;  %p143_p3 = scmp.eq.s32.totalorder %s3528_s21, 1 }
   0x6   : > { %s4503_s25 = scalar_select %p20_p0, %s4434_s19, %s22_s24  }
   0x7   : > { %p31_p4 = por %p30_p2, %p29_p1  ;;  %p4505_p5 = por %p143_p3, %p29_p1 }
   0x8   : > { %p3531_p6 = scmp.ge.s32.totalorder %s4438_s20, 2 }
   0xa   : > { %177 = sbr.rel (%p3531_p6) target bundleno = 29 (0x1d), region = 32 }
   0xf   : > { %180 = sbr.rel (!%p31_p4) target bundleno = 29 (0x1d), region = 36  ;;  %s182_s27 = sand.u32 (%p31_p4), 1, %s4434_s19  }
  0x10   : > { %s3533_s28 = sshll.u32 (%p31_p4), %s4438_s20, 2  ;;  %s3532_s29 = sshll.u32 (%p31_p4), %s182_s27, 6 }
  0x11   : > { %s4515_s7 = scalar_lea.vmem (%p31_p4), %s5448_s0, %s3533_s28  ;;  %s184_s8 = scalar_lea.vmem (%p31_p4), [#allocation3], %s3532_s29 }
  0x12   : > { %v203_v0 = vld [vmem:[%s4515_s7] sm:$0xf] (%p31_p4)  ;;  %v205_v1 = vld [vmem:[%s4515_s7 + $0x8] sm:$0xf] (%p31_p4)  ;;  %v207_v2 = vld [vmem:[%s4515_s7 + $0x10] sm:$0xf] (%p31_p4) }
  0x13   : > { %204 = vst [vmem:[%s184_s8] sm:$0xf] (%p31_p4), %v203_v0  ;;  %206 = vst [vmem:[%s184_s8 + $0x4] sm:$0xf] (%p31_p4), %v205_v1  ;;  %v209_v3 = vld [vmem:[%s4515_s7 + $0x18] sm:$0xf] (%p31_p4) }
  0x14   : > { %v211_v4 = vld [vmem:[%s4515_s7 + $0x20] sm:$0xf]  ;;  %208 = vst [vmem:[%s184_s8 + $0x8] sm:$0xf] %v207_v2  ;;  %210 = vst [vmem:[%s184_s8 + $0xc] sm:$0xf] %v209_v3 }
  0x15   : > { %212 = vst [vmem:[%s184_s8 + $0x10] sm:$0xf] %v211_v4  ;;  %v213_v5 = vld [vmem:[%s4515_s7 + $0x28] sm:$0xf]  ;;  %v215_v6 = vld [vmem:[%s4515_s7 + $0x30] sm:$0xf] }
  0x16   : > { %v217_v7 = vld [vmem:[%s4515_s7 + $0x38] sm:$0xf]  ;;  %214 = vst [vmem:[%s184_s8 + $0x14] sm:$0xf] %v213_v5  ;;  %216 = vst [vmem:[%s184_s8 + $0x18] sm:$0xf] %v215_v6 }
  0x17   : > { %218 = vst [vmem:[%s184_s8 + $0x1c] sm:$0xf] %v217_v7  ;;  %v219_v8 = vld [vmem:[%s4515_s7 + $0x40] sm:$0xf]  ;;  %v221_v9 = vld [vmem:[%s4515_s7 + $0x48] sm:$0xf] }
  0x18   : > { %v223_v10 = vld [vmem:[%s4515_s7 + $0x50] sm:$0xf]  ;;  %220 = vst [vmem:[%s184_s8 + $0x20] sm:$0xf] %v219_v8  ;;  %222 = vst [vmem:[%s184_s8 + $0x24] sm:$0xf] %v221_v9 }
  0x19   : > { %224 = vst [vmem:[%s184_s8 + $0x28] sm:$0xf] %v223_v10  ;;  %v225_v11 = vld [vmem:[%s4515_s7 + $0x58] sm:$0xf]  ;;  %v227_v12 = vld [vmem:[%s4515_s7 + $0x60] sm:$0xf] }
  0x1a   : > { %v229_v13 = vld [vmem:[%s4515_s7 + $0x68] sm:$0xf]  ;;  %226 = vst [vmem:[%s184_s8 + $0x2c] sm:$0xf] %v225_v11  ;;  %228 = vst [vmem:[%s184_s8 + $0x30] sm:$0xf] %v227_v12 }
  0x1b   : > { %230 = vst [vmem:[%s184_s8 + $0x34] sm:$0xf] %v229_v13  ;;  %v231_v14 = vld [vmem:[%s4515_s7 + $0x70] sm:$0xf]  ;;  %v233_v15 = vld [vmem:[%s4515_s7 + $0x78] sm:$0xf] }
  0x1c   : > { %232 = vst [vmem:[%s184_s8 + $0x38] sm:$0xf] %v231_v14  ;;  %234 = vst [vmem:[%s184_s8 + $0x3c] sm:$0xf] %v233_v15 }
  0x1d PF: > { %p3534_p7 = scmp.ge.s32.totalorder %s4438_s20, 1  ;;  %p289_p8 = scmp.lt.s32.totalorder %s4438_s20, 3 }
  0x1f   : > { %p290_p9 = pnand %p3534_p7, %p289_p8 }
  0x20   : > { %s296_s11 = sand.u32 (!%p290_p9), 1, %s4430_s18   ;;  %s4444_s12 = smov (!%p290_p9), 32  }
  0x21   : > { %293 = sbr.rel (%p290_p9) target bundleno = 11182 (0x2bae), region = 77  ;;  %s4542_s14 = sshll.u32 (!%p290_p9), %s296_s11, 6 }
  0x22   : > { %s4551_s18 = scalar_lea.vmem (!%p290_p9), [#allocation3], %s4542_s14  ;;  %s4443_s11 = smov (!%p290_p9), 64  }
  0x23   : > { %s5344_s13 = scalar_lea.vmem (!%p290_p9), [#allocation4], %s4542_s14 }
  0x26   : > { %v4134_v16 = vld [vmem:[%s5449_s1 + $0x14] ss:$8 sps:$4 sm:$0xff]   ;;  %v4136_v17 = vld [vmem:[%s5449_s1 + $0x10] ss:$8 sps:$4 sm:$0xff]   ;;  %v4440_v18 = vmov 0   ;;  %v4441_v21 = vmov 0.0   ;;  %v345_v34 = vlaneseq }
  0x27   : > { %472 = vmatprep.mubr.bf16.mxu0 %v4440_v18  ;;  %452 = vmatprep.subr.bf16.mxu0 %v4134_v16  ;;  %v4137_v19 = vld [vmem:[%s5449_s1 + $0x4] ss:$8 sps:$4 sm:$0xff]   ;;  %v4139_v20 = vld [vmem:[%s5449_s1] ss:$8 sps:$4 sm:$0xff]   ;;  %vm4442_vm0 = vmmov 0   ;;  %vm415_vm1 = vcmask 261120  }
  0x28   : > { %453 = vmatpush1.bf16.msra.mxu0 %v4136_v17  ;;  %3849 = vmatprep.subr.bf16.mxu1 %v4441_v21  ;;  %v4557_v22 = vld [vmem:[%s5451_s3 + $0x8] sm:$0xff]   ;;  %v4140_v23 = vld [vmem:[%s4551_s18] sm:$0xff]   ;;  %v4144_v28 = vld [vmem:[%s4551_s18 + $0x10] sm:$0xff]   ;;  %v346_v35 = vshrl.u32 %v345_v34, 7  ;;  %vm877_vm2 = vcmask 257024   ;;  %vm887_vm3 = vcmask 519424  }
  0x29   : > { %454 = vmatprep.subr.bf16.mxu0 %v4137_v19  ;;  %3853 = vmatprep.mubr.msk.bf16.mxu1 %vm4442_vm0, %v4441_v21  ;;  %v4566_v24 = vld [vmem:[%s5451_s3] sm:$0xff]   ;;  %v4577_v25 = vld [vmem:[%s5452_s4 + $0x8] sm:$0xff]   ;;  %v4145_v29 = vld [vmem:[%s4551_s18 + $0x18] sm:$0xff]   ;;  %s3702_s14 = sshll.u32 (%p4505_p5), %s3528_s21, 2 }
  0x2a   : > { %3850 = vmatpush3.bf16.msra.mxu1 %v4557_v22  ;;  %v4143_v26 = vld [vmem:[%s4551_s18 + $0x8] sm:$0xff]   ;;  %v4587_v27 = vld [vmem:[%s5452_s4] sm:$0xff]   ;;  %v4148_v32 = vld [vmem:[%s4551_s18 + $0x30] sm:$0xff]   ;;  %v347_v36 = vsub.s32 0, %v346_v35  ;;  %v351_v37 = vsub.s32 1, %v346_v35  ;;  %s3370_s15 = scalar_lea.vmem (%p4505_p5), %s5453_s5, %s3702_s14 }
  0x2b   : > { %3851 = vmatprep.subr.bf16.mxu1 %v4441_v21  ;;  %v4146_v30 = vld [vmem:[%s4551_s18 + $0x20] sm:$0xff]   ;;  %v4147_v31 = vld [vmem:[%s4551_s18 + $0x28] sm:$0xff]   ;;  %v4149_v33 = vld [vmem:[%s4551_s18 + $0x38] sm:$0xff]  }
  0x2c   : > { %455 = vmatpush1.bf16.msra.mxu0 %v4139_v20  ;;  %v343_v38 = vld [vmem:[%s5450_s2] sm:$0x3] }
  0x2d   : > { %3913 = vmatprep.subr.bf16.mxu0 %v4441_v21  ;;  %v4618_v39 = vrot.slane %v343_v38, %v347_v36  ;;  %v4620_v40 = vrot.slane %v343_v38, %v351_v37 }
  0x2e   : > { %3852 = vmatpush3.bf16.msra.mxu1 %v4566_v24 }
  0x2f   : > { %3549 = vmatmul.mubr.msk.bf16.vlgmr.msra.gmra.mxu0 %vm415_vm1, %v4140_v23  ;;  %3857 = vmatprep.subr.bf16.mxu1 %v4441_v21 }
  0x30   : > { %482 = vmatprep.mubr.bf16.mxu0 %v4440_v18  ;;  %3914 = vmatpush3.bf16.msra.mxu0 %v4557_v22 }
  0x31   : > { %3854 = vmatmul.mubr.bf16.vlgmr.msra.gmra.mxu1 %v4440_v18  ;;  %3915 = vmatprep.subr.bf16.mxu0 %v4441_v21 }
  0x32   : > { %3861 = vmatprep.mubr.msk.bf16.mxu1 %vm4442_vm0, %v4441_v21  ;;  %3858 = vmatpush3.bf16.msra.mxu1 %v4577_v25 }
  0x33   : > { %3859 = vmatprep.subr.bf16.mxu1 %v4441_v21 }
  0x34   : > { %3916 = vmatpush3.bf16.msra.mxu0 %v4566_v24 }
  0x35   : > { %3929 = vmatprep.subr.bf16.mxu0 %v4441_v21 }
  0x36   : > { %3860 = vmatpush3.bf16.msra.mxu1 %v4587_v27 }
  0x37   : > { %3550 = vmatmul.mubr.msk.bf16.gmra.mxu0 %vm415_vm1, %v4143_v26  ;;  %3865 = vmatprep.subr.bf16.mxu1 %v4441_v21 }
  0x38   : > { %492 = vmatprep.mubr.bf16.mxu0 %v4440_v18 }
  0x39   : > { %3862 = vmatmul.mubr.bf16.vlgmr.msra.gmra.mxu1 %v4440_v18 }
  0x3a   : > { %3866 = vmatpush3.bf16.msra.mxu1 %v4557_v22  ;;  %3869 = vmatprep.mubr.msk.bf16.mxu1 %vm4442_vm0, %v4441_v21 }
  0x3b   : > { %3867 = vmatprep.subr.bf16.mxu1 %v4441_v21 }
  0x3e   : > { %3868 = vmatpush3.bf16.msra.mxu1 %v4566_v24 }
  0x3f   : > { %3551 = vmatmul.mubr.msk.bf16.gmra.mxu0 %vm415_vm1, %v4144_v28  ;;  %3873 = vmatprep.subr.bf16.mxu1 %v4441_v21 }
  0x40   : > { %502 = vmatprep.mubr.bf16.mxu0 %v4440_v18 }
  0x47   : > { %3552 = vmatmul.mubr.msk.bf16.gmra.mxu0 %vm415_vm1, %v4145_v29 }
  0x48   : > { %512 = vmatprep.mubr.bf16.mxu0 %v4440_v18 }
  0x4f   : > { %3553 = vmatmul.mubr.msk.bf16.gmra.mxu0 %vm415_vm1, %v4146_v30 }
  0x50   : > { %522 = vmatprep.mubr.bf16.mxu0 %v4440_v18 }
  0x57   : > { %3554 = vmatmul.mubr.msk.bf16.gmra.mxu0 %vm415_vm1, %v4147_v31 }
  0x58   : > { %532 = vmatprep.mubr.bf16.mxu0 %v4440_v18 }
  0x5f   : > { %3555 = vmatmul.mubr.msk.bf16.gmra.mxu0 %vm415_vm1, %v4148_v32 }
  0x60   : > { %542 = vmatprep.mubr.bf16.mxu0 %v4440_v18 }
  0x67   : > { %3556 = vmatmul.mubr.msk.bf16.gmra.mxu0 %vm415_vm1, %v4149_v33 }
  0x68   : > { %3917 = vmatprep.mubr.msk.bf16.mxu0 %vm4442_vm0, %v4441_v21 }
  0xef   : > { %v474_v41 = vpop.f32.mrf.mxu0 }
  0xf0   : > { %v475_v43 = vadd.f32 %v474_v41, %v4618_v39 }
  0xf1   : > { %v476_v42 = vpop.f32.mrf.mxu0  ;;  %v754_v45 = vpop.f32.mrf.mxu1 }
  0xf2   : > { %v477_v44 = vadd.f32 %v476_v42, %v4620_v40 }
  0xf3   : > { %v478_v46 = vpop.f32.mrf.mxu0  ;;  %v3855_v49 = vpop.f32.mrf.mxu1 }
  0xf4   : > { %v4624_v47 = vpack.c.bf16 %v477_v44, %v475_v43  ;;  %v479_v48 = vadd.f32 %v478_v46, %v4618_v39 }
  0xf5   : > { %v480_v50 = vpop.f32.mrf.mxu0  ;;  %v757_v53 = vpop.f32.mrf.mxu1 }
  0xf6   : > { %v481_v51 = vadd.f32 %v480_v50, %v4620_v40  ;;  %v813_v52 = vunpack.c.l.bf16 %v4624_v47 }
  0xf7   : > { %v484_v54 = vpop.f32.mrf.mxu0  ;;  %v3856_v58 = vpop.f32.mrf.mxu1 }
  0xf8   : > { %v4629_v55 = vpack.c.bf16 %v481_v51, %v479_v48  ;;  %v485_v56 = vadd.f32 %v484_v54, %v4618_v39  ;;  %v4632_v57 = vadd.f32 %v813_v52, %v754_v45 }
  0xf9   : > { %v486_v59 = vpop.f32.mrf.mxu0  ;;  %v4636_v62 = vpop.f32.mrf.mxu1 }
  0xfa   : > { %4152 = vtanh.f32 %v4632_v57  ;;  %v487_v60 = vadd.f32 %v486_v59, %v4620_v40 }
  0xfb   : > { %v488_v61 = vpop.f32.mrf.mxu0  ;;  %v3863_v2 = vpop.f32.mrf.mxu1 }
  0xfc   : > { %v4638_v63 = vpack.c.bf16 %v487_v60, %v485_v56  ;;  %v489_v0 = vadd.f32 %v488_v61, %v4618_v39 }
  0xfd   : > { %v490_v1 = vpop.f32.mrf.mxu0  ;;  %v809_v5 = vpop.f32.mrf.mxu1 }
  0xfe   : > { %v491_v3 = vadd.f32 %v490_v1, %v4620_v40 }
  0xff   : > { %v494_v4 = vpop.f32.mrf.mxu0  ;;  %v3864_v9 = vpop.f32.mrf.mxu1 }
 0x100   : > { %v4642_v6 = vpack.c.bf16 %v491_v3, %v489_v0  ;;  %v495_v7 = vadd.f32 %v494_v4, %v4618_v39 }
 0x101   : > { %v496_v8 = vpop.f32.mrf.mxu0 }
 0x102   : > { %v497_v10 = vadd.f32 %v496_v8, %v4620_v40 }
 0x103   : > { %v498_v11 = vpop.f32.mrf.mxu0 }
 0x104   : > { %v4646_v12 = vpack.c.bf16 %v497_v10, %v495_v7  ;;  %v499_v13 = vadd.f32 %v498_v11, %v4618_v39 }
 0x105   : > { %v500_v14 = vpop.f32.mrf.mxu0 }
 0x106   : > { %v501_v15 = vadd.f32 %v500_v14, %v4620_v40 }
 0x107   : > { %v4153_v16 = vpop.eup %4152  ;;  %v504_v17 = vpop.f32.mrf.mxu0 }
 0x108   : > { %v4650_v18 = vpack.c.bf16 %v501_v15, %v499_v13  ;;  %v505_v19 = vadd.f32 %v504_v17, %v4618_v39  ;;  %831 = vrot.lane.b32.xlu0 %v4153_v16, %s4443_s11 }
 0x109   : > { %v506_v20 = vpop.f32.mrf.mxu0 }
 0x10a   : > { %v507_v23 = vadd.f32 %v506_v20, %v4620_v40 }
 0x10b   : > { %v508_v26 = vpop.f32.mrf.mxu0 }
 0x10c   : > { %v4655_v28 = vpack.c.bf16 %v507_v23, %v505_v19  ;;  %v509_v29 = vadd.f32 %v508_v26, %v4618_v39 }
 0x10d   : > { %v510_v30 = vpop.f32.mrf.mxu0 }
 0x10e   : > { %v511_v31 = vadd.f32 %v510_v30, %v4620_v40 }
 0x10f   : > { %v514_v32 = vpop.f32.mrf.mxu0 }
 0x110   : > { %v4659_v33 = vpack.c.bf16 %v511_v31, %v509_v29  ;;  %v515_v34 = vadd.f32 %v514_v32, %v4618_v39  ;;  %v3577_v29 = vmul.f32 -1.442695, %v4632_v57 }
 0x111   : > { %v516_v35 = vpop.f32.mrf.mxu0 }
 0x112   : > { %v517_v36 = vadd.f32 %v516_v35, %v4620_v40 }
 0x113   : > { %v518_v37 = vpop.f32.mrf.mxu0 }
 0x114   : > { %v4663_v38 = vpack.c.bf16 %v517_v36, %v515_v34  ;;  %v519_v41 = vadd.f32 %v518_v37, %v4618_v39 }
 0x115   : > { %v520_v42 = vpop.f32.mrf.mxu0 }
 0x116   : > { %v521_v43 = vadd.f32 %v520_v42, %v4620_v40 }
 0x117   : > { %v524_v44 = vpop.f32.mrf.mxu0 }
 0x118   : > { %v4667_v45 = vpack.c.bf16 %v521_v43, %v519_v41  ;;  %v525_v46 = vadd.f32 %v524_v44, %v4618_v39 }
 0x119   : > { %v526_v48 = vpop.f32.mrf.mxu0 }
 0x11a   : > { %v527_v49 = vadd.f32 %v526_v48, %v4620_v40 }
 0x11b   : > { %v528_v50 = vpop.f32.mrf.mxu0 }
 0x11c   : > { %v4671_v51 = vpack.c.bf16 %v527_v49, %v525_v46  ;;  %v529_v52 = vadd.f32 %v528_v50, %v4618_v39 }
 0x11d   : > { %v530_v53 = vpop.f32.mrf.mxu0 }
 0x11e   : > { %v531_v54 = vadd.f32 %v530_v53, %v4620_v40 }
 0x11f   : > { %v534_v56 = vpop.f32.mrf.mxu0 }
 0x120   : > { %v4675_v58 = vpack.c.bf16 %v531_v54, %v529_v52  ;;  %v535_v59 = vadd.f32 %v534_v56, %v4618_v39 }
 0x121   : > { %v536_v60 = vpop.f32.mrf.mxu0 }
 0x122   : > { %v537_v61 = vadd.f32 %v536_v60, %v4620_v40 }
 0x123   : > { %v538_v0 = vpop.f32.mrf.mxu0 }
 0x124   : > { %v4679_v1 = vpack.c.bf16 %v537_v61, %v535_v59  ;;  %v539_v2 = vadd.f32 %v538_v0, %v4618_v39 }
 0x125   : > { %v540_v3 = vpop.f32.mrf.mxu0 }
 0x126   : > { %v541_v4 = vadd.f32 %v540_v3, %v4620_v40 }
 0x127   : > { %v544_v5 = vpop.f32.mrf.mxu0 }
 0x128   : > { %v4683_v7 = vpack.c.bf16 %v541_v4, %v539_v2  ;;  %v545_v8 = vadd.f32 %v544_v5, %v4618_v39  ;;  %v981_v2 = vunpack.c.l.bf16 %v4629_v55 }
 0x129   : > { %v546_v9 = vpop.f32.mrf.mxu0 }
 0x12a   : > { %v547_v10 = vadd.f32 %v546_v9, %v4620_v40 }
 0x12b   : > { %v548_v11 = vpop.f32.mrf.mxu0 }
 0x12c   : > { %v4687_v13 = vpack.c.bf16 %v547_v10, %v545_v8  ;;  %v549_v15 = vadd.f32 %v548_v11, %v4618_v39 }
 0x12d   : > { %v550_v14 = vpop.f32.mrf.mxu0 }
 0x12e   : > { %v551_v16 = vadd.f32 %v550_v14, %v4620_v40  ;;  %v986_v11 = vrot.slane %v4687_v13, 4 }
 0x130   : > { %v4691_v17 = vpack.c.bf16 %v551_v16, %v549_v15  ;;  %v988_v14 = vunpack.c.l.bf16 %v986_v11 }
 0x132   : > { %v818_v19 = vrot.slane %v4691_v17, 4 }
 0x134   : > { %v820_v20 = vunpack.c.l.bf16 %v818_v19 }
 0x136   : > { %v821_v23 = vadd.f32 %v820_v20, %v4636_v62 }
 0x138   : > { %4154 = vtanh.f32 %v821_v23  ;;  %v3578_v34 = vmul.f32 -1.442695, %v821_v23 }
 0x139   : > { %4156 = vpow2.f32 %v3577_v29 }
 0x145   : > { %v4155_v26 = vpop.eup %4154 }
 0x146   : > { %855 = vrot.lane.b32.xlu0 %v4155_v26, %s4443_s11  ;;  %v4157_v30 = vpop.eup %4156 }
 0x147   : > { %v825_v31 = vadd.f32 1.0, %v4157_v30 }
 0x149   : > { %4158 = vrcp.f32 %v825_v31 }
 0x14a   : > { %4160 = vpow2.f32 %v3578_v34 }
 0x156   : > { %v4159_v39 = vpop.eup %4158 }
 0x157   : > { %v4161_v35 = vpop.eup %4160  ;;  %v829_v57 = vmul.f32 0.0, %v4159_v39 }
 0x158   : > { %v849_v62 = vadd.f32 1.0, %v4161_v35 }
 0x15a   : > { %4162 = vrcp.f32 %v849_v62 }
 0x167   : > { %v4163_v36 = vpop.eup %4162 }
 0x168   : > { %v853_v46 = vmul.f32 0.0, %v4163_v36 }
 0x17a   : > { %v832_v32 = vpop.permute.xlu0 %831 }
 0x17b   : > { %v834_v40 = vmul.f32 %v4159_v39, %v832_v32 }
 0x17d   : > { %836 = vrot.lane.b32.xlu1 %v834_v40, %s4444_s12 }
 0x1b8   : > { %v856_v37 = vpop.permute.xlu0 %855 }
 0x1b9   : > { %v858_v41 = vmul.f32 %v4163_v36, %v856_v37 }
 0x1bb   : > { %860 = vrot.lane.b32.xlu1 %v858_v41, %s4444_s12 }
 0x1ef   : > { %v837_v42 = vpop.permute.xlu1 %836 }
 0x1f0   : > { %v4699_v43 = vadd.f32 %v837_v42, %v829_v57 }
 0x1f2   : > { %4164 = vtanh.f32 %v4699_v43 }
 0x1ff   : > { %v4165_v44 = vpop.eup %4164 }
 0x200   : > { %842 = vrot.lane.b32.xlu0 %v4165_v44, %s4443_s11 }
 0x22d   : > { %v861_v48 = vpop.permute.xlu1 %860 }
 0x22e   : > { %v4703_v49 = vadd.f32 %v861_v48, %v853_v46 }
 0x230   : > { %4166 = vtanh.f32 %v4703_v49 }
 0x23d   : > { %v4167_v50 = vpop.eup %4166 }
 0x23e   : > { %866 = vrot.lane.b32.xlu1 %v4167_v50, %s4443_s11 }
 0x272   : > { %v843_v52 = vpop.permute.xlu0 %842 }
 0x273   : > { %v845_v53 = vmul.f32 %v4159_v39, %v843_v52 }
 0x275   : > { %v4707_v54 = vpack.c.bf16 %v845_v53, %v845_v53 }
 0x277   : > { %889 = vrot.lane.b32.xlu0 %v4707_v54, %s4444_s12 }
 0x2b0   : > { %v867_v56 = vpop.permute.xlu1 %866 }
 0x2b1   : > { %v869_v59 = vmul.f32 %v4163_v36, %v867_v56 }
 0x2b3   : > { %v4711_v60 = vpack.c.bf16 %v869_v59, %v869_v59 }
 0x2b5   : > { %934 = vrot.lane.b32.xlu1 %v4711_v60, %s4444_s12 }
 0x2e9   : > { %v890_v61 = vpop.permute.xlu0 %889 }
 0x2ea   : > { %3870 = vmatmul.mubr.msk.bf16.vlgmr.msra.gmra.mxu1 %vm415_vm1, %v890_v61 }
 0x2eb   : > { %3874 = vmatpush3.bf16.msra.mxu1 %v4577_v25  ;;  %3877 = vmatprep.mubr.msk.bf16.mxu1 %vm4442_vm0, %v4441_v21 }
 0x2ec   : > { %3875 = vmatprep.subr.bf16.mxu1 %v4441_v21 }
 0x2ef   : > { %3876 = vmatpush3.bf16.msra.mxu1 %v4587_v27 }
 0x2f0   : > { %3881 = vmatprep.subr.bf16.mxu1 %v4441_v21 }
 0x327   : > { %v935_v0 = vpop.permute.xlu1 %934 }
 0x328   : > { %3878 = vmatmul.mubr.msk.bf16.vlgmr.msra.gmra.mxu1 %vm415_vm1, %v935_v0 }
 0x329   : > { %3882 = vmatpush3.bf16.msra.mxu1 %v4557_v22  ;;  %3885 = vmatprep.mubr.msk.bf16.mxu1 %vm4442_vm0, %v4441_v21 }
 0x32a   : > { %3883 = vmatprep.subr.bf16.mxu1 %v4441_v21 }
 0x32d   : > { %3884 = vmatpush3.bf16.msra.mxu1 %v4566_v24 }
 0x32e   : > { %3889 = vmatprep.subr.bf16.mxu1 %v4441_v21 }
 0x3aa   : > { %v928_v3 = vpop.f32.mrf.mxu1 }
 0x3ab   : > { %v982_v4 = vadd.f32 %v981_v2, %v928_v3 }
 0x3ac   : > { %v3871_v5 = vpop.f32.mrf.mxu1 }
 0x3ad   : > { %4168 = vtanh.f32 %v982_v4  ;;  %v3584_v29 = vmul.f32 -1.442695, %v982_v4  ;;  %v1148_v4 = vunpack.c.l.bf16 %v4638_v63 }
 0x3ae   : > { %v931_v8 = vpop.f32.mrf.mxu1 }
 0x3b0   : > { %v3872_v9 = vpop.f32.mrf.mxu1 }
 0x3ba   : > { %v4169_v10 = vpop.eup %4168 }
 0x3bb   : > { %999 = vrot.lane.b32.xlu0 %v4169_v10, %s4443_s11 }
 0x3e8   : > { %v973_v15 = vpop.f32.mrf.mxu1 }
 0x3e9   : > { %v989_v16 = vadd.f32 %v988_v14, %v973_v15  ;;  %v1153_v15 = vrot.slane %v4683_v7, 4 }
 0x3ea   : > { %v3879_v19 = vpop.f32.mrf.mxu1 }
 0x3eb   : > { %4170 = vtanh.f32 %v989_v16  ;;  %v3585_v34 = vmul.f32 -1.442695, %v989_v16  ;;  %v1155_v16 = vunpack.c.l.bf16 %v1153_v15 }
 0x3ec   : > { %v976_v20 = vpop.f32.mrf.mxu1  ;;  %4172 = vpow2.f32 %v3584_v29 }
 0x3ee   : > { %v3880_v23 = vpop.f32.mrf.mxu1 }
 0x3f8   : > { %v4171_v26 = vpop.eup %4170 }
 0x3f9   : > { %1023 = vrot.lane.b32.xlu1 %v4171_v26, %s4443_s11  ;;  %v4173_v30 = vpop.eup %4172 }
 0x3fa   : > { %v993_v31 = vadd.f32 1.0, %v4173_v30 }
 0x3fc   : > { %4174 = vrcp.f32 %v993_v31 }
 0x3fd   : > { %4176 = vpow2.f32 %v3585_v34 }
 0x409   : > { %v4175_v39 = vpop.eup %4174 }
 0x40a   : > { %v4177_v35 = vpop.eup %4176  ;;  %v997_v57 = vmul.f32 %v4175_v39, %v4699_v43 }
 0x40b   : > { %v1017_v62 = vadd.f32 1.0, %v4177_v35 }
 0x40d   : > { %4178 = vrcp.f32 %v1017_v62 }
 0x41a   : > { %v4179_v36 = vpop.eup %4178 }
 0x41b   : > { %v1021_v48 = vmul.f32 %v4179_v36, %v4703_v49 }
 0x42d   : > { %v1000_v32 = vpop.permute.xlu0 %999 }
 0x42e   : > { %v1002_v40 = vmul.f32 %v4175_v39, %v1000_v32 }
 0x430   : > { %1004 = vrot.lane.b32.xlu0 %v1002_v40, %s4444_s12 }
 0x46b   : > { %v1024_v37 = vpop.permute.xlu1 %1023 }
 0x46c   : > { %v1026_v41 = vmul.f32 %v4179_v36, %v1024_v37 }
 0x46e   : > { %1028 = vrot.lane.b32.xlu1 %v1026_v41, %s4444_s12 }
 0x4a2   : > { %v1005_v42 = vpop.permute.xlu0 %1004 }
 0x4a3   : > { %v4736_v44 = vadd.f32 %v1005_v42, %v997_v57 }
 0x4a5   : > { %4180 = vtanh.f32 %v4736_v44 }
 0x4b2   : > { %v4181_v46 = vpop.eup %4180 }
 0x4b3   : > { %1010 = vrot.lane.b32.xlu0 %v4181_v46, %s4443_s11 }
 0x4e0   : > { %v1029_v50 = vpop.permute.xlu1 %1028 }
 0x4e1   : > { %v4741_v52 = vadd.f32 %v1029_v50, %v1021_v48 }
 0x4e3   : > { %4182 = vtanh.f32 %v4741_v52 }
 0x4f0   : > { %v4183_v53 = vpop.eup %4182 }
 0x4f1   : > { %1034 = vrot.lane.b32.xlu1 %v4183_v53, %s4443_s11 }
 0x525   : > { %v1011_v56 = vpop.permute.xlu0 %1010 }
 0x526   : > { %v1013_v43 = vmul.f32 %v4175_v39, %v1011_v56 }
 0x528   : > { %v4745_v59 = vpack.c.bf16 %v1013_v43, %v1013_v43 }
 0x52a   : > { %1056 = vrot.lane.b32.xlu0 %v4745_v59, %s4444_s12 }
 0x563   : > { %v1035_v61 = vpop.permute.xlu1 %1034 }
 0x564   : > { %v1037_v0 = vmul.f32 %v4179_v36, %v1035_v61 }
 0x566   : > { %v4749_v2 = vpack.c.bf16 %v1037_v0, %v1037_v0 }
 0x568   : > { %1101 = vrot.lane.b32.xlu1 %v4749_v2, %s4444_s12 }
 0x59c   : > { %v1057_v49 = vpop.permute.xlu0 %1056 }
 0x59d   : > { %3886 = vmatmul.mubr.msk.bf16.vlgmr.msra.gmra.mxu1 %vm415_vm1, %v1057_v49 }
 0x59e   : > { %3890 = vmatpush3.bf16.msra.mxu1 %v4577_v25  ;;  %3893 = vmatprep.mubr.msk.bf16.mxu1 %vm4442_vm0, %v4441_v21 }
 0x59f   : > { %3891 = vmatprep.subr.bf16.mxu1 %v4441_v21 }
 0x5a2   : > { %3892 = vmatpush3.bf16.msra.mxu1 %v4587_v27 }
 0x5a3   : > { %3897 = vmatprep.subr.bf16.mxu1 %v4441_v21 }
 0x5da   : > { %v1102_v3 = vpop.permute.xlu1 %1101 }
 0x5db   : > { %3894 = vmatmul.mubr.msk.bf16.vlgmr.msra.gmra.mxu1 %vm415_vm1, %v1102_v3 }
 0x5dc   : > { %3898 = vmatpush3.bf16.msra.mxu1 %v4557_v22  ;;  %3901 = vmatprep.mubr.msk.bf16.mxu1 %vm4442_vm0, %v4441_v21 }
 0x5dd   : > { %3899 = vmatprep.subr.bf16.mxu1 %v4441_v21 }
 0x5e0   : > { %3900 = vmatpush3.bf16.msra.mxu1 %v4566_v24 }
 0x5e1   : > { %3905 = vmatprep.subr.bf16.mxu1 %v4441_v21 }
 0x65d   : > { %v1095_v5 = vpop.f32.mrf.mxu1 }
 0x65e   : > { %v1149_v8 = vadd.f32 %v1148_v4, %v1095_v5 }
 0x65f   : > { %v3887_v9 = vpop.f32.mrf.mxu1 }
 0x660   : > { %4184 = vtanh.f32 %v1149_v8  ;;  %v3592_v31 = vmul.f32 -1.442695, %v1149_v8 }
 0x661   : > { %v1098_v10 = vpop.f32.mrf.mxu1 }
 0x662   : > { %v1315_v10 = vunpack.c.l.bf16 %v4642_v6 }
 0x663   : > { %v3888_v11 = vpop.f32.mrf.mxu1 }
 0x66d   : > { %v4185_v14 = vpop.eup %4184 }
 0x66e   : > { %1166 = vrot.lane.b32.xlu0 %v4185_v14, %s4443_s11 }
 0x69b   : > { %v1140_v19 = vpop.f32.mrf.mxu1 }
 0x69c   : > { %v1156_v20 = vadd.f32 %v1155_v16, %v1140_v19 }
 0x69d   : > { %v3895_v23 = vpop.f32.mrf.mxu1 }
 0x69e   : > { %4186 = vtanh.f32 %v1156_v20  ;;  %v3593_v62 = vmul.f32 -1.442695, %v1156_v20  ;;  %v1320_v23 = vrot.slane %v4679_v1, 4 }
 0x69f   : > { %v1143_v26 = vpop.f32.mrf.mxu1  ;;  %4188 = vpow2.f32 %v3592_v31 }
 0x6a0   : > { %v1322_v26 = vunpack.c.l.bf16 %v1320_v23 }
 0x6a1   : > { %v3896_v29 = vpop.f32.mrf.mxu1 }
 0x6ab   : > { %v4187_v30 = vpop.eup %4186 }
 0x6ac   : > { %1190 = vrot.lane.b32.xlu1 %v4187_v30, %s4443_s11  ;;  %v4189_v39 = vpop.eup %4188 }
 0x6ad   : > { %v1160_v32 = vadd.f32 1.0, %v4189_v39 }
 0x6af   : > { %4190 = vrcp.f32 %v1160_v32 }
 0x6b0   : > { %4192 = vpow2.f32 %v3593_v62 }
 0x6bc   : > { %v4191_v40 = vpop.eup %4190 }
 0x6bd   : > { %v4193_v36 = vpop.eup %4192  ;;  %v1164_v46 = vmul.f32 %v4191_v40, %v4736_v44 }
 0x6be   : > { %v1184_v37 = vadd.f32 1.0, %v4193_v36 }
 0x6c0   : > { %4194 = vrcp.f32 %v1184_v37 }
 0x6cd   : > { %v4195_v41 = vpop.eup %4194 }
 0x6ce   : > { %v1188_v56 = vmul.f32 %v4195_v41, %v4741_v52 }
 0x6e0   : > { %v1167_v34 = vpop.permute.xlu0 %1166 }
 0x6e1   : > { %v1169_v35 = vmul.f32 %v4191_v40, %v1167_v34 }
 0x6e3   : > { %1171 = vrot.lane.b32.xlu0 %v1169_v35, %s4444_s12 }
 0x71e   : > { %v1191_v57 = vpop.permute.xlu1 %1190 }
 0x71f   : > { %v1193_v42 = vmul.f32 %v4195_v41, %v1191_v57 }
 0x721   : > { %1195 = vrot.lane.b32.xlu1 %v1193_v42, %s4444_s12 }
 0x755   : > { %v1172_v48 = vpop.permute.xlu0 %1171 }
 0x756   : > { %v4774_v50 = vadd.f32 %v1172_v48, %v1164_v46 }
 0x758   : > { %4196 = vtanh.f32 %v4774_v50 }
 0x765   : > { %v4197_v53 = vpop.eup %4196 }
 0x766   : > { %1177 = vrot.lane.b32.xlu0 %v4197_v53, %s4443_s11 }
 0x793   : > { %v1196_v43 = vpop.permute.xlu1 %1195 }
 0x794   : > { %v4779_v61 = vadd.f32 %v1196_v43, %v1188_v56 }
 0x796   : > { %4198 = vtanh.f32 %v4779_v61 }
 0x7a3   : > { %v4199_v0 = vpop.eup %4198 }
 0x7a4   : > { %1201 = vrot.lane.b32.xlu1 %v4199_v0, %s4443_s11 }
 0x7d8   : > { %v1178_v49 = vpop.permute.xlu0 %1177 }
 0x7d9   : > { %v1180_v44 = vmul.f32 %v4191_v40, %v1178_v49 }
 0x7db   : > { %v4783_v3 = vpack.c.bf16 %v1180_v44, %v1180_v44 }
 0x7dd   : > { %1223 = vrot.lane.b32.xlu0 %v4783_v3, %s4444_s12 }
 0x816   : > { %v1202_v4 = vpop.permute.xlu1 %1201 }
 0x817   : > { %v1204_v5 = vmul.f32 %v4195_v41, %v1202_v4 }
 0x819   : > { %v4787_v8 = vpack.c.bf16 %v1204_v5, %v1204_v5 }
 0x81b   : > { %1268 = vrot.lane.b32.xlu1 %v4787_v8, %s4444_s12 }
 0x84f   : > { %v1224_v52 = vpop.permute.xlu0 %1223 }
 0x850   : > { %3902 = vmatmul.mubr.msk.bf16.vlgmr.msra.gmra.mxu1 %vm415_vm1, %v1224_v52 }
 0x851   : > { %3906 = vmatpush3.bf16.msra.mxu1 %v4577_v25  ;;  %3909 = vmatprep.mubr.msk.bf16.mxu1 %vm4442_vm0, %v4441_v21 }
 0x852   : > { %3907 = vmatprep.subr.bf16.mxu1 %v4441_v21 }
 0x855   : > { %3908 = vmatpush3.bf16.msra.mxu1 %v4587_v27 }
 0x856   : > { %3921 = vmatprep.subr.bf16.mxu1 %v4441_v21 }
 0x88d   : > { %v1269_v9 = vpop.permute.xlu1 %1268 }
 0x88e   : > { %3910 = vmatmul.mubr.msk.bf16.vlgmr.msra.gmra.mxu1 %vm415_vm1, %v1269_v9 }
 0x88f   : > { %3922 = vmatpush3.bf16.msra.mxu1 %v4577_v25  ;;  %3925 = vmatprep.mubr.msk.bf16.mxu1 %vm4442_vm0, %v4441_v21 }
 0x890   : > { %3923 = vmatprep.subr.bf16.mxu1 %v4441_v21 }
 0x893   : > { %3924 = vmatpush3.bf16.msra.mxu1 %v4587_v27 }
 0x894   : > { %3937 = vmatprep.subr.bf16.mxu1 %v4441_v21 }
 0x910   : > { %v1262_v11 = vpop.f32.mrf.mxu1 }
 0x911   : > { %v1316_v14 = vadd.f32 %v1315_v10, %v1262_v11 }
 0x912   : > { %v3903_v15 = vpop.f32.mrf.mxu1 }
 0x913   : > { %4200 = vtanh.f32 %v1316_v14  ;;  %v3600_v34 = vmul.f32 -1.442695, %v1316_v14 }
 0x914   : > { %v1265_v16 = vpop.f32.mrf.mxu1 }
 0x916   : > { %v3904_v19 = vpop.f32.mrf.mxu1 }
 0x920   : > { %v4201_v20 = vpop.eup %4200 }
 0x921   : > { %1333 = vrot.lane.b32.xlu0 %v4201_v20, %s4443_s11  ;;  %v1482_v20 = vunpack.c.l.bf16 %v4646_v12 }
 0x94e   : > { %v1307_v29 = vpop.f32.mrf.mxu1 }
 0x94f   : > { %v1323_v30 = vadd.f32 %v1322_v26, %v1307_v29 }
 0x950   : > { %v3911_v31 = vpop.f32.mrf.mxu1 }
 0x951   : > { %4202 = vtanh.f32 %v1323_v30  ;;  %v3601_v57 = vmul.f32 -1.442695, %v1323_v30 }
 0x952   : > { %v1310_v39 = vpop.f32.mrf.mxu1  ;;  %4204 = vpow2.f32 %v3600_v34 }
 0x954   : > { %v3912_v32 = vpop.f32.mrf.mxu1 }
 0x955   : > { %v1487_v32 = vrot.slane %v4675_v58, 4 }
 0x95e   : > { %v4203_v40 = vpop.eup %4202 }
 0x95f   : > { %1357 = vrot.lane.b32.xlu1 %v4203_v40, %s4443_s11  ;;  %v4205_v35 = vpop.eup %4204  ;;  %v1489_v40 = vunpack.c.l.bf16 %v1487_v32 }
 0x960   : > { %v1327_v62 = vadd.f32 1.0, %v4205_v35 }
 0x962   : > { %4206 = vrcp.f32 %v1327_v62 }
 0x963   : > { %4208 = vpow2.f32 %v3601_v57 }
 0x96f   : > { %v4207_v36 = vpop.eup %4206 }
 0x970   : > { %v4209_v42 = vpop.eup %4208  ;;  %v1331_v43 = vmul.f32 %v4207_v36, %v4774_v50 }
 0x971   : > { %v1351_v46 = vadd.f32 1.0, %v4209_v42 }
 0x973   : > { %4210 = vrcp.f32 %v1351_v46 }
 0x980   : > { %v4211_v48 = vpop.eup %4210 }
 0x981   : > { %v1355_v4 = vmul.f32 %v4211_v48, %v4779_v61 }
 0x993   : > { %v1334_v37 = vpop.permute.xlu0 %1333 }
 0x994   : > { %v1336_v41 = vmul.f32 %v4207_v36, %v1334_v37 }
 0x996   : > { %1338 = vrot.lane.b32.xlu0 %v1336_v41, %s4444_s12 }
 0x9d1   : > { %v1358_v53 = vpop.permute.xlu1 %1357 }
 0x9d2   : > { %v1360_v56 = vmul.f32 %v4211_v48, %v1358_v53 }
 0x9d4   : > { %1362 = vrot.lane.b32.xlu1 %v1360_v56, %s4444_s12 }
 0xa08   : > { %v1339_v0 = vpop.permute.xlu0 %1338 }
 0xa09   : > { %v4812_v49 = vadd.f32 %v1339_v0, %v1331_v43 }
 0xa0b   : > { %4212 = vtanh.f32 %v4812_v49 }
 0xa18   : > { %v4213_v44 = vpop.eup %4212 }
 0xa19   : > { %1344 = vrot.lane.b32.xlu0 %v4213_v44, %s4443_s11 }
 0xa46   : > { %v1363_v5 = vpop.permute.xlu1 %1362 }
 0xa47   : > { %v4817_v52 = vadd.f32 %v1363_v5, %v1355_v4 }
 0xa49   : > { %4214 = vtanh.f32 %v4817_v52 }
 0xa56   : > { %v4215_v9 = vpop.eup %4214 }
 0xa57   : > { %1368 = vrot.lane.b32.xlu1 %v4215_v9, %s4443_s11 }
 0xa8b   : > { %v1345_v10 = vpop.permute.xlu0 %1344 }
 0xa8c   : > { %v1347_v50 = vmul.f32 %v4207_v36, %v1345_v10 }
 0xa8e   : > { %v4821_v11 = vpack.c.bf16 %v1347_v50, %v1347_v50 }
 0xa90   : > { %1390 = vrot.lane.b32.xlu0 %v4821_v11, %s4444_s12 }
 0xac9   : > { %v1369_v14 = vpop.permute.xlu1 %1368 }
 0xaca   : > { %v1371_v15 = vmul.f32 %v4211_v48, %v1369_v14 }
 0xacc   : > { %v4825_v16 = vpack.c.bf16 %v1371_v15, %v1371_v15 }
 0xace   : > { %1435 = vrot.lane.b32.xlu1 %v4825_v16, %s4444_s12 }
 0xb02   : > { %v1391_v61 = vpop.permute.xlu0 %1390 }
 0xb03   : > { %3918 = vmatmul.mubr.msk.bf16.vlgmr.msra.gmra.mxu0 %vm415_vm1, %v1391_v61 }
 0xb04   : > { %3930 = vmatpush3.bf16.msra.mxu0 %v4557_v22  ;;  %3933 = vmatprep.mubr.msk.bf16.mxu0 %vm4442_vm0, %v4441_v21 }
 0xb05   : > { %3931 = vmatprep.subr.bf16.mxu0 %v4441_v21 }
 0xb08   : > { %3932 = vmatpush3.bf16.msra.mxu0 %v4566_v24 }
 0xb09   : > { %3945 = vmatprep.subr.bf16.mxu0 %v4441_v21 }
 0xb40   : > { %v1436_v19 = vpop.permute.xlu1 %1435 }
 0xb41   : > { %3926 = vmatmul.mubr.msk.bf16.vlgmr.msra.gmra.mxu1 %vm415_vm1, %v1436_v19 }
 0xb42   : > { %3938 = vmatpush3.bf16.msra.mxu1 %v4577_v25  ;;  %3941 = vmatprep.mubr.msk.bf16.mxu1 %vm4442_vm0, %v4441_v21 }
 0xb43   : > { %3939 = vmatprep.subr.bf16.mxu1 %v4441_v21 }
 0xb46   : > { %3940 = vmatpush3.bf16.msra.mxu1 %v4587_v27 }
 0xb47   : > { %3953 = vmatprep.subr.bf16.mxu1 %v4441_v21 }
 0xbc3   : > { %v1429_v23 = vpop.f32.mrf.mxu0 }
 0xbc4   : > { %v1483_v26 = vadd.f32 %v1482_v20, %v1429_v23 }
 0xbc5   : > { %v3919_v29 = vpop.f32.mrf.mxu0 }
 0xbc6   : > { %4216 = vtanh.f32 %v1483_v26  ;;  %v3608_v57 = vmul.f32 -1.442695, %v1483_v26 }
 0xbc7   : > { %v1432_v30 = vpop.f32.mrf.mxu0 }
 0xbc9   : > { %v3920_v31 = vpop.f32.mrf.mxu0 }
 0xbd3   : > { %v4217_v39 = vpop.eup %4216 }
 0xbd4   : > { %1500 = vrot.lane.b32.xlu0 %v4217_v39, %s4443_s11 }
 0xc01   : > { %v1474_v34 = vpop.f32.mrf.mxu1 }
 0xc02   : > { %v1490_v35 = vadd.f32 %v1489_v40, %v1474_v34 }
 0xc03   : > { %v3927_v62 = vpop.f32.mrf.mxu1 }
 0xc04   : > { %4218 = vtanh.f32 %v1490_v35  ;;  %v3609_v43 = vmul.f32 -1.442695, %v1490_v35 }
 0xc05   : > { %v1477_v36 = vpop.f32.mrf.mxu1  ;;  %4220 = vpow2.f32 %v3608_v57 }
 0xc07   : > { %v3928_v37 = vpop.f32.mrf.mxu1 }
 0xc11   : > { %v4219_v41 = vpop.eup %4218 }
 0xc12   : > { %1524 = vrot.lane.b32.xlu1 %v4219_v41, %s4443_s11  ;;  %v4221_v42 = vpop.eup %4220 }
 0xc13   : > { %v1494_v46 = vadd.f32 1.0, %v4221_v42 }
 0xc15   : > { %4222 = vrcp.f32 %v1494_v46 }
 0xc16   : > { %4224 = vpow2.f32 %v3609_v43 }
 0xc22   : > { %v4223_v48 = vpop.eup %4222 }
 0xc23   : > { %v4225_v0 = vpop.eup %4224  ;;  %v1498_v10 = vmul.f32 %v4223_v48, %v4812_v49 }
 0xc24   : > { %v1518_v44 = vadd.f32 1.0, %v4225_v0 }
 0xc26   : > { %4226 = vrcp.f32 %v1518_v44 }
 0xc33   : > { %v4227_v4 = vpop.eup %4226 }
 0xc34   : > { %v1522_v61 = vmul.f32 %v4227_v4, %v4817_v52 }
 0xc46   : > { %v1501_v53 = vpop.permute.xlu0 %1500 }
 0xc47   : > { %v1503_v56 = vmul.f32 %v4223_v48, %v1501_v53 }
 0xc49   : > { %1505 = vrot.lane.b32.xlu0 %v1503_v56, %s4444_s12 }
 0xc84   : > { %v1525_v5 = vpop.permute.xlu1 %1524 }
 0xc85   : > { %v1527_v9 = vmul.f32 %v4227_v4, %v1525_v5 }
 0xc87   : > { %1529 = vrot.lane.b32.xlu1 %v1527_v9, %s4444_s12 }
 0xcbb   : > { %v1506_v50 = vpop.permute.xlu0 %1505 }
 0xcbc   : > { %v4850_v14 = vadd.f32 %v1506_v50, %v1498_v10 }
 0xcbe   : > { %4228 = vtanh.f32 %v4850_v14 }
 0xccb   : > { %v4229_v15 = vpop.eup %4228 }
 0xccc   : > { %1511 = vrot.lane.b32.xlu0 %v4229_v15, %s4443_s11 }
 0xcf9   : > { %v1530_v19 = vpop.permute.xlu1 %1529 }
 0xcfa   : > { %v4855_v20 = vadd.f32 %v1530_v19, %v1522_v61 }
 0xcfc   : > { %4230 = vtanh.f32 %v4855_v20 }
 0xd09   : > { %v4231_v23 = vpop.eup %4230 }
 0xd0a   : > { %1535 = vrot.lane.b32.xlu1 %v4231_v23, %s4443_s11 }
 0xd3e   : > { %v1512_v26 = vpop.permute.xlu0 %1511 }
 0xd3f   : > { %v1514_v49 = vmul.f32 %v4223_v48, %v1512_v26 }
 0xd41   : > { %v4859_v29 = vpack.c.bf16 %v1514_v49, %v1514_v49 }
 0xd43   : > { %1557 = vrot.lane.b32.xlu0 %v4859_v29, %s4444_s12 }
 0xd7c   : > { %v1536_v30 = vpop.permute.xlu1 %1535 }
 0xd7d   : > { %v1538_v31 = vmul.f32 %v4227_v4, %v1536_v30 }
 0xd7f   : > { %v4863_v39 = vpack.c.bf16 %v1538_v31, %v1538_v31 }
 0xd81   : > { %1602 = vrot.lane.b32.xlu1 %v4863_v39, %s4444_s12 }
 0xdb5   : > { %v1558_v52 = vpop.permute.xlu0 %1557 }
 0xdb6   : > { %3934 = vmatmul.mubr.msk.bf16.vlgmr.msra.gmra.mxu0 %vm415_vm1, %v1558_v52 }
 0xdb7   : > { %3946 = vmatpush3.bf16.msra.mxu0 %v4557_v22  ;;  %3949 = vmatprep.mubr.msk.bf16.mxu0 %vm4442_vm0, %v4441_v21  ;;  %v1649_v22 = vunpack.c.l.bf16 %v4650_v18 }
 0xdb8   : > { %3947 = vmatprep.subr.bf16.mxu0 %v4441_v21 }
 0xdbb   : > { %3948 = vmatpush3.bf16.msra.mxu0 %v4566_v24 }
 0xdbc   : > { %3961 = vmatprep.subr.bf16.mxu0 %v4441_v21 }
 0xdf3   : > { %v1603_v32 = vpop.permute.xlu1 %1602 }
 0xdf4   : > { %3942 = vmatmul.mubr.msk.bf16.vlgmr.msra.gmra.mxu1 %vm415_vm1, %v1603_v32 }
 0xdf5   : > { %3954 = vmatpush3.bf16.msra.mxu1 %v4577_v25  ;;  %3957 = vmatprep.mubr.msk.bf16.mxu1 %vm4442_vm0, %v4441_v21  ;;  %v1654_v25 = vrot.slane %v4671_v51, 4 }
 0xdf6   : > { %3955 = vmatprep.subr.bf16.mxu1 %v4441_v21 }
 0xdf7   : > { %v1656_v37 = vunpack.c.l.bf16 %v1654_v25 }
 0xdf9   : > { %3956 = vmatpush3.bf16.msra.mxu1 %v4587_v27 }
 0xdfa   : > { %3969 = vmatprep.subr.bf16.mxu1 %v4441_v21 }
 0xe76   : > { %v1596_v40 = vpop.f32.mrf.mxu0 }
 0xe77   : > { %v1650_v24 = vadd.f32 %v1649_v22, %v1596_v40 }
 0xe78   : > { %v3935_v34 = vpop.f32.mrf.mxu0 }
 0xe79   : > { %4232 = vtanh.f32 %v1650_v24  ;;  %v3616_v53 = vmul.f32 -1.442695, %v1650_v24 }
 0xe7a   : > { %v1599_v35 = vpop.f32.mrf.mxu0 }
 0xe7c   : > { %v3936_v62 = vpop.f32.mrf.mxu0 }
 0xe7d   : > { %v4909_v62 = vld [vmem:[%s5451_s3 + $0x8] sm:$0xff]  }
 0xe86   : > { %v4233_v36 = vpop.eup %4232 }
 0xe87   : > { %1667 = vrot.lane.b32.xlu0 %v4233_v36, %s4443_s11  ;;  %v4918_v36 = vld [vmem:[%s5451_s3] sm:$0xff]  }
 0xeb4   : > { %v1641_v41 = vpop.f32.mrf.mxu1 }
 0xeb5   : > { %v1657_v57 = vadd.f32 %v1656_v37, %v1641_v41  ;;  %v4926_v37 = vld [vmem:[%s5452_s4 + $0x8] sm:$0xff]   ;;  %v4935_v41 = vld [vmem:[%s5452_s4] sm:$0xff]  }
 0xeb6   : > { %v3943_v42 = vpop.f32.mrf.mxu1 }
 0xeb7   : > { %4234 = vtanh.f32 %v1657_v57  ;;  %v3617_v5 = vmul.f32 -1.442695, %v1657_v57  ;;  %v1816_v57 = vunpack.c.l.bf16 %v4655_v28 }
 0xeb8   : > { %v1644_v27 = vpop.f32.mrf.mxu1  ;;  %4236 = vpow2.f32 %v3616_v53 }
 0xeba   : > { %v3944_v46 = vpop.f32.mrf.mxu1 }
 0xec4   : > { %v4235_v48 = vpop.eup %4234 }
 0xec5   : > { %1691 = vrot.lane.b32.xlu1 %v4235_v48, %s4443_s11  ;;  %v4237_v56 = vpop.eup %4236 }
 0xec6   : > { %v1661_v43 = vadd.f32 1.0, %v4237_v56 }
 0xec8   : > { %4238 = vrcp.f32 %v1661_v43  ;;  %v1821_v43 = vrot.slane %v4667_v45, 4 }
 0xec9   : > { %4240 = vpow2.f32 %v3617_v5 }
 0xed5   : > { %v4239_v0 = vpop.eup %4238 }
 0xed6   : > { %v4241_v9 = vpop.eup %4240  ;;  %v1665_v19 = vmul.f32 %v4239_v0, %v4850_v14 }
 0xed7   : > { %v1685_v10 = vadd.f32 1.0, %v4241_v9 }
 0xed9   : > { %4242 = vrcp.f32 %v1685_v10 }
 0xee6   : > { %v4243_v50 = vpop.eup %4242 }
 0xee7   : > { %v1689_v30 = vmul.f32 %v4243_v50, %v4855_v20 }
 0xef9   : > { %v1668_v44 = vpop.permute.xlu0 %1667 }
 0xefa   : > { %v1670_v4 = vmul.f32 %v4239_v0, %v1668_v44 }
 0xefc   : > { %1672 = vrot.lane.b32.xlu0 %v1670_v4, %s4444_s12 }
 0xf37   : > { %v1692_v15 = vpop.permute.xlu1 %1691 }
 0xf38   : > { %v1694_v61 = vmul.f32 %v4243_v50, %v1692_v15 }
 0xf3a   : > { %1696 = vrot.lane.b32.xlu1 %v1694_v61, %s4444_s12 }
 0xf6e   : > { %v1673_v23 = vpop.permute.xlu0 %1672 }
 0xf6f   : > { %v4888_v26 = vadd.f32 %v1673_v23, %v1665_v19 }
 0xf71   : > { %4244 = vtanh.f32 %v4888_v26 }
 0xf7e   : > { %v4245_v49 = vpop.eup %4244 }
 0xf7f   : > { %1678 = vrot.lane.b32.xlu0 %v4245_v49, %s4443_s11 }
 0xfac   : > { %v1697_v31 = vpop.permute.xlu1 %1696 }
 0xfad   : > { %v4893_v52 = vadd.f32 %v1697_v31, %v1689_v30 }
 0xfaf   : > { %4246 = vtanh.f32 %v4893_v52 }
 0xfbc   : > { %v4247_v32 = vpop.eup %4246 }
 0xfbd   : > { %1702 = vrot.lane.b32.xlu1 %v4247_v32, %s4443_s11 }
 0xff1   : > { %v1679_v22 = vpop.permute.xlu0 %1678 }
 0xff2   : > { %v1681_v14 = vmul.f32 %v4239_v0, %v1679_v22  ;;  %v1823_v0 = vunpack.c.l.bf16 %v1821_v43 }
 0xff4   : > { %v4897_v40 = vpack.c.bf16 %v1681_v14, %v1681_v14 }
 0xff6   : > { %1724 = vrot.lane.b32.xlu0 %v4897_v40, %s4444_s12 }
0x102f   : > { %v1703_v24 = vpop.permute.xlu1 %1702 }
0x1030   : > { %v1705_v34 = vmul.f32 %v4243_v50, %v1703_v24 }
0x1032   : > { %v4901_v35 = vpack.c.bf16 %v1705_v34, %v1705_v34 }
0x1034   : > { %1769 = vrot.lane.b32.xlu1 %v4901_v35, %s4444_s12 }
0x1068   : > { %v1725_v20 = vpop.permute.xlu0 %1724 }
0x1069   : > { %3950 = vmatmul.mubr.msk.bf16.vlgmr.msra.gmra.mxu0 %vm415_vm1, %v1725_v20 }
0x106a   : > { %3962 = vmatpush3.bf16.msra.mxu0 %v4909_v62  ;;  %3965 = vmatprep.mubr.msk.bf16.mxu0 %vm4442_vm0, %v4441_v21 }
0x106b   : > { %3963 = vmatprep.subr.bf16.mxu0 %v4441_v21 }
0x106e   : > { %3964 = vmatpush3.bf16.msra.mxu0 %v4918_v36 }
0x106f   : > { %3977 = vmatprep.subr.bf16.mxu0 %v4441_v21 }
0x10a6   : > { %v1770_v25 = vpop.permute.xlu1 %1769 }
0x10a7   : > { %3958 = vmatmul.mubr.msk.bf16.vlgmr.msra.gmra.mxu1 %vm415_vm1, %v1770_v25 }
0x10a8   : > { %3970 = vmatpush3.bf16.msra.mxu1 %v4926_v37  ;;  %3973 = vmatprep.mubr.msk.bf16.mxu1 %vm4442_vm0, %v4441_v21 }
0x10a9   : > { %3971 = vmatprep.subr.bf16.mxu1 %v4441_v21 }
0x10ac   : > { %3972 = vmatpush3.bf16.msra.mxu1 %v4935_v41 }
0x10ad   : > { %3985 = vmatprep.subr.bf16.mxu1 %v4441_v21 }
0x1129   : > { %v1763_v42 = vpop.f32.mrf.mxu0 }
0x112a   : > { %v1817_v27 = vadd.f32 %v1816_v57, %v1763_v42 }
0x112b   : > { %v3951_v46 = vpop.f32.mrf.mxu0 }
0x112c   : > { %4248 = vtanh.f32 %v1817_v27  ;;  %v3624_v15 = vmul.f32 -1.442695, %v1817_v27 }
0x112d   : > { %v1766_v48 = vpop.f32.mrf.mxu0 }
0x112f   : > { %v3952_v53 = vpop.f32.mrf.mxu0 }
0x1139   : > { %v4249_v56 = vpop.eup %4248 }
0x113a   : > { %1834 = vrot.lane.b32.xlu0 %v4249_v56, %s4443_s11 }
0x1167   : > { %v1808_v44 = vpop.f32.mrf.mxu1 }
0x1168   : > { %v1824_v4 = vadd.f32 %v1823_v0, %v1808_v44 }
0x1169   : > { %v3959_v5 = vpop.f32.mrf.mxu1 }
0x116a   : > { %4250 = vtanh.f32 %v1824_v4  ;;  %v3625_v31 = vmul.f32 -1.442695, %v1824_v4 }
0x116b   : > { %v1811_v9 = vpop.f32.mrf.mxu1  ;;  %4252 = vpow2.f32 %v3624_v15 }
0x116c   : > { %v1983_v9 = vunpack.c.l.bf16 %v4659_v33 }
0x116d   : > { %v3960_v10 = vpop.f32.mrf.mxu1 }
0x1177   : > { %v4251_v50 = vpop.eup %4250 }
0x1178   : > { %1858 = vrot.lane.b32.xlu1 %v4251_v50, %s4443_s11  ;;  %v4253_v61 = vpop.eup %4252 }
0x1179   : > { %v1828_v19 = vadd.f32 1.0, %v4253_v61 }
0x117b   : > { %4254 = vrcp.f32 %v1828_v19 }
0x117c   : > { %4256 = vpow2.f32 %v3625_v31 }
0x1188   : > { %v4255_v23 = vpop.eup %4254 }
0x1189   : > { %v4257_v32 = vpop.eup %4256  ;;  %v1832_v20 = vmul.f32 %v4255_v23, %v4888_v26 }
0x118a   : > { %v1852_v22 = vadd.f32 1.0, %v4257_v32 }
0x118c   : > { %4258 = vrcp.f32 %v1852_v22 }
0x1199   : > { %v4259_v14 = vpop.eup %4258 }
0x119a   : > { %v1856_v27 = vmul.f32 %v4259_v14, %v4893_v52 }
0x11ac   : > { %v1835_v49 = vpop.permute.xlu0 %1834 }
0x11ad   : > { %v1837_v30 = vmul.f32 %v4255_v23, %v1835_v49  ;;  %v1988_v49 = vrot.slane %v4663_v38, 4 }
0x11af   : > { %1839 = vrot.lane.b32.xlu0 %v1837_v30, %s4444_s12  ;;  %v1990_v30 = vunpack.c.l.bf16 %v1988_v49 }
0x11ea   : > { %v1859_v24 = vpop.permute.xlu1 %1858 }
0x11eb   : > { %v1861_v34 = vmul.f32 %v4259_v14, %v1859_v24 }
0x11ed   : > { %1863 = vrot.lane.b32.xlu1 %v1861_v34, %s4444_s12 }
0x1221   : > { %v1840_v25 = vpop.permute.xlu0 %1839 }
0x1222   : > { %v4946_v57 = vadd.f32 %v1840_v25, %v1832_v20 }
0x1224   : > { %4260 = vtanh.f32 %v4946_v57 }
0x1231   : > { %v4261_v42 = vpop.eup %4260 }
0x1232   : > { %1845 = vrot.lane.b32.xlu0 %v4261_v42, %s4443_s11 }
0x125f   : > { %v1864_v46 = vpop.permute.xlu1 %1863 }
0x1260   : > { %v4951_v48 = vadd.f32 %v1864_v46, %v1856_v27 }
0x1262   : > { %4262 = vtanh.f32 %v4951_v48 }
0x126f   : > { %v4263_v53 = vpop.eup %4262 }
0x1270   : > { %1869 = vrot.lane.b32.xlu1 %v4263_v53, %s4443_s11 }
0x12a4   : > { %v1846_v56 = vpop.permute.xlu0 %1845 }
0x12a5   : > { %v1848_v26 = vmul.f32 %v4255_v23, %v1846_v56 }
0x12a7   : > { %v4955_v43 = vpack.c.bf16 %v1848_v26, %v1848_v26 }
0x12a9   : > { %1891 = vrot.lane.b32.xlu0 %v4955_v43, %s4444_s12 }
0x12e2   : > { %v1870_v0 = vpop.permute.xlu1 %1869 }
0x12e3   : > { %v1872_v44 = vmul.f32 %v4259_v14, %v1870_v0 }
0x12e5   : > { %v4959_v4 = vpack.c.bf16 %v1872_v44, %v1872_v44 }
0x12e7   : > { %1936 = vrot.lane.b32.xlu1 %v4959_v4, %s4444_s12 }
0x131b   : > { %v1892_v52 = vpop.permute.xlu0 %1891 }
0x131c   : > { %3966 = vmatmul.mubr.msk.bf16.vlgmr.msra.gmra.mxu0 %vm415_vm1, %v1892_v52 }
0x131d   : > { %3978 = vmatpush3.bf16.msra.mxu0 %v4909_v62  ;;  %3981 = vmatprep.mubr.msk.bf16.mxu0 %vm4442_vm0, %v4441_v21 }
0x131e   : > { %3979 = vmatprep.subr.bf16.mxu0 %v4441_v21 }
0x1321   : > { %3980 = vmatpush3.bf16.msra.mxu0 %v4918_v36 }
0x1322   : > { %3993 = vmatprep.subr.bf16.mxu0 %v4441_v21 }
0x1359   : > { %v1937_v5 = vpop.permute.xlu1 %1936 }
0x135a   : > { %3974 = vmatmul.mubr.msk.bf16.vlgmr.msra.gmra.mxu1 %vm415_vm1, %v1937_v5 }
0x135b   : > { %3986 = vmatpush3.bf16.msra.mxu1 %v4926_v37  ;;  %3989 = vmatprep.mubr.msk.bf16.mxu1 %vm4442_vm0, %v4441_v21 }
0x135c   : > { %3987 = vmatprep.subr.bf16.mxu1 %v4441_v21 }
0x135f   : > { %3988 = vmatpush3.bf16.msra.mxu1 %v4935_v41 }
0x1360   : > { %4001 = vmatprep.subr.bf16.mxu1 %v4441_v21 }
0x13dc   : > { %v1930_v10 = vpop.f32.mrf.mxu0 }
0x13dd   : > { %v1984_v50 = vadd.f32 %v1983_v9, %v1930_v10 }
0x13de   : > { %v3967_v15 = vpop.f32.mrf.mxu0 }
0x13df   : > { %4264 = vtanh.f32 %v1984_v50  ;;  %v3632_v20 = vmul.f32 -1.442695, %v1984_v50 }
0x13e0   : > { %v1933_v61 = vpop.f32.mrf.mxu0 }
0x13e2   : > { %v3968_v19 = vpop.f32.mrf.mxu0 }
0x13ec   : > { %v4265_v23 = vpop.eup %4264 }
0x13ed   : > { %2001 = vrot.lane.b32.xlu0 %v4265_v23, %s4443_s11 }
0x141a   : > { %v1975_v31 = vpop.f32.mrf.mxu1 }
0x141b   : > { %v1991_v32 = vadd.f32 %v1990_v30, %v1975_v31 }
0x141c   : > { %v3975_v22 = vpop.f32.mrf.mxu1 }
0x141d   : > { %4266 = vtanh.f32 %v1991_v32  ;;  %v3633_v56 = vmul.f32 -1.442695, %v1991_v32 }
0x141e   : > { %v1978_v14 = vpop.f32.mrf.mxu1  ;;  %4268 = vpow2.f32 %v3632_v20 }
0x1420   : > { %v3976_v24 = vpop.f32.mrf.mxu1 }
0x142a   : > { %v4267_v34 = vpop.eup %4266 }
0x142b   : > { %2025 = vrot.lane.b32.xlu1 %v4267_v34, %s4443_s11  ;;  %v4269_v25 = vpop.eup %4268  ;;  %v2149_v34 = vunpack.c.l.bf16 %v4663_v38 }
0x142c   : > { %v1995_v42 = vadd.f32 1.0, %v4269_v25 }
0x142e   : > { %4270 = vrcp.f32 %v1995_v42 }
0x142f   : > { %4272 = vpow2.f32 %v3633_v56  ;;  %v2153_v56 = vrot.slane %v4659_v33, 4 }
0x143b   : > { %v4271_v27 = vpop.eup %4270 }
0x143c   : > { %v4273_v26 = vpop.eup %4272  ;;  %v1999_v9 = vmul.f32 %v4271_v27, %v4946_v57 }
0x143d   : > { %v2019_v0 = vadd.f32 1.0, %v4273_v26  ;;  %v2155_v26 = vunpack.c.l.bf16 %v2153_v56 }
0x143f   : > { %4274 = vrcp.f32 %v2019_v0 }
0x144c   : > { %v4275_v44 = vpop.eup %4274 }
0x144d   : > { %v2023_v61 = vmul.f32 %v4275_v44, %v4951_v48 }
0x145f   : > { %v2002_v46 = vpop.permute.xlu0 %2001 }
0x1460   : > { %v2004_v53 = vmul.f32 %v4271_v27, %v2002_v46 }
0x1462   : > { %2006 = vrot.lane.b32.xlu0 %v2004_v53, %s4444_s12 }
0x149d   : > { %v2026_v52 = vpop.permute.xlu1 %2025 }
0x149e   : > { %v2028_v5 = vmul.f32 %v4275_v44, %v2026_v52 }
0x14a0   : > { %2030 = vrot.lane.b32.xlu1 %v2028_v5, %s4444_s12 }
0x14d4   : > { %v2007_v10 = vpop.permute.xlu0 %2006 }
0x14d5   : > { %v4984_v50 = vadd.f32 %v2007_v10, %v1999_v9 }
0x14d7   : > { %4276 = vtanh.f32 %v4984_v50 }
0x14e4   : > { %v4277_v15 = vpop.eup %4276 }
0x14e5   : > { %2012 = vrot.lane.b32.xlu0 %v4277_v15, %s4443_s11 }
0x1512   : > { %v2031_v19 = vpop.permute.xlu1 %2030 }
0x1513   : > { %v4989_v23 = vadd.f32 %v2031_v19, %v2023_v61 }
0x1515   : > { %4278 = vtanh.f32 %v4989_v23 }
0x1522   : > { %v4279_v49 = vpop.eup %4278 }
0x1523   : > { %2036 = vrot.lane.b32.xlu1 %v4279_v49, %s4443_s11 }
0x1557   : > { %v2013_v30 = vpop.permute.xlu0 %2012 }
0x1558   : > { %v2015_v57 = vmul.f32 %v4271_v27, %v2013_v30 }
0x155a   : > { %v4993_v31 = vpack.c.bf16 %v2015_v57, %v2015_v57 }
0x155c   : > { %2058 = vrot.lane.b32.xlu0 %v4993_v31, %s4444_s12 }
0x1595   : > { %v2037_v32 = vpop.permute.xlu1 %2036 }
0x1596   : > { %v2039_v22 = vmul.f32 %v4275_v44, %v2037_v32 }
0x1598   : > { %v4997_v14 = vpack.c.bf16 %v2039_v22, %v2039_v22 }
0x159a   : > { %2103 = vrot.lane.b32.xlu1 %v4997_v14, %s4444_s12 }
0x15ce   : > { %v2059_v48 = vpop.permute.xlu0 %2058 }
0x15cf   : > { %3982 = vmatmul.mubr.msk.bf16.vlgmr.msra.gmra.mxu0 %vm415_vm1, %v2059_v48 }
0x15d0   : > { %3994 = vmatpush3.bf16.msra.mxu0 %v4909_v62  ;;  %3997 = vmatprep.mubr.msk.bf16.mxu0 %vm4442_vm0, %v4441_v21 }
0x15d1   : > { %3995 = vmatprep.subr.bf16.mxu0 %v4441_v21 }
0x15d4   : > { %3996 = vmatpush3.bf16.msra.mxu0 %v4918_v36 }
0x15d5   : > { %4009 = vmatprep.subr.bf16.mxu0 %v4441_v21 }
0x160c   : > { %v2104_v24 = vpop.permute.xlu1 %2103 }
0x160d   : > { %3990 = vmatmul.mubr.msk.bf16.vlgmr.msra.gmra.mxu1 %vm415_vm1, %v2104_v24 }
0x160e   : > { %4002 = vmatpush3.bf16.msra.mxu1 %v4926_v37  ;;  %4005 = vmatprep.mubr.msk.bf16.mxu1 %vm4442_vm0, %v4441_v21 }
0x160f   : > { %4003 = vmatprep.subr.bf16.mxu1 %v4441_v21 }
0x1612   : > { %4004 = vmatpush3.bf16.msra.mxu1 %v4935_v41 }
0x1613   : > { %4017 = vmatprep.subr.bf16.mxu1 %v4441_v21 }
0x168f   : > { %v2097_v20 = vpop.f32.mrf.mxu0 }
0x1690   : > { %v2150_v25 = vadd.f32 %v2149_v34, %v2097_v20 }
0x1691   : > { %v3983_v42 = vpop.f32.mrf.mxu0 }
0x1692   : > { %4280 = vtanh.f32 %v2150_v25  ;;  %v3640_v38 = vmul.f32 -1.442695, %v2150_v25 }
0x1693   : > { %v2100_v27 = vpop.f32.mrf.mxu0 }
0x1695   : > { %v3984_v46 = vpop.f32.mrf.mxu0 }
0x169f   : > { %v4281_v53 = vpop.eup %4280 }
0x16a0   : > { %2166 = vrot.lane.b32.xlu0 %v4281_v53, %s4443_s11 }
0x16cd   : > { %v2142_v0 = vpop.f32.mrf.mxu1 }
0x16ce   : > { %v2156_v44 = vadd.f32 %v2155_v26, %v2142_v0 }
0x16cf   : > { %v3991_v52 = vpop.f32.mrf.mxu1 }
0x16d0   : > { %4282 = vtanh.f32 %v2156_v44  ;;  %v3641_v33 = vmul.f32 -1.442695, %v2156_v44 }
0x16d1   : > { %v2145_v5 = vpop.f32.mrf.mxu1  ;;  %4284 = vpow2.f32 %v3640_v38 }
0x16d3   : > { %v3992_v9 = vpop.f32.mrf.mxu1 }
0x16dd   : > { %v4283_v10 = vpop.eup %4282 }
0x16de   : > { %2190 = vrot.lane.b32.xlu1 %v4283_v10, %s4443_s11  ;;  %v4285_v15 = vpop.eup %4284  ;;  %v2312_v10 = vunpack.c.l.bf16 %v4667_v45 }
0x16df   : > { %v2160_v61 = vadd.f32 1.0, %v4285_v15 }
0x16e1   : > { %4286 = vrcp.f32 %v2160_v61 }
0x16e2   : > { %4288 = vpow2.f32 %v3641_v33  ;;  %v2316_v33 = vrot.slane %v4655_v28, 4 }
0x16ee   : > { %v4287_v19 = vpop.eup %4286 }
0x16ef   : > { %v4289_v57 = vpop.eup %4288  ;;  %v2164_v34 = vmul.f32 %v4287_v19, %v4984_v50 }
0x16f0   : > { %v2184_v32 = vadd.f32 1.0, %v4289_v57  ;;  %v2318_v57 = vunpack.c.l.bf16 %v2316_v33 }
0x16f2   : > { %4290 = vrcp.f32 %v2184_v32 }
0x16ff   : > { %v4291_v22 = vpop.eup %4290 }
0x1700   : > { %v2188_v27 = vmul.f32 %v4291_v22, %v4989_v23 }
0x1712   : > { %v2167_v49 = vpop.permute.xlu0 %2166 }
0x1713   : > { %v2169_v30 = vmul.f32 %v4287_v19, %v2167_v49 }
0x1715   : > { %2171 = vrot.lane.b32.xlu0 %v2169_v30, %s4444_s12 }
0x1750   : > { %v2191_v48 = vpop.permute.xlu1 %2190 }
0x1751   : > { %v2193_v24 = vmul.f32 %v4291_v22, %v2191_v48 }
0x1753   : > { %2195 = vrot.lane.b32.xlu1 %v2193_v24, %s4444_s12 }
0x1787   : > { %v2172_v20 = vpop.permute.xlu0 %2171 }
0x1788   : > { %v5022_v25 = vadd.f32 %v2172_v20, %v2164_v34 }
0x178a   : > { %4292 = vtanh.f32 %v5022_v25 }
0x1797   : > { %v4293_v42 = vpop.eup %4292 }
0x1798   : > { %2177 = vrot.lane.b32.xlu0 %v4293_v42, %s4443_s11 }
0x17c5   : > { %v2196_v46 = vpop.permute.xlu1 %2195 }
0x17c6   : > { %v5027_v53 = vadd.f32 %v2196_v46, %v2188_v27 }
0x17c8   : > { %4294 = vtanh.f32 %v5027_v53 }
0x17d5   : > { %v4295_v56 = vpop.eup %4294 }
0x17d6   : > { %2201 = vrot.lane.b32.xlu1 %v4295_v56, %s4443_s11 }
0x180a   : > { %v2178_v26 = vpop.permute.xlu0 %2177 }
0x180b   : > { %v2180_v50 = vmul.f32 %v4287_v19, %v2178_v26 }
0x180d   : > { %v5031_v0 = vpack.c.bf16 %v2180_v50, %v2180_v50 }
0x180f   : > { %2221 = vrot.lane.b32.xlu0 %v5031_v0, %s4444_s12 }
0x1848   : > { %v2202_v44 = vpop.permute.xlu1 %2201 }
0x1849   : > { %v2204_v52 = vmul.f32 %v4291_v22, %v2202_v44 }
0x184b   : > { %v5035_v5 = vpack.c.bf16 %v2204_v52, %v2204_v52 }
0x184d   : > { %2266 = vrot.lane.b32.xlu1 %v5035_v5, %s4444_s12 }
0x1881   : > { %v2222_v23 = vpop.permute.xlu0 %2221 }
0x1882   : > { %3998 = vmatmul.mubr.msk.bf16.vlgmr.msra.gmra.mxu0 %vm415_vm1, %v2222_v23 }
0x1883   : > { %4010 = vmatpush3.bf16.msra.mxu0 %v4909_v62  ;;  %4013 = vmatprep.mubr.msk.bf16.mxu0 %vm4442_vm0, %v4441_v21 }
0x1884   : > { %4011 = vmatprep.subr.bf16.mxu0 %v4441_v21 }
0x1887   : > { %4012 = vmatpush3.bf16.msra.mxu0 %v4918_v36 }
0x1888   : > { %4025 = vmatprep.subr.bf16.mxu0 %v4441_v21 }
0x18bf   : > { %v2267_v9 = vpop.permute.xlu1 %2266 }
0x18c0   : > { %4006 = vmatmul.mubr.msk.bf16.vlgmr.msra.gmra.mxu1 %vm415_vm1, %v2267_v9 }
0x18c1   : > { %4018 = vmatpush3.bf16.msra.mxu1 %v4926_v37  ;;  %4021 = vmatprep.mubr.msk.bf16.mxu1 %vm4442_vm0, %v4441_v21 }
0x18c2   : > { %4019 = vmatprep.subr.bf16.mxu1 %v4441_v21 }
0x18c5   : > { %4020 = vmatpush3.bf16.msra.mxu1 %v4935_v41 }
0x18c6   : > { %4033 = vmatprep.subr.bf16.mxu1 %v4441_v21 }
0x1942   : > { %v2260_v38 = vpop.f32.mrf.mxu0 }
0x1943   : > { %v2313_v15 = vadd.f32 %v2312_v10, %v2260_v38 }
0x1944   : > { %v3999_v61 = vpop.f32.mrf.mxu0 }
0x1945   : > { %4296 = vtanh.f32 %v2313_v15  ;;  %v3648_v45 = vmul.f32 -1.442695, %v2313_v15 }
0x1946   : > { %v2263_v19 = vpop.f32.mrf.mxu0 }
0x1948   : > { %v4000_v49 = vpop.f32.mrf.mxu0 }
0x1952   : > { %v4297_v30 = vpop.eup %4296 }
0x1953   : > { %2329 = vrot.lane.b32.xlu0 %v4297_v30, %s4443_s11 }
0x1980   : > { %v2305_v32 = vpop.f32.mrf.mxu1 }
0x1981   : > { %v2319_v22 = vadd.f32 %v2318_v57, %v2305_v32 }
0x1982   : > { %v4007_v48 = vpop.f32.mrf.mxu1 }
0x1983   : > { %4298 = vtanh.f32 %v2319_v22  ;;  %v3649_v28 = vmul.f32 -1.442695, %v2319_v22 }
0x1984   : > { %v2308_v24 = vpop.f32.mrf.mxu1  ;;  %4300 = vpow2.f32 %v3648_v45 }
0x1986   : > { %v4008_v34 = vpop.f32.mrf.mxu1 }
0x1990   : > { %v4299_v20 = vpop.eup %4298 }
0x1991   : > { %2353 = vrot.lane.b32.xlu1 %v4299_v20, %s4443_s11  ;;  %v4301_v42 = vpop.eup %4300  ;;  %v2475_v20 = vunpack.c.l.bf16 %v4671_v51 }
0x1992   : > { %v2323_v27 = vadd.f32 1.0, %v4301_v42 }
0x1994   : > { %4302 = vrcp.f32 %v2323_v27 }
0x1995   : > { %4304 = vpow2.f32 %v3649_v28  ;;  %v2479_v28 = vrot.slane %v4650_v18, 4 }
0x19a1   : > { %v4303_v46 = vpop.eup %4302 }
0x19a2   : > { %v4305_v50 = vpop.eup %4304  ;;  %v2327_v10 = vmul.f32 %v4303_v46, %v5022_v25 }
0x19a3   : > { %v2347_v44 = vadd.f32 1.0, %v4305_v50  ;;  %v2481_v50 = vunpack.c.l.bf16 %v2479_v28 }
0x19a5   : > { %4306 = vrcp.f32 %v2347_v44 }
0x19b2   : > { %v4307_v52 = vpop.eup %4306 }
0x19b3   : > { %v2351_v19 = vmul.f32 %v4307_v52, %v5027_v53 }
0x19c5   : > { %v2330_v56 = vpop.permute.xlu0 %2329 }
0x19c6   : > { %v2332_v26 = vmul.f32 %v4303_v46, %v2330_v56 }
0x19c8   : > { %2334 = vrot.lane.b32.xlu0 %v2332_v26, %s4444_s12 }
0x1a03   : > { %v2354_v23 = vpop.permute.xlu1 %2353 }
0x1a04   : > { %v2356_v9 = vmul.f32 %v4307_v52, %v2354_v23 }
0x1a06   : > { %2358 = vrot.lane.b32.xlu1 %v2356_v9, %s4444_s12 }
0x1a3a   : > { %v2335_v38 = vpop.permute.xlu0 %2334 }
0x1a3b   : > { %v5060_v15 = vadd.f32 %v2335_v38, %v2327_v10 }
0x1a3d   : > { %4308 = vtanh.f32 %v5060_v15 }
0x1a4a   : > { %v4309_v61 = vpop.eup %4308 }
0x1a4b   : > { %2340 = vrot.lane.b32.xlu0 %v4309_v61, %s4443_s11 }
0x1a78   : > { %v2359_v49 = vpop.permute.xlu1 %2358 }
0x1a79   : > { %v5065_v30 = vadd.f32 %v2359_v49, %v2351_v19 }
0x1a7b   : > { %4310 = vtanh.f32 %v5065_v30 }
0x1a88   : > { %v4311_v33 = vpop.eup %4310 }
0x1a89   : > { %2364 = vrot.lane.b32.xlu1 %v4311_v33, %s4443_s11 }
0x1abd   : > { %v2341_v57 = vpop.permute.xlu0 %2340 }
0x1abe   : > { %v2343_v25 = vmul.f32 %v4303_v46, %v2341_v57 }
0x1ac0   : > { %v5069_v32 = vpack.c.bf16 %v2343_v25, %v2343_v25 }
0x1ac2   : > { %2384 = vrot.lane.b32.xlu0 %v5069_v32, %s4444_s12 }
0x1afb   : > { %v2365_v22 = vpop.permute.xlu1 %2364 }
0x1afc   : > { %v2367_v48 = vmul.f32 %v4307_v52, %v2365_v22 }
0x1afe   : > { %v5073_v24 = vpack.c.bf16 %v2367_v48, %v2367_v48 }
0x1b00   : > { %2429 = vrot.lane.b32.xlu1 %v5073_v24, %s4444_s12 }
0x1b34   : > { %v2385_v53 = vpop.permute.xlu0 %2384 }
0x1b35   : > { %4014 = vmatmul.mubr.msk.bf16.vlgmr.msra.gmra.mxu0 %vm415_vm1, %v2385_v53 }
0x1b36   : > { %4026 = vmatpush3.bf16.msra.mxu0 %v4909_v62  ;;  %4029 = vmatprep.mubr.msk.bf16.mxu0 %vm4442_vm0, %v4441_v21 }
0x1b37   : > { %4027 = vmatprep.subr.bf16.mxu0 %v4441_v21 }
0x1b3a   : > { %4028 = vmatpush3.bf16.msra.mxu0 %v4918_v36 }
0x1b3b   : > { %4041 = vmatprep.subr.bf16.mxu0 %v4441_v21 }
0x1b72   : > { %v2430_v34 = vpop.permute.xlu1 %2429 }
0x1b73   : > { %4022 = vmatmul.mubr.msk.bf16.vlgmr.msra.gmra.mxu1 %vm415_vm1, %v2430_v34 }
0x1b74   : > { %4034 = vmatpush3.bf16.msra.mxu1 %v4926_v37  ;;  %4037 = vmatprep.mubr.msk.bf16.mxu1 %vm4442_vm0, %v4441_v21 }
0x1b75   : > { %4035 = vmatprep.subr.bf16.mxu1 %v4441_v21 }
0x1b78   : > { %4036 = vmatpush3.bf16.msra.mxu1 %v4935_v41 }
0x1b79   : > { %4049 = vmatprep.subr.bf16.mxu1 %v4441_v21 }
0x1bf5   : > { %v2423_v45 = vpop.f32.mrf.mxu0 }
0x1bf6   : > { %v2476_v42 = vadd.f32 %v2475_v20, %v2423_v45 }
0x1bf7   : > { %v4015_v27 = vpop.f32.mrf.mxu0 }
0x1bf8   : > { %4312 = vtanh.f32 %v2476_v42  ;;  %v3656_v51 = vmul.f32 -1.442695, %v2476_v42 }
0x1bf9   : > { %v2426_v46 = vpop.f32.mrf.mxu0 }
0x1bfb   : > { %v4016_v56 = vpop.f32.mrf.mxu0 }
0x1c05   : > { %v4313_v26 = vpop.eup %4312 }
0x1c06   : > { %2492 = vrot.lane.b32.xlu0 %v4313_v26, %s4443_s11 }
0x1c33   : > { %v2468_v44 = vpop.f32.mrf.mxu1 }
0x1c34   : > { %v2482_v52 = vadd.f32 %v2481_v50, %v2468_v44 }
0x1c35   : > { %v4023_v23 = vpop.f32.mrf.mxu1 }
0x1c36   : > { %4314 = vtanh.f32 %v2482_v52  ;;  %v3657_v18 = vmul.f32 -1.442695, %v2482_v52 }
0x1c37   : > { %v2471_v9 = vpop.f32.mrf.mxu1  ;;  %4316 = vpow2.f32 %v3656_v51 }
0x1c39   : > { %v4024_v10 = vpop.f32.mrf.mxu1 }
0x1c43   : > { %v4315_v38 = vpop.eup %4314 }
0x1c44   : > { %2516 = vrot.lane.b32.xlu1 %v4315_v38, %s4443_s11  ;;  %v4317_v61 = vpop.eup %4316  ;;  %v2638_v38 = vunpack.c.l.bf16 %v4675_v58 }
0x1c45   : > { %v2486_v19 = vadd.f32 1.0, %v4317_v61 }
0x1c47   : > { %4318 = vrcp.f32 %v2486_v19 }
0x1c48   : > { %4320 = vpow2.f32 %v3657_v18  ;;  %v2642_v18 = vrot.slane %v4646_v12, 4 }
0x1c54   : > { %v4319_v49 = vpop.eup %4318 }
0x1c55   : > { %v4321_v25 = vpop.eup %4320  ;;  %v2490_v20 = vmul.f32 %v4319_v49, %v5060_v15 }
0x1c56   : > { %v2510_v22 = vadd.f32 1.0, %v4321_v25  ;;  %v2644_v25 = vunpack.c.l.bf16 %v2642_v18 }
0x1c58   : > { %4322 = vrcp.f32 %v2510_v22 }
0x1c65   : > { %v4323_v48 = vpop.eup %4322 }
0x1c66   : > { %v2514_v46 = vmul.f32 %v4323_v48, %v5065_v30 }
0x1c78   : > { %v2493_v33 = vpop.permute.xlu0 %2492 }
0x1c79   : > { %v2495_v57 = vmul.f32 %v4319_v49, %v2493_v33 }
0x1c7b   : > { %2497 = vrot.lane.b32.xlu0 %v2495_v57, %s4444_s12 }
0x1cb6   : > { %v2517_v53 = vpop.permute.xlu1 %2516 }
0x1cb7   : > { %v2519_v34 = vmul.f32 %v4323_v48, %v2517_v53 }
0x1cb9   : > { %2521 = vrot.lane.b32.xlu1 %v2519_v34, %s4444_s12 }
0x1ced   : > { %v2498_v45 = vpop.permute.xlu0 %2497 }
0x1cee   : > { %v5098_v42 = vadd.f32 %v2498_v45, %v2490_v20 }
0x1cf0   : > { %4324 = vtanh.f32 %v5098_v42 }
0x1cfd   : > { %v4325_v27 = vpop.eup %4324 }
0x1cfe   : > { %2503 = vrot.lane.b32.xlu0 %v4325_v27, %s4443_s11 }
0x1d2b   : > { %v2522_v56 = vpop.permute.xlu1 %2521 }
0x1d2c   : > { %v5103_v26 = vadd.f32 %v2522_v56, %v2514_v46 }
0x1d2e   : > { %4326 = vtanh.f32 %v5103_v26 }
0x1d3b   : > { %v4327_v28 = vpop.eup %4326 }
0x1d3c   : > { %2527 = vrot.lane.b32.xlu1 %v4327_v28, %s4443_s11 }
0x1d70   : > { %v2504_v50 = vpop.permute.xlu0 %2503 }
0x1d71   : > { %v2506_v15 = vmul.f32 %v4319_v49, %v2504_v50 }
0x1d73   : > { %v5107_v44 = vpack.c.bf16 %v2506_v15, %v2506_v15 }
0x1d75   : > { %2547 = vrot.lane.b32.xlu0 %v5107_v44, %s4444_s12 }
0x1dae   : > { %v2528_v52 = vpop.permute.xlu1 %2527 }
0x1daf   : > { %v2530_v23 = vmul.f32 %v4323_v48, %v2528_v52 }
0x1db1   : > { %v5111_v9 = vpack.c.bf16 %v2530_v23, %v2530_v23 }
0x1db3   : > { %2592 = vrot.lane.b32.xlu1 %v5111_v9, %s4444_s12 }
0x1de7   : > { %v2548_v30 = vpop.permute.xlu0 %2547 }
0x1de8   : > { %4030 = vmatmul.mubr.msk.bf16.vlgmr.msra.gmra.mxu0 %vm415_vm1, %v2548_v30 }
0x1de9   : > { %4042 = vmatpush3.bf16.msra.mxu0 %v4909_v62  ;;  %4045 = vmatprep.mubr.msk.bf16.mxu0 %vm4442_vm0, %v4441_v21 }
0x1dea   : > { %4043 = vmatprep.subr.bf16.mxu0 %v4441_v21 }
0x1ded   : > { %4044 = vmatpush3.bf16.msra.mxu0 %v4918_v36 }
0x1dee   : > { %4057 = vmatprep.subr.bf16.mxu0 %v4441_v21 }
0x1e25   : > { %v2593_v10 = vpop.permute.xlu1 %2592 }
0x1e26   : > { %4038 = vmatmul.mubr.msk.bf16.vlgmr.msra.gmra.mxu1 %vm415_vm1, %v2593_v10 }
0x1e27   : > { %4050 = vmatpush3.bf16.msra.mxu1 %v4926_v37  ;;  %4053 = vmatprep.mubr.msk.bf16.mxu1 %vm4442_vm0, %v4441_v21 }
0x1e28   : > { %4051 = vmatprep.subr.bf16.mxu1 %v4441_v21 }
0x1e2b   : > { %4052 = vmatpush3.bf16.msra.mxu1 %v4935_v41 }
0x1e2c   : > { %4065 = vmatprep.subr.bf16.mxu1 %v4441_v21 }
0x1ea8   : > { %v2586_v51 = vpop.f32.mrf.mxu0 }
0x1ea9   : > { %v2639_v61 = vadd.f32 %v2638_v38, %v2586_v51 }
0x1eaa   : > { %v4031_v19 = vpop.f32.mrf.mxu0 }
0x1eab   : > { %4328 = vtanh.f32 %v2639_v61  ;;  %v3664_v58 = vmul.f32 -1.442695, %v2639_v61 }
0x1eac   : > { %v2589_v49 = vpop.f32.mrf.mxu0 }
0x1eae   : > { %v4032_v33 = vpop.f32.mrf.mxu0 }
0x1eb8   : > { %v4329_v57 = vpop.eup %4328 }
0x1eb9   : > { %2655 = vrot.lane.b32.xlu0 %v4329_v57, %s4443_s11 }
0x1ee6   : > { %v2631_v22 = vpop.f32.mrf.mxu1 }
0x1ee7   : > { %v2645_v48 = vadd.f32 %v2644_v25, %v2631_v22 }
0x1ee8   : > { %v4039_v53 = vpop.f32.mrf.mxu1 }
0x1ee9   : > { %4330 = vtanh.f32 %v2645_v48  ;;  %v3665_v12 = vmul.f32 -1.442695, %v2645_v48 }
0x1eea   : > { %v2634_v34 = vpop.f32.mrf.mxu1  ;;  %4332 = vpow2.f32 %v3664_v58 }
0x1eec   : > { %v4040_v20 = vpop.f32.mrf.mxu1 }
0x1ef6   : > { %v4331_v45 = vpop.eup %4330 }
0x1ef7   : > { %2679 = vrot.lane.b32.xlu1 %v4331_v45, %s4443_s11  ;;  %v4333_v27 = vpop.eup %4332  ;;  %v2801_v45 = vunpack.c.l.bf16 %v4679_v1 }
0x1ef8   : > { %v2649_v46 = vadd.f32 1.0, %v4333_v27 }
0x1efa   : > { %4334 = vrcp.f32 %v2649_v46 }
0x1efb   : > { %4336 = vpow2.f32 %v3665_v12  ;;  %v2805_v12 = vrot.slane %v4642_v6, 4 }
0x1f07   : > { %v4335_v56 = vpop.eup %4334 }
0x1f08   : > { %v4337_v15 = vpop.eup %4336  ;;  %v2653_v38 = vmul.f32 %v4335_v56, %v5098_v42 }
0x1f09   : > { %v2673_v52 = vadd.f32 1.0, %v4337_v15  ;;  %v2807_v15 = vunpack.c.l.bf16 %v2805_v12 }
0x1f0b   : > { %4338 = vrcp.f32 %v2673_v52 }
0x1f18   : > { %v4339_v23 = vpop.eup %4338 }
0x1f19   : > { %v2677_v49 = vmul.f32 %v4339_v23, %v5103_v26 }
0x1f2b   : > { %v2656_v28 = vpop.permute.xlu0 %2655 }
0x1f2c   : > { %v2658_v50 = vmul.f32 %v4335_v56, %v2656_v28 }
0x1f2e   : > { %2660 = vrot.lane.b32.xlu0 %v2658_v50, %s4444_s12 }
0x1f69   : > { %v2680_v30 = vpop.permute.xlu1 %2679 }
0x1f6a   : > { %v2682_v10 = vmul.f32 %v4339_v23, %v2680_v30 }
0x1f6c   : > { %2684 = vrot.lane.b32.xlu1 %v2682_v10, %s4444_s12 }
0x1fa0   : > { %v2661_v51 = vpop.permute.xlu0 %2660 }
0x1fa1   : > { %v5136_v61 = vadd.f32 %v2661_v51, %v2653_v38 }
0x1fa3   : > { %4340 = vtanh.f32 %v5136_v61 }
0x1fb0   : > { %v4341_v19 = vpop.eup %4340 }
0x1fb1   : > { %2666 = vrot.lane.b32.xlu0 %v4341_v19, %s4443_s11 }
0x1fde   : > { %v2685_v33 = vpop.permute.xlu1 %2684 }
0x1fdf   : > { %v5141_v57 = vadd.f32 %v2685_v33, %v2677_v49 }
0x1fe1   : > { %4342 = vtanh.f32 %v5141_v57 }
0x1fee   : > { %v4343_v18 = vpop.eup %4342 }
0x1fef   : > { %2690 = vrot.lane.b32.xlu1 %v4343_v18, %s4443_s11 }
0x2023   : > { %v2667_v25 = vpop.permute.xlu0 %2666 }
0x2024   : > { %v2669_v42 = vmul.f32 %v4335_v56, %v2667_v25 }
0x2026   : > { %v5145_v22 = vpack.c.bf16 %v2669_v42, %v2669_v42 }
0x2028   : > { %2710 = vrot.lane.b32.xlu0 %v5145_v22, %s4444_s12 }
0x2061   : > { %v2691_v48 = vpop.permute.xlu1 %2690 }
0x2062   : > { %v2693_v53 = vmul.f32 %v4339_v23, %v2691_v48 }
0x2064   : > { %v5149_v34 = vpack.c.bf16 %v2693_v53, %v2693_v53 }
0x2066   : > { %2755 = vrot.lane.b32.xlu1 %v5149_v34, %s4444_s12 }
0x209a   : > { %v2711_v26 = vpop.permute.xlu0 %2710 }
0x209b   : > { %4046 = vmatmul.mubr.msk.bf16.vlgmr.msra.gmra.mxu0 %vm415_vm1, %v2711_v26 }
0x209c   : > { %4058 = vmatpush3.bf16.msra.mxu0 %v4909_v62  ;;  %4061 = vmatprep.mubr.msk.bf16.mxu0 %vm4442_vm0, %v4441_v21 }
0x209d   : > { %4059 = vmatprep.subr.bf16.mxu0 %v4441_v21 }
0x20a0   : > { %4060 = vmatpush3.bf16.msra.mxu0 %v4918_v36 }
0x20a1   : > { %4073 = vmatprep.subr.bf16.mxu0 %v4441_v21 }
0x20d8   : > { %v2756_v20 = vpop.permute.xlu1 %2755 }
0x20d9   : > { %4054 = vmatmul.mubr.msk.bf16.vlgmr.msra.gmra.mxu1 %vm415_vm1, %v2756_v20 }
0x20da   : > { %4066 = vmatpush3.bf16.msra.mxu1 %v4926_v37  ;;  %4069 = vmatprep.mubr.msk.bf16.mxu1 %vm4442_vm0, %v4441_v21 }
0x20db   : > { %4067 = vmatprep.subr.bf16.mxu1 %v4441_v21 }
0x20de   : > { %4068 = vmatpush3.bf16.msra.mxu1 %v4935_v41 }
0x20df   : > { %4081 = vmatprep.subr.bf16.mxu1 %v4441_v21 }
0x215b   : > { %v2749_v58 = vpop.f32.mrf.mxu0 }
0x215c   : > { %v2802_v27 = vadd.f32 %v2801_v45, %v2749_v58 }
0x215d   : > { %v4047_v46 = vpop.f32.mrf.mxu0 }
0x215e   : > { %4344 = vtanh.f32 %v2802_v27  ;;  %v3672_v1 = vmul.f32 -1.442695, %v2802_v27 }
0x215f   : > { %v2752_v56 = vpop.f32.mrf.mxu0 }
0x2161   : > { %v4048_v28 = vpop.f32.mrf.mxu0 }
0x216b   : > { %v4345_v50 = vpop.eup %4344 }
0x216c   : > { %2818 = vrot.lane.b32.xlu0 %v4345_v50, %s4443_s11 }
0x2199   : > { %v2794_v52 = vpop.f32.mrf.mxu1 }
0x219a   : > { %v2808_v23 = vadd.f32 %v2807_v15, %v2794_v52 }
0x219b   : > { %v4055_v30 = vpop.f32.mrf.mxu1 }
0x219c   : > { %4346 = vtanh.f32 %v2808_v23  ;;  %v3673_v6 = vmul.f32 -1.442695, %v2808_v23 }
0x219d   : > { %v2797_v10 = vpop.f32.mrf.mxu1  ;;  %4348 = vpow2.f32 %v3672_v1 }
0x219f   : > { %v4056_v38 = vpop.f32.mrf.mxu1 }
0x21a9   : > { %v4347_v51 = vpop.eup %4346 }
0x21aa   : > { %2842 = vrot.lane.b32.xlu1 %v4347_v51, %s4443_s11  ;;  %v4349_v19 = vpop.eup %4348 }
0x21ab   : > { %v2812_v49 = vadd.f32 1.0, %v4349_v19 }
0x21ad   : > { %4350 = vrcp.f32 %v2812_v49 }
0x21ae   : > { %4352 = vpow2.f32 %v3673_v6 }
0x21ba   : > { %v4351_v33 = vpop.eup %4350 }
0x21bb   : > { %v4353_v42 = vpop.eup %4352  ;;  %v2816_v45 = vmul.f32 %v4351_v33, %v5136_v61 }
0x21bc   : > { %v2836_v48 = vadd.f32 1.0, %v4353_v42 }
0x21be   : > { %4354 = vrcp.f32 %v2836_v48 }
0x21cb   : > { %v4355_v53 = vpop.eup %4354 }
0x21cc   : > { %v2840_v56 = vmul.f32 %v4355_v53, %v5141_v57 }
0x21de   : > { %v2819_v18 = vpop.permute.xlu0 %2818 }
0x21df   : > { %v2821_v25 = vmul.f32 %v4351_v33, %v2819_v18 }
0x21e1   : > { %2823 = vrot.lane.b32.xlu0 %v2821_v25, %s4444_s12 }
0x221c   : > { %v2843_v26 = vpop.permute.xlu1 %2842 }
0x221d   : > { %v2845_v20 = vmul.f32 %v4355_v53, %v2843_v26 }
0x221f   : > { %2847 = vrot.lane.b32.xlu1 %v2845_v20, %s4444_s12 }
0x2253   : > { %v2824_v58 = vpop.permute.xlu0 %2823 }
0x2254   : > { %v5174_v27 = vadd.f32 %v2824_v58, %v2816_v45 }
0x2256   : > { %4356 = vtanh.f32 %v5174_v27 }
0x2263   : > { %v4357_v46 = vpop.eup %4356 }
0x2264   : > { %2829 = vrot.lane.b32.xlu0 %v4357_v46, %s4443_s11 }
0x2291   : > { %v2848_v28 = vpop.permute.xlu1 %2847 }
0x2292   : > { %v5179_v50 = vadd.f32 %v2848_v28, %v2840_v56 }
0x2294   : > { %4358 = vtanh.f32 %v5179_v50 }
0x22a1   : > { %v4359_v12 = vpop.eup %4358 }
0x22a2   : > { %2853 = vrot.lane.b32.xlu1 %v4359_v12, %s4443_s11 }
0x22d6   : > { %v2830_v15 = vpop.permute.xlu0 %2829 }
0x22d7   : > { %v2832_v61 = vmul.f32 %v4351_v33, %v2830_v15 }
0x22d9   : > { %v5183_v52 = vpack.c.bf16 %v2832_v61, %v2832_v61 }
0x22db   : > { %2873 = vrot.lane.b32.xlu0 %v5183_v52, %s4444_s12 }
0x2314   : > { %v2854_v23 = vpop.permute.xlu1 %2853 }
0x2315   : > { %v2856_v30 = vmul.f32 %v4355_v53, %v2854_v23 }
0x2317   : > { %v5187_v10 = vpack.c.bf16 %v2856_v30, %v2856_v30 }
0x2319   : > { %2918 = vrot.lane.b32.xlu1 %v5187_v10, %s4444_s12 }
0x234d   : > { %v2874_v57 = vpop.permute.xlu0 %2873 }
0x234e   : > { %4062 = vmatmul.mubr.msk.bf16.vlgmr.msra.gmra.mxu0 %vm415_vm1, %v2874_v57 }
0x234f   : > { %4074 = vmatpush3.bf16.msra.mxu0 %v4909_v62  ;;  %4077 = vmatprep.mubr.msk.bf16.mxu0 %vm4442_vm0, %v4441_v21  ;;  %v2964_v62 = vunpack.c.l.bf16 %v4683_v7 }
0x2350   : > { %4075 = vmatprep.subr.bf16.mxu0 %v4441_v21 }
0x2353   : > { %4076 = vmatpush3.bf16.msra.mxu0 %v4918_v36 }
0x2354   : > { %4089 = vmatprep.subr.bf16.mxu0 %v4441_v21 }
0x238b   : > { %v2919_v38 = vpop.permute.xlu1 %2918 }
0x238c   : > { %4070 = vmatmul.mubr.msk.bf16.vlgmr.msra.gmra.mxu1 %vm415_vm1, %v2919_v38 }
0x238d   : > { %4082 = vmatpush3.bf16.msra.mxu1 %v4926_v37  ;;  %4085 = vmatprep.mubr.msk.bf16.mxu1 %vm4442_vm0, %v4441_v21  ;;  %v2968_v37 = vrot.slane %v4638_v63, 4 }
0x238e   : > { %4083 = vmatprep.subr.bf16.mxu1 %v4441_v21 }
0x238f   : > { %v2970_v18 = vunpack.c.l.bf16 %v2968_v37 }
0x2391   : > { %4084 = vmatpush3.bf16.msra.mxu1 %v4935_v41 }
0x2392   : > { %4097 = vmatprep.subr.bf16.mxu1 %v4441_v21 }
0x240e   : > { %v2912_v51 = vpop.f32.mrf.mxu0 }
0x240f   : > { %v2965_v36 = vadd.f32 %v2964_v62, %v2912_v51 }
0x2410   : > { %v4063_v1 = vpop.f32.mrf.mxu0 }
0x2411   : > { %4360 = vtanh.f32 %v2965_v36  ;;  %v3680_v7 = vmul.f32 -1.442695, %v2965_v36 }
0x2412   : > { %v2915_v19 = vpop.f32.mrf.mxu0 }
0x2414   : > { %v4064_v49 = vpop.f32.mrf.mxu0 }
0x241e   : > { %v4361_v33 = vpop.eup %4360 }
0x241f   : > { %2981 = vrot.lane.b32.xlu0 %v4361_v33, %s4443_s11 }
0x244c   : > { %v2957_v25 = vpop.f32.mrf.mxu1 }
0x244d   : > { %v2971_v6 = vadd.f32 %v2970_v18, %v2957_v25  ;;  %v4412_v25 = vld [vmem:[%s5451_s3 + $0x8] sm:$0xff]  }
0x244e   : > { %v4071_v42 = vpop.f32.mrf.mxu1 }
0x244f   : > { %4362 = vtanh.f32 %v2971_v6  ;;  %v3681_v63 = vmul.f32 -1.442695, %v2971_v6  ;;  %v4413_v6 = vld [vmem:[%s5451_s3] sm:$0xff]  }
0x2450   : > { %v2960_v41 = vpop.f32.mrf.mxu1  ;;  %4364 = vpow2.f32 %v3680_v7 }
0x2451   : > { %v4414_v41 = vld [vmem:[%s5452_s4 + $0x8] sm:$0xff]  }
0x2452   : > { %v4072_v48 = vpop.f32.mrf.mxu1 }
0x2453   : > { %v4415_v48 = vld [vmem:[%s5452_s4] sm:$0xff]  }
0x245c   : > { %v4363_v53 = vpop.eup %4362 }
0x245d   : > { %3005 = vrot.lane.b32.xlu1 %v4363_v53, %s4443_s11  ;;  %v4365_v26 = vpop.eup %4364  ;;  %v3127_v53 = vunpack.c.l.bf16 %v4687_v13 }
0x245e   : > { %v2975_v20 = vadd.f32 1.0, %v4365_v26 }
0x2460   : > { %4366 = vrcp.f32 %v2975_v20 }
0x2461   : > { %4368 = vpow2.f32 %v3681_v63  ;;  %v3131_v63 = vrot.slane %v4629_v55, 4 }
0x246d   : > { %v4367_v45 = vpop.eup %4366 }
0x246e   : > { %v4369_v56 = vpop.eup %4368  ;;  %v2979_v23 = vmul.f32 %v4367_v45, %v5174_v27 }
0x246f   : > { %v2999_v28 = vadd.f32 1.0, %v4369_v56  ;;  %v3133_v56 = vunpack.c.l.bf16 %v3131_v63 }
0x2471   : > { %4370 = vrcp.f32 %v2999_v28 }
0x247e   : > { %v4371_v12 = vpop.eup %4370 }
0x247f   : > { %v3003_v62 = vmul.f32 %v4371_v12, %v5179_v50 }
0x2491   : > { %v2982_v58 = vpop.permute.xlu0 %2981 }
0x2492   : > { %v2984_v46 = vmul.f32 %v4367_v45, %v2982_v58 }
0x2494   : > { %2986 = vrot.lane.b32.xlu0 %v2984_v46, %s4444_s12 }
0x24cf   : > { %v3006_v15 = vpop.permute.xlu1 %3005 }
0x24d0   : > { %v3008_v61 = vmul.f32 %v4371_v12, %v3006_v15 }
0x24d2   : > { %3010 = vrot.lane.b32.xlu1 %v3008_v61, %s4444_s12 }
0x2506   : > { %v2987_v30 = vpop.permute.xlu0 %2986 }
0x2507   : > { %v5212_v57 = vadd.f32 %v2987_v30, %v2979_v23 }
0x2509   : > { %4372 = vtanh.f32 %v5212_v57 }
0x2516   : > { %v4373_v38 = vpop.eup %4372 }
0x2517   : > { %2992 = vrot.lane.b32.xlu0 %v4373_v38, %s4443_s11 }
0x2544   : > { %v3011_v51 = vpop.permute.xlu1 %3010 }
0x2545   : > { %v5217_v36 = vadd.f32 %v3011_v51, %v3003_v62 }
0x2547   : > { %4374 = vtanh.f32 %v5217_v36 }
0x2554   : > { %v4375_v1 = vpop.eup %4374 }
0x2555   : > { %3016 = vrot.lane.b32.xlu1 %v4375_v1, %s4443_s11 }
0x2589   : > { %v2993_v19 = vpop.permute.xlu0 %2992 }
0x258a   : > { %v2995_v27 = vmul.f32 %v4367_v45, %v2993_v19 }
0x258c   : > { %v5221_v49 = vpack.c.bf16 %v2995_v27, %v2995_v27 }
0x258e   : > { %3036 = vrot.lane.b32.xlu0 %v5221_v49, %s4444_s12 }
0x25c7   : > { %v3017_v33 = vpop.permute.xlu1 %3016 }
0x25c8   : > { %v3019_v37 = vmul.f32 %v4371_v12, %v3017_v33 }
0x25ca   : > { %v5225_v18 = vpack.c.bf16 %v3019_v37, %v3019_v37 }
0x25cc   : > { %3081 = vrot.lane.b32.xlu1 %v5225_v18, %s4444_s12 }
0x2600   : > { %v3037_v50 = vpop.permute.xlu0 %3036 }
0x2601   : > { %4078 = vmatmul.mubr.msk.bf16.vlgmr.msra.gmra.mxu0 %vm415_vm1, %v3037_v50 }
0x2602   : > { %4090 = vmatpush3.bf16.msra.mxu0 %v4412_v25  ;;  %4093 = vmatprep.mubr.msk.bf16.mxu0 %vm4442_vm0, %v4441_v21 }
0x2603   : > { %4091 = vmatprep.subr.bf16.mxu0 %v4441_v21 }
0x2606   : > { %4092 = vmatpush3.bf16.msra.mxu0 %v4413_v6 }
0x263e   : > { %v3082_v42 = vpop.permute.xlu1 %3081 }
0x263f   : > { %4086 = vmatmul.mubr.msk.bf16.vlgmr.msra.gmra.mxu1 %vm415_vm1, %v3082_v42 }
0x2640   : > { %4098 = vmatpush3.bf16.msra.mxu1 %v4414_v41  ;;  %4101 = vmatprep.mubr.msk.bf16.mxu1 %vm4442_vm0, %v4441_v21 }
0x2641   : > { %4099 = vmatprep.subr.bf16.mxu1 %v4441_v21 }
0x2644   : > { %4100 = vmatpush3.bf16.msra.mxu1 %v4415_v48 }
0x26c1   : > { %v3075_v7 = vpop.f32.mrf.mxu0 }
0x26c2   : > { %v3128_v26 = vadd.f32 %v3127_v53, %v3075_v7 }
0x26c3   : > { %v4079_v20 = vpop.f32.mrf.mxu0 }
0x26c4   : > { %4376 = vtanh.f32 %v3128_v26  ;;  %v3688_v13 = vmul.f32 -1.442695, %v3128_v26 }
0x26c5   : > { %v3078_v45 = vpop.f32.mrf.mxu0 }
0x26c7   : > { %v4080_v58 = vpop.f32.mrf.mxu0 }
0x26d1   : > { %v4377_v46 = vpop.eup %4376 }
0x26d2   : > { %3144 = vrot.lane.b32.xlu0 %v4377_v46, %s4443_s11 }
0x26ff   : > { %v3120_v21 = vpop.f32.mrf.mxu1 }
0x2700   : > { %v3134_v28 = vadd.f32 %v3133_v56, %v3120_v21  ;;  %v3290_v21 = vunpack.c.l.bf16 %v4691_v17 }
0x2701   : > { %v4087_v12 = vpop.f32.mrf.mxu1 }
0x2702   : > { %4378 = vtanh.f32 %v3134_v28  ;;  %v3689_v55 = vmul.f32 -1.442695, %v3134_v28 }
0x2703   : > { %v3123_v15 = vpop.f32.mrf.mxu1  ;;  %4380 = vpow2.f32 %v3688_v13 }
0x2705   : > { %v4088_v61 = vpop.f32.mrf.mxu1 }
0x270f   : > { %v4379_v23 = vpop.eup %4378 }
0x2710   : > { %3168 = vrot.lane.b32.xlu1 %v4379_v23, %s4443_s11  ;;  %v4381_v30 = vpop.eup %4380 }
0x2711   : > { %v3138_v38 = vadd.f32 1.0, %v4381_v30  ;;  %v3294_v30 = vrot.slane %v4624_v47, 4 }
0x2713   : > { %4382 = vrcp.f32 %v3138_v38  ;;  %v3296_v38 = vunpack.c.l.bf16 %v3294_v30 }
0x2714   : > { %4384 = vpow2.f32 %v3689_v55 }
0x2720   : > { %v4383_v62 = vpop.eup %4382 }
0x2721   : > { %v4385_v19 = vpop.eup %4384  ;;  %v3142_v25 = vmul.f32 %v4383_v62, %v5212_v57 }
0x2722   : > { %v3162_v27 = vadd.f32 1.0, %v4385_v19 }
0x2724   : > { %4386 = vrcp.f32 %v3162_v27 }
0x2731   : > { %v4387_v33 = vpop.eup %4386 }
0x2732   : > { %v3166_v48 = vmul.f32 %v4387_v33, %v5217_v36 }
0x2744   : > { %v3145_v51 = vpop.permute.xlu0 %3144 }
0x2745   : > { %v3147_v1 = vmul.f32 %v4383_v62, %v3145_v51 }
0x2747   : > { %3149 = vrot.lane.b32.xlu0 %v3147_v1, %s4444_s12 }
0x2782   : > { %v3169_v37 = vpop.permute.xlu1 %3168 }
0x2783   : > { %v3171_v50 = vmul.f32 %v4387_v33, %v3169_v37 }
0x2785   : > { %3173 = vrot.lane.b32.xlu1 %v3171_v50, %s4444_s12 }
0x27b9   : > { %v3150_v6 = vpop.permute.xlu0 %3149 }
0x27ba   : > { %v3152_v42 = vadd.f32 %v3150_v6, %v3142_v25 }
0x27bc   : > { %4388 = vtanh.f32 %v3152_v42 }
0x27c9   : > { %v4389_v41 = vpop.eup %4388 }
0x27ca   : > { %3155 = vrot.lane.b32.xlu0 %v4389_v41, %s4443_s11 }
0x27f7   : > { %v3174_v53 = vpop.permute.xlu1 %3173 }
0x27f8   : > { %v5258_v7 = vadd.f32 %v3174_v53, %v3166_v48 }
0x27fa   : > { %4390 = vtanh.f32 %v5258_v7 }
0x2807   : > { %v4391_v26 = vpop.eup %4390 }
0x2808   : > { %3179 = vrot.lane.b32.xlu1 %v4391_v26, %s4443_s11 }
0x283c   : > { %v3156_v20 = vpop.permute.xlu0 %3155 }
0x283d   : > { %v3158_v45 = vmul.f32 %v4383_v62, %v3156_v20 }
0x283f   : > { %v5262_v58 = vpack.c.bf16 %v3158_v45, %v3158_v45 }
0x2841   : > { %3199 = vrot.lane.b32.xlu0 %v5262_v58, %s4444_s12 }
0x287a   : > { %v3180_v57 = vpop.permute.xlu1 %3179 }
0x287b   : > { %v3182_v46 = vmul.f32 %v4387_v33, %v3180_v57 }
0x287d   : > { %v5266_v63 = vpack.c.bf16 %v3182_v46, %v3182_v46 }
0x287f   : > { %3244 = vrot.lane.b32.xlu1 %v5266_v63, %s4444_s12 }
0x28b3   : > { %v3200_v36 = vpop.permute.xlu0 %3199 }
0x28b4   : > { %4094 = vmatmul.mubr.msk.bf16.vlgmr.msra.gmra.mxu0 %vm415_vm1, %v3200_v36 }
0x28f1   : > { %v3245_v56 = vpop.permute.xlu1 %3244 }
0x28f2   : > { %4102 = vmatmul.mubr.msk.bf16.vlgmr.msra.gmra.mxu1 %vm415_vm1, %v3245_v56 }
0x2974   : > { %v3238_v28 = vpop.f32.mrf.mxu0 }
0x2975   : > { %v3291_v12 = vadd.f32 %v3290_v21, %v3238_v28 }
0x2976   : > { %v4095_v15 = vpop.f32.mrf.mxu0 }
0x2977   : > { %4392 = vtanh.f32 %v3291_v12  ;;  %v3696_v17 = vmul.f32 -1.442695, %v3291_v12 }
0x2978   : > { %v3241_v61 = vpop.f32.mrf.mxu0 }
0x297a   : > { %v4096_v23 = vpop.f32.mrf.mxu0 }
0x2984   : > { %v4393_v13 = vpop.eup %4392 }
0x2985   : > { %3307 = vrot.lane.b32.xlu0 %v4393_v13, %s4443_s11 }
0x29b2   : > { %v3283_v62 = vpop.f32.mrf.mxu1 }
0x29b3   : > { %v3297_v51 = vadd.f32 %v3296_v38, %v3283_v62 }
0x29b4   : > { %v4103_v1 = vpop.f32.mrf.mxu1 }
0x29b5   : > { %4394 = vtanh.f32 %v3297_v51  ;;  %v3697_v47 = vmul.f32 -1.442695, %v3297_v51 }
0x29b6   : > { %v3286_v55 = vpop.f32.mrf.mxu1  ;;  %4396 = vpow2.f32 %v3696_v17 }
0x29b8   : > { %v4104_v19 = vpop.f32.mrf.mxu1 }
0x29c2   : > { %v4395_v27 = vpop.eup %4394 }
0x29c3   : > { %3331 = vrot.lane.b32.xlu1 %v4395_v27, %s4443_s11  ;;  %v4397_v33 = vpop.eup %4396 }
0x29c4   : > { %v3301_v37 = vadd.f32 1.0, %v4397_v33 }
0x29c6   : > { %4398 = vrcp.f32 %v3301_v37 }
0x29c7   : > { %4400 = vpow2.f32 %v3697_v47 }
0x29d3   : > { %v4399_v50 = vpop.eup %4398 }
0x29d4   : > { %v4401_v41 = vpop.eup %4400  ;;  %v3305_v45 = vmul.f32 %v4399_v50, %v3152_v42 }
0x29d5   : > { %v3325_v48 = vadd.f32 1.0, %v4401_v41 }
0x29d7   : > { %4402 = vrcp.f32 %v3325_v48 }
0x29e4   : > { %v5277_v53 = vpop.eup %4402 }
0x29f7   : > { %v3308_v25 = vpop.permute.xlu0 %3307 }
0x29f8   : > { %v3310_v6 = vmul.f32 %v4399_v50, %v3308_v25 }
0x29fa   : > { %3312 = vrot.lane.b32.xlu0 %v3310_v6, %s4444_s12 }
0x2a35   : > { %v3332_v26 = vpop.permute.xlu1 %3331 }
0x2a36   : > { %v3334_v20 = vmul.f32 %v5277_v53, %v3332_v26 }
0x2a38   : > { %3336 = vrot.lane.b32.xlu1 %v3334_v20, %s4444_s12 }
0x2a6c   : > { %v3313_v57 = vpop.permute.xlu0 %3312 }
0x2a6d   : > { %v3315_v46 = vadd.f32 %v3313_v57, %v3305_v45 }
0x2a6f   : > { %4404 = vtanh.f32 %v3315_v46 }
0x2a7c   : > { %v4405_v36 = vpop.eup %4404 }
0x2a7d   : > { %3318 = vrot.lane.b32.xlu0 %v4405_v36, %s4443_s11 }
0x2a81   : > { %874 = vrot.lane.b32.xlu0 %v4707_v54, %s4444_s12  ;;  %v3329_v54 = vmul.f32 %v5277_v53, %v5258_v7 }
0x2a85   : > { %1042 = vrot.lane.b32.xlu0 %v4745_v59, %s4444_s12 }
0x2a89   : > { %1209 = vrot.lane.b32.xlu0 %v4783_v3, %s4444_s12 }
0x2a8d   : > { %1376 = vrot.lane.b32.xlu0 %v4821_v11, %s4444_s12 }
0x2a91   : > { %1543 = vrot.lane.b32.xlu0 %v4859_v29, %s4444_s12 }
0x2a95   : > { %1710 = vrot.lane.b32.xlu0 %v4897_v40, %s4444_s12 }
0x2a99   : > { %1877 = vrot.lane.b32.xlu0 %v4955_v43, %s4444_s12 }
0x2a9d   : > { %2044 = vrot.lane.b32.xlu0 %v4993_v31, %s4444_s12 }
0x2aa1   : > { %2209 = vrot.lane.b32.xlu0 %v5031_v0, %s4444_s12 }
0x2aa5   : > { %2372 = vrot.lane.b32.xlu0 %v5069_v32, %s4444_s12 }
0x2aa9   : > { %2535 = vrot.lane.b32.xlu0 %v5107_v44, %s4444_s12 }
0x2aaa   : > { %v3337_v59 = vpop.permute.xlu1 %3336 }
0x2aab   : > { %v3339_v3 = vadd.f32 %v3337_v59, %v3329_v54 }
0x2aad   : > { %4406 = vtanh.f32 %v3339_v3  ;;  %2698 = vrot.lane.b32.xlu0 %v5145_v22, %s4444_s12 }
0x2ab1   : > { %2861 = vrot.lane.b32.xlu0 %v5183_v52, %s4444_s12 }
0x2ab5   : > { %3024 = vrot.lane.b32.xlu0 %v5221_v49, %s4444_s12 }
0x2ab9   : > { %3187 = vrot.lane.b32.xlu0 %v5262_v58, %s4444_s12 }
0x2aba   : > { %v4407_v11 = vpop.eup %4406 }
0x2abb   : > { %3342 = vrot.lane.b32.xlu1 %v4407_v11, %s4443_s11 }
0x2abf   : > { %883 = vrot.lane.b32.xlu1 %v4711_v60, %s4443_s11 }
0x2ac3   : > { %1051 = vrot.lane.b32.xlu1 %v4749_v2, %s4443_s11 }
0x2ac7   : > { %1218 = vrot.lane.b32.xlu1 %v4787_v8, %s4443_s11 }
0x2acb   : > { %1385 = vrot.lane.b32.xlu1 %v4825_v16, %s4443_s11 }
0x2acf   : > { %1552 = vrot.lane.b32.xlu1 %v4863_v39, %s4443_s11 }
0x2ad3   : > { %1719 = vrot.lane.b32.xlu1 %v4901_v35, %s4443_s11 }
0x2ad7   : > { %1886 = vrot.lane.b32.xlu1 %v4959_v4, %s4443_s11 }
0x2adb   : > { %2053 = vrot.lane.b32.xlu1 %v4997_v14, %s4443_s11 }
0x2adf   : > { %2217 = vrot.lane.b32.xlu1 %v5035_v5, %s4443_s11 }
0x2ae3   : > { %2380 = vrot.lane.b32.xlu1 %v5073_v24, %s4443_s11 }
0x2ae7   : > { %2543 = vrot.lane.b32.xlu1 %v5111_v9, %s4443_s11 }
0x2aeb   : > { %2706 = vrot.lane.b32.xlu1 %v5149_v34, %s4443_s11 }
0x2aef   : > { %v3319_v60 = vpop.permute.xlu0 %3318  ;;  %2869 = vrot.lane.b32.xlu1 %v5187_v10, %s4443_s11 }
0x2af0   : > { %v3321_v2 = vmul.f32 %v4399_v50, %v3319_v60 }
0x2af2   : > { %v3751_v8 = vpack.c.bf16 %v3321_v2, %v3321_v2 }
0x2af3   : > { %v875_v16 = vpop.permute.xlu0 %874  ;;  %3032 = vrot.lane.b32.xlu1 %v5225_v18, %s4443_s11 }
0x2af4   : > { %878 = vst.msk [vmem:[%s5344_s13] sm:$0xf] %vm877_vm2, %v875_v16  ;;  %3350 = vrot.lane.b32.xlu0 %v3751_v8, %s4444_s12 }
0x2af7   : > { %v1043_v29 = vpop.permute.xlu0 %1042  ;;  %3195 = vrot.lane.b32.xlu1 %v5266_v63, %s4443_s11 }
0x2af8   : > { %3587 = vst.msk [vmem:[%s5344_s13 + $0x4] sm:$0xf] %vm877_vm2, %v1043_v29 }
0x2afb   : > { %v1210_v39 = vpop.permute.xlu0 %1209 }
0x2afc   : > { %3595 = vst.msk [vmem:[%s5344_s13 + $0x8] sm:$0xf] %vm877_vm2, %v1210_v39 }
0x2aff   : > { %v1377_v40 = vpop.permute.xlu0 %1376 }
0x2b00   : > { %3603 = vst.msk [vmem:[%s5344_s13 + $0xc] sm:$0xf] %vm877_vm2, %v1377_v40 }
0x2b03   : > { %v1544_v35 = vpop.permute.xlu0 %1543 }
0x2b04   : > { %3611 = vst.msk [vmem:[%s5344_s13 + $0x10] sm:$0xf] %vm877_vm2, %v1544_v35 }
0x2b07   : > { %v1711_v43 = vpop.permute.xlu0 %1710 }
0x2b08   : > { %3619 = vst.msk [vmem:[%s5344_s13 + $0x14] sm:$0xf] %vm877_vm2, %v1711_v43 }
0x2b0b   : > { %v1878_v4 = vpop.permute.xlu0 %1877 }
0x2b0c   : > { %3627 = vst.msk [vmem:[%s5344_s13 + $0x18] sm:$0xf] %vm877_vm2, %v1878_v4 }
0x2b0f   : > { %v2045_v31 = vpop.permute.xlu0 %2044 }
0x2b10   : > { %3635 = vst.msk [vmem:[%s5344_s13 + $0x1c] sm:$0xf] %vm877_vm2, %v2045_v31 }
0x2b13   : > { %v2210_v14 = vpop.permute.xlu0 %2209 }
0x2b17   : > { %v2373_v0 = vpop.permute.xlu0 %2372 }
0x2b1b   : > { %v2536_v5 = vpop.permute.xlu0 %2535 }
0x2b1f   : > { %v2699_v32 = vpop.permute.xlu0 %2698 }
0x2b23   : > { %v2862_v24 = vpop.permute.xlu0 %2861 }
0x2b27   : > { %v3025_v22 = vpop.permute.xlu0 %3024 }
0x2b2b   : > { %v3188_v49 = vpop.permute.xlu0 %3187 }
0x2b2d   : > { %v3343_v44 = vpop.permute.xlu1 %3342 }
0x2b2e   : > { %v3345_v9 = vmul.f32 %v5277_v53, %v3343_v44 }
0x2b30   : > { %v3752_v34 = vpack.c.bf16 %v3345_v9, %v3345_v9 }
0x2b31   : > { %v884_v52 = vpop.permute.xlu1 %883 }
0x2b32   : > { %3581 = vst.msk [vmem:[%s5344_s13 + $0x3c] sm:$0xf] %vm887_vm3, %v884_v52  ;;  %3358 = vrot.lane.b32.xlu1 %v3752_v34, %s4443_s11 }
0x2b35   : > { %v1052_v10 = vpop.permute.xlu1 %1051 }
0x2b36   : > { %3589 = vst.msk [vmem:[%s5344_s13 + $0x38] sm:$0xf] %vm887_vm3, %v1052_v10 }
0x2b37   : > { %3691 = vst.msk [vmem:[%s5344_s13 + $0x38] sm:$0xf] %vm877_vm2, %v3188_v49 }
0x2b39   : > { %v1219_v18 = vpop.permute.xlu1 %1218 }
0x2b3a   : > { %3597 = vst.msk [vmem:[%s5344_s13 + $0x34] sm:$0xf] %vm887_vm3, %v1219_v18 }
0x2b3b   : > { %3683 = vst.msk [vmem:[%s5344_s13 + $0x34] sm:$0xf] %vm877_vm2, %v3025_v22 }
0x2b3d   : > { %v1386_v42 = vpop.permute.xlu1 %1385 }
0x2b3e   : > { %3605 = vst.msk [vmem:[%s5344_s13 + $0x30] sm:$0xf] %vm887_vm3, %v1386_v42  ;;  %v3415_v48 = vld [vmem:[%s5344_s13 + $0x38] sm:$0xf] (%p4505_p5) }
0x2b3f   : > { %3675 = vst.msk [vmem:[%s5344_s13 + $0x30] sm:$0xf] %vm877_vm2, %v2862_v24  ;;  %3416 = vst [vmem:[%s3370_s15 + $0x70] sm:$0xf] (%p4505_p5), %v3415_v48 }
0x2b41   : > { %v1553_v7 = vpop.permute.xlu1 %1552 }
0x2b42   : > { %3613 = vst.msk [vmem:[%s5344_s13 + $0x2c] sm:$0xf] %vm887_vm3, %v1553_v7  ;;  %v3413_v41 = vld [vmem:[%s5344_s13 + $0x34] sm:$0xf] (%p4505_p5) }
0x2b43   : > { %3667 = vst.msk [vmem:[%s5344_s13 + $0x2c] sm:$0xf] %vm877_vm2, %v2699_v32  ;;  %3414 = vst [vmem:[%s3370_s15 + $0x68] sm:$0xf] (%p4505_p5), %v3413_v41 }
0x2b45   : > { %v1720_v58 = vpop.permute.xlu1 %1719 }
0x2b46   : > { %3621 = vst.msk [vmem:[%s5344_s13 + $0x28] sm:$0xf] %vm887_vm3, %v1720_v58  ;;  %v3411_v47 = vld [vmem:[%s5344_s13 + $0x30] sm:$0xf] (%p4505_p5) }
0x2b47   : > { %3659 = vst.msk [vmem:[%s5344_s13 + $0x28] sm:$0xf] %vm877_vm2, %v2536_v5  ;;  %3412 = vst [vmem:[%s3370_s15 + $0x60] sm:$0xf] (%p4505_p5), %v3411_v47 }
0x2b49   : > { %v1887_v63 = vpop.permute.xlu1 %1886 }
0x2b4a   : > { %3629 = vst.msk [vmem:[%s5344_s13 + $0x24] sm:$0xf] %vm887_vm3, %v1887_v63  ;;  %v3409_v6 = vld [vmem:[%s5344_s13 + $0x2c] sm:$0xf] (%p4505_p5) }
0x2b4b   : > { %3651 = vst.msk [vmem:[%s5344_s13 + $0x24] sm:$0xf] %vm877_vm2, %v2373_v0  ;;  %3410 = vst [vmem:[%s3370_s15 + $0x58] sm:$0xf] (%p4505_p5), %v3409_v6 }
0x2b4d   : > { %v2054_v56 = vpop.permute.xlu1 %2053 }
0x2b4e   : > { %3637 = vst.msk [vmem:[%s5344_s13 + $0x20] sm:$0xf] %vm887_vm3, %v2054_v56  ;;  %v3407_v25 = vld [vmem:[%s5344_s13 + $0x28] sm:$0xf] (%p4505_p5) }
0x2b4f   : > { %3643 = vst.msk [vmem:[%s5344_s13 + $0x20] sm:$0xf] %vm877_vm2, %v2210_v14  ;;  %3408 = vst [vmem:[%s3370_s15 + $0x50] sm:$0xf] (%p4505_p5), %v3407_v25 }
0x2b51   : > { %v2218_v21 = vpop.permute.xlu1 %2217 }
0x2b52   : > { %3645 = vst.msk [vmem:[%s5344_s13 + $0x1c] sm:$0xf] %vm887_vm3, %v2218_v21  ;;  %v3405_v50 = vld [vmem:[%s5344_s13 + $0x24] sm:$0xf] (%p4505_p5) }
0x2b53   : > { %3406 = vst [vmem:[%s3370_s15 + $0x48] sm:$0xf] (%p4505_p5), %v3405_v50 }
0x2b55   : > { %v2381_v28 = vpop.permute.xlu1 %2380 }
0x2b56   : > { %3653 = vst.msk [vmem:[%s5344_s13 + $0x18] sm:$0xf] %vm887_vm3, %v2381_v28  ;;  %v3403_v37 = vld [vmem:[%s5344_s13 + $0x20] sm:$0xf] (%p4505_p5) }
0x2b57   : > { %3404 = vst [vmem:[%s3370_s15 + $0x40] sm:$0xf] (%p4505_p5), %v3403_v37 }
0x2b59   : > { %v2544_v12 = vpop.permute.xlu1 %2543  ;;  %v3401_v33 = vld [vmem:[%s5344_s13 + $0x1c] sm:$0xf] (%p4505_p5) }
0x2b5a   : > { %3661 = vst.msk [vmem:[%s5344_s13 + $0x14] sm:$0xf] %vm887_vm3, %v2544_v12  ;;  %3402 = vst [vmem:[%s3370_s15 + $0x38] sm:$0xf] (%p4505_p5), %v3401_v33 }
0x2b5d   : > { %v2707_v15 = vpop.permute.xlu1 %2706  ;;  %v3399_v17 = vld [vmem:[%s5344_s13 + $0x18] sm:$0xf] (%p4505_p5) }
0x2b5e   : > { %3669 = vst.msk [vmem:[%s5344_s13 + $0x10] sm:$0xf] %vm887_vm3, %v2707_v15  ;;  %3400 = vst [vmem:[%s3370_s15 + $0x30] sm:$0xf] (%p4505_p5), %v3399_v17 }
0x2b61   : > { %v2870_v61 = vpop.permute.xlu1 %2869  ;;  %v3397_v27 = vld [vmem:[%s5344_s13 + $0x14] sm:$0xf] (%p4505_p5) }
0x2b62   : > { %3677 = vst.msk [vmem:[%s5344_s13 + $0xc] sm:$0xf] %vm887_vm3, %v2870_v61  ;;  %3398 = vst [vmem:[%s3370_s15 + $0x28] sm:$0xf] (%p4505_p5), %v3397_v27 }
0x2b65   : > { %v3033_v23 = vpop.permute.xlu1 %3032  ;;  %v3395_v19 = vld [vmem:[%s5344_s13 + $0x10] sm:$0xf] (%p4505_p5) }
0x2b66   : > { %3685 = vst.msk [vmem:[%s5344_s13 + $0x8] sm:$0xf] %vm887_vm3, %v3033_v23  ;;  %v3351_v13 = vpop.permute.xlu0 %3350  ;;  %3396 = vst [vmem:[%s3370_s15 + $0x20] sm:$0xf] (%p4505_p5), %v3395_v19 }
0x2b67   : > { %3699 = vst.msk [vmem:[%s5344_s13 + $0x3c] sm:$0xf] %vm877_vm2, %v3351_v13 }
0x2b69   : > { %v3196_v30 = vpop.permute.xlu1 %3195  ;;  %v3393_v55 = vld [vmem:[%s5344_s13 + $0xc] sm:$0xf] (%p4505_p5) }
0x2b6a   : > { %3693 = vst.msk [vmem:[%s5344_s13 + $0x4] sm:$0xf] %vm887_vm3, %v3196_v30  ;;  %3394 = vst [vmem:[%s3370_s15 + $0x18] sm:$0xf] (%p4505_p5), %v3393_v55 }
0x2b6d   : > { %v3391_v1 = vld [vmem:[%s5344_s13 + $0x8] sm:$0xf] (%p4505_p5) }
0x2b6e   : > { %3392 = vst [vmem:[%s3370_s15 + $0x10] sm:$0xf] (%p4505_p5), %v3391_v1  ;;  %v3417_v53 = vld [vmem:[%s5344_s13 + $0x3c] sm:$0xf] (%p4505_p5) }
0x2b6f   : > { %3418 = vst [vmem:[%s3370_s15 + $0x78] sm:$0xf] (%p4505_p5), %v3417_v53 }
0x2b71   : > { %v3389_v51 = vld [vmem:[%s5344_s13 + $0x4] sm:$0xf] (%p4505_p5) }
0x2b72   : > { %3390 = vst [vmem:[%s3370_s15 + $0x8] sm:$0xf] (%p4505_p5), %v3389_v51 }
0x2ba1   : > { %3368 = sbr.rel (!%p4505_p5) target bundleno = 11182 (0x2bae), region = 85 }
0x2ba4   : > { %v3359_v38 = vpop.permute.xlu1 %3358 }
0x2ba5   : > { %3361 = vst.msk [vmem:[%s5344_s13] sm:$0xf] %vm887_vm3, %v3359_v38 }
0x2bac   : > { %v3387_v62 = vld [vmem:[%s5344_s13] sm:$0xf] }
0x2bad   : > { %3388 = vst [vmem:[%s3370_s15] sm:$0xf] %v3387_v62 }
0x2bae PF: > { %p12_p10 = scmp.ge.s32.totalorder %s4492_s22, 4   ;;  %s5455_s18 = smov %s4434_s19 }
0x2baf   : > { %s5456_s19 = smov %s4503_s25  ;;  %s5457_s20 = smov %s4492_s22 }
0x2bb0   :  { %14 = sbr.rel (!%p12_p10) target bundleno = 2 (0x2), region = 187 }

</bundles_post_ra>
